<compile_context>
chip_gen: v7x
topology: tpu7x:2x2x1
jax: 0.10.0
libtpu: 0.0.40
codegen_flags: <defaults>
</compile_context>

<pallas_src>
import functools
import math

import numpy as np
import jax
import jax.numpy as jnp
from jax.experimental import pallas as pl
from jax.experimental.pallas import tpu as pltpu


def _dilated_attn_kernel(w_ref, q_ref, k_ref, v_ref, o_ref, *scratch,
                         w_list, r_list, scale, approx_recip, use_strided):
    """One (TBH, TS, D) block; every dilation group fused.

    w_ref        : SMEM (n_groups,) f32 — softmax(alpha) group weights (scalar prefetch).
    q/k/v/o_ref  : VMEM (TBH, TS, D) blocks of the (B*H, S, D) tensors.
    scratch      : optional f32 VMEM accumulator (only when the I/O dtype is not f32;
                   for f32 the output block itself is the accumulator).
    """
    tbh, ts, d = q_ref.shape
    acc_ref = scratch[0] if scratch else o_ref
    first_covers_all = (r_list[0] == 1)     # dense group first -> init by set, no zero-fill

    if not first_covers_all:
        acc_ref[...] = jnp.zeros_like(acc_ref)

    for gi, (w, r) in enumerate(zip(w_list, r_list)):
        L = w // r              # dilated positions per segment
        n_seg = ts // w         # segments inside this block
        wt = w_ref[gi]          # group weight (SMEM f32 scalar)

        def _idx(j_off, n_seg=n_seg, w=w):
            # rows {seg*w + j_off : seg in [0, n_seg)} — a sublane-strided window.
            if n_seg == 1:
                return pl.ds(j_off, 1)
            if w == 1:
                return pl.ds(j_off, n_seg)
            return pl.ds(j_off, n_seg, stride=w)

        # ---- dilated gather -------------------------------------------------
        if use_strided:
            # One strided slab per in-segment dilated slot: touches only the rows
            # this group needs, straight from VMEM, no relayout copies.
            q_slabs = [q_ref[:, _idx(j * r), :] for j in range(L)]
            k_slabs = [k_ref[:, _idx(j * r), :] for j in range(L)]
            v_slabs = [v_ref[:, _idx(j * r), :] for j in range(L)]
        else:
            # Fallback (older jax without strided ref indexing): value-level gather.
            def _slabs_of(ref, r=r, w=w, n_seg=n_seg, L=L):
                x = ref[...].reshape(tbh, n_seg, w, d)
                return [x[:, :, j * r, :] for j in range(L)]
            q_slabs = _slabs_of(q_ref)
            k_slabs = _slabs_of(k_ref)
            v_slabs = _slabs_of(v_ref)

        out_slabs = []          # only used on the fallback scatter path
        for i in range(L):
            # ---- scores / softmax: lane-dense (TBH, n_seg) tensors ----------
            # products stay in the input dtype (bf16 VPU on v6e/v7x); the d-axis
            # reduction and the softmax run in f32.
            s_i = [jnp.sum((q_slabs[i] * k_slabs[j]).astype(jnp.float32), axis=-1) * scale
                   for j in range(L)]
            m_i = functools.reduce(jnp.maximum, s_i)
            p_i = [jnp.exp(x - m_i) for x in s_i]
            denom = functools.reduce(lambda a, b: a + b, p_i)
            if approx_recip:
                inv = pl.reciprocal(denom, approx=True)   # EUP slot, fine for bf16
            else:
                inv = 1.0 / denom                         # exact: f32 parity with reference
            # Fold the group weight into the reciprocal so the weighting rides on the
            # tiny (TBH, n_seg) tensor instead of a full (TBH, TS, D) pass.
            inv_w = inv * wt

            # ---- weighted value combination: (TBH, n_seg, D) ----------------
            o_i = (p_i[0] * inv_w)[..., None] * v_slabs[0].astype(jnp.float32)
            for j in range(1, L):
                o_i = o_i + (p_i[j] * inv_w)[..., None] * v_slabs[j].astype(jnp.float32)
            o_i = o_i.astype(acc_ref.dtype)

            # ---- zero-padded scatter-accumulate back to rows {seg*w + i*r} ---
            if use_strided:
                dst = (slice(None), _idx(i * r), slice(None))
                if gi == 0 and first_covers_all:
                    acc_ref[dst] = o_i                     # dense group: init by set
                else:
                    acc_ref[dst] = acc_ref[dst] + o_i      # strided read-modify-write
            else:
                out_slabs.append(o_i)

        if not use_strided:
            # Fallback scatter: interleave the L slot-slabs with zero rows and add.
            zero = jnp.zeros((tbh, n_seg, d), acc_ref.dtype)
            parts = []
            for i in range(L):
                parts.append(out_slabs[i])
                parts.extend([zero] * (r - 1))
            group_full = jnp.stack(parts, axis=2).reshape(tbh, ts, d)
            if gi == 0 and first_covers_all:
                acc_ref[...] = group_full
            else:
                acc_ref[...] = acc_ref[...] + group_full

    if scratch:
        o_ref[...] = acc_ref[...].astype(o_ref.dtype)


def _choose_tiles(bh, s, d, itemsize, seg, target_block_bytes):
    """Pick (TBH, TS) block sizes.

    Budget per grid step: 4 I/O operands x 2 pipeline buffers + (optional) f32
    accumulator + ~3-4 block-sized in-kernel temporaries  =>  ~12-14x one block,
    so the ~1 MiB/operand default stays well inside v7x's 64 MiB VMEM; on v6e/v5e
    (128 MiB) target_block_bytes can be raised to 2-4 MiB to get closer to the
    HBM roofline and amortize the ~0.35 us per-grid-step overhead.
    """
    sub = {1: 32, 2: 16}.get(itemsize, 8)          # dtype-aware sublane packing unit
    unit = (seg * sub) // math.gcd(seg, sub)       # lcm(every window, sublane pack)
    target_elems = max(1, target_block_bytes // max(itemsize, 1))

    # Sequence tile: largest multiple of `unit` that divides S within the budget.
    if s % unit == 0:
        ts = unit
        cap = max(unit, target_elems // max(d, 1))
        m = unit
        while m <= min(s, cap):
            if s % m == 0:
                ts = m
            m += unit
    else:
        ts = s

    # batch*heads tile.
    cap_bh = max(1, target_elems // (ts * d))
    tbh = 1
    for t in range(1, min(bh, cap_bh) + 1):
        if bh % t == 0:
            tbh = t

    # v7x runs two TensorCores over the "parallel" grid axes: keep >= 4 grid steps
    # when the problem allows it, preferring to split batch*heads (no-op for 1-TC
    # v5e/v6e beyond negligible per-step overhead).
    def n_steps():
        return (bh // tbh) * (s // ts)

    while n_steps() < 4 and tbh > 1:
        tbh = max(t for t in range(1, tbh) if tbh % t == 0)
    while n_steps() < 4 and s % unit == 0 and ts > unit:
        cands = [m for m in range(unit, ts, unit) if s % m == 0]
        if not cands:
            break
        ts = max(cands)
    return tbh, ts


def dilated_attention_forward(q, k, v, alpha, w_list=(4, 8, 16), r_list=(1, 2, 4),
                              *, target_block_bytes=1 << 20):
    b, h, s, d = q.shape
    assert len(w_list) == len(r_list), "w and r need to have equal number of elements"
    assert any(s % w == 0 for w in w_list), (
        f"Input sequence length {s} is not divisible by any in w: {w_list}")
    # The reference rearranges every group, so every window must divide S.
    assert all(s % w == 0 for w in w_list), (
        f"sequence length {s} must be divisible by every window in {w_list}")
    # TODO(synk): general (w % r != 0) dilation would need an in-kernel gather table;
    # the module's default config always satisfies w % r == 0.
    assert all(w % r == 0 for w, r in zip(w_list, r_list)), "w must be divisible by r"

    weights = jax.nn.softmax(jnp.asarray(alpha, jnp.float32))   # (n_groups,) -> SMEM
    scale = float(d) ** (-0.5)

    bh = b * h
    q3 = q.reshape(bh, s, d)        # free reshapes — no layout change
    k3 = k.reshape(bh, s, d)
    v3 = v.reshape(bh, s, d)

    seg = functools.reduce(math.lcm, w_list)
    tbh, ts = _choose_tiles(bh, s, d, q.dtype.itemsize, seg, target_block_bytes)
    grid = (bh // tbh, s // ts)

    out_is_f32 = jnp.dtype(q.dtype) == jnp.dtype(jnp.float32)
    # f32: accumulate directly in the output block.  Narrower dtypes: f32 scratch,
    # approximate (EUP) reciprocal is accurate enough at bf16 precision.
    scratch = [] if out_is_f32 else [pltpu.VMEM((tbh, ts, d), jnp.float32)]
    approx_recip = not out_is_f32

    spec = pl.BlockSpec((tbh, ts, d), lambda i, j, wts: (i, j, 0))
    # Scoped VMEM: blocks + temporaries (see _choose_tiles), capped for v7x's 64 MiB.
    vmem_limit = int(min(96 << 20, max(32 << 20, 16 * target_block_bytes)))

    def build(use_strided):
        kernel = functools.partial(
            _dilated_attn_kernel, w_list=tuple(w_list), r_list=tuple(r_list),
            scale=scale, approx_recip=approx_recip, use_strided=use_strided)
        return pl.pallas_call(
            kernel,
            out_shape=jax.ShapeDtypeStruct((bh, s, d), q.dtype),
            grid_spec=pltpu.PrefetchScalarGridSpec(
                num_scalar_prefetch=1,              # softmax(alpha) weights -> SMEM
                grid=grid,
                in_specs=[spec, spec, spec],
                out_specs=spec,
                scratch_shapes=scratch),
            compiler_params=pltpu.CompilerParams(
                dimension_semantics=("parallel", "parallel"),
                vmem_limit_bytes=vmem_limit),
        )

    try:
        out3 = build(use_strided=True)(weights, q3, k3, v3)
    except Exception:
        # TODO(synk): sublane-strided ref indexing (pl.ds(..., stride=w)) is the fast
        # path for the dilation gather/scatter; fall back to a value-level
        # reshape/stack gather-scatter if this jax/libtpu build rejects it.
        out3 = build(use_strided=False)(weights, q3, k3, v3)

    return out3.reshape(b, h, s, d)


def _reference_forward(q, k, v, alpha, w_list=(4, 8, 16), r_list=(1, 2, 4)):
    """Pure-JAX reference for validation (same math, no Pallas)."""
    b, h, s, d = q.shape
    weights = jax.nn.softmax(alpha)
    out = jnp.zeros((b, h, s, d), jnp.float32)
    for i, (w, r) in enumerate(zip(w_list, r_list)):
        n = s // w
        idx = np.arange(0, w, r)
        if idx.size == 0:
            idx = np.array([w - 1])
        pos = (np.arange(n)[:, None] * w + idx[None, :]).reshape(-1)
        qs = q[:, :, pos, :].reshape(b, h, n, idx.size, d)
        ks = k[:, :, pos, :].reshape(b, h, n, idx.size, d)
        vs = v[:, :, pos, :].reshape(b, h, n, idx.size, d)
        attn = jnp.einsum("bhnid,bhnjd->bhnij", qs, ks) * (float(d) ** -0.5)
        attn = jax.nn.softmax(attn, axis=-1)
        o = jnp.einsum("bhnij,bhnjd->bhnid", attn, vs).reshape(b, h, n * idx.size, d)
        out_i = jnp.zeros((b, h, s, d), jnp.float32).at[:, :, pos, :].set(o)
        out = out + weights[i] * out_i
    return out


if __name__ == "__main__":
    key = jax.random.PRNGKey(0)
    kq, kk, kv = jax.random.split(key, 3)

    B, H, S, D = 2, 4, 16, 32          # S=16 is divisible by every w in (4, 8, 16)
    q = jax.random.normal(kq, (B, H, S, D), dtype=jnp.float32)
    k = jax.random.normal(kk, (B, H, S, D), dtype=jnp.float32)
    v = jax.random.normal(kv, (B, H, S, D), dtype=jnp.float32)

    # nn.Parameter(torch.ones(n_groups)) — deterministic init
    alpha = jnp.ones((3,), dtype=jnp.float32)

    out = jax.block_until_ready(dilated_attention_forward(q, k, v, alpha))
    ref = jax.block_until_ready(_reference_forward(q, k, v, alpha))
    np.testing.assert_allclose(np.asarray(out), np.asarray(ref), atol=1e-4, rtol=1e-4)

    print("KERNEL_OK")
</pallas_src>

<mosaic_0001>
module attributes {stable_mosaic.version = 11 : i64} {
  func.func @_dilated_attn_kernel(%arg0: i32, %arg1: i32, %arg2: memref<3xf32, #tpu.memory_space<smem>>, %arg3: memref<2x16x32xf32, #tpu.memory_space<vmem>>, %arg4: memref<2x16x32xf32, #tpu.memory_space<vmem>>, %arg5: memref<2x16x32xf32, #tpu.memory_space<vmem>>, %arg6: memref<2x16x32xf32, #tpu.memory_space<vmem>>) attributes {dimension_semantics = [#tpu.dimension_semantics<parallel>, #tpu.dimension_semantics<parallel>], iteration_bounds = array<i64: 4, 1>, scalar_prefetch = 1 : i64, scratch_operands = 0 : i64, tpu.core_type = #tpu.core_type<tc>, window_params = [{transform_indices = @transform_0, window_bounds = array<i64: 2, 16, 32>}, {transform_indices = @transform_1, window_bounds = array<i64: 2, 16, 32>}, {transform_indices = @transform_2, window_bounds = array<i64: 2, 16, 32>}, {transform_indices = @transform_3, window_bounds = array<i64: 2, 16, 32>}]} {
    %c0 = arith.constant 0 : index
    %0 = memref.load %arg2[%c0] : memref<3xf32, #tpu.memory_space<smem>>
    %c0_0 = arith.constant 0 : index
    %c0_1 = arith.constant 0 : index
    %c0_2 = arith.constant 0 : index
    %1 = tpu.strided_load %arg3[%c0_0, %c0_1, %c0_2] {strides = array<i32: 1, 4, 1>} : memref<2x16x32xf32, #tpu.memory_space<vmem>>, vector<2x4x32xf32>
    %c0_3 = arith.constant 0 : index
    %c1 = arith.constant 1 : index
    %c0_4 = arith.constant 0 : index
    %2 = tpu.strided_load %arg3[%c0_3, %c1, %c0_4] {strides = array<i32: 1, 4, 1>} : memref<2x16x32xf32, #tpu.memory_space<vmem>>, vector<2x4x32xf32>
    %c0_5 = arith.constant 0 : index
    %c2 = arith.constant 2 : index
    %c0_6 = arith.constant 0 : index
    %3 = tpu.strided_load %arg3[%c0_5, %c2, %c0_6] {strides = array<i32: 1, 4, 1>} : memref<2x16x32xf32, #tpu.memory_space<vmem>>, vector<2x4x32xf32>
    %c0_7 = arith.constant 0 : index
    %c3 = arith.constant 3 : index
    %c0_8 = arith.constant 0 : index
    %4 = tpu.strided_load %arg3[%c0_7, %c3, %c0_8] {strides = array<i32: 1, 4, 1>} : memref<2x16x32xf32, #tpu.memory_space<vmem>>, vector<2x4x32xf32>
    %c0_9 = arith.constant 0 : index
    %c0_10 = arith.constant 0 : index
    %c0_11 = arith.constant 0 : index
    %5 = tpu.strided_load %arg4[%c0_9, %c0_10, %c0_11] {strides = array<i32: 1, 4, 1>} : memref<2x16x32xf32, #tpu.memory_space<vmem>>, vector<2x4x32xf32>
    %c0_12 = arith.constant 0 : index
    %c1_13 = arith.constant 1 : index
    %c0_14 = arith.constant 0 : index
    %6 = tpu.strided_load %arg4[%c0_12, %c1_13, %c0_14] {strides = array<i32: 1, 4, 1>} : memref<2x16x32xf32, #tpu.memory_space<vmem>>, vector<2x4x32xf32>
    %c0_15 = arith.constant 0 : index
    %c2_16 = arith.constant 2 : index
    %c0_17 = arith.constant 0 : index
    %7 = tpu.strided_load %arg4[%c0_15, %c2_16, %c0_17] {strides = array<i32: 1, 4, 1>} : memref<2x16x32xf32, #tpu.memory_space<vmem>>, vector<2x4x32xf32>
    %c0_18 = arith.constant 0 : index
    %c3_19 = arith.constant 3 : index
    %c0_20 = arith.constant 0 : index
    %8 = tpu.strided_load %arg4[%c0_18, %c3_19, %c0_20] {strides = array<i32: 1, 4, 1>} : memref<2x16x32xf32, #tpu.memory_space<vmem>>, vector<2x4x32xf32>
    %c0_21 = arith.constant 0 : index
    %c0_22 = arith.constant 0 : index
    %c0_23 = arith.constant 0 : index
    %9 = tpu.strided_load %arg5[%c0_21, %c0_22, %c0_23] {strides = array<i32: 1, 4, 1>} : memref<2x16x32xf32, #tpu.memory_space<vmem>>, vector<2x4x32xf32>
    %c0_24 = arith.constant 0 : index
    %c1_25 = arith.constant 1 : index
    %c0_26 = arith.constant 0 : index
    %10 = tpu.strided_load %arg5[%c0_24, %c1_25, %c0_26] {strides = array<i32: 1, 4, 1>} : memref<2x16x32xf32, #tpu.memory_space<vmem>>, vector<2x4x32xf32>
    %c0_27 = arith.constant 0 : index
    %c2_28 = arith.constant 2 : index
    %c0_29 = arith.constant 0 : index
    %11 = tpu.strided_load %arg5[%c0_27, %c2_28, %c0_29] {strides = array<i32: 1, 4, 1>} : memref<2x16x32xf32, #tpu.memory_space<vmem>>, vector<2x4x32xf32>
    %c0_30 = arith.constant 0 : index
    %c3_31 = arith.constant 3 : index
    %c0_32 = arith.constant 0 : index
    %12 = tpu.strided_load %arg5[%c0_30, %c3_31, %c0_32] {strides = array<i32: 1, 4, 1>} : memref<2x16x32xf32, #tpu.memory_space<vmem>>, vector<2x4x32xf32>
    %13 = arith.mulf %1, %5 : vector<2x4x32xf32>
    %cst = arith.constant dense<0.000000e+00> : vector<2x4xf32>
    %14 = vector.multi_reduction <add>, %13, %cst [2] : vector<2x4x32xf32> to vector<2x4xf32>
    %cst_33 = arith.constant 0.176776692 : f32
    %15 = vector.broadcast %cst_33 : f32 to vector<2x4xf32>
    %16 = arith.mulf %14, %15 : vector<2x4xf32>
    %17 = arith.mulf %1, %6 : vector<2x4x32xf32>
    %cst_34 = arith.constant dense<0.000000e+00> : vector<2x4xf32>
    %18 = vector.multi_reduction <add>, %17, %cst_34 [2] : vector<2x4x32xf32> to vector<2x4xf32>
    %cst_35 = arith.constant 0.176776692 : f32
    %19 = vector.broadcast %cst_35 : f32 to vector<2x4xf32>
    %20 = arith.mulf %18, %19 : vector<2x4xf32>
    %21 = arith.mulf %1, %7 : vector<2x4x32xf32>
    %cst_36 = arith.constant dense<0.000000e+00> : vector<2x4xf32>
    %22 = vector.multi_reduction <add>, %21, %cst_36 [2] : vector<2x4x32xf32> to vector<2x4xf32>
    %cst_37 = arith.constant 0.176776692 : f32
    %23 = vector.broadcast %cst_37 : f32 to vector<2x4xf32>
    %24 = arith.mulf %22, %23 : vector<2x4xf32>
    %25 = arith.mulf %1, %8 : vector<2x4x32xf32>
    %cst_38 = arith.constant dense<0.000000e+00> : vector<2x4xf32>
    %26 = vector.multi_reduction <add>, %25, %cst_38 [2] : vector<2x4x32xf32> to vector<2x4xf32>
    %cst_39 = arith.constant 0.176776692 : f32
    %27 = vector.broadcast %cst_39 : f32 to vector<2x4xf32>
    %28 = arith.mulf %26, %27 : vector<2x4xf32>
    %29 = arith.maximumf %16, %20 : vector<2x4xf32>
    %30 = arith.maximumf %29, %24 : vector<2x4xf32>
    %31 = arith.maximumf %30, %28 : vector<2x4xf32>
    %32 = arith.subf %16, %31 : vector<2x4xf32>
    %33 = math.exp %32 : vector<2x4xf32>
    %34 = arith.subf %20, %31 : vector<2x4xf32>
    %35 = math.exp %34 : vector<2x4xf32>
    %36 = arith.subf %24, %31 : vector<2x4xf32>
    %37 = math.exp %36 : vector<2x4xf32>
    %38 = arith.subf %28, %31 : vector<2x4xf32>
    %39 = math.exp %38 : vector<2x4xf32>
    %40 = arith.addf %33, %35 : vector<2x4xf32>
    %41 = arith.addf %40, %37 : vector<2x4xf32>
    %42 = arith.addf %41, %39 : vector<2x4xf32>
    %cst_40 = arith.constant 1.000000e+00 : f32
    %43 = vector.broadcast %cst_40 : f32 to vector<2x4xf32>
    %44 = arith.divf %43, %42 : vector<2x4xf32>
    %45 = vector.broadcast %0 : f32 to vector<2x4xf32>
    %46 = arith.mulf %44, %45 : vector<2x4xf32>
    %47 = arith.mulf %33, %46 : vector<2x4xf32>
    %48 = vector.shape_cast %47 : vector<2x4xf32> to vector<2x4x1xf32>
    %49 = vector.broadcast %48 : vector<2x4x1xf32> to vector<2x4x32xf32>
    %50 = arith.mulf %49, %9 : vector<2x4x32xf32>
    %51 = arith.mulf %35, %46 : vector<2x4xf32>
    %52 = vector.shape_cast %51 : vector<2x4xf32> to vector<2x4x1xf32>
    %53 = vector.broadcast %52 : vector<2x4x1xf32> to vector<2x4x32xf32>
    %54 = arith.mulf %53, %10 : vector<2x4x32xf32>
    %55 = arith.addf %50, %54 : vector<2x4x32xf32>
    %56 = arith.mulf %37, %46 : vector<2x4xf32>
    %57 = vector.shape_cast %56 : vector<2x4xf32> to vector<2x4x1xf32>
    %58 = vector.broadcast %57 : vector<2x4x1xf32> to vector<2x4x32xf32>
    %59 = arith.mulf %58, %11 : vector<2x4x32xf32>
    %60 = arith.addf %55, %59 : vector<2x4x32xf32>
    %61 = arith.mulf %39, %46 : vector<2x4xf32>
    %62 = vector.shape_cast %61 : vector<2x4xf32> to vector<2x4x1xf32>
    %63 = vector.broadcast %62 : vector<2x4x1xf32> to vector<2x4x32xf32>
    %64 = arith.mulf %63, %12 : vector<2x4x32xf32>
    %65 = arith.addf %60, %64 : vector<2x4x32xf32>
    %c0_41 = arith.constant 0 : index
    %c0_42 = arith.constant 0 : index
    %c0_43 = arith.constant 0 : index
    %66 = tpu.strided_load %arg6[%c0_41, %c0_42, %c0_43] {strides = array<i32: 1, 4, 1>} : memref<2x16x32xf32, #tpu.memory_space<vmem>>, vector<2x4x32xf32>
    tpu.strided_store %arg6[%c0_41, %c0_42, %c0_43], %65 {strides = array<i32: 1, 4, 1>} : memref<2x16x32xf32, #tpu.memory_space<vmem>>, vector<2x4x32xf32>
    %67 = arith.mulf %2, %5 : vector<2x4x32xf32>
    %cst_44 = arith.constant dense<0.000000e+00> : vector<2x4xf32>
    %68 = vector.multi_reduction <add>, %67, %cst_44 [2] : vector<2x4x32xf32> to vector<2x4xf32>
    %cst_45 = arith.constant 0.176776692 : f32
    %69 = vector.broadcast %cst_45 : f32 to vector<2x4xf32>
    %70 = arith.mulf %68, %69 : vector<2x4xf32>
    %71 = arith.mulf %2, %6 : vector<2x4x32xf32>
    %cst_46 = arith.constant dense<0.000000e+00> : vector<2x4xf32>
    %72 = vector.multi_reduction <add>, %71, %cst_46 [2] : vector<2x4x32xf32> to vector<2x4xf32>
    %cst_47 = arith.constant 0.176776692 : f32
    %73 = vector.broadcast %cst_47 : f32 to vector<2x4xf32>
    %74 = arith.mulf %72, %73 : vector<2x4xf32>
    %75 = arith.mulf %2, %7 : vector<2x4x32xf32>
    %cst_48 = arith.constant dense<0.000000e+00> : vector<2x4xf32>
    %76 = vector.multi_reduction <add>, %75, %cst_48 [2] : vector<2x4x32xf32> to vector<2x4xf32>
    %cst_49 = arith.constant 0.176776692 : f32
    %77 = vector.broadcast %cst_49 : f32 to vector<2x4xf32>
    %78 = arith.mulf %76, %77 : vector<2x4xf32>
    %79 = arith.mulf %2, %8 : vector<2x4x32xf32>
    %cst_50 = arith.constant dense<0.000000e+00> : vector<2x4xf32>
    %80 = vector.multi_reduction <add>, %79, %cst_50 [2] : vector<2x4x32xf32> to vector<2x4xf32>
    %cst_51 = arith.constant 0.176776692 : f32
    %81 = vector.broadcast %cst_51 : f32 to vector<2x4xf32>
    %82 = arith.mulf %80, %81 : vector<2x4xf32>
    %83 = arith.maximumf %70, %74 : vector<2x4xf32>
    %84 = arith.maximumf %83, %78 : vector<2x4xf32>
    %85 = arith.maximumf %84, %82 : vector<2x4xf32>
    %86 = arith.subf %70, %85 : vector<2x4xf32>
    %87 = math.exp %86 : vector<2x4xf32>
    %88 = arith.subf %74, %85 : vector<2x4xf32>
    %89 = math.exp %88 : vector<2x4xf32>
    %90 = arith.subf %78, %85 : vector<2x4xf32>
    %91 = math.exp %90 : vector<2x4xf32>
    %92 = arith.subf %82, %85 : vector<2x4xf32>
    %93 = math.exp %92 : vector<2x4xf32>
    %94 = arith.addf %87, %89 : vector<2x4xf32>
    %95 = arith.addf %94, %91 : vector<2x4xf32>
    %96 = arith.addf %95, %93 : vector<2x4xf32>
    %cst_52 = arith.constant 1.000000e+00 : f32
    %97 = vector.broadcast %cst_52 : f32 to vector<2x4xf32>
    %98 = arith.divf %97, %96 : vector<2x4xf32>
    %99 = vector.broadcast %0 : f32 to vector<2x4xf32>
    %100 = arith.mulf %98, %99 : vector<2x4xf32>
    %101 = arith.mulf %87, %100 : vector<2x4xf32>
    %102 = vector.shape_cast %101 : vector<2x4xf32> to vector<2x4x1xf32>
    %103 = vector.broadcast %102 : vector<2x4x1xf32> to vector<2x4x32xf32>
    %104 = arith.mulf %103, %9 : vector<2x4x32xf32>
    %105 = arith.mulf %89, %100 : vector<2x4xf32>
    %106 = vector.shape_cast %105 : vector<2x4xf32> to vector<2x4x1xf32>
    %107 = vector.broadcast %106 : vector<2x4x1xf32> to vector<2x4x32xf32>
    %108 = arith.mulf %107, %10 : vector<2x4x32xf32>
    %109 = arith.addf %104, %108 : vector<2x4x32xf32>
    %110 = arith.mulf %91, %100 : vector<2x4xf32>
    %111 = vector.shape_cast %110 : vector<2x4xf32> to vector<2x4x1xf32>
    %112 = vector.broadcast %111 : vector<2x4x1xf32> to vector<2x4x32xf32>
    %113 = arith.mulf %112, %11 : vector<2x4x32xf32>
    %114 = arith.addf %109, %113 : vector<2x4x32xf32>
    %115 = arith.mulf %93, %100 : vector<2x4xf32>
    %116 = vector.shape_cast %115 : vector<2x4xf32> to vector<2x4x1xf32>
    %117 = vector.broadcast %116 : vector<2x4x1xf32> to vector<2x4x32xf32>
    %118 = arith.mulf %117, %12 : vector<2x4x32xf32>
    %119 = arith.addf %114, %118 : vector<2x4x32xf32>
    %c0_53 = arith.constant 0 : index
    %c1_54 = arith.constant 1 : index
    %c0_55 = arith.constant 0 : index
    %120 = tpu.strided_load %arg6[%c0_53, %c1_54, %c0_55] {strides = array<i32: 1, 4, 1>} : memref<2x16x32xf32, #tpu.memory_space<vmem>>, vector<2x4x32xf32>
    tpu.strided_store %arg6[%c0_53, %c1_54, %c0_55], %119 {strides = array<i32: 1, 4, 1>} : memref<2x16x32xf32, #tpu.memory_space<vmem>>, vector<2x4x32xf32>
    %121 = arith.mulf %3, %5 : vector<2x4x32xf32>
    %cst_56 = arith.constant dense<0.000000e+00> : vector<2x4xf32>
    %122 = vector.multi_reduction <add>, %121, %cst_56 [2] : vector<2x4x32xf32> to vector<2x4xf32>
    %cst_57 = arith.constant 0.176776692 : f32
    %123 = vector.broadcast %cst_57 : f32 to vector<2x4xf32>
    %124 = arith.mulf %122, %123 : vector<2x4xf32>
    %125 = arith.mulf %3, %6 : vector<2x4x32xf32>
    %cst_58 = arith.constant dense<0.000000e+00> : vector<2x4xf32>
    %126 = vector.multi_reduction <add>, %125, %cst_58 [2] : vector<2x4x32xf32> to vector<2x4xf32>
    %cst_59 = arith.constant 0.176776692 : f32
    %127 = vector.broadcast %cst_59 : f32 to vector<2x4xf32>
    %128 = arith.mulf %126, %127 : vector<2x4xf32>
    %129 = arith.mulf %3, %7 : vector<2x4x32xf32>
    %cst_60 = arith.constant dense<0.000000e+00> : vector<2x4xf32>
    %130 = vector.multi_reduction <add>, %129, %cst_60 [2] : vector<2x4x32xf32> to vector<2x4xf32>
    %cst_61 = arith.constant 0.176776692 : f32
    %131 = vector.broadcast %cst_61 : f32 to vector<2x4xf32>
    %132 = arith.mulf %130, %131 : vector<2x4xf32>
    %133 = arith.mulf %3, %8 : vector<2x4x32xf32>
    %cst_62 = arith.constant dense<0.000000e+00> : vector<2x4xf32>
    %134 = vector.multi_reduction <add>, %133, %cst_62 [2] : vector<2x4x32xf32> to vector<2x4xf32>
    %cst_63 = arith.constant 0.176776692 : f32
    %135 = vector.broadcast %cst_63 : f32 to vector<2x4xf32>
    %136 = arith.mulf %134, %135 : vector<2x4xf32>
    %137 = arith.maximumf %124, %128 : vector<2x4xf32>
    %138 = arith.maximumf %137, %132 : vector<2x4xf32>
    %139 = arith.maximumf %138, %136 : vector<2x4xf32>
    %140 = arith.subf %124, %139 : vector<2x4xf32>
    %141 = math.exp %140 : vector<2x4xf32>
    %142 = arith.subf %128, %139 : vector<2x4xf32>
    %143 = math.exp %142 : vector<2x4xf32>
    %144 = arith.subf %132, %139 : vector<2x4xf32>
    %145 = math.exp %144 : vector<2x4xf32>
    %146 = arith.subf %136, %139 : vector<2x4xf32>
    %147 = math.exp %146 : vector<2x4xf32>
    %148 = arith.addf %141, %143 : vector<2x4xf32>
    %149 = arith.addf %148, %145 : vector<2x4xf32>
    %150 = arith.addf %149, %147 : vector<2x4xf32>
    %cst_64 = arith.constant 1.000000e+00 : f32
    %151 = vector.broadcast %cst_64 : f32 to vector<2x4xf32>
    %152 = arith.divf %151, %150 : vector<2x4xf32>
    %153 = vector.broadcast %0 : f32 to vector<2x4xf32>
    %154 = arith.mulf %152, %153 : vector<2x4xf32>
    %155 = arith.mulf %141, %154 : vector<2x4xf32>
    %156 = vector.shape_cast %155 : vector<2x4xf32> to vector<2x4x1xf32>
    %157 = vector.broadcast %156 : vector<2x4x1xf32> to vector<2x4x32xf32>
    %158 = arith.mulf %157, %9 : vector<2x4x32xf32>
    %159 = arith.mulf %143, %154 : vector<2x4xf32>
    %160 = vector.shape_cast %159 : vector<2x4xf32> to vector<2x4x1xf32>
    %161 = vector.broadcast %160 : vector<2x4x1xf32> to vector<2x4x32xf32>
    %162 = arith.mulf %161, %10 : vector<2x4x32xf32>
    %163 = arith.addf %158, %162 : vector<2x4x32xf32>
    %164 = arith.mulf %145, %154 : vector<2x4xf32>
    %165 = vector.shape_cast %164 : vector<2x4xf32> to vector<2x4x1xf32>
    %166 = vector.broadcast %165 : vector<2x4x1xf32> to vector<2x4x32xf32>
    %167 = arith.mulf %166, %11 : vector<2x4x32xf32>
    %168 = arith.addf %163, %167 : vector<2x4x32xf32>
    %169 = arith.mulf %147, %154 : vector<2x4xf32>
    %170 = vector.shape_cast %169 : vector<2x4xf32> to vector<2x4x1xf32>
    %171 = vector.broadcast %170 : vector<2x4x1xf32> to vector<2x4x32xf32>
    %172 = arith.mulf %171, %12 : vector<2x4x32xf32>
    %173 = arith.addf %168, %172 : vector<2x4x32xf32>
    %c0_65 = arith.constant 0 : index
    %c2_66 = arith.constant 2 : index
    %c0_67 = arith.constant 0 : index
    %174 = tpu.strided_load %arg6[%c0_65, %c2_66, %c0_67] {strides = array<i32: 1, 4, 1>} : memref<2x16x32xf32, #tpu.memory_space<vmem>>, vector<2x4x32xf32>
    tpu.strided_store %arg6[%c0_65, %c2_66, %c0_67], %173 {strides = array<i32: 1, 4, 1>} : memref<2x16x32xf32, #tpu.memory_space<vmem>>, vector<2x4x32xf32>
    %175 = arith.mulf %4, %5 : vector<2x4x32xf32>
    %cst_68 = arith.constant dense<0.000000e+00> : vector<2x4xf32>
    %176 = vector.multi_reduction <add>, %175, %cst_68 [2] : vector<2x4x32xf32> to vector<2x4xf32>
    %cst_69 = arith.constant 0.176776692 : f32
    %177 = vector.broadcast %cst_69 : f32 to vector<2x4xf32>
    %178 = arith.mulf %176, %177 : vector<2x4xf32>
    %179 = arith.mulf %4, %6 : vector<2x4x32xf32>
    %cst_70 = arith.constant dense<0.000000e+00> : vector<2x4xf32>
    %180 = vector.multi_reduction <add>, %179, %cst_70 [2] : vector<2x4x32xf32> to vector<2x4xf32>
    %cst_71 = arith.constant 0.176776692 : f32
    %181 = vector.broadcast %cst_71 : f32 to vector<2x4xf32>
    %182 = arith.mulf %180, %181 : vector<2x4xf32>
    %183 = arith.mulf %4, %7 : vector<2x4x32xf32>
    %cst_72 = arith.constant dense<0.000000e+00> : vector<2x4xf32>
    %184 = vector.multi_reduction <add>, %183, %cst_72 [2] : vector<2x4x32xf32> to vector<2x4xf32>
    %cst_73 = arith.constant 0.176776692 : f32
    %185 = vector.broadcast %cst_73 : f32 to vector<2x4xf32>
    %186 = arith.mulf %184, %185 : vector<2x4xf32>
    %187 = arith.mulf %4, %8 : vector<2x4x32xf32>
    %cst_74 = arith.constant dense<0.000000e+00> : vector<2x4xf32>
    %188 = vector.multi_reduction <add>, %187, %cst_74 [2] : vector<2x4x32xf32> to vector<2x4xf32>
    %cst_75 = arith.constant 0.176776692 : f32
    %189 = vector.broadcast %cst_75 : f32 to vector<2x4xf32>
    %190 = arith.mulf %188, %189 : vector<2x4xf32>
    %191 = arith.maximumf %178, %182 : vector<2x4xf32>
    %192 = arith.maximumf %191, %186 : vector<2x4xf32>
    %193 = arith.maximumf %192, %190 : vector<2x4xf32>
    %194 = arith.subf %178, %193 : vector<2x4xf32>
    %195 = math.exp %194 : vector<2x4xf32>
    %196 = arith.subf %182, %193 : vector<2x4xf32>
    %197 = math.exp %196 : vector<2x4xf32>
    %198 = arith.subf %186, %193 : vector<2x4xf32>
    %199 = math.exp %198 : vector<2x4xf32>
    %200 = arith.subf %190, %193 : vector<2x4xf32>
    %201 = math.exp %200 : vector<2x4xf32>
    %202 = arith.addf %195, %197 : vector<2x4xf32>
    %203 = arith.addf %202, %199 : vector<2x4xf32>
    %204 = arith.addf %203, %201 : vector<2x4xf32>
    %cst_76 = arith.constant 1.000000e+00 : f32
    %205 = vector.broadcast %cst_76 : f32 to vector<2x4xf32>
    %206 = arith.divf %205, %204 : vector<2x4xf32>
    %207 = vector.broadcast %0 : f32 to vector<2x4xf32>
    %208 = arith.mulf %206, %207 : vector<2x4xf32>
    %209 = arith.mulf %195, %208 : vector<2x4xf32>
    %210 = vector.shape_cast %209 : vector<2x4xf32> to vector<2x4x1xf32>
    %211 = vector.broadcast %210 : vector<2x4x1xf32> to vector<2x4x32xf32>
    %212 = arith.mulf %211, %9 : vector<2x4x32xf32>
    %213 = arith.mulf %197, %208 : vector<2x4xf32>
    %214 = vector.shape_cast %213 : vector<2x4xf32> to vector<2x4x1xf32>
    %215 = vector.broadcast %214 : vector<2x4x1xf32> to vector<2x4x32xf32>
    %216 = arith.mulf %215, %10 : vector<2x4x32xf32>
    %217 = arith.addf %212, %216 : vector<2x4x32xf32>
    %218 = arith.mulf %199, %208 : vector<2x4xf32>
    %219 = vector.shape_cast %218 : vector<2x4xf32> to vector<2x4x1xf32>
    %220 = vector.broadcast %219 : vector<2x4x1xf32> to vector<2x4x32xf32>
    %221 = arith.mulf %220, %11 : vector<2x4x32xf32>
    %222 = arith.addf %217, %221 : vector<2x4x32xf32>
    %223 = arith.mulf %201, %208 : vector<2x4xf32>
    %224 = vector.shape_cast %223 : vector<2x4xf32> to vector<2x4x1xf32>
    %225 = vector.broadcast %224 : vector<2x4x1xf32> to vector<2x4x32xf32>
    %226 = arith.mulf %225, %12 : vector<2x4x32xf32>
    %227 = arith.addf %222, %226 : vector<2x4x32xf32>
    %c0_77 = arith.constant 0 : index
    %c3_78 = arith.constant 3 : index
    %c0_79 = arith.constant 0 : index
    %228 = tpu.strided_load %arg6[%c0_77, %c3_78, %c0_79] {strides = array<i32: 1, 4, 1>} : memref<2x16x32xf32, #tpu.memory_space<vmem>>, vector<2x4x32xf32>
    tpu.strided_store %arg6[%c0_77, %c3_78, %c0_79], %227 {strides = array<i32: 1, 4, 1>} : memref<2x16x32xf32, #tpu.memory_space<vmem>>, vector<2x4x32xf32>
    %c1_80 = arith.constant 1 : index
    %229 = memref.load %arg2[%c1_80] : memref<3xf32, #tpu.memory_space<smem>>
    %c0_81 = arith.constant 0 : index
    %c0_82 = arith.constant 0 : index
    %c0_83 = arith.constant 0 : index
    %230 = tpu.strided_load %arg3[%c0_81, %c0_82, %c0_83] {strides = array<i32: 1, 8, 1>} : memref<2x16x32xf32, #tpu.memory_space<vmem>>, vector<2x2x32xf32>
    %c0_84 = arith.constant 0 : index
    %c2_85 = arith.constant 2 : index
    %c0_86 = arith.constant 0 : index
    %231 = tpu.strided_load %arg3[%c0_84, %c2_85, %c0_86] {strides = array<i32: 1, 8, 1>} : memref<2x16x32xf32, #tpu.memory_space<vmem>>, vector<2x2x32xf32>
    %c0_87 = arith.constant 0 : index
    %c4 = arith.constant 4 : index
    %c0_88 = arith.constant 0 : index
    %232 = tpu.strided_load %arg3[%c0_87, %c4, %c0_88] {strides = array<i32: 1, 8, 1>} : memref<2x16x32xf32, #tpu.memory_space<vmem>>, vector<2x2x32xf32>
    %c0_89 = arith.constant 0 : index
    %c6 = arith.constant 6 : index
    %c0_90 = arith.constant 0 : index
    %233 = tpu.strided_load %arg3[%c0_89, %c6, %c0_90] {strides = array<i32: 1, 8, 1>} : memref<2x16x32xf32, #tpu.memory_space<vmem>>, vector<2x2x32xf32>
    %c0_91 = arith.constant 0 : index
    %c0_92 = arith.constant 0 : index
    %c0_93 = arith.constant 0 : index
    %234 = tpu.strided_load %arg4[%c0_91, %c0_92, %c0_93] {strides = array<i32: 1, 8, 1>} : memref<2x16x32xf32, #tpu.memory_space<vmem>>, vector<2x2x32xf32>
    %c0_94 = arith.constant 0 : index
    %c2_95 = arith.constant 2 : index
    %c0_96 = arith.constant 0 : index
    %235 = tpu.strided_load %arg4[%c0_94, %c2_95, %c0_96] {strides = array<i32: 1, 8, 1>} : memref<2x16x32xf32, #tpu.memory_space<vmem>>, vector<2x2x32xf32>
    %c0_97 = arith.constant 0 : index
    %c4_98 = arith.constant 4 : index
    %c0_99 = arith.constant 0 : index
    %236 = tpu.strided_load %arg4[%c0_97, %c4_98, %c0_99] {strides = array<i32: 1, 8, 1>} : memref<2x16x32xf32, #tpu.memory_space<vmem>>, vector<2x2x32xf32>
    %c0_100 = arith.constant 0 : index
    %c6_101 = arith.constant 6 : index
    %c0_102 = arith.constant 0 : index
    %237 = tpu.strided_load %arg4[%c0_100, %c6_101, %c0_102] {strides = array<i32: 1, 8, 1>} : memref<2x16x32xf32, #tpu.memory_space<vmem>>, vector<2x2x32xf32>
    %c0_103 = arith.constant 0 : index
    %c0_104 = arith.constant 0 : index
    %c0_105 = arith.constant 0 : index
    %238 = tpu.strided_load %arg5[%c0_103, %c0_104, %c0_105] {strides = array<i32: 1, 8, 1>} : memref<2x16x32xf32, #tpu.memory_space<vmem>>, vector<2x2x32xf32>
    %c0_106 = arith.constant 0 : index
    %c2_107 = arith.constant 2 : index
    %c0_108 = arith.constant 0 : index
    %239 = tpu.strided_load %arg5[%c0_106, %c2_107, %c0_108] {strides = array<i32: 1, 8, 1>} : memref<2x16x32xf32, #tpu.memory_space<vmem>>, vector<2x2x32xf32>
    %c0_109 = arith.constant 0 : index
    %c4_110 = arith.constant 4 : index
    %c0_111 = arith.constant 0 : index
    %240 = tpu.strided_load %arg5[%c0_109, %c4_110, %c0_111] {strides = array<i32: 1, 8, 1>} : memref<2x16x32xf32, #tpu.memory_space<vmem>>, vector<2x2x32xf32>
    %c0_112 = arith.constant 0 : index
    %c6_113 = arith.constant 6 : index
    %c0_114 = arith.constant 0 : index
    %241 = tpu.strided_load %arg5[%c0_112, %c6_113, %c0_114] {strides = array<i32: 1, 8, 1>} : memref<2x16x32xf32, #tpu.memory_space<vmem>>, vector<2x2x32xf32>
    %242 = arith.mulf %230, %234 : vector<2x2x32xf32>
    %cst_115 = arith.constant dense<0.000000e+00> : vector<2x2xf32>
    %243 = vector.multi_reduction <add>, %242, %cst_115 [2] : vector<2x2x32xf32> to vector<2x2xf32>
    %cst_116 = arith.constant 0.176776692 : f32
    %244 = vector.broadcast %cst_116 : f32 to vector<2x2xf32>
    %245 = arith.mulf %243, %244 : vector<2x2xf32>
    %246 = arith.mulf %230, %235 : vector<2x2x32xf32>
    %cst_117 = arith.constant dense<0.000000e+00> : vector<2x2xf32>
    %247 = vector.multi_reduction <add>, %246, %cst_117 [2] : vector<2x2x32xf32> to vector<2x2xf32>
    %cst_118 = arith.constant 0.176776692 : f32
    %248 = vector.broadcast %cst_118 : f32 to vector<2x2xf32>
    %249 = arith.mulf %247, %248 : vector<2x2xf32>
    %250 = arith.mulf %230, %236 : vector<2x2x32xf32>
    %cst_119 = arith.constant dense<0.000000e+00> : vector<2x2xf32>
    %251 = vector.multi_reduction <add>, %250, %cst_119 [2] : vector<2x2x32xf32> to vector<2x2xf32>
    %cst_120 = arith.constant 0.176776692 : f32
    %252 = vector.broadcast %cst_120 : f32 to vector<2x2xf32>
    %253 = arith.mulf %251, %252 : vector<2x2xf32>
    %254 = arith.mulf %230, %237 : vector<2x2x32xf32>
    %cst_121 = arith.constant dense<0.000000e+00> : vector<2x2xf32>
    %255 = vector.multi_reduction <add>, %254, %cst_121 [2] : vector<2x2x32xf32> to vector<2x2xf32>
    %cst_122 = arith.constant 0.176776692 : f32
    %256 = vector.broadcast %cst_122 : f32 to vector<2x2xf32>
    %257 = arith.mulf %255, %256 : vector<2x2xf32>
    %258 = arith.maximumf %245, %249 : vector<2x2xf32>
    %259 = arith.maximumf %258, %253 : vector<2x2xf32>
    %260 = arith.maximumf %259, %257 : vector<2x2xf32>
    %261 = arith.subf %245, %260 : vector<2x2xf32>
    %262 = math.exp %261 : vector<2x2xf32>
    %263 = arith.subf %249, %260 : vector<2x2xf32>
    %264 = math.exp %263 : vector<2x2xf32>
    %265 = arith.subf %253, %260 : vector<2x2xf32>
    %266 = math.exp %265 : vector<2x2xf32>
    %267 = arith.subf %257, %260 : vector<2x2xf32>
    %268 = math.exp %267 : vector<2x2xf32>
    %269 = arith.addf %262, %264 : vector<2x2xf32>
    %270 = arith.addf %269, %266 : vector<2x2xf32>
    %271 = arith.addf %270, %268 : vector<2x2xf32>
    %cst_123 = arith.constant 1.000000e+00 : f32
    %272 = vector.broadcast %cst_123 : f32 to vector<2x2xf32>
    %273 = arith.divf %272, %271 : vector<2x2xf32>
    %274 = vector.broadcast %229 : f32 to vector<2x2xf32>
    %275 = arith.mulf %273, %274 : vector<2x2xf32>
    %276 = arith.mulf %262, %275 : vector<2x2xf32>
    %277 = vector.shape_cast %276 : vector<2x2xf32> to vector<2x2x1xf32>
    %278 = vector.broadcast %277 : vector<2x2x1xf32> to vector<2x2x32xf32>
    %279 = arith.mulf %278, %238 : vector<2x2x32xf32>
    %280 = arith.mulf %264, %275 : vector<2x2xf32>
    %281 = vector.shape_cast %280 : vector<2x2xf32> to vector<2x2x1xf32>
    %282 = vector.broadcast %281 : vector<2x2x1xf32> to vector<2x2x32xf32>
    %283 = arith.mulf %282, %239 : vector<2x2x32xf32>
    %284 = arith.addf %279, %283 : vector<2x2x32xf32>
    %285 = arith.mulf %266, %275 : vector<2x2xf32>
    %286 = vector.shape_cast %285 : vector<2x2xf32> to vector<2x2x1xf32>
    %287 = vector.broadcast %286 : vector<2x2x1xf32> to vector<2x2x32xf32>
    %288 = arith.mulf %287, %240 : vector<2x2x32xf32>
    %289 = arith.addf %284, %288 : vector<2x2x32xf32>
    %290 = arith.mulf %268, %275 : vector<2x2xf32>
    %291 = vector.shape_cast %290 : vector<2x2xf32> to vector<2x2x1xf32>
    %292 = vector.broadcast %291 : vector<2x2x1xf32> to vector<2x2x32xf32>
    %293 = arith.mulf %292, %241 : vector<2x2x32xf32>
    %294 = arith.addf %289, %293 : vector<2x2x32xf32>
    %c0_124 = arith.constant 0 : index
    %c0_125 = arith.constant 0 : index
    %c0_126 = arith.constant 0 : index
    %295 = tpu.strided_load %arg6[%c0_124, %c0_125, %c0_126] {strides = array<i32: 1, 8, 1>} : memref<2x16x32xf32, #tpu.memory_space<vmem>>, vector<2x2x32xf32>
    %296 = arith.addf %295, %294 : vector<2x2x32xf32>
    %c0_127 = arith.constant 0 : index
    %c0_128 = arith.constant 0 : index
    %c0_129 = arith.constant 0 : index
    %297 = tpu.strided_load %arg6[%c0_127, %c0_128, %c0_129] {strides = array<i32: 1, 8, 1>} : memref<2x16x32xf32, #tpu.memory_space<vmem>>, vector<2x2x32xf32>
    tpu.strided_store %arg6[%c0_127, %c0_128, %c0_129], %296 {strides = array<i32: 1, 8, 1>} : memref<2x16x32xf32, #tpu.memory_space<vmem>>, vector<2x2x32xf32>
    %298 = arith.mulf %231, %234 : vector<2x2x32xf32>
    %cst_130 = arith.constant dense<0.000000e+00> : vector<2x2xf32>
    %299 = vector.multi_reduction <add>, %298, %cst_130 [2] : vector<2x2x32xf32> to vector<2x2xf32>
    %cst_131 = arith.constant 0.176776692 : f32
    %300 = vector.broadcast %cst_131 : f32 to vector<2x2xf32>
    %301 = arith.mulf %299, %300 : vector<2x2xf32>
    %302 = arith.mulf %231, %235 : vector<2x2x32xf32>
    %cst_132 = arith.constant dense<0.000000e+00> : vector<2x2xf32>
    %303 = vector.multi_reduction <add>, %302, %cst_132 [2] : vector<2x2x32xf32> to vector<2x2xf32>
    %cst_133 = arith.constant 0.176776692 : f32
    %304 = vector.broadcast %cst_133 : f32 to vector<2x2xf32>
    %305 = arith.mulf %303, %304 : vector<2x2xf32>
    %306 = arith.mulf %231, %236 : vector<2x2x32xf32>
    %cst_134 = arith.constant dense<0.000000e+00> : vector<2x2xf32>
    %307 = vector.multi_reduction <add>, %306, %cst_134 [2] : vector<2x2x32xf32> to vector<2x2xf32>
    %cst_135 = arith.constant 0.176776692 : f32
    %308 = vector.broadcast %cst_135 : f32 to vector<2x2xf32>
    %309 = arith.mulf %307, %308 : vector<2x2xf32>
    %310 = arith.mulf %231, %237 : vector<2x2x32xf32>
    %cst_136 = arith.constant dense<0.000000e+00> : vector<2x2xf32>
    %311 = vector.multi_reduction <add>, %310, %cst_136 [2] : vector<2x2x32xf32> to vector<2x2xf32>
    %cst_137 = arith.constant 0.176776692 : f32
    %312 = vector.broadcast %cst_137 : f32 to vector<2x2xf32>
    %313 = arith.mulf %311, %312 : vector<2x2xf32>
    %314 = arith.maximumf %301, %305 : vector<2x2xf32>
    %315 = arith.maximumf %314, %309 : vector<2x2xf32>
    %316 = arith.maximumf %315, %313 : vector<2x2xf32>
    %317 = arith.subf %301, %316 : vector<2x2xf32>
    %318 = math.exp %317 : vector<2x2xf32>
    %319 = arith.subf %305, %316 : vector<2x2xf32>
    %320 = math.exp %319 : vector<2x2xf32>
    %321 = arith.subf %309, %316 : vector<2x2xf32>
    %322 = math.exp %321 : vector<2x2xf32>
    %323 = arith.subf %313, %316 : vector<2x2xf32>
    %324 = math.exp %323 : vector<2x2xf32>
    %325 = arith.addf %318, %320 : vector<2x2xf32>
    %326 = arith.addf %325, %322 : vector<2x2xf32>
    %327 = arith.addf %326, %324 : vector<2x2xf32>
    %cst_138 = arith.constant 1.000000e+00 : f32
    %328 = vector.broadcast %cst_138 : f32 to vector<2x2xf32>
    %329 = arith.divf %328, %327 : vector<2x2xf32>
    %330 = vector.broadcast %229 : f32 to vector<2x2xf32>
    %331 = arith.mulf %329, %330 : vector<2x2xf32>
    %332 = arith.mulf %318, %331 : vector<2x2xf32>
    %333 = vector.shape_cast %332 : vector<2x2xf32> to vector<2x2x1xf32>
    %334 = vector.broadcast %333 : vector<2x2x1xf32> to vector<2x2x32xf32>
    %335 = arith.mulf %334, %238 : vector<2x2x32xf32>
    %336 = arith.mulf %320, %331 : vector<2x2xf32>
    %337 = vector.shape_cast %336 : vector<2x2xf32> to vector<2x2x1xf32>
    %338 = vector.broadcast %337 : vector<2x2x1xf32> to vector<2x2x32xf32>
    %339 = arith.mulf %338, %239 : vector<2x2x32xf32>
    %340 = arith.addf %335, %339 : vector<2x2x32xf32>
    %341 = arith.mulf %322, %331 : vector<2x2xf32>
    %342 = vector.shape_cast %341 : vector<2x2xf32> to vector<2x2x1xf32>
    %343 = vector.broadcast %342 : vector<2x2x1xf32> to vector<2x2x32xf32>
    %344 = arith.mulf %343, %240 : vector<2x2x32xf32>
    %345 = arith.addf %340, %344 : vector<2x2x32xf32>
    %346 = arith.mulf %324, %331 : vector<2x2xf32>
    %347 = vector.shape_cast %346 : vector<2x2xf32> to vector<2x2x1xf32>
    %348 = vector.broadcast %347 : vector<2x2x1xf32> to vector<2x2x32xf32>
    %349 = arith.mulf %348, %241 : vector<2x2x32xf32>
    %350 = arith.addf %345, %349 : vector<2x2x32xf32>
    %c0_139 = arith.constant 0 : index
    %c2_140 = arith.constant 2 : index
    %c0_141 = arith.constant 0 : index
    %351 = tpu.strided_load %arg6[%c0_139, %c2_140, %c0_141] {strides = array<i32: 1, 8, 1>} : memref<2x16x32xf32, #tpu.memory_space<vmem>>, vector<2x2x32xf32>
    %352 = arith.addf %351, %350 : vector<2x2x32xf32>
    %c0_142 = arith.constant 0 : index
    %c2_143 = arith.constant 2 : index
    %c0_144 = arith.constant 0 : index
    %353 = tpu.strided_load %arg6[%c0_142, %c2_143, %c0_144] {strides = array<i32: 1, 8, 1>} : memref<2x16x32xf32, #tpu.memory_space<vmem>>, vector<2x2x32xf32>
    tpu.strided_store %arg6[%c0_142, %c2_143, %c0_144], %352 {strides = array<i32: 1, 8, 1>} : memref<2x16x32xf32, #tpu.memory_space<vmem>>, vector<2x2x32xf32>
    %354 = arith.mulf %232, %234 : vector<2x2x32xf32>
    %cst_145 = arith.constant dense<0.000000e+00> : vector<2x2xf32>
    %355 = vector.multi_reduction <add>, %354, %cst_145 [2] : vector<2x2x32xf32> to vector<2x2xf32>
    %cst_146 = arith.constant 0.176776692 : f32
    %356 = vector.broadcast %cst_146 : f32 to vector<2x2xf32>
    %357 = arith.mulf %355, %356 : vector<2x2xf32>
    %358 = arith.mulf %232, %235 : vector<2x2x32xf32>
    %cst_147 = arith.constant dense<0.000000e+00> : vector<2x2xf32>
    %359 = vector.multi_reduction <add>, %358, %cst_147 [2] : vector<2x2x32xf32> to vector<2x2xf32>
    %cst_148 = arith.constant 0.176776692 : f32
    %360 = vector.broadcast %cst_148 : f32 to vector<2x2xf32>
    %361 = arith.mulf %359, %360 : vector<2x2xf32>
    %362 = arith.mulf %232, %236 : vector<2x2x32xf32>
    %cst_149 = arith.constant dense<0.000000e+00> : vector<2x2xf32>
    %363 = vector.multi_reduction <add>, %362, %cst_149 [2] : vector<2x2x32xf32> to vector<2x2xf32>
    %cst_150 = arith.constant 0.176776692 : f32
    %364 = vector.broadcast %cst_150 : f32 to vector<2x2xf32>
    %365 = arith.mulf %363, %364 : vector<2x2xf32>
    %366 = arith.mulf %232, %237 : vector<2x2x32xf32>
    %cst_151 = arith.constant dense<0.000000e+00> : vector<2x2xf32>
    %367 = vector.multi_reduction <add>, %366, %cst_151 [2] : vector<2x2x32xf32> to vector<2x2xf32>
    %cst_152 = arith.constant 0.176776692 : f32
    %368 = vector.broadcast %cst_152 : f32 to vector<2x2xf32>
    %369 = arith.mulf %367, %368 : vector<2x2xf32>
    %370 = arith.maximumf %357, %361 : vector<2x2xf32>
    %371 = arith.maximumf %370, %365 : vector<2x2xf32>
    %372 = arith.maximumf %371, %369 : vector<2x2xf32>
    %373 = arith.subf %357, %372 : vector<2x2xf32>
    %374 = math.exp %373 : vector<2x2xf32>
    %375 = arith.subf %361, %372 : vector<2x2xf32>
    %376 = math.exp %375 : vector<2x2xf32>
    %377 = arith.subf %365, %372 : vector<2x2xf32>
    %378 = math.exp %377 : vector<2x2xf32>
    %379 = arith.subf %369, %372 : vector<2x2xf32>
    %380 = math.exp %379 : vector<2x2xf32>
    %381 = arith.addf %374, %376 : vector<2x2xf32>
    %382 = arith.addf %381, %378 : vector<2x2xf32>
    %383 = arith.addf %382, %380 : vector<2x2xf32>
    %cst_153 = arith.constant 1.000000e+00 : f32
    %384 = vector.broadcast %cst_153 : f32 to vector<2x2xf32>
    %385 = arith.divf %384, %383 : vector<2x2xf32>
    %386 = vector.broadcast %229 : f32 to vector<2x2xf32>
    %387 = arith.mulf %385, %386 : vector<2x2xf32>
    %388 = arith.mulf %374, %387 : vector<2x2xf32>
    %389 = vector.shape_cast %388 : vector<2x2xf32> to vector<2x2x1xf32>
    %390 = vector.broadcast %389 : vector<2x2x1xf32> to vector<2x2x32xf32>
    %391 = arith.mulf %390, %238 : vector<2x2x32xf32>
    %392 = arith.mulf %376, %387 : vector<2x2xf32>
    %393 = vector.shape_cast %392 : vector<2x2xf32> to vector<2x2x1xf32>
    %394 = vector.broadcast %393 : vector<2x2x1xf32> to vector<2x2x32xf32>
    %395 = arith.mulf %394, %239 : vector<2x2x32xf32>
    %396 = arith.addf %391, %395 : vector<2x2x32xf32>
    %397 = arith.mulf %378, %387 : vector<2x2xf32>
    %398 = vector.shape_cast %397 : vector<2x2xf32> to vector<2x2x1xf32>
    %399 = vector.broadcast %398 : vector<2x2x1xf32> to vector<2x2x32xf32>
    %400 = arith.mulf %399, %240 : vector<2x2x32xf32>
    %401 = arith.addf %396, %400 : vector<2x2x32xf32>
    %402 = arith.mulf %380, %387 : vector<2x2xf32>
    %403 = vector.shape_cast %402 : vector<2x2xf32> to vector<2x2x1xf32>
    %404 = vector.broadcast %403 : vector<2x2x1xf32> to vector<2x2x32xf32>
    %405 = arith.mulf %404, %241 : vector<2x2x32xf32>
    %406 = arith.addf %401, %405 : vector<2x2x32xf32>
    %c0_154 = arith.constant 0 : index
    %c4_155 = arith.constant 4 : index
    %c0_156 = arith.constant 0 : index
    %407 = tpu.strided_load %arg6[%c0_154, %c4_155, %c0_156] {strides = array<i32: 1, 8, 1>} : memref<2x16x32xf32, #tpu.memory_space<vmem>>, vector<2x2x32xf32>
    %408 = arith.addf %407, %406 : vector<2x2x32xf32>
    %c0_157 = arith.constant 0 : index
    %c4_158 = arith.constant 4 : index
    %c0_159 = arith.constant 0 : index
    %409 = tpu.strided_load %arg6[%c0_157, %c4_158, %c0_159] {strides = array<i32: 1, 8, 1>} : memref<2x16x32xf32, #tpu.memory_space<vmem>>, vector<2x2x32xf32>
    tpu.strided_store %arg6[%c0_157, %c4_158, %c0_159], %408 {strides = array<i32: 1, 8, 1>} : memref<2x16x32xf32, #tpu.memory_space<vmem>>, vector<2x2x32xf32>
    %410 = arith.mulf %233, %234 : vector<2x2x32xf32>
    %cst_160 = arith.constant dense<0.000000e+00> : vector<2x2xf32>
    %411 = vector.multi_reduction <add>, %410, %cst_160 [2] : vector<2x2x32xf32> to vector<2x2xf32>
    %cst_161 = arith.constant 0.176776692 : f32
    %412 = vector.broadcast %cst_161 : f32 to vector<2x2xf32>
    %413 = arith.mulf %411, %412 : vector<2x2xf32>
    %414 = arith.mulf %233, %235 : vector<2x2x32xf32>
    %cst_162 = arith.constant dense<0.000000e+00> : vector<2x2xf32>
    %415 = vector.multi_reduction <add>, %414, %cst_162 [2] : vector<2x2x32xf32> to vector<2x2xf32>
    %cst_163 = arith.constant 0.176776692 : f32
    %416 = vector.broadcast %cst_163 : f32 to vector<2x2xf32>
    %417 = arith.mulf %415, %416 : vector<2x2xf32>
    %418 = arith.mulf %233, %236 : vector<2x2x32xf32>
    %cst_164 = arith.constant dense<0.000000e+00> : vector<2x2xf32>
    %419 = vector.multi_reduction <add>, %418, %cst_164 [2] : vector<2x2x32xf32> to vector<2x2xf32>
    %cst_165 = arith.constant 0.176776692 : f32
    %420 = vector.broadcast %cst_165 : f32 to vector<2x2xf32>
    %421 = arith.mulf %419, %420 : vector<2x2xf32>
    %422 = arith.mulf %233, %237 : vector<2x2x32xf32>
    %cst_166 = arith.constant dense<0.000000e+00> : vector<2x2xf32>
    %423 = vector.multi_reduction <add>, %422, %cst_166 [2] : vector<2x2x32xf32> to vector<2x2xf32>
    %cst_167 = arith.constant 0.176776692 : f32
    %424 = vector.broadcast %cst_167 : f32 to vector<2x2xf32>
    %425 = arith.mulf %423, %424 : vector<2x2xf32>
    %426 = arith.maximumf %413, %417 : vector<2x2xf32>
    %427 = arith.maximumf %426, %421 : vector<2x2xf32>
    %428 = arith.maximumf %427, %425 : vector<2x2xf32>
    %429 = arith.subf %413, %428 : vector<2x2xf32>
    %430 = math.exp %429 : vector<2x2xf32>
    %431 = arith.subf %417, %428 : vector<2x2xf32>
    %432 = math.exp %431 : vector<2x2xf32>
    %433 = arith.subf %421, %428 : vector<2x2xf32>
    %434 = math.exp %433 : vector<2x2xf32>
    %435 = arith.subf %425, %428 : vector<2x2xf32>
    %436 = math.exp %435 : vector<2x2xf32>
    %437 = arith.addf %430, %432 : vector<2x2xf32>
    %438 = arith.addf %437, %434 : vector<2x2xf32>
    %439 = arith.addf %438, %436 : vector<2x2xf32>
    %cst_168 = arith.constant 1.000000e+00 : f32
    %440 = vector.broadcast %cst_168 : f32 to vector<2x2xf32>
    %441 = arith.divf %440, %439 : vector<2x2xf32>
    %442 = vector.broadcast %229 : f32 to vector<2x2xf32>
    %443 = arith.mulf %441, %442 : vector<2x2xf32>
    %444 = arith.mulf %430, %443 : vector<2x2xf32>
    %445 = vector.shape_cast %444 : vector<2x2xf32> to vector<2x2x1xf32>
    %446 = vector.broadcast %445 : vector<2x2x1xf32> to vector<2x2x32xf32>
    %447 = arith.mulf %446, %238 : vector<2x2x32xf32>
    %448 = arith.mulf %432, %443 : vector<2x2xf32>
    %449 = vector.shape_cast %448 : vector<2x2xf32> to vector<2x2x1xf32>
    %450 = vector.broadcast %449 : vector<2x2x1xf32> to vector<2x2x32xf32>
    %451 = arith.mulf %450, %239 : vector<2x2x32xf32>
    %452 = arith.addf %447, %451 : vector<2x2x32xf32>
    %453 = arith.mulf %434, %443 : vector<2x2xf32>
    %454 = vector.shape_cast %453 : vector<2x2xf32> to vector<2x2x1xf32>
    %455 = vector.broadcast %454 : vector<2x2x1xf32> to vector<2x2x32xf32>
    %456 = arith.mulf %455, %240 : vector<2x2x32xf32>
    %457 = arith.addf %452, %456 : vector<2x2x32xf32>
    %458 = arith.mulf %436, %443 : vector<2x2xf32>
    %459 = vector.shape_cast %458 : vector<2x2xf32> to vector<2x2x1xf32>
    %460 = vector.broadcast %459 : vector<2x2x1xf32> to vector<2x2x32xf32>
    %461 = arith.mulf %460, %241 : vector<2x2x32xf32>
    %462 = arith.addf %457, %461 : vector<2x2x32xf32>
    %c0_169 = arith.constant 0 : index
    %c6_170 = arith.constant 6 : index
    %c0_171 = arith.constant 0 : index
    %463 = tpu.strided_load %arg6[%c0_169, %c6_170, %c0_171] {strides = array<i32: 1, 8, 1>} : memref<2x16x32xf32, #tpu.memory_space<vmem>>, vector<2x2x32xf32>
    %464 = arith.addf %463, %462 : vector<2x2x32xf32>
    %c0_172 = arith.constant 0 : index
    %c6_173 = arith.constant 6 : index
    %c0_174 = arith.constant 0 : index
    %465 = tpu.strided_load %arg6[%c0_172, %c6_173, %c0_174] {strides = array<i32: 1, 8, 1>} : memref<2x16x32xf32, #tpu.memory_space<vmem>>, vector<2x2x32xf32>
    tpu.strided_store %arg6[%c0_172, %c6_173, %c0_174], %464 {strides = array<i32: 1, 8, 1>} : memref<2x16x32xf32, #tpu.memory_space<vmem>>, vector<2x2x32xf32>
    %c2_175 = arith.constant 2 : index
    %466 = memref.load %arg2[%c2_175] : memref<3xf32, #tpu.memory_space<smem>>
    %c0_176 = arith.constant 0 : index
    %c0_177 = arith.constant 0 : index
    %c0_178 = arith.constant 0 : index
    %467 = vector.load %arg3[%c0_176, %c0_177, %c0_178] : memref<2x16x32xf32, #tpu.memory_space<vmem>>, vector<2x1x32xf32>
    %c0_179 = arith.constant 0 : index
    %c4_180 = arith.constant 4 : index
    %c0_181 = arith.constant 0 : index
    %468 = vector.load %arg3[%c0_179, %c4_180, %c0_181] : memref<2x16x32xf32, #tpu.memory_space<vmem>>, vector<2x1x32xf32>
    %c0_182 = arith.constant 0 : index
    %c8 = arith.constant 8 : index
    %c0_183 = arith.constant 0 : index
    %469 = vector.load %arg3[%c0_182, %c8, %c0_183] : memref<2x16x32xf32, #tpu.memory_space<vmem>>, vector<2x1x32xf32>
    %c0_184 = arith.constant 0 : index
    %c12 = arith.constant 12 : index
    %c0_185 = arith.constant 0 : index
    %470 = vector.load %arg3[%c0_184, %c12, %c0_185] : memref<2x16x32xf32, #tpu.memory_space<vmem>>, vector<2x1x32xf32>
    %c0_186 = arith.constant 0 : index
    %c0_187 = arith.constant 0 : index
    %c0_188 = arith.constant 0 : index
    %471 = vector.load %arg4[%c0_186, %c0_187, %c0_188] : memref<2x16x32xf32, #tpu.memory_space<vmem>>, vector<2x1x32xf32>
    %c0_189 = arith.constant 0 : index
    %c4_190 = arith.constant 4 : index
    %c0_191 = arith.constant 0 : index
    %472 = vector.load %arg4[%c0_189, %c4_190, %c0_191] : memref<2x16x32xf32, #tpu.memory_space<vmem>>, vector<2x1x32xf32>
    %c0_192 = arith.constant 0 : index
    %c8_193 = arith.constant 8 : index
    %c0_194 = arith.constant 0 : index
    %473 = vector.load %arg4[%c0_192, %c8_193, %c0_194] : memref<2x16x32xf32, #tpu.memory_space<vmem>>, vector<2x1x32xf32>
    %c0_195 = arith.constant 0 : index
    %c12_196 = arith.constant 12 : index
    %c0_197 = arith.constant 0 : index
    %474 = vector.load %arg4[%c0_195, %c12_196, %c0_197] : memref<2x16x32xf32, #tpu.memory_space<vmem>>, vector<2x1x32xf32>
    %c0_198 = arith.constant 0 : index
    %c0_199 = arith.constant 0 : index
    %c0_200 = arith.constant 0 : index
    %475 = vector.load %arg5[%c0_198, %c0_199, %c0_200] : memref<2x16x32xf32, #tpu.memory_space<vmem>>, vector<2x1x32xf32>
    %c0_201 = arith.constant 0 : index
    %c4_202 = arith.constant 4 : index
    %c0_203 = arith.constant 0 : index
    %476 = vector.load %arg5[%c0_201, %c4_202, %c0_203] : memref<2x16x32xf32, #tpu.memory_space<vmem>>, vector<2x1x32xf32>
    %c0_204 = arith.constant 0 : index
    %c8_205 = arith.constant 8 : index
    %c0_206 = arith.constant 0 : index
    %477 = vector.load %arg5[%c0_204, %c8_205, %c0_206] : memref<2x16x32xf32, #tpu.memory_space<vmem>>, vector<2x1x32xf32>
    %c0_207 = arith.constant 0 : index
    %c12_208 = arith.constant 12 : index
    %c0_209 = arith.constant 0 : index
    %478 = vector.load %arg5[%c0_207, %c12_208, %c0_209] : memref<2x16x32xf32, #tpu.memory_space<vmem>>, vector<2x1x32xf32>
    %479 = arith.mulf %467, %471 : vector<2x1x32xf32>
    %cst_210 = arith.constant dense<0.000000e+00> : vector<2x1xf32>
    %480 = vector.multi_reduction <add>, %479, %cst_210 [2] : vector<2x1x32xf32> to vector<2x1xf32>
    %cst_211 = arith.constant 0.176776692 : f32
    %481 = vector.broadcast %cst_211 : f32 to vector<2x1xf32>
    %482 = arith.mulf %480, %481 : vector<2x1xf32>
    %483 = arith.mulf %467, %472 : vector<2x1x32xf32>
    %cst_212 = arith.constant dense<0.000000e+00> : vector<2x1xf32>
    %484 = vector.multi_reduction <add>, %483, %cst_212 [2] : vector<2x1x32xf32> to vector<2x1xf32>
    %cst_213 = arith.constant 0.176776692 : f32
    %485 = vector.broadcast %cst_213 : f32 to vector<2x1xf32>
    %486 = arith.mulf %484, %485 : vector<2x1xf32>
    %487 = arith.mulf %467, %473 : vector<2x1x32xf32>
    %cst_214 = arith.constant dense<0.000000e+00> : vector<2x1xf32>
    %488 = vector.multi_reduction <add>, %487, %cst_214 [2] : vector<2x1x32xf32> to vector<2x1xf32>
    %cst_215 = arith.constant 0.176776692 : f32
    %489 = vector.broadcast %cst_215 : f32 to vector<2x1xf32>
    %490 = arith.mulf %488, %489 : vector<2x1xf32>
    %491 = arith.mulf %467, %474 : vector<2x1x32xf32>
    %cst_216 = arith.constant dense<0.000000e+00> : vector<2x1xf32>
    %492 = vector.multi_reduction <add>, %491, %cst_216 [2] : vector<2x1x32xf32> to vector<2x1xf32>
    %cst_217 = arith.constant 0.176776692 : f32
    %493 = vector.broadcast %cst_217 : f32 to vector<2x1xf32>
    %494 = arith.mulf %492, %493 : vector<2x1xf32>
    %495 = arith.maximumf %482, %486 : vector<2x1xf32>
    %496 = arith.maximumf %495, %490 : vector<2x1xf32>
    %497 = arith.maximumf %496, %494 : vector<2x1xf32>
    %498 = arith.subf %482, %497 : vector<2x1xf32>
    %499 = math.exp %498 : vector<2x1xf32>
    %500 = arith.subf %486, %497 : vector<2x1xf32>
    %501 = math.exp %500 : vector<2x1xf32>
    %502 = arith.subf %490, %497 : vector<2x1xf32>
    %503 = math.exp %502 : vector<2x1xf32>
    %504 = arith.subf %494, %497 : vector<2x1xf32>
    %505 = math.exp %504 : vector<2x1xf32>
    %506 = arith.addf %499, %501 : vector<2x1xf32>
    %507 = arith.addf %506, %503 : vector<2x1xf32>
    %508 = arith.addf %507, %505 : vector<2x1xf32>
    %cst_218 = arith.constant 1.000000e+00 : f32
    %509 = vector.broadcast %cst_218 : f32 to vector<2x1xf32>
    %510 = arith.divf %509, %508 : vector<2x1xf32>
    %511 = vector.broadcast %466 : f32 to vector<2x1xf32>
    %512 = arith.mulf %510, %511 : vector<2x1xf32>
    %513 = arith.mulf %499, %512 : vector<2x1xf32>
    %514 = vector.shape_cast %513 : vector<2x1xf32> to vector<2x1x1xf32>
    %515 = vector.broadcast %514 : vector<2x1x1xf32> to vector<2x1x32xf32>
    %516 = arith.mulf %515, %475 : vector<2x1x32xf32>
    %517 = arith.mulf %501, %512 : vector<2x1xf32>
    %518 = vector.shape_cast %517 : vector<2x1xf32> to vector<2x1x1xf32>
    %519 = vector.broadcast %518 : vector<2x1x1xf32> to vector<2x1x32xf32>
    %520 = arith.mulf %519, %476 : vector<2x1x32xf32>
    %521 = arith.addf %516, %520 : vector<2x1x32xf32>
    %522 = arith.mulf %503, %512 : vector<2x1xf32>
    %523 = vector.shape_cast %522 : vector<2x1xf32> to vector<2x1x1xf32>
    %524 = vector.broadcast %523 : vector<2x1x1xf32> to vector<2x1x32xf32>
    %525 = arith.mulf %524, %477 : vector<2x1x32xf32>
    %526 = arith.addf %521, %525 : vector<2x1x32xf32>
    %527 = arith.mulf %505, %512 : vector<2x1xf32>
    %528 = vector.shape_cast %527 : vector<2x1xf32> to vector<2x1x1xf32>
    %529 = vector.broadcast %528 : vector<2x1x1xf32> to vector<2x1x32xf32>
    %530 = arith.mulf %529, %478 : vector<2x1x32xf32>
    %531 = arith.addf %526, %530 : vector<2x1x32xf32>
    %c0_219 = arith.constant 0 : index
    %c0_220 = arith.constant 0 : index
    %c0_221 = arith.constant 0 : index
    %532 = vector.load %arg6[%c0_219, %c0_220, %c0_221] : memref<2x16x32xf32, #tpu.memory_space<vmem>>, vector<2x1x32xf32>
    %533 = arith.addf %532, %531 : vector<2x1x32xf32>
    %c0_222 = arith.constant 0 : index
    %c0_223 = arith.constant 0 : index
    %c0_224 = arith.constant 0 : index
    %534 = vector.load %arg6[%c0_222, %c0_223, %c0_224] : memref<2x16x32xf32, #tpu.memory_space<vmem>>, vector<2x1x32xf32>
    tpu.vector_store %arg6[%c0_222, %c0_223, %c0_224], %533 {strides = array<i32>} : memref<2x16x32xf32, #tpu.memory_space<vmem>>, vector<2x1x32xf32>,
    %535 = arith.mulf %468, %471 : vector<2x1x32xf32>
    %cst_225 = arith.constant dense<0.000000e+00> : vector<2x1xf32>
    %536 = vector.multi_reduction <add>, %535, %cst_225 [2] : vector<2x1x32xf32> to vector<2x1xf32>
    %cst_226 = arith.constant 0.176776692 : f32
    %537 = vector.broadcast %cst_226 : f32 to vector<2x1xf32>
    %538 = arith.mulf %536, %537 : vector<2x1xf32>
    %539 = arith.mulf %468, %472 : vector<2x1x32xf32>
    %cst_227 = arith.constant dense<0.000000e+00> : vector<2x1xf32>
    %540 = vector.multi_reduction <add>, %539, %cst_227 [2] : vector<2x1x32xf32> to vector<2x1xf32>
    %cst_228 = arith.constant 0.176776692 : f32
    %541 = vector.broadcast %cst_228 : f32 to vector<2x1xf32>
    %542 = arith.mulf %540, %541 : vector<2x1xf32>
    %543 = arith.mulf %468, %473 : vector<2x1x32xf32>
    %cst_229 = arith.constant dense<0.000000e+00> : vector<2x1xf32>
    %544 = vector.multi_reduction <add>, %543, %cst_229 [2] : vector<2x1x32xf32> to vector<2x1xf32>
    %cst_230 = arith.constant 0.176776692 : f32
    %545 = vector.broadcast %cst_230 : f32 to vector<2x1xf32>
    %546 = arith.mulf %544, %545 : vector<2x1xf32>
    %547 = arith.mulf %468, %474 : vector<2x1x32xf32>
    %cst_231 = arith.constant dense<0.000000e+00> : vector<2x1xf32>
    %548 = vector.multi_reduction <add>, %547, %cst_231 [2] : vector<2x1x32xf32> to vector<2x1xf32>
    %cst_232 = arith.constant 0.176776692 : f32
    %549 = vector.broadcast %cst_232 : f32 to vector<2x1xf32>
    %550 = arith.mulf %548, %549 : vector<2x1xf32>
    %551 = arith.maximumf %538, %542 : vector<2x1xf32>
    %552 = arith.maximumf %551, %546 : vector<2x1xf32>
    %553 = arith.maximumf %552, %550 : vector<2x1xf32>
    %554 = arith.subf %538, %553 : vector<2x1xf32>
    %555 = math.exp %554 : vector<2x1xf32>
    %556 = arith.subf %542, %553 : vector<2x1xf32>
    %557 = math.exp %556 : vector<2x1xf32>
    %558 = arith.subf %546, %553 : vector<2x1xf32>
    %559 = math.exp %558 : vector<2x1xf32>
    %560 = arith.subf %550, %553 : vector<2x1xf32>
    %561 = math.exp %560 : vector<2x1xf32>
    %562 = arith.addf %555, %557 : vector<2x1xf32>
    %563 = arith.addf %562, %559 : vector<2x1xf32>
    %564 = arith.addf %563, %561 : vector<2x1xf32>
    %cst_233 = arith.constant 1.000000e+00 : f32
    %565 = vector.broadcast %cst_233 : f32 to vector<2x1xf32>
    %566 = arith.divf %565, %564 : vector<2x1xf32>
    %567 = vector.broadcast %466 : f32 to vector<2x1xf32>
    %568 = arith.mulf %566, %567 : vector<2x1xf32>
    %569 = arith.mulf %555, %568 : vector<2x1xf32>
    %570 = vector.shape_cast %569 : vector<2x1xf32> to vector<2x1x1xf32>
    %571 = vector.broadcast %570 : vector<2x1x1xf32> to vector<2x1x32xf32>
    %572 = arith.mulf %571, %475 : vector<2x1x32xf32>
    %573 = arith.mulf %557, %568 : vector<2x1xf32>
    %574 = vector.shape_cast %573 : vector<2x1xf32> to vector<2x1x1xf32>
    %575 = vector.broadcast %574 : vector<2x1x1xf32> to vector<2x1x32xf32>
    %576 = arith.mulf %575, %476 : vector<2x1x32xf32>
    %577 = arith.addf %572, %576 : vector<2x1x32xf32>
    %578 = arith.mulf %559, %568 : vector<2x1xf32>
    %579 = vector.shape_cast %578 : vector<2x1xf32> to vector<2x1x1xf32>
    %580 = vector.broadcast %579 : vector<2x1x1xf32> to vector<2x1x32xf32>
    %581 = arith.mulf %580, %477 : vector<2x1x32xf32>
    %582 = arith.addf %577, %581 : vector<2x1x32xf32>
    %583 = arith.mulf %561, %568 : vector<2x1xf32>
    %584 = vector.shape_cast %583 : vector<2x1xf32> to vector<2x1x1xf32>
    %585 = vector.broadcast %584 : vector<2x1x1xf32> to vector<2x1x32xf32>
    %586 = arith.mulf %585, %478 : vector<2x1x32xf32>
    %587 = arith.addf %582, %586 : vector<2x1x32xf32>
    %c0_234 = arith.constant 0 : index
    %c4_235 = arith.constant 4 : index
    %c0_236 = arith.constant 0 : index
    %588 = vector.load %arg6[%c0_234, %c4_235, %c0_236] : memref<2x16x32xf32, #tpu.memory_space<vmem>>, vector<2x1x32xf32>
    %589 = arith.addf %588, %587 : vector<2x1x32xf32>
    %c0_237 = arith.constant 0 : index
    %c4_238 = arith.constant 4 : index
    %c0_239 = arith.constant 0 : index
    %590 = vector.load %arg6[%c0_237, %c4_238, %c0_239] : memref<2x16x32xf32, #tpu.memory_space<vmem>>, vector<2x1x32xf32>
    tpu.vector_store %arg6[%c0_237, %c4_238, %c0_239], %589 {strides = array<i32>} : memref<2x16x32xf32, #tpu.memory_space<vmem>>, vector<2x1x32xf32>,
    %591 = arith.mulf %469, %471 : vector<2x1x32xf32>
    %cst_240 = arith.constant dense<0.000000e+00> : vector<2x1xf32>
    %592 = vector.multi_reduction <add>, %591, %cst_240 [2] : vector<2x1x32xf32> to vector<2x1xf32>
    %cst_241 = arith.constant 0.176776692 : f32
    %593 = vector.broadcast %cst_241 : f32 to vector<2x1xf32>
    %594 = arith.mulf %592, %593 : vector<2x1xf32>
    %595 = arith.mulf %469, %472 : vector<2x1x32xf32>
    %cst_242 = arith.constant dense<0.000000e+00> : vector<2x1xf32>
    %596 = vector.multi_reduction <add>, %595, %cst_242 [2] : vector<2x1x32xf32> to vector<2x1xf32>
    %cst_243 = arith.constant 0.176776692 : f32
    %597 = vector.broadcast %cst_243 : f32 to vector<2x1xf32>
    %598 = arith.mulf %596, %597 : vector<2x1xf32>
    %599 = arith.mulf %469, %473 : vector<2x1x32xf32>
    %cst_244 = arith.constant dense<0.000000e+00> : vector<2x1xf32>
    %600 = vector.multi_reduction <add>, %599, %cst_244 [2] : vector<2x1x32xf32> to vector<2x1xf32>
    %cst_245 = arith.constant 0.176776692 : f32
    %601 = vector.broadcast %cst_245 : f32 to vector<2x1xf32>
    %602 = arith.mulf %600, %601 : vector<2x1xf32>
    %603 = arith.mulf %469, %474 : vector<2x1x32xf32>
    %cst_246 = arith.constant dense<0.000000e+00> : vector<2x1xf32>
    %604 = vector.multi_reduction <add>, %603, %cst_246 [2] : vector<2x1x32xf32> to vector<2x1xf32>
    %cst_247 = arith.constant 0.176776692 : f32
    %605 = vector.broadcast %cst_247 : f32 to vector<2x1xf32>
    %606 = arith.mulf %604, %605 : vector<2x1xf32>
    %607 = arith.maximumf %594, %598 : vector<2x1xf32>
    %608 = arith.maximumf %607, %602 : vector<2x1xf32>
    %609 = arith.maximumf %608, %606 : vector<2x1xf32>
    %610 = arith.subf %594, %609 : vector<2x1xf32>
    %611 = math.exp %610 : vector<2x1xf32>
    %612 = arith.subf %598, %609 : vector<2x1xf32>
    %613 = math.exp %612 : vector<2x1xf32>
    %614 = arith.subf %602, %609 : vector<2x1xf32>
    %615 = math.exp %614 : vector<2x1xf32>
    %616 = arith.subf %606, %609 : vector<2x1xf32>
    %617 = math.exp %616 : vector<2x1xf32>
    %618 = arith.addf %611, %613 : vector<2x1xf32>
    %619 = arith.addf %618, %615 : vector<2x1xf32>
    %620 = arith.addf %619, %617 : vector<2x1xf32>
    %cst_248 = arith.constant 1.000000e+00 : f32
    %621 = vector.broadcast %cst_248 : f32 to vector<2x1xf32>
    %622 = arith.divf %621, %620 : vector<2x1xf32>
    %623 = vector.broadcast %466 : f32 to vector<2x1xf32>
    %624 = arith.mulf %622, %623 : vector<2x1xf32>
    %625 = arith.mulf %611, %624 : vector<2x1xf32>
    %626 = vector.shape_cast %625 : vector<2x1xf32> to vector<2x1x1xf32>
    %627 = vector.broadcast %626 : vector<2x1x1xf32> to vector<2x1x32xf32>
    %628 = arith.mulf %627, %475 : vector<2x1x32xf32>
    %629 = arith.mulf %613, %624 : vector<2x1xf32>
    %630 = vector.shape_cast %629 : vector<2x1xf32> to vector<2x1x1xf32>
    %631 = vector.broadcast %630 : vector<2x1x1xf32> to vector<2x1x32xf32>
    %632 = arith.mulf %631, %476 : vector<2x1x32xf32>
    %633 = arith.addf %628, %632 : vector<2x1x32xf32>
    %634 = arith.mulf %615, %624 : vector<2x1xf32>
    %635 = vector.shape_cast %634 : vector<2x1xf32> to vector<2x1x1xf32>
    %636 = vector.broadcast %635 : vector<2x1x1xf32> to vector<2x1x32xf32>
    %637 = arith.mulf %636, %477 : vector<2x1x32xf32>
    %638 = arith.addf %633, %637 : vector<2x1x32xf32>
    %639 = arith.mulf %617, %624 : vector<2x1xf32>
    %640 = vector.shape_cast %639 : vector<2x1xf32> to vector<2x1x1xf32>
    %641 = vector.broadcast %640 : vector<2x1x1xf32> to vector<2x1x32xf32>
    %642 = arith.mulf %641, %478 : vector<2x1x32xf32>
    %643 = arith.addf %638, %642 : vector<2x1x32xf32>
    %c0_249 = arith.constant 0 : index
    %c8_250 = arith.constant 8 : index
    %c0_251 = arith.constant 0 : index
    %644 = vector.load %arg6[%c0_249, %c8_250, %c0_251] : memref<2x16x32xf32, #tpu.memory_space<vmem>>, vector<2x1x32xf32>
    %645 = arith.addf %644, %643 : vector<2x1x32xf32>
    %c0_252 = arith.constant 0 : index
    %c8_253 = arith.constant 8 : index
    %c0_254 = arith.constant 0 : index
    %646 = vector.load %arg6[%c0_252, %c8_253, %c0_254] : memref<2x16x32xf32, #tpu.memory_space<vmem>>, vector<2x1x32xf32>
    tpu.vector_store %arg6[%c0_252, %c8_253, %c0_254], %645 {strides = array<i32>} : memref<2x16x32xf32, #tpu.memory_space<vmem>>, vector<2x1x32xf32>,
    %647 = arith.mulf %470, %471 : vector<2x1x32xf32>
    %cst_255 = arith.constant dense<0.000000e+00> : vector<2x1xf32>
    %648 = vector.multi_reduction <add>, %647, %cst_255 [2] : vector<2x1x32xf32> to vector<2x1xf32>
    %cst_256 = arith.constant 0.176776692 : f32
    %649 = vector.broadcast %cst_256 : f32 to vector<2x1xf32>
    %650 = arith.mulf %648, %649 : vector<2x1xf32>
    %651 = arith.mulf %470, %472 : vector<2x1x32xf32>
    %cst_257 = arith.constant dense<0.000000e+00> : vector<2x1xf32>
    %652 = vector.multi_reduction <add>, %651, %cst_257 [2] : vector<2x1x32xf32> to vector<2x1xf32>
    %cst_258 = arith.constant 0.176776692 : f32
    %653 = vector.broadcast %cst_258 : f32 to vector<2x1xf32>
    %654 = arith.mulf %652, %653 : vector<2x1xf32>
    %655 = arith.mulf %470, %473 : vector<2x1x32xf32>
    %cst_259 = arith.constant dense<0.000000e+00> : vector<2x1xf32>
    %656 = vector.multi_reduction <add>, %655, %cst_259 [2] : vector<2x1x32xf32> to vector<2x1xf32>
    %cst_260 = arith.constant 0.176776692 : f32
    %657 = vector.broadcast %cst_260 : f32 to vector<2x1xf32>
    %658 = arith.mulf %656, %657 : vector<2x1xf32>
    %659 = arith.mulf %470, %474 : vector<2x1x32xf32>
    %cst_261 = arith.constant dense<0.000000e+00> : vector<2x1xf32>
    %660 = vector.multi_reduction <add>, %659, %cst_261 [2] : vector<2x1x32xf32> to vector<2x1xf32>
    %cst_262 = arith.constant 0.176776692 : f32
    %661 = vector.broadcast %cst_262 : f32 to vector<2x1xf32>
    %662 = arith.mulf %660, %661 : vector<2x1xf32>
    %663 = arith.maximumf %650, %654 : vector<2x1xf32>
    %664 = arith.maximumf %663, %658 : vector<2x1xf32>
    %665 = arith.maximumf %664, %662 : vector<2x1xf32>
    %666 = arith.subf %650, %665 : vector<2x1xf32>
    %667 = math.exp %666 : vector<2x1xf32>
    %668 = arith.subf %654, %665 : vector<2x1xf32>
    %669 = math.exp %668 : vector<2x1xf32>
    %670 = arith.subf %658, %665 : vector<2x1xf32>
    %671 = math.exp %670 : vector<2x1xf32>
    %672 = arith.subf %662, %665 : vector<2x1xf32>
    %673 = math.exp %672 : vector<2x1xf32>
    %674 = arith.addf %667, %669 : vector<2x1xf32>
    %675 = arith.addf %674, %671 : vector<2x1xf32>
    %676 = arith.addf %675, %673 : vector<2x1xf32>
    %cst_263 = arith.constant 1.000000e+00 : f32
    %677 = vector.broadcast %cst_263 : f32 to vector<2x1xf32>
    %678 = arith.divf %677, %676 : vector<2x1xf32>
    %679 = vector.broadcast %466 : f32 to vector<2x1xf32>
    %680 = arith.mulf %678, %679 : vector<2x1xf32>
    %681 = arith.mulf %667, %680 : vector<2x1xf32>
    %682 = vector.shape_cast %681 : vector<2x1xf32> to vector<2x1x1xf32>
    %683 = vector.broadcast %682 : vector<2x1x1xf32> to vector<2x1x32xf32>
    %684 = arith.mulf %683, %475 : vector<2x1x32xf32>
    %685 = arith.mulf %669, %680 : vector<2x1xf32>
    %686 = vector.shape_cast %685 : vector<2x1xf32> to vector<2x1x1xf32>
    %687 = vector.broadcast %686 : vector<2x1x1xf32> to vector<2x1x32xf32>
    %688 = arith.mulf %687, %476 : vector<2x1x32xf32>
    %689 = arith.addf %684, %688 : vector<2x1x32xf32>
    %690 = arith.mulf %671, %680 : vector<2x1xf32>
    %691 = vector.shape_cast %690 : vector<2x1xf32> to vector<2x1x1xf32>
    %692 = vector.broadcast %691 : vector<2x1x1xf32> to vector<2x1x32xf32>
    %693 = arith.mulf %692, %477 : vector<2x1x32xf32>
    %694 = arith.addf %689, %693 : vector<2x1x32xf32>
    %695 = arith.mulf %673, %680 : vector<2x1xf32>
    %696 = vector.shape_cast %695 : vector<2x1xf32> to vector<2x1x1xf32>
    %697 = vector.broadcast %696 : vector<2x1x1xf32> to vector<2x1x32xf32>
    %698 = arith.mulf %697, %478 : vector<2x1x32xf32>
    %699 = arith.addf %694, %698 : vector<2x1x32xf32>
    %c0_264 = arith.constant 0 : index
    %c12_265 = arith.constant 12 : index
    %c0_266 = arith.constant 0 : index
    %700 = vector.load %arg6[%c0_264, %c12_265, %c0_266] : memref<2x16x32xf32, #tpu.memory_space<vmem>>, vector<2x1x32xf32>
    %701 = arith.addf %700, %699 : vector<2x1x32xf32>
    %c0_267 = arith.constant 0 : index
    %c12_268 = arith.constant 12 : index
    %c0_269 = arith.constant 0 : index
    %702 = vector.load %arg6[%c0_267, %c12_268, %c0_269] : memref<2x16x32xf32, #tpu.memory_space<vmem>>, vector<2x1x32xf32>
    tpu.vector_store %arg6[%c0_267, %c12_268, %c0_269], %701 {strides = array<i32>} : memref<2x16x32xf32, #tpu.memory_space<vmem>>, vector<2x1x32xf32>,
    return
  }
  func.func @transform_0(%arg0: i32, %arg1: i32, %arg2: memref<3xf32, #tpu.memory_space<smem>>) -> (i32, i32, i32) {
    %c0_i32 = arith.constant 0 : i32
    %c0_i32_0 = arith.constant 0 : i32
    return %arg0, %arg1, %c0_i32 : i32, i32, i32
  }
  func.func @transform_1(%arg0: i32, %arg1: i32, %arg2: memref<3xf32, #tpu.memory_space<smem>>) -> (i32, i32, i32) {
    %c0_i32 = arith.constant 0 : i32
    %c0_i32_0 = arith.constant 0 : i32
    return %arg0, %arg1, %c0_i32 : i32, i32, i32
  }
  func.func @transform_2(%arg0: i32, %arg1: i32, %arg2: memref<3xf32, #tpu.memory_space<smem>>) -> (i32, i32, i32) {
    %c0_i32 = arith.constant 0 : i32
    %c0_i32_0 = arith.constant 0 : i32
    return %arg0, %arg1, %c0_i32 : i32, i32, i32
  }
  func.func @transform_3(%arg0: i32, %arg1: i32, %arg2: memref<3xf32, #tpu.memory_space<smem>>) -> (i32, i32, i32) {
    %c0_i32 = arith.constant 0 : i32
    %c0_i32_0 = arith.constant 0 : i32
    return %arg0, %arg1, %c0_i32 : i32, i32, i32
  }
}

module attributes {stable_mosaic.version = 11 : i64} {
  func.func @_dilated_attn_kernel(%arg0: i32, %arg1: i32, %arg2: memref<3xf32, #tpu.memory_space<smem>>, %arg3: memref<2x16x32xf32, #tpu.memory_space<vmem>>, %arg4: memref<2x16x32xf32, #tpu.memory_space<vmem>>, %arg5: memref<2x16x32xf32, #tpu.memory_space<vmem>>, %arg6: memref<2x16x32xf32, #tpu.memory_space<vmem>>) attributes {dimension_semantics = [#tpu.dimension_semantics<parallel>, #tpu.dimension_semantics<parallel>], iteration_bounds = array<i64: 4, 1>, scalar_prefetch = 1 : i64, scratch_operands = 0 : i64, tpu.core_type = #tpu.core_type<tc>, window_params = [{transform_indices = @transform_0, window_bounds = array<i64: 2, 16, 32>}, {transform_indices = @transform_1, window_bounds = array<i64: 2, 16, 32>}, {transform_indices = @transform_2, window_bounds = array<i64: 2, 16, 32>}, {transform_indices = @transform_3, window_bounds = array<i64: 2, 16, 32>}]} {
    %c0 = arith.constant 0 : index
    %0 = memref.load %arg2[%c0] : memref<3xf32, #tpu.memory_space<smem>>
    %c0_0 = arith.constant 0 : index
    %c0_1 = arith.constant 0 : index
    %c0_2 = arith.constant 0 : index
    %1 = vector.load %arg3[%c0_0, %c0_1, %c0_2] : memref<2x16x32xf32, #tpu.memory_space<vmem>>, vector<2x16x32xf32>
    %2 = vector.shape_cast %1 : vector<2x16x32xf32> to vector<2x4x4x32xf32>
    %3 = vector.extract_strided_slice %2 {offsets = [0, 0, 0, 0], sizes = [2, 4, 1, 32], strides = [1, 1, 1, 1]} : vector<2x4x4x32xf32> to vector<2x4x1x32xf32>
    %4 = vector.shape_cast %3 : vector<2x4x1x32xf32> to vector<2x4x32xf32>
    %5 = vector.extract_strided_slice %2 {offsets = [0, 0, 1, 0], sizes = [2, 4, 1, 32], strides = [1, 1, 1, 1]} : vector<2x4x4x32xf32> to vector<2x4x1x32xf32>
    %6 = vector.shape_cast %5 : vector<2x4x1x32xf32> to vector<2x4x32xf32>
    %7 = vector.extract_strided_slice %2 {offsets = [0, 0, 2, 0], sizes = [2, 4, 1, 32], strides = [1, 1, 1, 1]} : vector<2x4x4x32xf32> to vector<2x4x1x32xf32>
    %8 = vector.shape_cast %7 : vector<2x4x1x32xf32> to vector<2x4x32xf32>
    %9 = vector.extract_strided_slice %2 {offsets = [0, 0, 3, 0], sizes = [2, 4, 1, 32], strides = [1, 1, 1, 1]} : vector<2x4x4x32xf32> to vector<2x4x1x32xf32>
    %10 = vector.shape_cast %9 : vector<2x4x1x32xf32> to vector<2x4x32xf32>
    %c0_3 = arith.constant 0 : index
    %c0_4 = arith.constant 0 : index
    %c0_5 = arith.constant 0 : index
    %11 = vector.load %arg4[%c0_3, %c0_4, %c0_5] : memref<2x16x32xf32, #tpu.memory_space<vmem>>, vector<2x16x32xf32>
    %12 = vector.shape_cast %11 : vector<2x16x32xf32> to vector<2x4x4x32xf32>
    %13 = vector.extract_strided_slice %12 {offsets = [0, 0, 0, 0], sizes = [2, 4, 1, 32], strides = [1, 1, 1, 1]} : vector<2x4x4x32xf32> to vector<2x4x1x32xf32>
    %14 = vector.shape_cast %13 : vector<2x4x1x32xf32> to vector<2x4x32xf32>
    %15 = vector.extract_strided_slice %12 {offsets = [0, 0, 1, 0], sizes = [2, 4, 1, 32], strides = [1, 1, 1, 1]} : vector<2x4x4x32xf32> to vector<2x4x1x32xf32>
    %16 = vector.shape_cast %15 : vector<2x4x1x32xf32> to vector<2x4x32xf32>
    %17 = vector.extract_strided_slice %12 {offsets = [0, 0, 2, 0], sizes = [2, 4, 1, 32], strides = [1, 1, 1, 1]} : vector<2x4x4x32xf32> to vector<2x4x1x32xf32>
    %18 = vector.shape_cast %17 : vector<2x4x1x32xf32> to vector<2x4x32xf32>
    %19 = vector.extract_strided_slice %12 {offsets = [0, 0, 3, 0], sizes = [2, 4, 1, 32], strides = [1, 1, 1, 1]} : vector<2x4x4x32xf32> to vector<2x4x1x32xf32>
    %20 = vector.shape_cast %19 : vector<2x4x1x32xf32> to vector<2x4x32xf32>
    %c0_6 = arith.constant 0 : index
    %c0_7 = arith.constant 0 : index
    %c0_8 = arith.constant 0 : index
    %21 = vector.load %arg5[%c0_6, %c0_7, %c0_8] : memref<2x16x32xf32, #tpu.memory_space<vmem>>, vector<2x16x32xf32>
    %22 = vector.shape_cast %21 : vector<2x16x32xf32> to vector<2x4x4x32xf32>
    %23 = vector.extract_strided_slice %22 {offsets = [0, 0, 0, 0], sizes = [2, 4, 1, 32], strides = [1, 1, 1, 1]} : vector<2x4x4x32xf32> to vector<2x4x1x32xf32>
    %24 = vector.shape_cast %23 : vector<2x4x1x32xf32> to vector<2x4x32xf32>
    %25 = vector.extract_strided_slice %22 {offsets = [0, 0, 1, 0], sizes = [2, 4, 1, 32], strides = [1, 1, 1, 1]} : vector<2x4x4x32xf32> to vector<2x4x1x32xf32>
    %26 = vector.shape_cast %25 : vector<2x4x1x32xf32> to vector<2x4x32xf32>
    %27 = vector.extract_strided_slice %22 {offsets = [0, 0, 2, 0], sizes = [2, 4, 1, 32], strides = [1, 1, 1, 1]} : vector<2x4x4x32xf32> to vector<2x4x1x32xf32>
    %28 = vector.shape_cast %27 : vector<2x4x1x32xf32> to vector<2x4x32xf32>
    %29 = vector.extract_strided_slice %22 {offsets = [0, 0, 3, 0], sizes = [2, 4, 1, 32], strides = [1, 1, 1, 1]} : vector<2x4x4x32xf32> to vector<2x4x1x32xf32>
    %30 = vector.shape_cast %29 : vector<2x4x1x32xf32> to vector<2x4x32xf32>
    %31 = arith.mulf %4, %14 : vector<2x4x32xf32>
    %cst = arith.constant dense<0.000000e+00> : vector<2x4xf32>
    %32 = vector.multi_reduction <add>, %31, %cst [2] : vector<2x4x32xf32> to vector<2x4xf32>
    %cst_9 = arith.constant 0.176776692 : f32
    %33 = vector.broadcast %cst_9 : f32 to vector<2x4xf32>
    %34 = arith.mulf %32, %33 : vector<2x4xf32>
    %35 = arith.mulf %4, %16 : vector<2x4x32xf32>
    %cst_10 = arith.constant dense<0.000000e+00> : vector<2x4xf32>
    %36 = vector.multi_reduction <add>, %35, %cst_10 [2] : vector<2x4x32xf32> to vector<2x4xf32>
    %cst_11 = arith.constant 0.176776692 : f32
    %37 = vector.broadcast %cst_11 : f32 to vector<2x4xf32>
    %38 = arith.mulf %36, %37 : vector<2x4xf32>
    %39 = arith.mulf %4, %18 : vector<2x4x32xf32>
    %cst_12 = arith.constant dense<0.000000e+00> : vector<2x4xf32>
    %40 = vector.multi_reduction <add>, %39, %cst_12 [2] : vector<2x4x32xf32> to vector<2x4xf32>
    %cst_13 = arith.constant 0.176776692 : f32
    %41 = vector.broadcast %cst_13 : f32 to vector<2x4xf32>
    %42 = arith.mulf %40, %41 : vector<2x4xf32>
    %43 = arith.mulf %4, %20 : vector<2x4x32xf32>
    %cst_14 = arith.constant dense<0.000000e+00> : vector<2x4xf32>
    %44 = vector.multi_reduction <add>, %43, %cst_14 [2] : vector<2x4x32xf32> to vector<2x4xf32>
    %cst_15 = arith.constant 0.176776692 : f32
    %45 = vector.broadcast %cst_15 : f32 to vector<2x4xf32>
    %46 = arith.mulf %44, %45 : vector<2x4xf32>
    %47 = arith.maximumf %34, %38 : vector<2x4xf32>
    %48 = arith.maximumf %47, %42 : vector<2x4xf32>
    %49 = arith.maximumf %48, %46 : vector<2x4xf32>
    %50 = arith.subf %34, %49 : vector<2x4xf32>
    %51 = math.exp %50 : vector<2x4xf32>
    %52 = arith.subf %38, %49 : vector<2x4xf32>
    %53 = math.exp %52 : vector<2x4xf32>
    %54 = arith.subf %42, %49 : vector<2x4xf32>
    %55 = math.exp %54 : vector<2x4xf32>
    %56 = arith.subf %46, %49 : vector<2x4xf32>
    %57 = math.exp %56 : vector<2x4xf32>
    %58 = arith.addf %51, %53 : vector<2x4xf32>
    %59 = arith.addf %58, %55 : vector<2x4xf32>
    %60 = arith.addf %59, %57 : vector<2x4xf32>
    %cst_16 = arith.constant 1.000000e+00 : f32
    %61 = vector.broadcast %cst_16 : f32 to vector<2x4xf32>
    %62 = arith.divf %61, %60 : vector<2x4xf32>
    %63 = vector.broadcast %0 : f32 to vector<2x4xf32>
    %64 = arith.mulf %62, %63 : vector<2x4xf32>
    %65 = arith.mulf %51, %64 : vector<2x4xf32>
    %66 = vector.shape_cast %65 : vector<2x4xf32> to vector<2x4x1xf32>
    %67 = vector.broadcast %66 : vector<2x4x1xf32> to vector<2x4x32xf32>
    %68 = arith.mulf %67, %24 : vector<2x4x32xf32>
    %69 = arith.mulf %53, %64 : vector<2x4xf32>
    %70 = vector.shape_cast %69 : vector<2x4xf32> to vector<2x4x1xf32>
    %71 = vector.broadcast %70 : vector<2x4x1xf32> to vector<2x4x32xf32>
    %72 = arith.mulf %71, %26 : vector<2x4x32xf32>
    %73 = arith.addf %68, %72 : vector<2x4x32xf32>
    %74 = arith.mulf %55, %64 : vector<2x4xf32>
    %75 = vector.shape_cast %74 : vector<2x4xf32> to vector<2x4x1xf32>
    %76 = vector.broadcast %75 : vector<2x4x1xf32> to vector<2x4x32xf32>
    %77 = arith.mulf %76, %28 : vector<2x4x32xf32>
    %78 = arith.addf %73, %77 : vector<2x4x32xf32>
    %79 = arith.mulf %57, %64 : vector<2x4xf32>
    %80 = vector.shape_cast %79 : vector<2x4xf32> to vector<2x4x1xf32>
    %81 = vector.broadcast %80 : vector<2x4x1xf32> to vector<2x4x32xf32>
    %82 = arith.mulf %81, %30 : vector<2x4x32xf32>
    %83 = arith.addf %78, %82 : vector<2x4x32xf32>
    %84 = arith.mulf %6, %14 : vector<2x4x32xf32>
    %cst_17 = arith.constant dense<0.000000e+00> : vector<2x4xf32>
    %85 = vector.multi_reduction <add>, %84, %cst_17 [2] : vector<2x4x32xf32> to vector<2x4xf32>
    %cst_18 = arith.constant 0.176776692 : f32
    %86 = vector.broadcast %cst_18 : f32 to vector<2x4xf32>
    %87 = arith.mulf %85, %86 : vector<2x4xf32>
    %88 = arith.mulf %6, %16 : vector<2x4x32xf32>
    %cst_19 = arith.constant dense<0.000000e+00> : vector<2x4xf32>
    %89 = vector.multi_reduction <add>, %88, %cst_19 [2] : vector<2x4x32xf32> to vector<2x4xf32>
    %cst_20 = arith.constant 0.176776692 : f32
    %90 = vector.broadcast %cst_20 : f32 to vector<2x4xf32>
    %91 = arith.mulf %89, %90 : vector<2x4xf32>
    %92 = arith.mulf %6, %18 : vector<2x4x32xf32>
    %cst_21 = arith.constant dense<0.000000e+00> : vector<2x4xf32>
    %93 = vector.multi_reduction <add>, %92, %cst_21 [2] : vector<2x4x32xf32> to vector<2x4xf32>
    %cst_22 = arith.constant 0.176776692 : f32
    %94 = vector.broadcast %cst_22 : f32 to vector<2x4xf32>
    %95 = arith.mulf %93, %94 : vector<2x4xf32>
    %96 = arith.mulf %6, %20 : vector<2x4x32xf32>
    %cst_23 = arith.constant dense<0.000000e+00> : vector<2x4xf32>
    %97 = vector.multi_reduction <add>, %96, %cst_23 [2] : vector<2x4x32xf32> to vector<2x4xf32>
    %cst_24 = arith.constant 0.176776692 : f32
    %98 = vector.broadcast %cst_24 : f32 to vector<2x4xf32>
    %99 = arith.mulf %97, %98 : vector<2x4xf32>
    %100 = arith.maximumf %87, %91 : vector<2x4xf32>
    %101 = arith.maximumf %100, %95 : vector<2x4xf32>
    %102 = arith.maximumf %101, %99 : vector<2x4xf32>
    %103 = arith.subf %87, %102 : vector<2x4xf32>
    %104 = math.exp %103 : vector<2x4xf32>
    %105 = arith.subf %91, %102 : vector<2x4xf32>
    %106 = math.exp %105 : vector<2x4xf32>
    %107 = arith.subf %95, %102 : vector<2x4xf32>
    %108 = math.exp %107 : vector<2x4xf32>
    %109 = arith.subf %99, %102 : vector<2x4xf32>
    %110 = math.exp %109 : vector<2x4xf32>
    %111 = arith.addf %104, %106 : vector<2x4xf32>
    %112 = arith.addf %111, %108 : vector<2x4xf32>
    %113 = arith.addf %112, %110 : vector<2x4xf32>
    %cst_25 = arith.constant 1.000000e+00 : f32
    %114 = vector.broadcast %cst_25 : f32 to vector<2x4xf32>
    %115 = arith.divf %114, %113 : vector<2x4xf32>
    %116 = vector.broadcast %0 : f32 to vector<2x4xf32>
    %117 = arith.mulf %115, %116 : vector<2x4xf32>
    %118 = arith.mulf %104, %117 : vector<2x4xf32>
    %119 = vector.shape_cast %118 : vector<2x4xf32> to vector<2x4x1xf32>
    %120 = vector.broadcast %119 : vector<2x4x1xf32> to vector<2x4x32xf32>
    %121 = arith.mulf %120, %24 : vector<2x4x32xf32>
    %122 = arith.mulf %106, %117 : vector<2x4xf32>
    %123 = vector.shape_cast %122 : vector<2x4xf32> to vector<2x4x1xf32>
    %124 = vector.broadcast %123 : vector<2x4x1xf32> to vector<2x4x32xf32>
    %125 = arith.mulf %124, %26 : vector<2x4x32xf32>
    %126 = arith.addf %121, %125 : vector<2x4x32xf32>
    %127 = arith.mulf %108, %117 : vector<2x4xf32>
    %128 = vector.shape_cast %127 : vector<2x4xf32> to vector<2x4x1xf32>
    %129 = vector.broadcast %128 : vector<2x4x1xf32> to vector<2x4x32xf32>
    %130 = arith.mulf %129, %28 : vector<2x4x32xf32>
    %131 = arith.addf %126, %130 : vector<2x4x32xf32>
    %132 = arith.mulf %110, %117 : vector<2x4xf32>
    %133 = vector.shape_cast %132 : vector<2x4xf32> to vector<2x4x1xf32>
    %134 = vector.broadcast %133 : vector<2x4x1xf32> to vector<2x4x32xf32>
    %135 = arith.mulf %134, %30 : vector<2x4x32xf32>
    %136 = arith.addf %131, %135 : vector<2x4x32xf32>
    %137 = arith.mulf %8, %14 : vector<2x4x32xf32>
    %cst_26 = arith.constant dense<0.000000e+00> : vector<2x4xf32>
    %138 = vector.multi_reduction <add>, %137, %cst_26 [2] : vector<2x4x32xf32> to vector<2x4xf32>
    %cst_27 = arith.constant 0.176776692 : f32
    %139 = vector.broadcast %cst_27 : f32 to vector<2x4xf32>
    %140 = arith.mulf %138, %139 : vector<2x4xf32>
    %141 = arith.mulf %8, %16 : vector<2x4x32xf32>
    %cst_28 = arith.constant dense<0.000000e+00> : vector<2x4xf32>
    %142 = vector.multi_reduction <add>, %141, %cst_28 [2] : vector<2x4x32xf32> to vector<2x4xf32>
    %cst_29 = arith.constant 0.176776692 : f32
    %143 = vector.broadcast %cst_29 : f32 to vector<2x4xf32>
    %144 = arith.mulf %142, %143 : vector<2x4xf32>
    %145 = arith.mulf %8, %18 : vector<2x4x32xf32>
    %cst_30 = arith.constant dense<0.000000e+00> : vector<2x4xf32>
    %146 = vector.multi_reduction <add>, %145, %cst_30 [2] : vector<2x4x32xf32> to vector<2x4xf32>
    %cst_31 = arith.constant 0.176776692 : f32
    %147 = vector.broadcast %cst_31 : f32 to vector<2x4xf32>
    %148 = arith.mulf %146, %147 : vector<2x4xf32>
    %149 = arith.mulf %8, %20 : vector<2x4x32xf32>
    %cst_32 = arith.constant dense<0.000000e+00> : vector<2x4xf32>
    %150 = vector.multi_reduction <add>, %149, %cst_32 [2] : vector<2x4x32xf32> to vector<2x4xf32>
    %cst_33 = arith.constant 0.176776692 : f32
    %151 = vector.broadcast %cst_33 : f32 to vector<2x4xf32>
    %152 = arith.mulf %150, %151 : vector<2x4xf32>
    %153 = arith.maximumf %140, %144 : vector<2x4xf32>
    %154 = arith.maximumf %153, %148 : vector<2x4xf32>
    %155 = arith.maximumf %154, %152 : vector<2x4xf32>
    %156 = arith.subf %140, %155 : vector<2x4xf32>
    %157 = math.exp %156 : vector<2x4xf32>
    %158 = arith.subf %144, %155 : vector<2x4xf32>
    %159 = math.exp %158 : vector<2x4xf32>
    %160 = arith.subf %148, %155 : vector<2x4xf32>
    %161 = math.exp %160 : vector<2x4xf32>
    %162 = arith.subf %152, %155 : vector<2x4xf32>
    %163 = math.exp %162 : vector<2x4xf32>
    %164 = arith.addf %157, %159 : vector<2x4xf32>
    %165 = arith.addf %164, %161 : vector<2x4xf32>
    %166 = arith.addf %165, %163 : vector<2x4xf32>
    %cst_34 = arith.constant 1.000000e+00 : f32
    %167 = vector.broadcast %cst_34 : f32 to vector<2x4xf32>
    %168 = arith.divf %167, %166 : vector<2x4xf32>
    %169 = vector.broadcast %0 : f32 to vector<2x4xf32>
    %170 = arith.mulf %168, %169 : vector<2x4xf32>
    %171 = arith.mulf %157, %170 : vector<2x4xf32>
    %172 = vector.shape_cast %171 : vector<2x4xf32> to vector<2x4x1xf32>
    %173 = vector.broadcast %172 : vector<2x4x1xf32> to vector<2x4x32xf32>
    %174 = arith.mulf %173, %24 : vector<2x4x32xf32>
    %175 = arith.mulf %159, %170 : vector<2x4xf32>
    %176 = vector.shape_cast %175 : vector<2x4xf32> to vector<2x4x1xf32>
    %177 = vector.broadcast %176 : vector<2x4x1xf32> to vector<2x4x32xf32>
    %178 = arith.mulf %177, %26 : vector<2x4x32xf32>
    %179 = arith.addf %174, %178 : vector<2x4x32xf32>
    %180 = arith.mulf %161, %170 : vector<2x4xf32>
    %181 = vector.shape_cast %180 : vector<2x4xf32> to vector<2x4x1xf32>
    %182 = vector.broadcast %181 : vector<2x4x1xf32> to vector<2x4x32xf32>
    %183 = arith.mulf %182, %28 : vector<2x4x32xf32>
    %184 = arith.addf %179, %183 : vector<2x4x32xf32>
    %185 = arith.mulf %163, %170 : vector<2x4xf32>
    %186 = vector.shape_cast %185 : vector<2x4xf32> to vector<2x4x1xf32>
    %187 = vector.broadcast %186 : vector<2x4x1xf32> to vector<2x4x32xf32>
    %188 = arith.mulf %187, %30 : vector<2x4x32xf32>
    %189 = arith.addf %184, %188 : vector<2x4x32xf32>
    %190 = arith.mulf %10, %14 : vector<2x4x32xf32>
    %cst_35 = arith.constant dense<0.000000e+00> : vector<2x4xf32>
    %191 = vector.multi_reduction <add>, %190, %cst_35 [2] : vector<2x4x32xf32> to vector<2x4xf32>
    %cst_36 = arith.constant 0.176776692 : f32
    %192 = vector.broadcast %cst_36 : f32 to vector<2x4xf32>
    %193 = arith.mulf %191, %192 : vector<2x4xf32>
    %194 = arith.mulf %10, %16 : vector<2x4x32xf32>
    %cst_37 = arith.constant dense<0.000000e+00> : vector<2x4xf32>
    %195 = vector.multi_reduction <add>, %194, %cst_37 [2] : vector<2x4x32xf32> to vector<2x4xf32>
    %cst_38 = arith.constant 0.176776692 : f32
    %196 = vector.broadcast %cst_38 : f32 to vector<2x4xf32>
    %197 = arith.mulf %195, %196 : vector<2x4xf32>
    %198 = arith.mulf %10, %18 : vector<2x4x32xf32>
    %cst_39 = arith.constant dense<0.000000e+00> : vector<2x4xf32>
    %199 = vector.multi_reduction <add>, %198, %cst_39 [2] : vector<2x4x32xf32> to vector<2x4xf32>
    %cst_40 = arith.constant 0.176776692 : f32
    %200 = vector.broadcast %cst_40 : f32 to vector<2x4xf32>
    %201 = arith.mulf %199, %200 : vector<2x4xf32>
    %202 = arith.mulf %10, %20 : vector<2x4x32xf32>
    %cst_41 = arith.constant dense<0.000000e+00> : vector<2x4xf32>
    %203 = vector.multi_reduction <add>, %202, %cst_41 [2] : vector<2x4x32xf32> to vector<2x4xf32>
    %cst_42 = arith.constant 0.176776692 : f32
    %204 = vector.broadcast %cst_42 : f32 to vector<2x4xf32>
    %205 = arith.mulf %203, %204 : vector<2x4xf32>
    %206 = arith.maximumf %193, %197 : vector<2x4xf32>
    %207 = arith.maximumf %206, %201 : vector<2x4xf32>
    %208 = arith.maximumf %207, %205 : vector<2x4xf32>
    %209 = arith.subf %193, %208 : vector<2x4xf32>
    %210 = math.exp %209 : vector<2x4xf32>
    %211 = arith.subf %197, %208 : vector<2x4xf32>
    %212 = math.exp %211 : vector<2x4xf32>
    %213 = arith.subf %201, %208 : vector<2x4xf32>
    %214 = math.exp %213 : vector<2x4xf32>
    %215 = arith.subf %205, %208 : vector<2x4xf32>
    %216 = math.exp %215 : vector<2x4xf32>
    %217 = arith.addf %210, %212 : vector<2x4xf32>
    %218 = arith.addf %217, %214 : vector<2x4xf32>
    %219 = arith.addf %218, %216 : vector<2x4xf32>
    %cst_43 = arith.constant 1.000000e+00 : f32
    %220 = vector.broadcast %cst_43 : f32 to vector<2x4xf32>
    %221 = arith.divf %220, %219 : vector<2x4xf32>
    %222 = vector.broadcast %0 : f32 to vector<2x4xf32>
    %223 = arith.mulf %221, %222 : vector<2x4xf32>
    %224 = arith.mulf %210, %223 : vector<2x4xf32>
    %225 = vector.shape_cast %224 : vector<2x4xf32> to vector<2x4x1xf32>
    %226 = vector.broadcast %225 : vector<2x4x1xf32> to vector<2x4x32xf32>
    %227 = arith.mulf %226, %24 : vector<2x4x32xf32>
    %228 = arith.mulf %212, %223 : vector<2x4xf32>
    %229 = vector.shape_cast %228 : vector<2x4xf32> to vector<2x4x1xf32>
    %230 = vector.broadcast %229 : vector<2x4x1xf32> to vector<2x4x32xf32>
    %231 = arith.mulf %230, %26 : vector<2x4x32xf32>
    %232 = arith.addf %227, %231 : vector<2x4x32xf32>
    %233 = arith.mulf %214, %223 : vector<2x4xf32>
    %234 = vector.shape_cast %233 : vector<2x4xf32> to vector<2x4x1xf32>
    %235 = vector.broadcast %234 : vector<2x4x1xf32> to vector<2x4x32xf32>
    %236 = arith.mulf %235, %28 : vector<2x4x32xf32>
    %237 = arith.addf %232, %236 : vector<2x4x32xf32>
    %238 = arith.mulf %216, %223 : vector<2x4xf32>
    %239 = vector.shape_cast %238 : vector<2x4xf32> to vector<2x4x1xf32>
    %240 = vector.broadcast %239 : vector<2x4x1xf32> to vector<2x4x32xf32>
    %241 = arith.mulf %240, %30 : vector<2x4x32xf32>
    %242 = arith.addf %237, %241 : vector<2x4x32xf32>
    %243 = vector.shape_cast %83 : vector<2x4x32xf32> to vector<2x4x1x32xf32>
    %244 = vector.shape_cast %136 : vector<2x4x32xf32> to vector<2x4x1x32xf32>
    %245 = vector.shape_cast %189 : vector<2x4x32xf32> to vector<2x4x1x32xf32>
    %246 = vector.shape_cast %242 : vector<2x4x32xf32> to vector<2x4x1x32xf32>
    %247 = tpu.concatenate %243, %244, %245, %246 in 2 : vector<2x4x1x32xf32>, vector<2x4x1x32xf32>, vector<2x4x1x32xf32>, vector<2x4x1x32xf32> -> vector<2x4x4x32xf32>
    %248 = vector.shape_cast %247 : vector<2x4x4x32xf32> to vector<2x16x32xf32>
    %c0_44 = arith.constant 0 : index
    %c0_45 = arith.constant 0 : index
    %c0_46 = arith.constant 0 : index
    %249 = vector.load %arg6[%c0_44, %c0_45, %c0_46] : memref<2x16x32xf32, #tpu.memory_space<vmem>>, vector<2x16x32xf32>
    tpu.vector_store %arg6[%c0_44, %c0_45, %c0_46], %248 {strides = array<i32>} : memref<2x16x32xf32, #tpu.memory_space<vmem>>, vector<2x16x32xf32>,
    %c1 = arith.constant 1 : index
    %250 = memref.load %arg2[%c1] : memref<3xf32, #tpu.memory_space<smem>>
    %c0_47 = arith.constant 0 : index
    %c0_48 = arith.constant 0 : index
    %c0_49 = arith.constant 0 : index
    %251 = vector.load %arg3[%c0_47, %c0_48, %c0_49] : memref<2x16x32xf32, #tpu.memory_space<vmem>>, vector<2x16x32xf32>
    %252 = vector.shape_cast %251 : vector<2x16x32xf32> to vector<2x2x8x32xf32>
    %253 = vector.extract_strided_slice %252 {offsets = [0, 0, 0, 0], sizes = [2, 2, 1, 32], strides = [1, 1, 1, 1]} : vector<2x2x8x32xf32> to vector<2x2x1x32xf32>
    %254 = vector.shape_cast %253 : vector<2x2x1x32xf32> to vector<2x2x32xf32>
    %255 = vector.extract_strided_slice %252 {offsets = [0, 0, 2, 0], sizes = [2, 2, 1, 32], strides = [1, 1, 1, 1]} : vector<2x2x8x32xf32> to vector<2x2x1x32xf32>
    %256 = vector.shape_cast %255 : vector<2x2x1x32xf32> to vector<2x2x32xf32>
    %257 = vector.extract_strided_slice %252 {offsets = [0, 0, 4, 0], sizes = [2, 2, 1, 32], strides = [1, 1, 1, 1]} : vector<2x2x8x32xf32> to vector<2x2x1x32xf32>
    %258 = vector.shape_cast %257 : vector<2x2x1x32xf32> to vector<2x2x32xf32>
    %259 = vector.extract_strided_slice %252 {offsets = [0, 0, 6, 0], sizes = [2, 2, 1, 32], strides = [1, 1, 1, 1]} : vector<2x2x8x32xf32> to vector<2x2x1x32xf32>
    %260 = vector.shape_cast %259 : vector<2x2x1x32xf32> to vector<2x2x32xf32>
    %c0_50 = arith.constant 0 : index
    %c0_51 = arith.constant 0 : index
    %c0_52 = arith.constant 0 : index
    %261 = vector.load %arg4[%c0_50, %c0_51, %c0_52] : memref<2x16x32xf32, #tpu.memory_space<vmem>>, vector<2x16x32xf32>
    %262 = vector.shape_cast %261 : vector<2x16x32xf32> to vector<2x2x8x32xf32>
    %263 = vector.extract_strided_slice %262 {offsets = [0, 0, 0, 0], sizes = [2, 2, 1, 32], strides = [1, 1, 1, 1]} : vector<2x2x8x32xf32> to vector<2x2x1x32xf32>
    %264 = vector.shape_cast %263 : vector<2x2x1x32xf32> to vector<2x2x32xf32>
    %265 = vector.extract_strided_slice %262 {offsets = [0, 0, 2, 0], sizes = [2, 2, 1, 32], strides = [1, 1, 1, 1]} : vector<2x2x8x32xf32> to vector<2x2x1x32xf32>
    %266 = vector.shape_cast %265 : vector<2x2x1x32xf32> to vector<2x2x32xf32>
    %267 = vector.extract_strided_slice %262 {offsets = [0, 0, 4, 0], sizes = [2, 2, 1, 32], strides = [1, 1, 1, 1]} : vector<2x2x8x32xf32> to vector<2x2x1x32xf32>
    %268 = vector.shape_cast %267 : vector<2x2x1x32xf32> to vector<2x2x32xf32>
    %269 = vector.extract_strided_slice %262 {offsets = [0, 0, 6, 0], sizes = [2, 2, 1, 32], strides = [1, 1, 1, 1]} : vector<2x2x8x32xf32> to vector<2x2x1x32xf32>
    %270 = vector.shape_cast %269 : vector<2x2x1x32xf32> to vector<2x2x32xf32>
    %c0_53 = arith.constant 0 : index
    %c0_54 = arith.constant 0 : index
    %c0_55 = arith.constant 0 : index
    %271 = vector.load %arg5[%c0_53, %c0_54, %c0_55] : memref<2x16x32xf32, #tpu.memory_space<vmem>>, vector<2x16x32xf32>
    %272 = vector.shape_cast %271 : vector<2x16x32xf32> to vector<2x2x8x32xf32>
    %273 = vector.extract_strided_slice %272 {offsets = [0, 0, 0, 0], sizes = [2, 2, 1, 32], strides = [1, 1, 1, 1]} : vector<2x2x8x32xf32> to vector<2x2x1x32xf32>
    %274 = vector.shape_cast %273 : vector<2x2x1x32xf32> to vector<2x2x32xf32>
    %275 = vector.extract_strided_slice %272 {offsets = [0, 0, 2, 0], sizes = [2, 2, 1, 32], strides = [1, 1, 1, 1]} : vector<2x2x8x32xf32> to vector<2x2x1x32xf32>
    %276 = vector.shape_cast %275 : vector<2x2x1x32xf32> to vector<2x2x32xf32>
    %277 = vector.extract_strided_slice %272 {offsets = [0, 0, 4, 0], sizes = [2, 2, 1, 32], strides = [1, 1, 1, 1]} : vector<2x2x8x32xf32> to vector<2x2x1x32xf32>
    %278 = vector.shape_cast %277 : vector<2x2x1x32xf32> to vector<2x2x32xf32>
    %279 = vector.extract_strided_slice %272 {offsets = [0, 0, 6, 0], sizes = [2, 2, 1, 32], strides = [1, 1, 1, 1]} : vector<2x2x8x32xf32> to vector<2x2x1x32xf32>
    %280 = vector.shape_cast %279 : vector<2x2x1x32xf32> to vector<2x2x32xf32>
    %281 = arith.mulf %254, %264 : vector<2x2x32xf32>
    %cst_56 = arith.constant dense<0.000000e+00> : vector<2x2xf32>
    %282 = vector.multi_reduction <add>, %281, %cst_56 [2] : vector<2x2x32xf32> to vector<2x2xf32>
    %cst_57 = arith.constant 0.176776692 : f32
    %283 = vector.broadcast %cst_57 : f32 to vector<2x2xf32>
    %284 = arith.mulf %282, %283 : vector<2x2xf32>
    %285 = arith.mulf %254, %266 : vector<2x2x32xf32>
    %cst_58 = arith.constant dense<0.000000e+00> : vector<2x2xf32>
    %286 = vector.multi_reduction <add>, %285, %cst_58 [2] : vector<2x2x32xf32> to vector<2x2xf32>
    %cst_59 = arith.constant 0.176776692 : f32
    %287 = vector.broadcast %cst_59 : f32 to vector<2x2xf32>
    %288 = arith.mulf %286, %287 : vector<2x2xf32>
    %289 = arith.mulf %254, %268 : vector<2x2x32xf32>
    %cst_60 = arith.constant dense<0.000000e+00> : vector<2x2xf32>
    %290 = vector.multi_reduction <add>, %289, %cst_60 [2] : vector<2x2x32xf32> to vector<2x2xf32>
    %cst_61 = arith.constant 0.176776692 : f32
    %291 = vector.broadcast %cst_61 : f32 to vector<2x2xf32>
    %292 = arith.mulf %290, %291 : vector<2x2xf32>
    %293 = arith.mulf %254, %270 : vector<2x2x32xf32>
    %cst_62 = arith.constant dense<0.000000e+00> : vector<2x2xf32>
    %294 = vector.multi_reduction <add>, %293, %cst_62 [2] : vector<2x2x32xf32> to vector<2x2xf32>
    %cst_63 = arith.constant 0.176776692 : f32
    %295 = vector.broadcast %cst_63 : f32 to vector<2x2xf32>
    %296 = arith.mulf %294, %295 : vector<2x2xf32>
    %297 = arith.maximumf %284, %288 : vector<2x2xf32>
    %298 = arith.maximumf %297, %292 : vector<2x2xf32>
    %299 = arith.maximumf %298, %296 : vector<2x2xf32>
    %300 = arith.subf %284, %299 : vector<2x2xf32>
    %301 = math.exp %300 : vector<2x2xf32>
    %302 = arith.subf %288, %299 : vector<2x2xf32>
    %303 = math.exp %302 : vector<2x2xf32>
    %304 = arith.subf %292, %299 : vector<2x2xf32>
    %305 = math.exp %304 : vector<2x2xf32>
    %306 = arith.subf %296, %299 : vector<2x2xf32>
    %307 = math.exp %306 : vector<2x2xf32>
    %308 = arith.addf %301, %303 : vector<2x2xf32>
    %309 = arith.addf %308, %305 : vector<2x2xf32>
    %310 = arith.addf %309, %307 : vector<2x2xf32>
    %cst_64 = arith.constant 1.000000e+00 : f32
    %311 = vector.broadcast %cst_64 : f32 to vector<2x2xf32>
    %312 = arith.divf %311, %310 : vector<2x2xf32>
    %313 = vector.broadcast %250 : f32 to vector<2x2xf32>
    %314 = arith.mulf %312, %313 : vector<2x2xf32>
    %315 = arith.mulf %301, %314 : vector<2x2xf32>
    %316 = vector.shape_cast %315 : vector<2x2xf32> to vector<2x2x1xf32>
    %317 = vector.broadcast %316 : vector<2x2x1xf32> to vector<2x2x32xf32>
    %318 = arith.mulf %317, %274 : vector<2x2x32xf32>
    %319 = arith.mulf %303, %314 : vector<2x2xf32>
    %320 = vector.shape_cast %319 : vector<2x2xf32> to vector<2x2x1xf32>
    %321 = vector.broadcast %320 : vector<2x2x1xf32> to vector<2x2x32xf32>
    %322 = arith.mulf %321, %276 : vector<2x2x32xf32>
    %323 = arith.addf %318, %322 : vector<2x2x32xf32>
    %324 = arith.mulf %305, %314 : vector<2x2xf32>
    %325 = vector.shape_cast %324 : vector<2x2xf32> to vector<2x2x1xf32>
    %326 = vector.broadcast %325 : vector<2x2x1xf32> to vector<2x2x32xf32>
    %327 = arith.mulf %326, %278 : vector<2x2x32xf32>
    %328 = arith.addf %323, %327 : vector<2x2x32xf32>
    %329 = arith.mulf %307, %314 : vector<2x2xf32>
    %330 = vector.shape_cast %329 : vector<2x2xf32> to vector<2x2x1xf32>
    %331 = vector.broadcast %330 : vector<2x2x1xf32> to vector<2x2x32xf32>
    %332 = arith.mulf %331, %280 : vector<2x2x32xf32>
    %333 = arith.addf %328, %332 : vector<2x2x32xf32>
    %334 = arith.mulf %256, %264 : vector<2x2x32xf32>
    %cst_65 = arith.constant dense<0.000000e+00> : vector<2x2xf32>
    %335 = vector.multi_reduction <add>, %334, %cst_65 [2] : vector<2x2x32xf32> to vector<2x2xf32>
    %cst_66 = arith.constant 0.176776692 : f32
    %336 = vector.broadcast %cst_66 : f32 to vector<2x2xf32>
    %337 = arith.mulf %335, %336 : vector<2x2xf32>
    %338 = arith.mulf %256, %266 : vector<2x2x32xf32>
    %cst_67 = arith.constant dense<0.000000e+00> : vector<2x2xf32>
    %339 = vector.multi_reduction <add>, %338, %cst_67 [2] : vector<2x2x32xf32> to vector<2x2xf32>
    %cst_68 = arith.constant 0.176776692 : f32
    %340 = vector.broadcast %cst_68 : f32 to vector<2x2xf32>
    %341 = arith.mulf %339, %340 : vector<2x2xf32>
    %342 = arith.mulf %256, %268 : vector<2x2x32xf32>
    %cst_69 = arith.constant dense<0.000000e+00> : vector<2x2xf32>
    %343 = vector.multi_reduction <add>, %342, %cst_69 [2] : vector<2x2x32xf32> to vector<2x2xf32>
    %cst_70 = arith.constant 0.176776692 : f32
    %344 = vector.broadcast %cst_70 : f32 to vector<2x2xf32>
    %345 = arith.mulf %343, %344 : vector<2x2xf32>
    %346 = arith.mulf %256, %270 : vector<2x2x32xf32>
    %cst_71 = arith.constant dense<0.000000e+00> : vector<2x2xf32>
    %347 = vector.multi_reduction <add>, %346, %cst_71 [2] : vector<2x2x32xf32> to vector<2x2xf32>
    %cst_72 = arith.constant 0.176776692 : f32
    %348 = vector.broadcast %cst_72 : f32 to vector<2x2xf32>
    %349 = arith.mulf %347, %348 : vector<2x2xf32>
    %350 = arith.maximumf %337, %341 : vector<2x2xf32>
    %351 = arith.maximumf %350, %345 : vector<2x2xf32>
    %352 = arith.maximumf %351, %349 : vector<2x2xf32>
    %353 = arith.subf %337, %352 : vector<2x2xf32>
    %354 = math.exp %353 : vector<2x2xf32>
    %355 = arith.subf %341, %352 : vector<2x2xf32>
    %356 = math.exp %355 : vector<2x2xf32>
    %357 = arith.subf %345, %352 : vector<2x2xf32>
    %358 = math.exp %357 : vector<2x2xf32>
    %359 = arith.subf %349, %352 : vector<2x2xf32>
    %360 = math.exp %359 : vector<2x2xf32>
    %361 = arith.addf %354, %356 : vector<2x2xf32>
    %362 = arith.addf %361, %358 : vector<2x2xf32>
    %363 = arith.addf %362, %360 : vector<2x2xf32>
    %cst_73 = arith.constant 1.000000e+00 : f32
    %364 = vector.broadcast %cst_73 : f32 to vector<2x2xf32>
    %365 = arith.divf %364, %363 : vector<2x2xf32>
    %366 = vector.broadcast %250 : f32 to vector<2x2xf32>
    %367 = arith.mulf %365, %366 : vector<2x2xf32>
    %368 = arith.mulf %354, %367 : vector<2x2xf32>
    %369 = vector.shape_cast %368 : vector<2x2xf32> to vector<2x2x1xf32>
    %370 = vector.broadcast %369 : vector<2x2x1xf32> to vector<2x2x32xf32>
    %371 = arith.mulf %370, %274 : vector<2x2x32xf32>
    %372 = arith.mulf %356, %367 : vector<2x2xf32>
    %373 = vector.shape_cast %372 : vector<2x2xf32> to vector<2x2x1xf32>
    %374 = vector.broadcast %373 : vector<2x2x1xf32> to vector<2x2x32xf32>
    %375 = arith.mulf %374, %276 : vector<2x2x32xf32>
    %376 = arith.addf %371, %375 : vector<2x2x32xf32>
    %377 = arith.mulf %358, %367 : vector<2x2xf32>
    %378 = vector.shape_cast %377 : vector<2x2xf32> to vector<2x2x1xf32>
    %379 = vector.broadcast %378 : vector<2x2x1xf32> to vector<2x2x32xf32>
    %380 = arith.mulf %379, %278 : vector<2x2x32xf32>
    %381 = arith.addf %376, %380 : vector<2x2x32xf32>
    %382 = arith.mulf %360, %367 : vector<2x2xf32>
    %383 = vector.shape_cast %382 : vector<2x2xf32> to vector<2x2x1xf32>
    %384 = vector.broadcast %383 : vector<2x2x1xf32> to vector<2x2x32xf32>
    %385 = arith.mulf %384, %280 : vector<2x2x32xf32>
    %386 = arith.addf %381, %385 : vector<2x2x32xf32>
    %387 = arith.mulf %258, %264 : vector<2x2x32xf32>
    %cst_74 = arith.constant dense<0.000000e+00> : vector<2x2xf32>
    %388 = vector.multi_reduction <add>, %387, %cst_74 [2] : vector<2x2x32xf32> to vector<2x2xf32>
    %cst_75 = arith.constant 0.176776692 : f32
    %389 = vector.broadcast %cst_75 : f32 to vector<2x2xf32>
    %390 = arith.mulf %388, %389 : vector<2x2xf32>
    %391 = arith.mulf %258, %266 : vector<2x2x32xf32>
    %cst_76 = arith.constant dense<0.000000e+00> : vector<2x2xf32>
    %392 = vector.multi_reduction <add>, %391, %cst_76 [2] : vector<2x2x32xf32> to vector<2x2xf32>
    %cst_77 = arith.constant 0.176776692 : f32
    %393 = vector.broadcast %cst_77 : f32 to vector<2x2xf32>
    %394 = arith.mulf %392, %393 : vector<2x2xf32>
    %395 = arith.mulf %258, %268 : vector<2x2x32xf32>
    %cst_78 = arith.constant dense<0.000000e+00> : vector<2x2xf32>
    %396 = vector.multi_reduction <add>, %395, %cst_78 [2] : vector<2x2x32xf32> to vector<2x2xf32>
    %cst_79 = arith.constant 0.176776692 : f32
    %397 = vector.broadcast %cst_79 : f32 to vector<2x2xf32>
    %398 = arith.mulf %396, %397 : vector<2x2xf32>
    %399 = arith.mulf %258, %270 : vector<2x2x32xf32>
    %cst_80 = arith.constant dense<0.000000e+00> : vector<2x2xf32>
    %400 = vector.multi_reduction <add>, %399, %cst_80 [2] : vector<2x2x32xf32> to vector<2x2xf32>
    %cst_81 = arith.constant 0.176776692 : f32
    %401 = vector.broadcast %cst_81 : f32 to vector<2x2xf32>
    %402 = arith.mulf %400, %401 : vector<2x2xf32>
    %403 = arith.maximumf %390, %394 : vector<2x2xf32>
    %404 = arith.maximumf %403, %398 : vector<2x2xf32>
    %405 = arith.maximumf %404, %402 : vector<2x2xf32>
    %406 = arith.subf %390, %405 : vector<2x2xf32>
    %407 = math.exp %406 : vector<2x2xf32>
    %408 = arith.subf %394, %405 : vector<2x2xf32>
    %409 = math.exp %408 : vector<2x2xf32>
    %410 = arith.subf %398, %405 : vector<2x2xf32>
    %411 = math.exp %410 : vector<2x2xf32>
    %412 = arith.subf %402, %405 : vector<2x2xf32>
    %413 = math.exp %412 : vector<2x2xf32>
    %414 = arith.addf %407, %409 : vector<2x2xf32>
    %415 = arith.addf %414, %411 : vector<2x2xf32>
    %416 = arith.addf %415, %413 : vector<2x2xf32>
    %cst_82 = arith.constant 1.000000e+00 : f32
    %417 = vector.broadcast %cst_82 : f32 to vector<2x2xf32>
    %418 = arith.divf %417, %416 : vector<2x2xf32>
    %419 = vector.broadcast %250 : f32 to vector<2x2xf32>
    %420 = arith.mulf %418, %419 : vector<2x2xf32>
    %421 = arith.mulf %407, %420 : vector<2x2xf32>
    %422 = vector.shape_cast %421 : vector<2x2xf32> to vector<2x2x1xf32>
    %423 = vector.broadcast %422 : vector<2x2x1xf32> to vector<2x2x32xf32>
    %424 = arith.mulf %423, %274 : vector<2x2x32xf32>
    %425 = arith.mulf %409, %420 : vector<2x2xf32>
    %426 = vector.shape_cast %425 : vector<2x2xf32> to vector<2x2x1xf32>
    %427 = vector.broadcast %426 : vector<2x2x1xf32> to vector<2x2x32xf32>
    %428 = arith.mulf %427, %276 : vector<2x2x32xf32>
    %429 = arith.addf %424, %428 : vector<2x2x32xf32>
    %430 = arith.mulf %411, %420 : vector<2x2xf32>
    %431 = vector.shape_cast %430 : vector<2x2xf32> to vector<2x2x1xf32>
    %432 = vector.broadcast %431 : vector<2x2x1xf32> to vector<2x2x32xf32>
    %433 = arith.mulf %432, %278 : vector<2x2x32xf32>
    %434 = arith.addf %429, %433 : vector<2x2x32xf32>
    %435 = arith.mulf %413, %420 : vector<2x2xf32>
    %436 = vector.shape_cast %435 : vector<2x2xf32> to vector<2x2x1xf32>
    %437 = vector.broadcast %436 : vector<2x2x1xf32> to vector<2x2x32xf32>
    %438 = arith.mulf %437, %280 : vector<2x2x32xf32>
    %439 = arith.addf %434, %438 : vector<2x2x32xf32>
    %440 = arith.mulf %260, %264 : vector<2x2x32xf32>
    %cst_83 = arith.constant dense<0.000000e+00> : vector<2x2xf32>
    %441 = vector.multi_reduction <add>, %440, %cst_83 [2] : vector<2x2x32xf32> to vector<2x2xf32>
    %cst_84 = arith.constant 0.176776692 : f32
    %442 = vector.broadcast %cst_84 : f32 to vector<2x2xf32>
    %443 = arith.mulf %441, %442 : vector<2x2xf32>
    %444 = arith.mulf %260, %266 : vector<2x2x32xf32>
    %cst_85 = arith.constant dense<0.000000e+00> : vector<2x2xf32>
    %445 = vector.multi_reduction <add>, %444, %cst_85 [2] : vector<2x2x32xf32> to vector<2x2xf32>
    %cst_86 = arith.constant 0.176776692 : f32
    %446 = vector.broadcast %cst_86 : f32 to vector<2x2xf32>
    %447 = arith.mulf %445, %446 : vector<2x2xf32>
    %448 = arith.mulf %260, %268 : vector<2x2x32xf32>
    %cst_87 = arith.constant dense<0.000000e+00> : vector<2x2xf32>
    %449 = vector.multi_reduction <add>, %448, %cst_87 [2] : vector<2x2x32xf32> to vector<2x2xf32>
    %cst_88 = arith.constant 0.176776692 : f32
    %450 = vector.broadcast %cst_88 : f32 to vector<2x2xf32>
    %451 = arith.mulf %449, %450 : vector<2x2xf32>
    %452 = arith.mulf %260, %270 : vector<2x2x32xf32>
    %cst_89 = arith.constant dense<0.000000e+00> : vector<2x2xf32>
    %453 = vector.multi_reduction <add>, %452, %cst_89 [2] : vector<2x2x32xf32> to vector<2x2xf32>
    %cst_90 = arith.constant 0.176776692 : f32
    %454 = vector.broadcast %cst_90 : f32 to vector<2x2xf32>
    %455 = arith.mulf %453, %454 : vector<2x2xf32>
    %456 = arith.maximumf %443, %447 : vector<2x2xf32>
    %457 = arith.maximumf %456, %451 : vector<2x2xf32>
    %458 = arith.maximumf %457, %455 : vector<2x2xf32>
    %459 = arith.subf %443, %458 : vector<2x2xf32>
    %460 = math.exp %459 : vector<2x2xf32>
    %461 = arith.subf %447, %458 : vector<2x2xf32>
    %462 = math.exp %461 : vector<2x2xf32>
    %463 = arith.subf %451, %458 : vector<2x2xf32>
    %464 = math.exp %463 : vector<2x2xf32>
    %465 = arith.subf %455, %458 : vector<2x2xf32>
    %466 = math.exp %465 : vector<2x2xf32>
    %467 = arith.addf %460, %462 : vector<2x2xf32>
    %468 = arith.addf %467, %464 : vector<2x2xf32>
    %469 = arith.addf %468, %466 : vector<2x2xf32>
    %cst_91 = arith.constant 1.000000e+00 : f32
    %470 = vector.broadcast %cst_91 : f32 to vector<2x2xf32>
    %471 = arith.divf %470, %469 : vector<2x2xf32>
    %472 = vector.broadcast %250 : f32 to vector<2x2xf32>
    %473 = arith.mulf %471, %472 : vector<2x2xf32>
    %474 = arith.mulf %460, %473 : vector<2x2xf32>
    %475 = vector.shape_cast %474 : vector<2x2xf32> to vector<2x2x1xf32>
    %476 = vector.broadcast %475 : vector<2x2x1xf32> to vector<2x2x32xf32>
    %477 = arith.mulf %476, %274 : vector<2x2x32xf32>
    %478 = arith.mulf %462, %473 : vector<2x2xf32>
    %479 = vector.shape_cast %478 : vector<2x2xf32> to vector<2x2x1xf32>
    %480 = vector.broadcast %479 : vector<2x2x1xf32> to vector<2x2x32xf32>
    %481 = arith.mulf %480, %276 : vector<2x2x32xf32>
    %482 = arith.addf %477, %481 : vector<2x2x32xf32>
    %483 = arith.mulf %464, %473 : vector<2x2xf32>
    %484 = vector.shape_cast %483 : vector<2x2xf32> to vector<2x2x1xf32>
    %485 = vector.broadcast %484 : vector<2x2x1xf32> to vector<2x2x32xf32>
    %486 = arith.mulf %485, %278 : vector<2x2x32xf32>
    %487 = arith.addf %482, %486 : vector<2x2x32xf32>
    %488 = arith.mulf %466, %473 : vector<2x2xf32>
    %489 = vector.shape_cast %488 : vector<2x2xf32> to vector<2x2x1xf32>
    %490 = vector.broadcast %489 : vector<2x2x1xf32> to vector<2x2x32xf32>
    %491 = arith.mulf %490, %280 : vector<2x2x32xf32>
    %492 = arith.addf %487, %491 : vector<2x2x32xf32>
    %cst_92 = arith.constant 0.000000e+00 : f32
    %493 = vector.broadcast %cst_92 : f32 to vector<2x2x32xf32>
    %494 = vector.shape_cast %333 : vector<2x2x32xf32> to vector<2x2x1x32xf32>
    %495 = vector.shape_cast %493 : vector<2x2x32xf32> to vector<2x2x1x32xf32>
    %496 = vector.shape_cast %386 : vector<2x2x32xf32> to vector<2x2x1x32xf32>
    %497 = vector.shape_cast %493 : vector<2x2x32xf32> to vector<2x2x1x32xf32>
    %498 = vector.shape_cast %439 : vector<2x2x32xf32> to vector<2x2x1x32xf32>
    %499 = vector.shape_cast %493 : vector<2x2x32xf32> to vector<2x2x1x32xf32>
    %500 = vector.shape_cast %492 : vector<2x2x32xf32> to vector<2x2x1x32xf32>
    %501 = vector.shape_cast %493 : vector<2x2x32xf32> to vector<2x2x1x32xf32>
    %502 = tpu.concatenate %494, %495, %496, %497, %498, %499, %500, %501 in 2 : vector<2x2x1x32xf32>, vector<2x2x1x32xf32>, vector<2x2x1x32xf32>, vector<2x2x1x32xf32>, vector<2x2x1x32xf32>, vector<2x2x1x32xf32>, vector<2x2x1x32xf32>, vector<2x2x1x32xf32> -> vector<2x2x8x32xf32>
    %503 = vector.shape_cast %502 : vector<2x2x8x32xf32> to vector<2x16x32xf32>
    %c0_93 = arith.constant 0 : index
    %c0_94 = arith.constant 0 : index
    %c0_95 = arith.constant 0 : index
    %504 = vector.load %arg6[%c0_93, %c0_94, %c0_95] : memref<2x16x32xf32, #tpu.memory_space<vmem>>, vector<2x16x32xf32>
    %505 = arith.addf %504, %503 : vector<2x16x32xf32>
    %c0_96 = arith.constant 0 : index
    %c0_97 = arith.constant 0 : index
    %c0_98 = arith.constant 0 : index
    %506 = vector.load %arg6[%c0_96, %c0_97, %c0_98] : memref<2x16x32xf32, #tpu.memory_space<vmem>>, vector<2x16x32xf32>
    tpu.vector_store %arg6[%c0_96, %c0_97, %c0_98], %505 {strides = array<i32>} : memref<2x16x32xf32, #tpu.memory_space<vmem>>, vector<2x16x32xf32>,
    %c2 = arith.constant 2 : index
    %507 = memref.load %arg2[%c2] : memref<3xf32, #tpu.memory_space<smem>>
    %c0_99 = arith.constant 0 : index
    %c0_100 = arith.constant 0 : index
    %c0_101 = arith.constant 0 : index
    %508 = vector.load %arg3[%c0_99, %c0_100, %c0_101] : memref<2x16x32xf32, #tpu.memory_space<vmem>>, vector<2x16x32xf32>
    %509 = vector.shape_cast %508 : vector<2x16x32xf32> to vector<2x1x16x32xf32>
    %510 = vector.extract_strided_slice %509 {offsets = [0, 0, 0, 0], sizes = [2, 1, 1, 32], strides = [1, 1, 1, 1]} : vector<2x1x16x32xf32> to vector<2x1x1x32xf32>
    %511 = vector.shape_cast %510 : vector<2x1x1x32xf32> to vector<2x1x32xf32>
    %512 = vector.extract_strided_slice %509 {offsets = [0, 0, 4, 0], sizes = [2, 1, 1, 32], strides = [1, 1, 1, 1]} : vector<2x1x16x32xf32> to vector<2x1x1x32xf32>
    %513 = vector.shape_cast %512 : vector<2x1x1x32xf32> to vector<2x1x32xf32>
    %514 = vector.extract_strided_slice %509 {offsets = [0, 0, 8, 0], sizes = [2, 1, 1, 32], strides = [1, 1, 1, 1]} : vector<2x1x16x32xf32> to vector<2x1x1x32xf32>
    %515 = vector.shape_cast %514 : vector<2x1x1x32xf32> to vector<2x1x32xf32>
    %516 = vector.extract_strided_slice %509 {offsets = [0, 0, 12, 0], sizes = [2, 1, 1, 32], strides = [1, 1, 1, 1]} : vector<2x1x16x32xf32> to vector<2x1x1x32xf32>
    %517 = vector.shape_cast %516 : vector<2x1x1x32xf32> to vector<2x1x32xf32>
    %c0_102 = arith.constant 0 : index
    %c0_103 = arith.constant 0 : index
    %c0_104 = arith.constant 0 : index
    %518 = vector.load %arg4[%c0_102, %c0_103, %c0_104] : memref<2x16x32xf32, #tpu.memory_space<vmem>>, vector<2x16x32xf32>
    %519 = vector.shape_cast %518 : vector<2x16x32xf32> to vector<2x1x16x32xf32>
    %520 = vector.extract_strided_slice %519 {offsets = [0, 0, 0, 0], sizes = [2, 1, 1, 32], strides = [1, 1, 1, 1]} : vector<2x1x16x32xf32> to vector<2x1x1x32xf32>
    %521 = vector.shape_cast %520 : vector<2x1x1x32xf32> to vector<2x1x32xf32>
    %522 = vector.extract_strided_slice %519 {offsets = [0, 0, 4, 0], sizes = [2, 1, 1, 32], strides = [1, 1, 1, 1]} : vector<2x1x16x32xf32> to vector<2x1x1x32xf32>
    %523 = vector.shape_cast %522 : vector<2x1x1x32xf32> to vector<2x1x32xf32>
    %524 = vector.extract_strided_slice %519 {offsets = [0, 0, 8, 0], sizes = [2, 1, 1, 32], strides = [1, 1, 1, 1]} : vector<2x1x16x32xf32> to vector<2x1x1x32xf32>
    %525 = vector.shape_cast %524 : vector<2x1x1x32xf32> to vector<2x1x32xf32>
    %526 = vector.extract_strided_slice %519 {offsets = [0, 0, 12, 0], sizes = [2, 1, 1, 32], strides = [1, 1, 1, 1]} : vector<2x1x16x32xf32> to vector<2x1x1x32xf32>
    %527 = vector.shape_cast %526 : vector<2x1x1x32xf32> to vector<2x1x32xf32>
    %c0_105 = arith.constant 0 : index
    %c0_106 = arith.constant 0 : index
    %c0_107 = arith.constant 0 : index
    %528 = vector.load %arg5[%c0_105, %c0_106, %c0_107] : memref<2x16x32xf32, #tpu.memory_space<vmem>>, vector<2x16x32xf32>
    %529 = vector.shape_cast %528 : vector<2x16x32xf32> to vector<2x1x16x32xf32>
    %530 = vector.extract_strided_slice %529 {offsets = [0, 0, 0, 0], sizes = [2, 1, 1, 32], strides = [1, 1, 1, 1]} : vector<2x1x16x32xf32> to vector<2x1x1x32xf32>
    %531 = vector.shape_cast %530 : vector<2x1x1x32xf32> to vector<2x1x32xf32>
    %532 = vector.extract_strided_slice %529 {offsets = [0, 0, 4, 0], sizes = [2, 1, 1, 32], strides = [1, 1, 1, 1]} : vector<2x1x16x32xf32> to vector<2x1x1x32xf32>
    %533 = vector.shape_cast %532 : vector<2x1x1x32xf32> to vector<2x1x32xf32>
    %534 = vector.extract_strided_slice %529 {offsets = [0, 0, 8, 0], sizes = [2, 1, 1, 32], strides = [1, 1, 1, 1]} : vector<2x1x16x32xf32> to vector<2x1x1x32xf32>
    %535 = vector.shape_cast %534 : vector<2x1x1x32xf32> to vector<2x1x32xf32>
    %536 = vector.extract_strided_slice %529 {offsets = [0, 0, 12, 0], sizes = [2, 1, 1, 32], strides = [1, 1, 1, 1]} : vector<2x1x16x32xf32> to vector<2x1x1x32xf32>
    %537 = vector.shape_cast %536 : vector<2x1x1x32xf32> to vector<2x1x32xf32>
    %538 = arith.mulf %511, %521 : vector<2x1x32xf32>
    %cst_108 = arith.constant dense<0.000000e+00> : vector<2x1xf32>
    %539 = vector.multi_reduction <add>, %538, %cst_108 [2] : vector<2x1x32xf32> to vector<2x1xf32>
    %cst_109 = arith.constant 0.176776692 : f32
    %540 = vector.broadcast %cst_109 : f32 to vector<2x1xf32>
    %541 = arith.mulf %539, %540 : vector<2x1xf32>
    %542 = arith.mulf %511, %523 : vector<2x1x32xf32>
    %cst_110 = arith.constant dense<0.000000e+00> : vector<2x1xf32>
    %543 = vector.multi_reduction <add>, %542, %cst_110 [2] : vector<2x1x32xf32> to vector<2x1xf32>
    %cst_111 = arith.constant 0.176776692 : f32
    %544 = vector.broadcast %cst_111 : f32 to vector<2x1xf32>
    %545 = arith.mulf %543, %544 : vector<2x1xf32>
    %546 = arith.mulf %511, %525 : vector<2x1x32xf32>
    %cst_112 = arith.constant dense<0.000000e+00> : vector<2x1xf32>
    %547 = vector.multi_reduction <add>, %546, %cst_112 [2] : vector<2x1x32xf32> to vector<2x1xf32>
    %cst_113 = arith.constant 0.176776692 : f32
    %548 = vector.broadcast %cst_113 : f32 to vector<2x1xf32>
    %549 = arith.mulf %547, %548 : vector<2x1xf32>
    %550 = arith.mulf %511, %527 : vector<2x1x32xf32>
    %cst_114 = arith.constant dense<0.000000e+00> : vector<2x1xf32>
    %551 = vector.multi_reduction <add>, %550, %cst_114 [2] : vector<2x1x32xf32> to vector<2x1xf32>
    %cst_115 = arith.constant 0.176776692 : f32
    %552 = vector.broadcast %cst_115 : f32 to vector<2x1xf32>
    %553 = arith.mulf %551, %552 : vector<2x1xf32>
    %554 = arith.maximumf %541, %545 : vector<2x1xf32>
    %555 = arith.maximumf %554, %549 : vector<2x1xf32>
    %556 = arith.maximumf %555, %553 : vector<2x1xf32>
    %557 = arith.subf %541, %556 : vector<2x1xf32>
    %558 = math.exp %557 : vector<2x1xf32>
    %559 = arith.subf %545, %556 : vector<2x1xf32>
    %560 = math.exp %559 : vector<2x1xf32>
    %561 = arith.subf %549, %556 : vector<2x1xf32>
    %562 = math.exp %561 : vector<2x1xf32>
    %563 = arith.subf %553, %556 : vector<2x1xf32>
    %564 = math.exp %563 : vector<2x1xf32>
    %565 = arith.addf %558, %560 : vector<2x1xf32>
    %566 = arith.addf %565, %562 : vector<2x1xf32>
    %567 = arith.addf %566, %564 : vector<2x1xf32>
    %cst_116 = arith.constant 1.000000e+00 : f32
    %568 = vector.broadcast %cst_116 : f32 to vector<2x1xf32>
    %569 = arith.divf %568, %567 : vector<2x1xf32>
    %570 = vector.broadcast %507 : f32 to vector<2x1xf32>
    %571 = arith.mulf %569, %570 : vector<2x1xf32>
    %572 = arith.mulf %558, %571 : vector<2x1xf32>
    %573 = vector.shape_cast %572 : vector<2x1xf32> to vector<2x1x1xf32>
    %574 = vector.broadcast %573 : vector<2x1x1xf32> to vector<2x1x32xf32>
    %575 = arith.mulf %574, %531 : vector<2x1x32xf32>
    %576 = arith.mulf %560, %571 : vector<2x1xf32>
    %577 = vector.shape_cast %576 : vector<2x1xf32> to vector<2x1x1xf32>
    %578 = vector.broadcast %577 : vector<2x1x1xf32> to vector<2x1x32xf32>
    %579 = arith.mulf %578, %533 : vector<2x1x32xf32>
    %580 = arith.addf %575, %579 : vector<2x1x32xf32>
    %581 = arith.mulf %562, %571 : vector<2x1xf32>
    %582 = vector.shape_cast %581 : vector<2x1xf32> to vector<2x1x1xf32>
    %583 = vector.broadcast %582 : vector<2x1x1xf32> to vector<2x1x32xf32>
    %584 = arith.mulf %583, %535 : vector<2x1x32xf32>
    %585 = arith.addf %580, %584 : vector<2x1x32xf32>
    %586 = arith.mulf %564, %571 : vector<2x1xf32>
    %587 = vector.shape_cast %586 : vector<2x1xf32> to vector<2x1x1xf32>
    %588 = vector.broadcast %587 : vector<2x1x1xf32> to vector<2x1x32xf32>
    %589 = arith.mulf %588, %537 : vector<2x1x32xf32>
    %590 = arith.addf %585, %589 : vector<2x1x32xf32>
    %591 = arith.mulf %513, %521 : vector<2x1x32xf32>
    %cst_117 = arith.constant dense<0.000000e+00> : vector<2x1xf32>
    %592 = vector.multi_reduction <add>, %591, %cst_117 [2] : vector<2x1x32xf32> to vector<2x1xf32>
    %cst_118 = arith.constant 0.176776692 : f32
    %593 = vector.broadcast %cst_118 : f32 to vector<2x1xf32>
    %594 = arith.mulf %592, %593 : vector<2x1xf32>
    %595 = arith.mulf %513, %523 : vector<2x1x32xf32>
    %cst_119 = arith.constant dense<0.000000e+00> : vector<2x1xf32>
    %596 = vector.multi_reduction <add>, %595, %cst_119 [2] : vector<2x1x32xf32> to vector<2x1xf32>
    %cst_120 = arith.constant 0.176776692 : f32
    %597 = vector.broadcast %cst_120 : f32 to vector<2x1xf32>
    %598 = arith.mulf %596, %597 : vector<2x1xf32>
    %599 = arith.mulf %513, %525 : vector<2x1x32xf32>
    %cst_121 = arith.constant dense<0.000000e+00> : vector<2x1xf32>
    %600 = vector.multi_reduction <add>, %599, %cst_121 [2] : vector<2x1x32xf32> to vector<2x1xf32>
    %cst_122 = arith.constant 0.176776692 : f32
    %601 = vector.broadcast %cst_122 : f32 to vector<2x1xf32>
    %602 = arith.mulf %600, %601 : vector<2x1xf32>
    %603 = arith.mulf %513, %527 : vector<2x1x32xf32>
    %cst_123 = arith.constant dense<0.000000e+00> : vector<2x1xf32>
    %604 = vector.multi_reduction <add>, %603, %cst_123 [2] : vector<2x1x32xf32> to vector<2x1xf32>
    %cst_124 = arith.constant 0.176776692 : f32
    %605 = vector.broadcast %cst_124 : f32 to vector<2x1xf32>
    %606 = arith.mulf %604, %605 : vector<2x1xf32>
    %607 = arith.maximumf %594, %598 : vector<2x1xf32>
    %608 = arith.maximumf %607, %602 : vector<2x1xf32>
    %609 = arith.maximumf %608, %606 : vector<2x1xf32>
    %610 = arith.subf %594, %609 : vector<2x1xf32>
    %611 = math.exp %610 : vector<2x1xf32>
    %612 = arith.subf %598, %609 : vector<2x1xf32>
    %613 = math.exp %612 : vector<2x1xf32>
    %614 = arith.subf %602, %609 : vector<2x1xf32>
    %615 = math.exp %614 : vector<2x1xf32>
    %616 = arith.subf %606, %609 : vector<2x1xf32>
    %617 = math.exp %616 : vector<2x1xf32>
    %618 = arith.addf %611, %613 : vector<2x1xf32>
    %619 = arith.addf %618, %615 : vector<2x1xf32>
    %620 = arith.addf %619, %617 : vector<2x1xf32>
    %cst_125 = arith.constant 1.000000e+00 : f32
    %621 = vector.broadcast %cst_125 : f32 to vector<2x1xf32>
    %622 = arith.divf %621, %620 : vector<2x1xf32>
    %623 = vector.broadcast %507 : f32 to vector<2x1xf32>
    %624 = arith.mulf %622, %623 : vector<2x1xf32>
    %625 = arith.mulf %611, %624 : vector<2x1xf32>
    %626 = vector.shape_cast %625 : vector<2x1xf32> to vector<2x1x1xf32>
    %627 = vector.broadcast %626 : vector<2x1x1xf32> to vector<2x1x32xf32>
    %628 = arith.mulf %627, %531 : vector<2x1x32xf32>
    %629 = arith.mulf %613, %624 : vector<2x1xf32>
    %630 = vector.shape_cast %629 : vector<2x1xf32> to vector<2x1x1xf32>
    %631 = vector.broadcast %630 : vector<2x1x1xf32> to vector<2x1x32xf32>
    %632 = arith.mulf %631, %533 : vector<2x1x32xf32>
    %633 = arith.addf %628, %632 : vector<2x1x32xf32>
    %634 = arith.mulf %615, %624 : vector<2x1xf32>
    %635 = vector.shape_cast %634 : vector<2x1xf32> to vector<2x1x1xf32>
    %636 = vector.broadcast %635 : vector<2x1x1xf32> to vector<2x1x32xf32>
    %637 = arith.mulf %636, %535 : vector<2x1x32xf32>
    %638 = arith.addf %633, %637 : vector<2x1x32xf32>
    %639 = arith.mulf %617, %624 : vector<2x1xf32>
    %640 = vector.shape_cast %639 : vector<2x1xf32> to vector<2x1x1xf32>
    %641 = vector.broadcast %640 : vector<2x1x1xf32> to vector<2x1x32xf32>
    %642 = arith.mulf %641, %537 : vector<2x1x32xf32>
    %643 = arith.addf %638, %642 : vector<2x1x32xf32>
    %644 = arith.mulf %515, %521 : vector<2x1x32xf32>
    %cst_126 = arith.constant dense<0.000000e+00> : vector<2x1xf32>
    %645 = vector.multi_reduction <add>, %644, %cst_126 [2] : vector<2x1x32xf32> to vector<2x1xf32>
    %cst_127 = arith.constant 0.176776692 : f32
    %646 = vector.broadcast %cst_127 : f32 to vector<2x1xf32>
    %647 = arith.mulf %645, %646 : vector<2x1xf32>
    %648 = arith.mulf %515, %523 : vector<2x1x32xf32>
    %cst_128 = arith.constant dense<0.000000e+00> : vector<2x1xf32>
    %649 = vector.multi_reduction <add>, %648, %cst_128 [2] : vector<2x1x32xf32> to vector<2x1xf32>
    %cst_129 = arith.constant 0.176776692 : f32
    %650 = vector.broadcast %cst_129 : f32 to vector<2x1xf32>
    %651 = arith.mulf %649, %650 : vector<2x1xf32>
    %652 = arith.mulf %515, %525 : vector<2x1x32xf32>
    %cst_130 = arith.constant dense<0.000000e+00> : vector<2x1xf32>
    %653 = vector.multi_reduction <add>, %652, %cst_130 [2] : vector<2x1x32xf32> to vector<2x1xf32>
    %cst_131 = arith.constant 0.176776692 : f32
    %654 = vector.broadcast %cst_131 : f32 to vector<2x1xf32>
    %655 = arith.mulf %653, %654 : vector<2x1xf32>
    %656 = arith.mulf %515, %527 : vector<2x1x32xf32>
    %cst_132 = arith.constant dense<0.000000e+00> : vector<2x1xf32>
    %657 = vector.multi_reduction <add>, %656, %cst_132 [2] : vector<2x1x32xf32> to vector<2x1xf32>
    %cst_133 = arith.constant 0.176776692 : f32
    %658 = vector.broadcast %cst_133 : f32 to vector<2x1xf32>
    %659 = arith.mulf %657, %658 : vector<2x1xf32>
    %660 = arith.maximumf %647, %651 : vector<2x1xf32>
    %661 = arith.maximumf %660, %655 : vector<2x1xf32>
    %662 = arith.maximumf %661, %659 : vector<2x1xf32>
    %663 = arith.subf %647, %662 : vector<2x1xf32>
    %664 = math.exp %663 : vector<2x1xf32>
    %665 = arith.subf %651, %662 : vector<2x1xf32>
    %666 = math.exp %665 : vector<2x1xf32>
    %667 = arith.subf %655, %662 : vector<2x1xf32>
    %668 = math.exp %667 : vector<2x1xf32>
    %669 = arith.subf %659, %662 : vector<2x1xf32>
    %670 = math.exp %669 : vector<2x1xf32>
    %671 = arith.addf %664, %666 : vector<2x1xf32>
    %672 = arith.addf %671, %668 : vector<2x1xf32>
    %673 = arith.addf %672, %670 : vector<2x1xf32>
    %cst_134 = arith.constant 1.000000e+00 : f32
    %674 = vector.broadcast %cst_134 : f32 to vector<2x1xf32>
    %675 = arith.divf %674, %673 : vector<2x1xf32>
    %676 = vector.broadcast %507 : f32 to vector<2x1xf32>
    %677 = arith.mulf %675, %676 : vector<2x1xf32>
    %678 = arith.mulf %664, %677 : vector<2x1xf32>
    %679 = vector.shape_cast %678 : vector<2x1xf32> to vector<2x1x1xf32>
    %680 = vector.broadcast %679 : vector<2x1x1xf32> to vector<2x1x32xf32>
    %681 = arith.mulf %680, %531 : vector<2x1x32xf32>
    %682 = arith.mulf %666, %677 : vector<2x1xf32>
    %683 = vector.shape_cast %682 : vector<2x1xf32> to vector<2x1x1xf32>
    %684 = vector.broadcast %683 : vector<2x1x1xf32> to vector<2x1x32xf32>
    %685 = arith.mulf %684, %533 : vector<2x1x32xf32>
    %686 = arith.addf %681, %685 : vector<2x1x32xf32>
    %687 = arith.mulf %668, %677 : vector<2x1xf32>
    %688 = vector.shape_cast %687 : vector<2x1xf32> to vector<2x1x1xf32>
    %689 = vector.broadcast %688 : vector<2x1x1xf32> to vector<2x1x32xf32>
    %690 = arith.mulf %689, %535 : vector<2x1x32xf32>
    %691 = arith.addf %686, %690 : vector<2x1x32xf32>
    %692 = arith.mulf %670, %677 : vector<2x1xf32>
    %693 = vector.shape_cast %692 : vector<2x1xf32> to vector<2x1x1xf32>
    %694 = vector.broadcast %693 : vector<2x1x1xf32> to vector<2x1x32xf32>
    %695 = arith.mulf %694, %537 : vector<2x1x32xf32>
    %696 = arith.addf %691, %695 : vector<2x1x32xf32>
    %697 = arith.mulf %517, %521 : vector<2x1x32xf32>
    %cst_135 = arith.constant dense<0.000000e+00> : vector<2x1xf32>
    %698 = vector.multi_reduction <add>, %697, %cst_135 [2] : vector<2x1x32xf32> to vector<2x1xf32>
    %cst_136 = arith.constant 0.176776692 : f32
    %699 = vector.broadcast %cst_136 : f32 to vector<2x1xf32>
    %700 = arith.mulf %698, %699 : vector<2x1xf32>
    %701 = arith.mulf %517, %523 : vector<2x1x32xf32>
    %cst_137 = arith.constant dense<0.000000e+00> : vector<2x1xf32>
    %702 = vector.multi_reduction <add>, %701, %cst_137 [2] : vector<2x1x32xf32> to vector<2x1xf32>
    %cst_138 = arith.constant 0.176776692 : f32
    %703 = vector.broadcast %cst_138 : f32 to vector<2x1xf32>
    %704 = arith.mulf %702, %703 : vector<2x1xf32>
    %705 = arith.mulf %517, %525 : vector<2x1x32xf32>
    %cst_139 = arith.constant dense<0.000000e+00> : vector<2x1xf32>
    %706 = vector.multi_reduction <add>, %705, %cst_139 [2] : vector<2x1x32xf32> to vector<2x1xf32>
    %cst_140 = arith.constant 0.176776692 : f32
    %707 = vector.broadcast %cst_140 : f32 to vector<2x1xf32>
    %708 = arith.mulf %706, %707 : vector<2x1xf32>
    %709 = arith.mulf %517, %527 : vector<2x1x32xf32>
    %cst_141 = arith.constant dense<0.000000e+00> : vector<2x1xf32>
    %710 = vector.multi_reduction <add>, %709, %cst_141 [2] : vector<2x1x32xf32> to vector<2x1xf32>
    %cst_142 = arith.constant 0.176776692 : f32
    %711 = vector.broadcast %cst_142 : f32 to vector<2x1xf32>
    %712 = arith.mulf %710, %711 : vector<2x1xf32>
    %713 = arith.maximumf %700, %704 : vector<2x1xf32>
    %714 = arith.maximumf %713, %708 : vector<2x1xf32>
    %715 = arith.maximumf %714, %712 : vector<2x1xf32>
    %716 = arith.subf %700, %715 : vector<2x1xf32>
    %717 = math.exp %716 : vector<2x1xf32>
    %718 = arith.subf %704, %715 : vector<2x1xf32>
    %719 = math.exp %718 : vector<2x1xf32>
    %720 = arith.subf %708, %715 : vector<2x1xf32>
    %721 = math.exp %720 : vector<2x1xf32>
    %722 = arith.subf %712, %715 : vector<2x1xf32>
    %723 = math.exp %722 : vector<2x1xf32>
    %724 = arith.addf %717, %719 : vector<2x1xf32>
    %725 = arith.addf %724, %721 : vector<2x1xf32>
    %726 = arith.addf %725, %723 : vector<2x1xf32>
    %cst_143 = arith.constant 1.000000e+00 : f32
    %727 = vector.broadcast %cst_143 : f32 to vector<2x1xf32>
    %728 = arith.divf %727, %726 : vector<2x1xf32>
    %729 = vector.broadcast %507 : f32 to vector<2x1xf32>
    %730 = arith.mulf %728, %729 : vector<2x1xf32>
    %731 = arith.mulf %717, %730 : vector<2x1xf32>
    %732 = vector.shape_cast %731 : vector<2x1xf32> to vector<2x1x1xf32>
    %733 = vector.broadcast %732 : vector<2x1x1xf32> to vector<2x1x32xf32>
    %734 = arith.mulf %733, %531 : vector<2x1x32xf32>
    %735 = arith.mulf %719, %730 : vector<2x1xf32>
    %736 = vector.shape_cast %735 : vector<2x1xf32> to vector<2x1x1xf32>
    %737 = vector.broadcast %736 : vector<2x1x1xf32> to vector<2x1x32xf32>
    %738 = arith.mulf %737, %533 : vector<2x1x32xf32>
    %739 = arith.addf %734, %738 : vector<2x1x32xf32>
    %740 = arith.mulf %721, %730 : vector<2x1xf32>
    %741 = vector.shape_cast %740 : vector<2x1xf32> to vector<2x1x1xf32>
    %742 = vector.broadcast %741 : vector<2x1x1xf32> to vector<2x1x32xf32>
    %743 = arith.mulf %742, %535 : vector<2x1x32xf32>
    %744 = arith.addf %739, %743 : vector<2x1x32xf32>
    %745 = arith.mulf %723, %730 : vector<2x1xf32>
    %746 = vector.shape_cast %745 : vector<2x1xf32> to vector<2x1x1xf32>
    %747 = vector.broadcast %746 : vector<2x1x1xf32> to vector<2x1x32xf32>
    %748 = arith.mulf %747, %537 : vector<2x1x32xf32>
    %749 = arith.addf %744, %748 : vector<2x1x32xf32>
    %cst_144 = arith.constant 0.000000e+00 : f32
    %750 = vector.broadcast %cst_144 : f32 to vector<2x1x32xf32>
    %751 = vector.shape_cast %590 : vector<2x1x32xf32> to vector<2x1x1x32xf32>
    %752 = vector.shape_cast %750 : vector<2x1x32xf32> to vector<2x1x1x32xf32>
    %753 = vector.shape_cast %750 : vector<2x1x32xf32> to vector<2x1x1x32xf32>
    %754 = vector.shape_cast %750 : vector<2x1x32xf32> to vector<2x1x1x32xf32>
    %755 = vector.shape_cast %643 : vector<2x1x32xf32> to vector<2x1x1x32xf32>
    %756 = vector.shape_cast %750 : vector<2x1x32xf32> to vector<2x1x1x32xf32>
    %757 = vector.shape_cast %750 : vector<2x1x32xf32> to vector<2x1x1x32xf32>
    %758 = vector.shape_cast %750 : vector<2x1x32xf32> to vector<2x1x1x32xf32>
    %759 = vector.shape_cast %696 : vector<2x1x32xf32> to vector<2x1x1x32xf32>
    %760 = vector.shape_cast %750 : vector<2x1x32xf32> to vector<2x1x1x32xf32>
    %761 = vector.shape_cast %750 : vector<2x1x32xf32> to vector<2x1x1x32xf32>
    %762 = vector.shape_cast %750 : vector<2x1x32xf32> to vector<2x1x1x32xf32>
    %763 = vector.shape_cast %749 : vector<2x1x32xf32> to vector<2x1x1x32xf32>
    %764 = vector.shape_cast %750 : vector<2x1x32xf32> to vector<2x1x1x32xf32>
    %765 = vector.shape_cast %750 : vector<2x1x32xf32> to vector<2x1x1x32xf32>
    %766 = vector.shape_cast %750 : vector<2x1x32xf32> to vector<2x1x1x32xf32>
    %767 = tpu.concatenate %751, %752, %753, %754, %755, %756, %757, %758, %759, %760, %761, %762, %763, %764, %765, %766 in 2 : vector<2x1x1x32xf32>, vector<2x1x1x32xf32>, vector<2x1x1x32xf32>, vector<2x1x1x32xf32>, vector<2x1x1x32xf32>, vector<2x1x1x32xf32>, vector<2x1x1x32xf32>, vector<2x1x1x32xf32>, vector<2x1x1x32xf32>, vector<2x1x1x32xf32>, vector<2x1x1x32xf32>, vector<2x1x1x32xf32>, vector<2x1x1x32xf32>, vector<2x1x1x32xf32>, vector<2x1x1x32xf32>, vector<2x1x1x32xf32> -> vector<2x1x16x32xf32>
    %768 = vector.shape_cast %767 : vector<2x1x16x32xf32> to vector<2x16x32xf32>
    %c0_145 = arith.constant 0 : index
    %c0_146 = arith.constant 0 : index
    %c0_147 = arith.constant 0 : index
    %769 = vector.load %arg6[%c0_145, %c0_146, %c0_147] : memref<2x16x32xf32, #tpu.memory_space<vmem>>, vector<2x16x32xf32>
    %770 = arith.addf %769, %768 : vector<2x16x32xf32>
    %c0_148 = arith.constant 0 : index
    %c0_149 = arith.constant 0 : index
    %c0_150 = arith.constant 0 : index
    %771 = vector.load %arg6[%c0_148, %c0_149, %c0_150] : memref<2x16x32xf32, #tpu.memory_space<vmem>>, vector<2x16x32xf32>
    tpu.vector_store %arg6[%c0_148, %c0_149, %c0_150], %770 {strides = array<i32>} : memref<2x16x32xf32, #tpu.memory_space<vmem>>, vector<2x16x32xf32>,
    return
  }
  func.func @transform_0(%arg0: i32, %arg1: i32, %arg2: memref<3xf32, #tpu.memory_space<smem>>) -> (i32, i32, i32) {
    %c0_i32 = arith.constant 0 : i32
    %c0_i32_0 = arith.constant 0 : i32
    return %arg0, %arg1, %c0_i32 : i32, i32, i32
  }
  func.func @transform_1(%arg0: i32, %arg1: i32, %arg2: memref<3xf32, #tpu.memory_space<smem>>) -> (i32, i32, i32) {
    %c0_i32 = arith.constant 0 : i32
    %c0_i32_0 = arith.constant 0 : i32
    return %arg0, %arg1, %c0_i32 : i32, i32, i32
  }
  func.func @transform_2(%arg0: i32, %arg1: i32, %arg2: memref<3xf32, #tpu.memory_space<smem>>) -> (i32, i32, i32) {
    %c0_i32 = arith.constant 0 : i32
    %c0_i32_0 = arith.constant 0 : i32
    return %arg0, %arg1, %c0_i32 : i32, i32, i32
  }
  func.func @transform_3(%arg0: i32, %arg1: i32, %arg2: memref<3xf32, #tpu.memory_space<smem>>) -> (i32, i32, i32) {
    %c0_i32 = arith.constant 0 : i32
    %c0_i32_0 = arith.constant 0 : i32
    return %arg0, %arg1, %c0_i32 : i32, i32, i32
  }
}

</mosaic_0001>

<bundles_post_ra>
// kernel: tpu_custom_call.1
= control target key start
LH: loop header
LB: loop body
LE: loop exit
PB: predicated region body
PF: predicated region fallthrough
CT: control target
= control target key end

     0   :  { %s4212_s0 = inlined_call_operand.hbm [shape: f32[3], index: 0, kind: input, shape index: {}]   ;;  %s4213_s1 = inlined_call_operand.hbm [shape: f32[8,16,32], index: 1, kind: input, shape index: {}]   ;;  %s4214_s2 = inlined_call_operand.hbm [shape: f32[8,16,32], index: 2, kind: input, shape index: {}]   ;;  %s4215_s3 = inlined_call_operand.hbm [shape: f32[8,16,32], index: 3, kind: input, shape index: {}]   ;;  %s4216_s4 = inlined_call_operand.hbm [shape: f32[8,16,32], index: 4, kind: output, shape index: {}]  }
   0x1   :  { %4245 = sst [smem:[#allocation37_spill]] %s4214_s2  ;;  %s2323_s17 = scalar_lea.hbm %s4212_s0, 16 }
   0x2   :  { %p2324_p0 = scmp.ne.s32.totalorder %s4212_s0, %s2323_s17  ;;  %p2327_p1 = scmp.lt.u32.totalorder %s2323_s17, %s4212_s0 }
   0x4   :  { %p2329_p2 = pnand %p2327_p1, %p2324_p0 }
   0x6   :  { %2332 = shalt.err (!%p2329_p2)  }
   0x7   :  { %s2513_s22 = smov [#allocation3]  }
   0x8   :  { %10 = dma.hbm_to_smem %s4212_s0, 16, %s2513_s22, [#allocation2] }
   0x9   :  { %2475 = dma.done.wait [#allocation2], 16 }
   0xa   :  { %2476 = vsyncadd [#allocation2], 4294967280 }
   0xb   :  { %12 = sfence }
   0xc   :  { %13 = vsyncpa [#allocation5], 0 }
   0xd   :  { %15 = vsyncpa [#allocation5 + $0x1], 0 }
   0xe   :  { %16 = vsyncpa [#allocation8], 0 }
   0xf   :  { %18 = vsyncpa [#allocation8 + $0x1], 0 }
  0x10   :  { %19 = vsyncpa [#allocation6], 0 }
  0x11   :  { %21 = vsyncpa [#allocation6 + $0x1], 0  ;;  %s2559_s25 = smov 0   ;;  %s2561_s26 = smov 0  }
  0x12   :  { %s2563_s27 = smov 0   ;;  %s2565_s28 = smov 0  }
  0x13   :  { %s2567_s29 = smov 0   ;;  %s2569_s0 = smov 0  }
  0x14 LB: > { %4246 = sst [smem:[#allocation15_spill]] %s2507_s29  ;;  %s2590_s30 = sadd.s32 4294967295, %s2511_s0   ;;  %s2511_s0 = sphi %s2569_s0, %s27_s0   ;;  %s2507_s29 = sphi %s2567_s29, %s4318_s29   ;;  %s2503_s28 = sphi %s2565_s28, %s4317_s28   ;;  %s2499_s27 = sphi %s2563_s27, %s4321_s27   ;;  %s2495_s26 = sphi %s2561_s26, %s4320_s26   ;;  %s2491_s25 = sphi %s2559_s25, %s4319_s25  }
  0x15   : > { %s1899_s5 = sadd.s32 4294967294, %s2511_s0   ;;  %s39_s6 = sadd.s32 1, %s2507_s29 }
  0x16   : > { %s48_s7 = sadd.s32 1, %s2499_s27  ;;  %p41_p3 = scmp.ge.s32.totalorder %s39_s6, 4 }
  0x17   : > { %p55_p4 = scmp.ne.s32.totalorder %s2499_s27, %s2495_s26  ;;  %p56_p5 = scmp.eq.s32.totalorder %s2511_s0, 0 }
  0x18   : > { %p61_p6 = scmp.ne.s32.totalorder %s2495_s26, %s2491_s25  ;;  %s4323_s6 = smov (%p41_p3, %s39_s6), 0 }
  0x19   : > { %4247 = sst [smem:[#allocation16_spill]] %s4323_s6  ;;  %p2602_p7 = por %p56_p5, %p55_p4 }
  0x1a   : > { %p62_p8 = scmp.eq.s32.totalorder %s2590_s30, 0  ;;  %s43_s9 = ssub.s32 %s2507_s29, %s4323_s6 }
  0x1b   : > { %p143_p9 = scmp.eq.s32.totalorder %s2590_s30, 3  ;;  %p46_p10 = scmp.eq.s32.totalorder %s43_s9, 0 }
  0x1c   : > { %p2610_p11 = por %p62_p8, %p61_p6  ;;  %p149_p13 = scmp.eq.s32.totalorder %s1899_s5, 3 }
  0x1d   : > { %p2614_p12 = por %p143_p9, %p55_p4  ;;  %p2020_p1 = scmp.lt.s32.totalorder %s2511_s0, 4 }
  0x1e   : > { %s4249_s10 = scalar_select %p2610_p11, 1, 0 }
  0x1f   : > { %s4250_s11 = scalar_select %p2614_p12, 1, 0 }
  0x20   : > { %s2619_s12 = scalar_select %p46_p10, %s2499_s27, %s48_s7  }
  0x21   : > { %p2621_p0 = por %p149_p13, %p61_p6  ;;  %s4219_s14 = sand.u32 1, %s2499_s27  }
  0x22   : > { %4251 = sst [smem:[#allocation17_spill]] %s2619_s12  ;;  %s2629_s15 = sshll.u32 %s4219_s14, 5 }
  0x23   : > { %s4252_s13 = scalar_select %p2621_p0, 1, 0 }
  0x24   : > { %s2632_s16 = sshll.u32 %s2507_s29, 9  ;;  %p2636_p2 = pnand %p2020_p1, %p2602_p7 }
  0x25   : > { %s193_s18 = sand.u32 1, %s2511_s0   ;;  %s4254_s2 = sld [smem:[#allocation37_spill]] }
  0x26   : > { %s197_s22 = scalar_lea.vmem [#allocation7], %s2629_s15  ;;  %s2652_s24 = scalar_lea.sflag [#allocation8], %s193_s18 }
  0x27   : > { %s207_s23 = sshll.u32 %s197_s22, 4  ;;  %p2658_p6 = pneg %p2636_p2  ;;  %s2649_s23 = int_to_ptr.vmem [resolvable:$true] %s207_s23 }
  0x2b   : > { %s2645_s21 = scalar_lea.hbm %s4254_s2, %s2632_s16  ;;  %s2338_s19 = scalar_lea.hbm %s4254_s2, 2048 }
  0x2c   : > { %s2333_s5 = scalar_lea.hbm %s2645_s21, 512  ;;  %p2339_p9 = scmp.lt.u32.totalorder %s2645_s21, %s4254_s2 }
  0x2d   : > { %p2334_p5 = scmp.ne.s32.totalorder %s2645_s21, %s2333_s5  ;;  %p2340_p10 = scmp.lt.u32.totalorder %s2338_s19, %s2333_s5 }
  0x2e   : > { %p2342_p1 = scmp.lt.u32.totalorder %s2333_s5, %s2645_s21 }
  0x2f   : > { %p2336_p7 = pnand %p2658_p6, %p2334_p5  ;;  %p2341_p13 = por %p2340_p10, %p2339_p9 }
  0x31   : > { %p2337_p8 = pneg %p2336_p7  ;;  %p2343_p3 = por %p2342_p1, %p2341_p13 }
  0x33   : > { %p2344_p4 = pnand %p2343_p3, %p2337_p8 }
  0x35   : > { %2347 = shalt.err (!%p2344_p4)
}
  0x36   : > { %s2348_s18 = scalar_lea.vmem %s2649_s23, 512  ;;  %s2514_s8 = smov [#allocation7]  }
  0x37   : > { %p2349_p5 = scmp.ne.s32.totalorder %s2649_s23, %s2348_s18  ;;  %s2353_s9 = sshll.u32 %s2514_s8, 4  ;;  %s2354_s9 = int_to_ptr.vmem [resolvable:$false] %s2353_s9 }
  0x38   : > { %s2355_s20 = scalar_lea.vmem %s2354_s9, 1024  ;;  %p2356_p12 = scmp.lt.s32.totalorder %s2649_s23, %s2354_s9 }
  0x39   : > { %p2351_p7 = pnand %p2349_p5, %p2658_p6  ;;  %p2357_p11 = scmp.lt.s32.totalorder %s2355_s20, %s2348_s18 }
  0x3b   : > { %p2352_p0 = pneg %p2351_p7  ;;  %p2358_p9 = por %p2357_p11, %p2356_p12 }
  0x3d   : > { %p2359_p10 = pnand %p2358_p9, %p2352_p0 }
  0x3f   : > { %2362 = shalt.err (!%p2359_p10)
}
  0x40   : > { %s4220_s5 = smov 128   ;;  %s4222_s19 = smov 8  }
  0x41   : > { %2012 = dma.hbm_to_vmem [thread:$0]  (!%p2636_p2), %s2645_s21, 512, %s2649_s23, %s2652_s24, %s4220_s5, %s4220_s5, %s4222_s19  }
  0x42   : > { %p4256_p11 = scmp.lt.s32.totalorder %s2511_s0, 5  ;;  %p4257_p12 = scmp.ge.s32.totalorder %s2511_s0, 1 }
  0x43   : > { %s2697_s9 = scalar_lea.hbm %s4213_s1, %s2632_s16  ;;  %s173_s20 = scalar_lea.vmem [#allocation4], %s2629_s15 }
  0x44   : > { %p2689_p0 = pnand %p4257_p12, %p4256_p11  ;;  %s183_s14 = sshll.u32 %s173_s20, 4  ;;  %s2700_s14 = int_to_ptr.vmem [resolvable:$true] %s183_s14 }
  0x45   : > { %s2706_s5 = scalar_lea.hbm %s4215_s3, %s2632_s16  ;;  %s4259_s19 = sand.u32 1, %s2499_s27  }
  0x46   : > { %s4258_s22 = scalar_select %p2689_p0, 1, 0 }
  0x47   : > { %s2710_s2 = scalar_lea.sflag [#allocation5], %s4259_s19  ;;  %s2363_s6 = scalar_lea.hbm %s2697_s9, 512 }
  0x48   : > { %p2364_p3 = scmp.ne.s32.totalorder %s2697_s9, %s2363_s6  ;;  %s2368_s29 = scalar_lea.hbm %s4213_s1, 2048 }
  0x49   : > { %p2369_p13 = scmp.lt.u32.totalorder %s2697_s9, %s4213_s1  ;;  %p2370_p1 = scmp.lt.u32.totalorder %s2368_s29, %s2363_s6 }
  0x4a   : > { %p2366_p4 = pnand %p2364_p3, %p2658_p6  ;;  %p2372_p7 = scmp.lt.u32.totalorder %s2363_s6, %s2697_s9 }
  0x4b   : > { %p2371_p5 = por %p2370_p1, %p2369_p13 }
  0x4c   : > { %p2367_p8 = pneg %p2366_p4 }
  0x4d   : > { %p2373_p9 = por %p2372_p7, %p2371_p5 }
  0x4f   : > { %p2374_p10 = pnand %p2373_p9, %p2367_p8 }
  0x51   : > { %2377 = shalt.err (!%p2374_p10)
}
  0x52   : > { %s2378_s16 = scalar_lea.vmem %s2700_s14, 512  ;;  %s2517_s19 = smov [#allocation4]  }
  0x53   : > { %p2379_p11 = scmp.ne.s32.totalorder %s2700_s14, %s2378_s16  ;;  %s2383_s21 = sshll.u32 %s2517_s19, 4  ;;  %s2384_s21 = int_to_ptr.vmem [resolvable:$false] %s2383_s21 }
  0x54   : > { %s2385_s12 = scalar_lea.vmem %s2384_s21, 1024  ;;  %p2386_p4 = scmp.lt.s32.totalorder %s2700_s14, %s2384_s21 }
  0x55   : > { %p2381_p12 = pnand %p2379_p11, %p2658_p6  ;;  %p2387_p0 = scmp.lt.s32.totalorder %s2385_s12, %s2378_s16 }
  0x57   : > { %p2382_p3 = pneg %p2381_p12  ;;  %p2388_p13 = por %p2387_p0, %p2386_p4 }
  0x59   : > { %p2389_p1 = pnand %p2388_p13, %p2382_p3 }
  0x5b   : > { %2392 = shalt.err (!%p2389_p1)
}
  0x5c   : > { %s4260_s29 = smov 8   ;;  %s4261_s6 = smov 128  }
  0x5d   : > { %2009 = dma.hbm_to_vmem [thread:$0]  (!%p2636_p2), %s2697_s9, 512, %s2700_s14, %s2710_s2, %s4261_s6, %s4261_s6, %s4260_s29  }
  0x5e   : > { %s221_s23 = scalar_lea.vmem [#allocation9], %s2629_s15  ;;  %s2393_s8 = scalar_lea.hbm %s2706_s5, 512 }
  0x5f   : > { %s231_s18 = sshll.u32 %s221_s23, 4  ;;  %p2394_p0 = scmp.ne.s32.totalorder %s2706_s5, %s2393_s8  ;;  %s2738_s18 = int_to_ptr.vmem [resolvable:$true] %s231_s18 }
  0x60   : > { %s2398_s19 = scalar_lea.hbm %s4215_s3, 2048  ;;  %p2399_p7 = scmp.lt.u32.totalorder %s2706_s5, %s4215_s3 }
  0x61   : > { %p2396_p8 = pnand %p2394_p0, %p2658_p6  ;;  %p2400_p9 = scmp.lt.u32.totalorder %s2398_s19, %s2393_s8 }
  0x62   : > { %p2402_p11 = scmp.lt.u32.totalorder %s2393_s8, %s2706_s5 }
  0x63   : > { %p2397_p5 = pneg %p2396_p8  ;;  %p2401_p10 = por %p2400_p9, %p2399_p7 }
  0x65   : > { %p2403_p12 = por %p2402_p11, %p2401_p10 }
  0x67   : > { %p2404_p3 = pnand %p2403_p12, %p2397_p5 }
  0x69   : > { %2407 = shalt.err (!%p2404_p3)
}
  0x6a   : > { %s2408_s2 = scalar_lea.vmem %s2738_s18, 512  ;;  %s2518_s14 = smov [#allocation9]  }
  0x6b   : > { %p2409_p4 = scmp.ne.s32.totalorder %s2738_s18, %s2408_s2  ;;  %s2413_s15 = sshll.u32 %s2518_s14, 4  ;;  %s2414_s15 = int_to_ptr.vmem [resolvable:$false] %s2413_s15 }
  0x6c   : > { %s2415_s9 = scalar_lea.vmem %s2414_s15, 1024  ;;  %p2416_p0 = scmp.lt.s32.totalorder %s2738_s18, %s2414_s15 }
  0x6d   : > { %p2411_p13 = pnand %p2409_p4, %p2658_p6  ;;  %p2417_p8 = scmp.lt.s32.totalorder %s2415_s9, %s2408_s2 }
  0x6f   : > { %p2412_p1 = pneg %p2411_p13  ;;  %p2418_p7 = por %p2417_p8, %p2416_p0 }
  0x71   : > { %p2419_p9 = pnand %p2418_p7, %p2412_p1 }
  0x73   : > { %2422 = shalt.err (!%p2419_p9)
}
  0x74   : > { %2015 = dma.hbm_to_vmem [thread:$0]  (!%p2636_p2), %s2706_s5, 512, %s2738_s18, %s2652_s24, %s4261_s6, %s4261_s6, %s4260_s29  }
  0x75   : > { %p4262_p6 = scmp.ne.s32.totalorder %s4258_s22, 0 }
  0x77   : > { %243 = sbr.rel (%p4262_p6) target bundleno = 591 (0x24f), region = 32 }
  0x7e   : > { %s2768_s7 = sand.u32 1, %s2495_s26   ;;  %p4263_p5 = scmp.ne.s32.totalorder %s4249_s10, 0 }
  0x7f   : > { %s2771_s23 = sshll.u32 %s2768_s7, 5  ;;  %s246_s17 = scalar_lea.sflag [#allocation5], %s2768_s7 }
  0x80   : > { %s2775_s8 = scalar_lea.vmem [#allocation4], %s2771_s23 }
  0x81   : > { %2478 = dma.done.wait (%p4263_p5), %s246_s17, 512  }
  0x82   : > { %2480 = vsyncadd (%p4263_p5), %s246_s17, 4294966784  ;;  %s254_s24 = sand.u32 1, %s2590_s30   ;;  %s2783_s22 = scalar_lea.vmem [#allocation7], %s2771_s23 }
  0x83   : > { %s255_s5 = scalar_lea.sflag [#allocation8], %s254_s24 }
  0x84   : > { %2482 = dma.done.wait (%p4263_p5), %s255_s5, 1024  }
  0x85   : > { %2484 = vsyncadd (%p4263_p5), %s255_s5, 4294966272  ;;  %vm356_vm0 = vcmask 257024   ;;  %v309_v0 = vld [vmem:[%s2775_s8] ss:$4 sm:$0xf]  ;;  %vm826_vm1 = vcmask 254976  }
  0x86   : > { %v2791_v1 = vld [vmem:[%s2783_s22 + $0x1] ss:$4 sm:$0xf]  ;;  %v2795_v3 = vld [vmem:[%s2783_s22] ss:$4 sm:$0xf] }
  0x87   : > { %v365_v2 = vmul.f32 %v2791_v1, %v309_v0  ;;  %v1919_v4 = vld [vmem:[%s2775_s8 + $0x10] ss:$4 sm:$0xf]  ;;  %v354_v5 = vmul.f32 %v2795_v3, %v309_v0  ;;  %v2800_v6 = vld [vmem:[%s2783_s22 + $0x11] ss:$4 sm:$0xf] }
  0x88   : > { %v2803_v7 = vld [vmem:[%s2783_s22 + $0x10] ss:$4 sm:$0xf]  ;;  %v366_v9 = vmul.f32 %v2800_v6, %v1919_v4  ;;  %v2809_v11 = vld [vmem:[%s2783_s22 + $0x12] ss:$4 sm:$0xf] }
  0x89   : > { %v367_v8 = vsel %vm356_vm0, %v365_v2, 0.0  ;;  %v355_v10 = vmul.f32 %v2803_v7, %v1919_v4  ;;  %v357_v12 = vsel %vm356_vm0, %v354_v5, 0.0  ;;  %v2813_v13 = vld [vmem:[%s2783_s22 + $0x2] ss:$4 sm:$0xf]  ;;  %v376_v15 = vmul.f32 %v2809_v11, %v1919_v4  ;;  %s3173_s30 = sld [smem:[#allocation3]] }
  0x8a   : > { %368 = vadd.xlane.f32.xlu1 %v367_v8  ;;  %358 = vadd.xlane.f32.xlu0 %v357_v12  ;;  %v370_v14 = vsel %vm356_vm0, %v366_v9, 0.0  ;;  %v375_v17 = vmul.f32 %v2813_v13, %v309_v0  ;;  %v2820_v18 = vld [vmem:[%s2783_s22 + $0x13] ss:$4 sm:$0xf]  ;;  %vm1305_vm2 = vcmask 253952   ;;  %s3221_s10 = scalar_lea.vmem [#allocation9], %s2771_s23 }
  0x8b   : > { %v360_v16 = vsel %vm356_vm0, %v355_v10, 0.0  ;;  %v2823_v19 = vld [vmem:[%s2783_s22 + $0x3] ss:$4 sm:$0xf]  ;;  %v380_v20 = vsel %vm356_vm0, %v376_v15, 0.0  ;;  %v386_v21 = vmul.f32 %v2820_v18, %v1919_v4  ;;  %s3296_s29 = scalar_lea.vmem [#allocation10], %s2771_s23 }
  0x8c   : > { %v377_v22 = vsel %vm356_vm0, %v375_v17, 0.0  ;;  %v385_v23 = vmul.f32 %v2823_v19, %v309_v0  ;;  %v1921_v24 = vld [vmem:[%s2775_s8 + $0x11] ss:$4 sm:$0xf]  ;;  %s1947_s6 = sld [smem:[#allocation3 + $0x1]]  ;;  %s1983_s18 = sld [smem:[#allocation3 + $0x2]] }
  0x8d   : > { %v1920_v25 = vld [vmem:[%s2775_s8 + $0x1] ss:$4 sm:$0xf]  ;;  %v390_v26 = vsel %vm356_vm0, %v386_v21, 0.0  ;;  %v464_v27 = vmul.f32 %v2803_v7, %v1921_v24  ;;  %v474_v31 = vmul.f32 %v2800_v6, %v1921_v24  ;;  %v484_v35 = vmul.f32 %v2809_v11, %v1921_v24  ;;  %s1997_s20 = sshll.u32 %s2503_s28, 9  ;;  %s1762_s16 = sshll.u32 %s3296_s29, 4  ;;  %s4163_s16 = int_to_ptr.vmem [resolvable:$true] %s1762_s16 }
  0x8e   : > { %371 = vadd.xlane.f32.xlu1 %v370_v14  ;;  %361 = vadd.xlane.f32.xlu0 %v360_v16  ;;  %v387_v28 = vsel %vm356_vm0, %v385_v23, 0.0  ;;  %v463_v29 = vmul.f32 %v1920_v25, %v2795_v3  ;;  %v473_v33 = vmul.f32 %v2791_v1, %v1920_v25  ;;  %v483_v37 = vmul.f32 %v2813_v13, %v1920_v25  ;;  %v1923_v42 = vld [vmem:[%s2775_s8 + $0x12] ss:$4 sm:$0xf]  ;;  %s4161_s12 = scalar_lea.hbm %s4216_s4, %s1997_s20  ;;  %s1746_s2 = scalar_lea.sflag [#allocation6], %s2768_s7 }
  0x8f   : > { %v468_v30 = vsel %vm356_vm0, %v464_v27, 0.0  ;;  %v478_v34 = vsel %vm356_vm0, %v474_v31, 0.0  ;;  %v488_v38 = vsel %vm356_vm0, %v484_v35, 0.0  ;;  %v494_v39 = vmul.f32 %v2820_v18, %v1921_v24  ;;  %v1922_v43 = vld [vmem:[%s2775_s8 + $0x2] ss:$4 sm:$0xf] }
  0x90   : > { %v465_v32 = vsel %vm356_vm0, %v463_v29, 0.0  ;;  %v475_v36 = vsel %vm356_vm0, %v473_v33, 0.0  ;;  %v485_v40 = vsel %vm356_vm0, %v483_v37, 0.0  ;;  %v493_v41 = vmul.f32 %v2823_v19, %v1920_v25  ;;  %v2858_v52 = vld [vmem:[%s2783_s22 + $0x14] ss:$8 sm:$0x3] }
  0x91   : > { %v498_v44 = vsel %vm356_vm0, %v494_v39, 0.0  ;;  %v572_v45 = vmul.f32 %v2803_v7, %v1923_v42  ;;  %v571_v47 = vmul.f32 %v1922_v43, %v2795_v3  ;;  %v582_v49 = vmul.f32 %v2800_v6, %v1923_v42  ;;  %v2861_v53 = vld [vmem:[%s2783_s22 + $0x4] ss:$8 sm:$0x3]  ;;  %s2423_s14 = scalar_lea.vmem %s4163_s16, 512  ;;  %p4314_p10 = scmp.ne.s32.totalorder %s4250_s11, 0 }
  0x92   : > { %381 = vadd.xlane.f32.xlu1 %v380_v20  ;;  %378 = vadd.xlane.f32.xlu0 %v377_v22  ;;  %v495_v46 = vsel %vm356_vm0, %v493_v41, 0.0  ;;  %v581_v51 = vmul.f32 %v2791_v1, %v1922_v43  ;;  %v2864_v54 = vld [vmem:[%s2775_s8 + $0x12] ss:$8 sm:$0x3]  ;;  %v592_v59 = vmul.f32 %v2809_v11, %v1923_v42  ;;  %v591_v63 = vmul.f32 %v2813_v13, %v1922_v43  ;;  %p2424_p2 = scmp.ne.s32.totalorder %s4163_s16, %s2423_s14  ;;  %s2519_s28 = smov [#allocation10]  }
  0x93   : > { %v576_v48 = vsel %vm356_vm0, %v572_v45, 0.0  ;;  %v573_v50 = vsel %vm356_vm0, %v571_v47, 0.0  ;;  %v2867_v55 = vld [vmem:[%s2775_s8 + $0x2] ss:$8 sm:$0x3]  ;;  %v959_v57 = vmul.f32 %v2858_v52, %v2864_v54  ;;  %v586_v58 = vsel %vm356_vm0, %v582_v49, 0.0 }
  0x94   : > { %v2870_v56 = vld [vmem:[%s2775_s8 + $0x16] ss:$8 sm:$0x3]  ;;  %v958_v60 = vmul.f32 %v2861_v53, %v2867_v55  ;;  %v583_v62 = vsel %vm356_vm0, %v581_v51, 0.0  ;;  %v596_v9 = vsel %vm356_vm0, %v592_v59, 0.0  ;;  %v602_v10 = vmul.f32 %v2820_v18, %v1923_v42  ;;  %p2425_p11 = pnand %p2424_p2, %p4314_p10  ;;  %s2427_s15 = sshll.u32 %s2519_s28, 4  ;;  %s2428_s15 = int_to_ptr.vmem [resolvable:$false] %s2427_s15 }
  0x95   : > { %v1185_v61 = vmul.f32 %v2858_v52, %v2870_v56  ;;  %v2883_v0 = vld [vmem:[%s2775_s8 + $0x6] ss:$8 sm:$0x3]  ;;  %v2886_v2 = vsel %vm826_vm1, %v959_v57, 0.0  ;;  %v593_v15 = vsel %vm356_vm0, %v591_v63, 0.0  ;;  %v601_v16 = vmul.f32 %v2823_v19, %v1922_v43  ;;  %s2429_s9 = scalar_lea.vmem %s2428_s15, 1024  ;;  %p2430_p3 = scmp.lt.s32.totalorder %s4163_s16, %s2428_s15 }
  0x96   : > { %391 = vadd.xlane.f32.xlu1 %v390_v26  ;;  %388 = vadd.xlane.f32.xlu0 %v387_v28  ;;  %v2889_v4 = vsel %vm826_vm1, %v958_v60, 0.0  ;;  %v1184_v8 = vmul.f32 %v2861_v53, %v2883_v0  ;;  %v2899_v12 = vld [vmem:[%s2775_s8 + $0x13] ss:$4 sm:$0xf]  ;;  %v606_v26 = vsel %vm356_vm0, %v602_v10, 0.0  ;;  %p2426_p12 = pneg %p2425_p11  ;;  %p2431_p4 = scmp.lt.s32.totalorder %s2429_s9, %s2423_s14 }
  0x97   : > { %v2892_v5 = vsel %vm826_vm1, %v1185_v61, 0.0  ;;  %v2907_v17 = vld [vmem:[%s2775_s8 + $0x3] ss:$4 sm:$0xf]  ;;  %v2917_v22 = vmul.f32 %v2809_v11, %v2899_v12  ;;  %v680_v11 = vmul.f32 %v2803_v7, %v2899_v12  ;;  %v603_v27 = vsel %vm356_vm0, %v601_v16, 0.0 }
  0x98   : > { %v2902_v14 = vsel %vm826_vm1, %v1184_v8, 0.0  ;;  %v2910_v20 = vld [vmem:[%s2783_s22 + $0x16] ss:$8 sm:$0x3]  ;;  %v2921_v23 = vmul.f32 %v2813_v13, %v2907_v17  ;;  %v679_v13 = vmul.f32 %v2907_v17, %v2795_v3  ;;  %v690_v3 = vmul.f32 %v2800_v6, %v2899_v12  ;;  %p2432_p13 = por %p2431_p4, %p2430_p3 }
  0x99   : > { %v2913_v21 = vld [vmem:[%s2783_s22 + $0x6] ss:$8 sm:$0x3]  ;;  %v969_v24 = vmul.f32 %v2910_v20, %v2864_v54  ;;  %v684_v31 = vsel %vm356_vm0, %v680_v11, 0.0 }
  0x9a   : > { %469 = vadd.xlane.f32.xlu1 %v468_v30  ;;  %466 = vadd.xlane.f32.xlu0 %v465_v32  ;;  %v968_v25 = vmul.f32 %v2913_v21, %v2867_v55  ;;  %v1195_v30 = vmul.f32 %v2910_v20, %v2870_v56  ;;  %v1194_v7 = vmul.f32 %v2913_v21, %v2883_v0  ;;  %v1948_v32 = vld [vmem:[%s2775_s8 + $0x10] ss:$8 sm:$0x3]  ;;  %v681_v33 = vsel %vm356_vm0, %v679_v13, 0.0  ;;  %p2433_p1 = pnand %p2432_p13, %p2426_p12 }
  0x9b   : > { %v2934_v28 = vsel %vm826_vm1, %v969_v24, 0.0  ;;  %v2951_v35 = vld [vmem:[%s2783_s22 + $0x10] ss:$8 sm:$0x3]  ;;  %v694_v6 = vsel %vm356_vm0, %v690_v3, 0.0  ;;  %v846_v8 = vmul.f32 %v2858_v52, %v1948_v32  ;;  %v856_v11 = vmul.f32 %v2910_v20, %v1948_v32 }
  0x9c   : > { %v2937_v29 = vsel %vm826_vm1, %v968_v25, 0.0  ;;  %v2957_v37 = vsel %vm826_vm1, %v1194_v7, 0.0  ;;  %v2961_v39 = vld [vmem:[%s2783_s22] ss:$8 sm:$0x3]  ;;  %v939_v3 = vmul.f32 %v2951_v35, %v2864_v54 }
  0x9d   : > { %v2968_v42 = vld [vmem:[%s2783_s22 + $0x12] ss:$8 sm:$0x3]  ;;  %v2971_v43 = vld [vmem:[%s2783_s22 + $0x2] ss:$8 sm:$0x3] }
  0x9e   : > { %479 = vadd.xlane.f32.xlu1 %v478_v34  ;;  %476 = vadd.xlane.f32.xlu0 %v475_v36  ;;  %v689_v34 = vmul.f32 %v2791_v1, %v2907_v17  ;;  %v2954_v36 = vsel %vm826_vm1, %v1195_v30, 0.0  ;;  %v836_v45 = vmul.f32 %v2968_v42, %v1948_v32  ;;  %v1951_v49 = vld [vmem:[%s2775_s8 + $0x4] ss:$8 sm:$0x3]  ;;  %v860_v30 = vsel %vm826_vm1, %v856_v11, 0.0 }
  0x9f   : > { %v1070_v25 = vmul.f32 %v2861_v53, %v1951_v49 }
  0xa0   : > { %v691_v1 = vsel %vm356_vm0, %v689_v34, 0.0 }
  0xa2   : > { %489 = vadd.xlane.f32.xlu1 %v488_v38  ;;  %486 = vadd.xlane.f32.xlu0 %v485_v40  ;;  %v788_v38 = vld [vmem:[%s2775_s8] ss:$8 sm:$0x3]  ;;  %v825_v40 = vmul.f32 %v2951_v35, %v1948_v32 }
  0xa3   : > { %v824_v41 = vmul.f32 %v2961_v39, %v788_v38  ;;  %v835_v47 = vmul.f32 %v2971_v43, %v788_v38  ;;  %v845_v10 = vmul.f32 %v2861_v53, %v788_v38  ;;  %v855_v13 = vmul.f32 %v2913_v21, %v788_v38 }
  0xa4   : > { %v1080_v53 = vmul.f32 %v2913_v21, %v1951_v49  ;;  %v949_v21 = vmul.f32 %v2968_v42, %v2864_v54  ;;  %v948_v38 = vmul.f32 %v2971_v43, %v2867_v55  ;;  %v1164_v54 = vmul.f32 %v2883_v0, %v2961_v39 }
  0xa5   : > { %v837_v57 = vsel %vm826_vm1, %v835_v47, 0.0  ;;  %v847_v24 = vsel %vm826_vm1, %v845_v10, 0.0  ;;  %v857_v7 = vsel %vm826_vm1, %v855_v13, 0.0  ;;  %v3032_v47 = vld [vmem:[%s2775_s8] sm:$0x1] }
  0xa6   : > { %499 = vadd.xlane.f32.xlu1 %v498_v44  ;;  %496 = vadd.xlane.f32.xlu0 %v495_v46  ;;  %v830_v44 = vsel %vm826_vm1, %v825_v40, 0.0  ;;  %v827_v46 = vsel %vm826_vm1, %v824_v41, 0.0  ;;  %v1082_v32 = vsel %vm826_vm1, %v1080_v53, 0.0  ;;  %v1165_v40 = vmul.f32 %v2951_v35, %v2870_v56 }
  0xa8   : > { %v1169_v41 = vsel %vm826_vm1, %v1165_v40, 0.0 }
  0xaa   : > { %577 = vadd.xlane.f32.xlu1 %v576_v48  ;;  %574 = vadd.xlane.f32.xlu0 %v573_v50  ;;  %v1952_v48 = vld [vmem:[%s2775_s8 + $0x14] ss:$8 sm:$0x3]  ;;  %v840_v50 = vsel %vm826_vm1, %v836_v45, 0.0  ;;  %v1174_v45 = vmul.f32 %v2971_v43, %v2883_v0 }
  0xab   : > { %v1051_v51 = vmul.f32 %v2951_v35, %v1952_v48  ;;  %v1061_v60 = vmul.f32 %v2968_v42, %v1952_v48  ;;  %v1071_v16 = vmul.f32 %v2858_v52, %v1952_v48  ;;  %v1081_v52 = vmul.f32 %v2910_v20, %v1952_v48  ;;  %v3028_v35 = vld [vmem:[%s2775_s8 + $0x10] sm:$0x1]  ;;  %v1290_v0 = vld [vmem:[%s2783_s22 + $0x14] sm:$0x1] }
  0xac   : > { %v943_v20 = vsel %vm826_vm1, %v939_v3, 0.0  ;;  %v3077_v3 = vld [vmem:[%s2775_s8 + $0xc] sm:$0x1] }
  0xad   : > { %v1055_v59 = vsel %vm826_vm1, %v1051_v51, 0.0  ;;  %v1065_v63 = vsel %vm826_vm1, %v1061_v60, 0.0  ;;  %v1315_v51 = vmul.f32 %v1290_v0, %v3028_v35  ;;  %v3049_v60 = vld [vmem:[%s2775_s8 + $0x4] sm:$0x1] }
  0xae   : > { %587 = vadd.xlane.f32.xlu1 %v586_v58  ;;  %584 = vadd.xlane.f32.xlu0 %v583_v62  ;;  %v1050_v58 = vmul.f32 %v1951_v49, %v2961_v39  ;;  %v1060_v62 = vmul.f32 %v2971_v43, %v1951_v49  ;;  %v1289_v43 = vld [vmem:[%s2783_s22 + $0x4] sm:$0x1] }
  0xaf   : > { %v1645_v40 = vmul.f32 %v1289_v43, %v3077_v3 }
  0xb0   : > { %v1052_v61 = vsel %vm826_vm1, %v1050_v58, 0.0  ;;  %v1314_v58 = vmul.f32 %v1289_v43, %v3032_v47 }
  0xb2   : > { %597 = vadd.xlane.f32.xlu1 %v596_v9  ;;  %594 = vadd.xlane.f32.xlu0 %v593_v15  ;;  %v1062_v9 = vsel %vm826_vm1, %v1060_v62, 0.0  ;;  %v850_v15 = vsel %vm826_vm1, %v846_v8, 0.0 }
  0xb6   : > { %607 = vadd.xlane.f32.xlu1 %v606_v26  ;;  %604 = vadd.xlane.f32.xlu0 %v603_v27  ;;  %v1075_v26 = vsel %vm826_vm1, %v1071_v16, 0.0  ;;  %v1072_v27 = vsel %vm826_vm1, %v1070_v25, 0.0  ;;  %v1425_v16 = vmul.f32 %v1289_v43, %v3049_v60  ;;  %v3063_v25 = vld [vmem:[%s2775_s8 + $0x8] sm:$0x1] }
  0xb7   : > { %v1535_v53 = vmul.f32 %v1289_v43, %v3063_v25 }
  0xba   : > { %685 = vadd.xlane.f32.xlu1 %v684_v31  ;;  %682 = vadd.xlane.f32.xlu0 %v681_v33  ;;  %v1085_v31 = vsel %vm826_vm1, %v1081_v52, 0.0  ;;  %v938_v33 = vmul.f32 %v2867_v55, %v2961_v39  ;;  %v1175_v55 = vmul.f32 %v2968_v42, %v2870_v56  ;;  %v1287_v39 = vld [vmem:[%s2783_s22] sm:$0x1]  ;;  %v1176_v56 = vsel %vm826_vm1, %v1174_v45, 0.0 }
  0xbb   : > { %v1303_v42 = vmul.f32 %v1287_v39, %v3032_v47  ;;  %v1415_v8 = vmul.f32 %v1287_v39, %v3049_v60  ;;  %v1525_v13 = vmul.f32 %v1287_v39, %v3063_v25 }
  0xbc   : > { %v940_v34 = vsel %vm826_vm1, %v938_v33, 0.0  ;;  %v1179_v48 = vsel %vm826_vm1, %v1175_v55, 0.0  ;;  %v1291_v55 = vld [vmem:[%s2783_s22 + $0x8] sm:$0x1] }
  0xbd   : > { %v1324_v45 = vmul.f32 %v1291_v55, %v3032_v47  ;;  %v1545_v43 = vmul.f32 %v1291_v55, %v3063_v25 }
  0xbe   : > { %695 = vadd.xlane.f32.xlu1 %v694_v6  ;;  %692 = vadd.xlane.f32.xlu0 %v691_v1  ;;  %v953_v6 = vsel %vm826_vm1, %v949_v21, 0.0  ;;  %v950_v1 = vsel %vm826_vm1, %v948_v38, 0.0  ;;  %v1635_v21 = vmul.f32 %v1287_v39, %v3077_v3 }
  0xc2   : > { %831 = vadd.xlane.f32.xlu1 %v830_v44  ;;  %828 = vadd.xlane.f32.xlu0 %v827_v46  ;;  %v1166_v44 = vsel %vm826_vm1, %v1164_v54, 0.0  ;;  %v1288_v46 = vld [vmem:[%s2783_s22 + $0x10] sm:$0x1]  ;;  %v1647_v54 = vsel %vm1305_vm2, %v1645_v40, 0.0 }
  0xc3   : > { %v1304_v49 = vmul.f32 %v1288_v46, %v3028_v35 }
  0xc6   : > { %841 = vadd.xlane.f32.xlu1 %v840_v50  ;;  %838 = vadd.xlane.f32.xlu0 %v837_v57  ;;  %v1309_v50 = vsel %vm1305_vm2, %v1304_v49, 0.0  ;;  %v1306_v57 = vsel %vm1305_vm2, %v1303_v42, 0.0 }
  0xca   : > { %1056 = vadd.xlane.f32.xlu1 %v1055_v59  ;;  %1053 = vadd.xlane.f32.xlu0 %v1052_v61  ;;  %v3046_v59 = vld [vmem:[%s2775_s8 + $0x14] sm:$0x1]  ;;  %v1319_v61 = vsel %vm1305_vm2, %v1315_v51, 0.0 }
  0xcb   : > { %v1416_v62 = vmul.f32 %v1288_v46, %v3046_v59  ;;  %v1426_v10 = vmul.f32 %v1290_v0, %v3046_v59 }
  0xce   : > { %1066 = vadd.xlane.f32.xlu1 %v1065_v63  ;;  %1063 = vadd.xlane.f32.xlu0 %v1062_v9  ;;  %v1316_v63 = vsel %vm1305_vm2, %v1314_v58, 0.0  ;;  %v1420_v9 = vsel %vm1305_vm2, %v1416_v62, 0.0 }
  0xd2   : > { %851 = vadd.xlane.f32.xlu1 %v850_v15  ;;  %848 = vadd.xlane.f32.xlu0 %v847_v24  ;;  %v1417_v15 = vsel %vm1305_vm2, %v1415_v8, 0.0  ;;  %v3060_v24 = vld [vmem:[%s2775_s8 + $0x18] sm:$0x1] }
  0xd3   : > { %v1526_v11 = vmul.f32 %v1288_v46, %v3060_v24  ;;  %v1536_v52 = vmul.f32 %v1290_v0, %v3060_v24 }
  0xd6   : > { %1076 = vadd.xlane.f32.xlu1 %v1075_v26  ;;  %1073 = vadd.xlane.f32.xlu0 %v1072_v27  ;;  %v1430_v26 = vsel %vm1305_vm2, %v1426_v10, 0.0  ;;  %v1427_v27 = vsel %vm1305_vm2, %v1425_v16, 0.0  ;;  %v1547_v10 = vsel %vm1305_vm2, %v1545_v43, 0.0 }
  0xda   : > { %861 = vadd.xlane.f32.xlu1 %v860_v30  ;;  %858 = vadd.xlane.f32.xlu0 %v857_v7  ;;  %v1530_v30 = vsel %vm1305_vm2, %v1526_v11, 0.0  ;;  %v1527_v7 = vsel %vm1305_vm2, %v1525_v13, 0.0 }
  0xde   : > { %1086 = vadd.xlane.f32.xlu1 %v1085_v31  ;;  %1083 = vadd.xlane.f32.xlu0 %v1082_v32  ;;  %v3074_v31 = vld [vmem:[%s2775_s8 + $0x1c] sm:$0x1]  ;;  %v1540_v32 = vsel %vm1305_vm2, %v1536_v52, 0.0 }
  0xdf   : > { %v1636_v33 = vmul.f32 %v1288_v46, %v3074_v31  ;;  %v1646_v38 = vmul.f32 %v1290_v0, %v3074_v31 }
  0xe2   : > { %944 = vadd.xlane.f32.xlu1 %v943_v20  ;;  %941 = vadd.xlane.f32.xlu0 %v940_v34  ;;  %v1537_v20 = vsel %vm1305_vm2, %v1535_v53, 0.0  ;;  %v1640_v34 = vsel %vm1305_vm2, %v1636_v33, 0.0 }
  0xe6   : > { %954 = vadd.xlane.f32.xlu1 %v953_v6  ;;  %951 = vadd.xlane.f32.xlu0 %v950_v1  ;;  %v1637_v6 = vsel %vm1305_vm2, %v1635_v21, 0.0  ;;  %v1650_v1 = vsel %vm1305_vm2, %v1646_v38, 0.0  ;;  %v704_v38 = vsel %vm356_vm0, %v2917_v22, 0.0 }
  0xea   : > { %1170 = vadd.xlane.f32.xlu1 %v1169_v41  ;;  %1167 = vadd.xlane.f32.xlu0 %v1166_v44  ;;  %v1292_v41 = vld [vmem:[%s2783_s22 + $0x18] sm:$0x1] }
  0xeb   : > { %v1325_v44 = vmul.f32 %v1292_v41, %v3028_v35  ;;  %v1546_v0 = vmul.f32 %v1292_v41, %v3060_v24 }
  0xed   : > { %v1329_v39 = vsel %vm1305_vm2, %v1325_v44, 0.0  ;;  %v1550_v62 = vsel %vm1305_vm2, %v1546_v0, 0.0 }
  0xee   : > { %1180 = vadd.xlane.f32.xlu1 %v1179_v48  ;;  %1177 = vadd.xlane.f32.xlu0 %v1176_v56  ;;  %v1436_v48 = vmul.f32 %v1292_v41, %v3046_v59  ;;  %v1326_v56 = vsel %vm1305_vm2, %v1324_v45, 0.0 }
  0xf0   : > { %v1440_v42 = vsel %vm1305_vm2, %v1436_v48, 0.0 }
  0xf2   : > { %1310 = vadd.xlane.f32.xlu1 %v1309_v50  ;;  %1307 = vadd.xlane.f32.xlu0 %v1306_v57 }
  0xf6   : > { %1320 = vadd.xlane.f32.xlu1 %v1319_v61  ;;  %1317 = vadd.xlane.f32.xlu0 %v1316_v63  ;;  %v1656_v63 = vmul.f32 %v1292_v41, %v3074_v31 }
  0xf8   : > { %v1660_v13 = vsel %vm1305_vm2, %v1656_v63, 0.0 }
  0xfa   : > { %1421 = vadd.xlane.f32.xlu1 %v1420_v9  ;;  %1418 = vadd.xlane.f32.xlu0 %v1417_v15  ;;  %v1655_v15 = vmul.f32 %v1291_v55, %v3077_v3 }
  0xfc   : > { %v1657_v53 = vsel %vm1305_vm2, %v1655_v15, 0.0 }
  0xfe   : > { %1431 = vadd.xlane.f32.xlu1 %v1430_v26  ;;  %1428 = vadd.xlane.f32.xlu0 %v1427_v27 }
 0x102   : > { %1531 = vadd.xlane.f32.xlu1 %v1530_v30  ;;  %1528 = vadd.xlane.f32.xlu0 %v1527_v7 }
 0x106   : > { %1541 = vadd.xlane.f32.xlu1 %v1540_v32  ;;  %1538 = vadd.xlane.f32.xlu0 %v1537_v20 }
 0x10a   : > { %1641 = vadd.xlane.f32.xlu1 %v1640_v34  ;;  %1638 = vadd.xlane.f32.xlu0 %v1637_v6  ;;  %v701_v6 = vsel %vm356_vm0, %v2921_v23, 0.0 }
 0x10e   : > { %1651 = vadd.xlane.f32.xlu1 %v1650_v1  ;;  %1648 = vadd.xlane.f32.xlu0 %v1647_v54 }
 0x112   : > { %964 = vadd.xlane.f32.xlu1 %v2886_v2  ;;  %961 = vadd.xlane.f32.xlu0 %v2889_v4  ;;  %v1435_v2 = vmul.f32 %v1291_v55, %v3049_v60 }
 0x116   : > { %1190 = vadd.xlane.f32.xlu1 %v2892_v5  ;;  %1187 = vadd.xlane.f32.xlu0 %v2902_v14  ;;  %v1437_v14 = vsel %vm1305_vm2, %v1435_v2, 0.0 }
 0x117   : > { %v369_v46 = vpop.xlane.xlu1 %368  ;;  %v359_v49 = vpop.xlane.xlu0 %358 }
 0x118   : > { %v373_v57 = vmul.f32 0.17677669, %v369_v46  ;;  %v363_v58 = vmul.f32 0.17677669, %v359_v49 }
 0x11a   : > { %1330 = vadd.xlane.f32.xlu1 %v1329_v39  ;;  %1327 = vadd.xlane.f32.xlu0 %v1326_v56  ;;  %v395_v11 = vmax.f32 %v363_v58, %v373_v57 }
 0x11b   : > { %v372_v4 = vpop.xlane.xlu1 %371  ;;  %v362_v5 = vpop.xlane.xlu0 %361 }
 0x11c   : > { %v374_v50 = vmul.f32 0.17677669, %v372_v4  ;;  %v364_v51 = vmul.f32 0.17677669, %v362_v5  ;;  %v1294_v4 = vld [vmem:[%s2783_s22 + $0x1c] sm:$0x1] }
 0x11d   : > { %v1293_v5 = vld [vmem:[%s2783_s22 + $0xc] sm:$0x1]  ;;  %v1446_v15 = vmul.f32 %v1294_v4, %v3046_v59 }
 0x11e   : > { %1441 = vadd.xlane.f32.xlu1 %v1440_v42  ;;  %1438 = vadd.xlane.f32.xlu0 %v1437_v14  ;;  %v396_v26 = vmax.f32 %v364_v51, %v374_v50  ;;  %v1334_v63 = vmul.f32 %v1293_v5, %v3032_v47  ;;  %v1445_v47 = vmul.f32 %v1293_v5, %v3049_v60 }
 0x11f   : > { %v382_v61 = vpop.xlane.xlu1 %381  ;;  %v379_v9 = vpop.xlane.xlu0 %378 }
 0x120   : > { %v384_v8 = vmul.f32 0.17677669, %v382_v61  ;;  %v383_v16 = vmul.f32 0.17677669, %v379_v9 }
 0x122   : > { %1551 = vadd.xlane.f32.xlu1 %v1550_v62  ;;  %1548 = vadd.xlane.f32.xlu0 %v1547_v10  ;;  %v398_v30 = vmax.f32 %v396_v26, %v384_v8  ;;  %v397_v32 = vmax.f32 %v395_v11, %v383_v16 }
 0x123   : > { %v392_v27 = vpop.xlane.xlu1 %391  ;;  %v389_v7 = vpop.xlane.xlu0 %388 }
 0x124   : > { %v394_v52 = vmul.f32 0.17677669, %v392_v27  ;;  %v393_v33 = vmul.f32 0.17677669, %v389_v7  ;;  %v1556_v7 = vmul.f32 %v1294_v4, %v3060_v24 }
 0x126   : > { %v400_v20 = vmax.f32 %v398_v30, %v394_v52  ;;  %1661 = vadd.xlane.f32.xlu1 %v1660_v13  ;;  %v399_v21 = vmax.f32 %v397_v32, %v393_v33  ;;  %1658 = vadd.xlane.f32.xlu0 %v1657_v53  ;;  %v1336_v13 = vsel %vm1305_vm2, %v1334_v63, 0.0 }
 0x127   : > { %v470_v34 = vpop.xlane.xlu1 %469  ;;  %v467_v55 = vpop.xlane.xlu0 %466 }
 0x128   : > { %v402_v40 = vsub.f32 %v364_v51, %v400_v20  ;;  %v408_v1 = vsub.f32 %v374_v50, %v400_v20  ;;  %v414_v54 = vsub.f32 %v384_v8, %v400_v20  ;;  %v420_v41 = vsub.f32 %v394_v52, %v400_v20 }
 0x129   : > { %v401_v44 = vsub.f32 %v363_v58, %v399_v21  ;;  %v407_v45 = vsub.f32 %v373_v57, %v399_v21  ;;  %v413_v56 = vsub.f32 %v383_v16, %v399_v21  ;;  %v419_v0 = vsub.f32 %v393_v33, %v399_v21 }
 0x12a   : > { %v405_v46 = vmul.f32 1.442695, %v402_v40  ;;  %v411_v39 = vmul.f32 1.442695, %v408_v1  ;;  %v417_v48 = vmul.f32 1.442695, %v414_v54  ;;  %705 = vadd.xlane.f32.xlu1 %v704_v38  ;;  %702 = vadd.xlane.f32.xlu0 %v701_v6  ;;  %v1335_v57 = vmul.f32 %v1294_v4, %v3028_v35 }
 0x12b   : > { %v423_v49 = vmul.f32 1.442695, %v420_v41  ;;  %v480_v22 = vpop.xlane.xlu1 %479  ;;  %v403_v2 = vmul.f32 1.442695, %v401_v44  ;;  %v477_v23 = vpop.xlane.xlu0 %476  ;;  %v409_v42 = vmul.f32 1.442695, %v407_v45  ;;  %v1555_v20 = vmul.f32 %v1293_v5, %v3063_v25 }
 0x12c   : > { %2075 = vpow2.f32 %v405_v46  ;;  %v482_v14 = vmul.f32 0.17677669, %v480_v22  ;;  %v415_v43 = vmul.f32 1.442695, %v413_v56  ;;  %v3118_v50 = vmul.f32 0.17677669, %v477_v23 }
 0x12d   : > { %2077 = vpow2.f32 %v411_v39  ;;  %v472_v58 = vmul.f32 0.17677669, %v470_v34  ;;  %v421_v8 = vmul.f32 1.442695, %v419_v0  ;;  %v471_v9 = vmul.f32 0.17677669, %v467_v55 }
 0x12e   : > { %2079 = vpow2.f32 %v417_v48  ;;  %974 = vadd.xlane.f32.xlu1 %v2934_v28  ;;  %971 = vadd.xlane.f32.xlu0 %v2937_v29  ;;  %v1339_v16 = vsel %vm1305_vm2, %v1335_v57, 0.0  ;;  %v1447_v33 = vsel %vm1305_vm2, %v1445_v47, 0.0  ;;  %v1666_v21 = vmul.f32 %v1294_v4, %v3074_v31 }
 0x12f   : > { %2081 = vpow2.f32 %v423_v49  ;;  %v490_v51 = vpop.xlane.xlu1 %489  ;;  %v487_v62 = vpop.xlane.xlu0 %486  ;;  %v504_v28 = vmax.f32 %v472_v58, %v482_v14  ;;  %v503_v29 = vmax.f32 %v471_v9, %v3118_v50  ;;  %v1665_v44 = vmul.f32 %v1293_v5, %v3077_v3 }
 0x130   : > { %2083 = vpow2.f32 %v403_v2  ;;  %v492_v61 = vmul.f32 0.17677669, %v490_v51  ;;  %v3123_v10 = vmul.f32 0.17677669, %v487_v62  ;;  %v1560_v39 = vsel %vm1305_vm2, %v1556_v7, 0.0 }
 0x131   : > { %2085 = vpow2.f32 %v409_v42  ;;  %v1557_v2 = vsel %vm1305_vm2, %v1555_v20, 0.0  ;;  %v1670_v3 = vsel %vm1305_vm2, %v1666_v21, 0.0 }
 0x132   : > { %1200 = vadd.xlane.f32.xlu1 %v2954_v36  ;;  %2087 = vpow2.f32 %v415_v43  ;;  %1197 = vadd.xlane.f32.xlu0 %v2957_v37  ;;  %v506_v26 = vmax.f32 %v504_v28, %v492_v61  ;;  %v505_v36 = vmax.f32 %v503_v29, %v3123_v10  ;;  %v1450_v37 = vsel %vm1305_vm2, %v1446_v15, 0.0 }
 0x133   : > { %v500_v35 = vpop.xlane.xlu1 %499  ;;  %v497_v27 = vpop.xlane.xlu0 %496  ;;  %2089 = vpow2.f32 %v421_v8  ;;  %v1667_v43 = vsel %vm1305_vm2, %v1665_v44, 0.0  ;;  %v3224_v44 = vld [vmem:[%s3221_s10 + $0x10] ss:$4 sm:$0xf] }
 0x134   : > { %v502_v11 = vmul.f32 0.17677669, %v500_v35  ;;  %v3133_v30 = vmul.f32 0.17677669, %v497_v27 }
 0x136   : > { %v3135_v59 = vpop.eup %2075  ;;  %v508_v52 = vmax.f32 %v506_v26, %v502_v11  ;;  %1340 = vadd.xlane.f32.xlu1 %v1339_v16  ;;  %v3142_v60 = vmax.f32 %v505_v36, %v3133_v30  ;;  %1337 = vadd.xlane.f32.xlu0 %v1336_v13 }
 0x137   : > { %v3139_v53 = vpop.eup %2077  ;;  %v578_v32 = vpop.xlane.xlu1 %577 }
 0x138   : > { %v3147_v34 = vpop.eup %2079  ;;  %v426_v38 = vadd.f32 %v3139_v53, %v3135_v59  ;;  %v510_v6 = vsub.f32 %v472_v58, %v508_v52  ;;  %v516_v24 = vsub.f32 %v482_v14, %v508_v52  ;;  %v522_v40 = vsub.f32 %v492_v61, %v508_v52  ;;  %v575_v1 = vpop.xlane.xlu0 %574 }
 0x139   : > { %v3151_v54 = vpop.eup %2081  ;;  %v528_v41 = vsub.f32 %v502_v11, %v508_v52  ;;  %v509_v55 = vsub.f32 %v471_v9, %v3142_v60  ;;  %v515_v56 = vsub.f32 %v3118_v50, %v3142_v60  ;;  %v710_v50 = vmul.f32 %v2820_v18, %v2899_v12 }
 0x13a   : > { %v3155_v45 = vpop.eup %2083  ;;  %v428_v25 = vadd.f32 %v3147_v34, %v426_v38  ;;  %v513_v31 = vmul.f32 1.442695, %v510_v6  ;;  %v519_v46 = vmul.f32 1.442695, %v516_v24  ;;  %1451 = vadd.xlane.f32.xlu1 %v1450_v37  ;;  %v525_v49 = vmul.f32 1.442695, %v522_v40  ;;  %1448 = vadd.xlane.f32.xlu0 %v1447_v33 }
 0x13b   : > { %v3159_v48 = vpop.eup %2085  ;;  %v588_v22 = vpop.xlane.xlu1 %587  ;;  %v531_v42 = vmul.f32 1.442695, %v528_v41  ;;  %v511_v14 = vmul.f32 1.442695, %v509_v55  ;;  %v521_v57 = vsub.f32 %v3123_v10, %v3142_v60  ;;  %v517_v62 = vmul.f32 1.442695, %v515_v56 }
 0x13c   : > { %v430_v23 = vadd.f32 %v3151_v54, %v428_v25  ;;  %v425_v4 = vadd.f32 %v3159_v48, %v3155_v45  ;;  %2091 = vpow2.f32 %v513_v31  ;;  %v585_v0 = vpop.xlane.xlu0 %584  ;;  %v3168_v5 = vpop.eup %2087  ;;  %v3178_v58 = vmul.f32 0.17677669, %v588_v22 }
 0x13d   : > { %2093 = vpow2.f32 %v519_v46  ;;  %v3180_v61 = vpop.eup %2089  ;;  %v527_v63 = vsub.f32 %v3133_v30, %v3142_v60  ;;  %v3184_v8 = vmul.f32 0.17677669, %v585_v0  ;;  %v580_v9 = vmul.f32 0.17677669, %v578_v32 }
 0x13e   : > { %2095 = vrcp.f32 %v430_v23  ;;  %v427_v51 = vadd.f32 %v3168_v5, %v425_v4  ;;  %1561 = vadd.xlane.f32.xlu1 %v1560_v39  ;;  %1558 = vadd.xlane.f32.xlu0 %v1557_v2  ;;  %v709_v10 = vmul.f32 %v2823_v19, %v2907_v17  ;;  %v3189_v15 = vmul.f32 0.17677669, %v575_v1  ;;  %v3230_v39 = vld [vmem:[%s3221_s10 + $0x11] ss:$4 sm:$0xf] }
 0x13f   : > { %2097 = vpow2.f32 %v525_v49  ;;  %v598_v18 = vpop.xlane.xlu1 %597  ;;  %v523_v16 = vmul.f32 1.442695, %v521_v57  ;;  %v612_v47 = vmax.f32 %v580_v9, %v3178_v58  ;;  %v529_v26 = vmul.f32 1.442695, %v527_v63 }
 0x140   : > { %v429_v12 = vadd.f32 %v3180_v61, %v427_v51  ;;  %2099 = vpow2.f32 %v531_v42  ;;  %v595_v28 = vpop.xlane.xlu0 %594  ;;  %v600_v29 = vmul.f32 0.17677669, %v598_v18  ;;  %v611_v11 = vmax.f32 %v3189_v15, %v3184_v8 }
 0x141   : > { %2101 = vpow2.f32 %v511_v14  ;;  %v3191_v35 = vmul.f32 0.17677669, %v595_v28  ;;  %v714_v19 = vsel %vm356_vm0, %v710_v50, 0.0  ;;  %v711_v30 = vsel %vm356_vm0, %v709_v10, 0.0 }
 0x142   : > { %2103 = vrcp.f32 %v429_v12  ;;  %1671 = vadd.xlane.f32.xlu1 %v1670_v3  ;;  %1668 = vadd.xlane.f32.xlu0 %v1667_v43  ;;  %v614_v17 = vmax.f32 %v612_v47, %v600_v29  ;;  %v3204_v60 = vstv %s3173_s30  ;;  %v3241_v43 = vld [vmem:[%s3221_s10 + $0x12] ss:$4 sm:$0xf]  ;;  %v3259_v10 = vld [vmem:[%s3221_s10] ss:$4 sm:$0xf] }
 0x143   : > { %2105 = vpow2.f32 %v517_v62  ;;  %v608_v27 = vpop.xlane.xlu1 %607  ;;  %v613_v52 = vmax.f32 %v611_v11, %v3191_v35  ;;  %4264 = vst [vmem:[#allocation18_spill] sm:$0xff] %v3204_v60 }
 0x144   : > { %v610_v13 = vmul.f32 0.17677669, %v608_v27  ;;  %v605_v36 = vpop.xlane.xlu0 %604  ;;  %2107 = vpow2.f32 %v523_v16 }
 0x145   : > { %v3199_v37 = vmul.f32 0.17677669, %v605_v36  ;;  %2109 = vpow2.f32 %v529_v26 }
 0x146   : > { %v3201_v7 = vpop.eup %2091  ;;  %v616_v32 = vmax.f32 %v614_v17, %v610_v13  ;;  %715 = vadd.xlane.f32.xlu1 %v714_v19  ;;  %712 = vadd.xlane.f32.xlu0 %v711_v30  ;;  %v3279_v30 = vld [vmem:[%s3221_s10 + $0x2] ss:$4 sm:$0xf] }
 0x147   : > { %v3206_v33 = vpop.eup %2093  ;;  %v3209_v20 = vmax.f32 %v613_v52, %v3199_v37  ;;  %v3211_v21 = vpop.xlane.xlu1 %685 }
 0x148   : > { %v2096_v38 = vpop.eup %2095  ;;  %v534_v6 = vadd.f32 %v3206_v33, %v3201_v7  ;;  %v618_v24 = vsub.f32 %v580_v9, %v616_v32  ;;  %v624_v40 = vsub.f32 %v3178_v58, %v616_v32  ;;  %v630_v1 = vsub.f32 %v600_v29, %v616_v32  ;;  %v3216_v41 = vpop.xlane.xlu0 %682 }
 0x149   : > { %v3218_v55 = vpop.eup %2097  ;;  %v437_v25 = vmul.f32 %v2096_v38, %v3204_v60  ;;  %v636_v31 = vsub.f32 %v610_v13, %v616_v32  ;;  %v617_v22 = vsub.f32 %v3189_v15, %v3209_v20  ;;  %v623_v58 = vsub.f32 %v3184_v8, %v3209_v20  ;;  %v3262_v15 = vld [vmem:[%s3221_s10 + $0x1] ss:$4 sm:$0xf] }
 0x14a   : > { %v3227_v46 = vpop.eup %2099  ;;  %v536_v49 = vadd.f32 %v3218_v55, %v534_v6  ;;  %v621_v56 = vmul.f32 1.442695, %v618_v24  ;;  %v627_v42 = vmul.f32 1.442695, %v624_v40  ;;  %v633_v57 = vmul.f32 1.442695, %v630_v1 }
 0x14b   : > { %v3235_v2 = vpop.eup %2101  ;;  %v439_v3 = vmul.f32 %v3135_v59, %v437_v25  ;;  %v443_v23 = vmul.f32 %v3139_v53, %v437_v25  ;;  %v449_v4 = vmul.f32 %v3147_v34, %v437_v25  ;;  %v696_v0 = vpop.xlane.xlu1 %695  ;;  %v455_v50 = vmul.f32 %v3151_v54, %v437_v25  ;;  %v3250_v53 = vld [vmem:[%s3221_s10 + $0x13] ss:$4 sm:$0xf]  ;;  %v3288_v6 = vld [vmem:[%s3221_s10 + $0x3] ss:$4 sm:$0xf] }
 0x14c   : > { %v2104_v14 = vpop.eup %2103  ;;  %v538_v51 = vadd.f32 %v3227_v46, %v536_v49  ;;  %v693_v59 = vpop.xlane.xlu0 %692  ;;  %2111 = vpow2.f32 %v621_v56  ;;  %v639_v18 = vmul.f32 1.442695, %v636_v31  ;;  %v619_v9 = vmul.f32 1.442695, %v617_v22 }
 0x14d   : > { %v3247_v62 = vpop.eup %2105  ;;  %v441_v34 = vmul.f32 %v3224_v44, %v439_v3  ;;  %v445_v63 = vmul.f32 %v3230_v39, %v443_v23  ;;  %v436_v54 = vmul.f32 %v2104_v14, %v3204_v60  ;;  %v451_v28 = vmul.f32 %v3241_v43, %v449_v4 }
 0x14e   : > { %2113 = vrcp.f32 %v538_v51  ;;  %v533_v12 = vadd.f32 %v3247_v62, %v3235_v2  ;;  %v629_v29 = vsub.f32 %v3191_v35, %v3209_v20  ;;  %v3268_v47 = vpop.eup %2107  ;;  %v457_v26 = vmul.f32 %v3250_v53, %v455_v50 }
 0x14f   : > { %v447_v8 = vadd.f32 %v445_v63, %v441_v34  ;;  %2115 = vpow2.f32 %v627_v42  ;;  %v3266_v16 = vpop.xlane.xlu1 %831  ;;  %v438_v11 = vmul.f32 %v3155_v45, %v436_v54  ;;  %v442_v27 = vmul.f32 %v3159_v48, %v436_v54  ;;  %v3276_v13 = vpop.eup %2109 }
 0x150   : > { %v448_v19 = vmul.f32 %v3168_v5, %v436_v54  ;;  %v3274_v17 = vpop.xlane.xlu0 %828  ;;  %v535_v35 = vadd.f32 %v3268_v47, %v533_v12  ;;  %2117 = vpow2.f32 %v633_v57  ;;  %v625_v52 = vmul.f32 1.442695, %v623_v58 }
 0x151   : > { %v453_v36 = vadd.f32 %v451_v28, %v447_v8  ;;  %v440_v32 = vmul.f32 %v438_v11, %v3259_v10  ;;  %v444_v45 = vmul.f32 %v3262_v15, %v442_v27  ;;  %v454_v48 = vmul.f32 %v3180_v61, %v436_v54 }
 0x152   : > { %v635_v5 = vsub.f32 %v3199_v37, %v3209_v20  ;;  %v537_v24 = vadd.f32 %v3276_v13, %v535_v35  ;;  %2119 = vpow2.f32 %v639_v18  ;;  %v631_v40 = vmul.f32 1.442695, %v629_v29 }
 0x153   : > { %v459_v38 = vadd.f32 %v457_v26, %v453_v36  ;;  %v842_v1 = vpop.xlane.xlu1 %841  ;;  %v446_v25 = vadd.f32 %v444_v45, %v440_v32  ;;  %v450_v31 = vmul.f32 %v3279_v30, %v448_v19  ;;  %2121 = vpow2.f32 %v619_v9 }
 0x154   : > { %v3293_v49 = vmul.f32 0.17677669, %v3211_v21  ;;  %v839_v56 = vpop.xlane.xlu0 %838  ;;  %2123 = vrcp.f32 %v537_v24  ;;  %v3300_v61 = vmul.f32 0.17677669, %v3216_v41  ;;  %v3302_v37 = vmul.f32 0.17677669, %v696_v0 }
 0x155   : > { %1940 = vst [vmem:[%s3296_s29 + $0x10] ss:$4 sm:$0xf] %v459_v38  ;;  %v3304_v20 = vmul.f32 0.17677669, %v693_v59  ;;  %v452_v22 = vadd.f32 %v450_v31, %v446_v25  ;;  %v456_v3 = vmul.f32 %v3288_v6, %v454_v48  ;;  %2125 = vpow2.f32 %v625_v52 }
 0x156   : > { %4265 = vst [vmem:[#allocation19_spill] sm:$0xff] %v3293_v49  ;;  %4266 = vst [vmem:[#allocation20_spill] sm:$0xff] %v3300_v61  ;;  %v637_v21 = vmul.f32 1.442695, %v635_v5  ;;  %v3307_v23 = vpop.eup %2111  ;;  %2127 = vpow2.f32 %v631_v40  ;;  %v3334_v19 = vmul.f32 0.17677669, %v842_v1 }
 0x157   : > { %4267 = vst [vmem:[#allocation21_spill] sm:$0xff] %v3302_v37  ;;  %4268 = vst [vmem:[#allocation22_spill] sm:$0xff] %v3304_v20  ;;  %v1057_v41 = vpop.xlane.xlu1 %1056  ;;  %v458_v0 = vadd.f32 %v456_v3, %v452_v22  ;;  %v834_v5 = vmul.f32 0.17677669, %v3266_v16  ;;  %v3348_v25 = vmul.f32 0.17677669, %v839_v56 }
 0x158   : > { %v2114_v14 = vpop.eup %2113  ;;  %v1054_v50 = vpop.xlane.xlu0 %1053  ;;  %2129 = vpow2.f32 %v637_v21  ;;  %v833_v3 = vmul.f32 0.17677669, %v3274_v17 }
 0x159   : > { %v3313_v51 = vpop.eup %2115  ;;  %v544_v57 = vmul.f32 %v2114_v14, %v3204_v60  ;;  %460 = vst [vmem:[%s3296_s29] ss:$4 sm:$0xf] %v458_v0  ;;  %v866_v21 = vmax.f32 %v834_v5, %v3334_v19 }
 0x15a   : > { %v642_v58 = vadd.f32 %v3313_v51, %v3307_v23  ;;  %v3319_v59 = vpop.eup %2117 }
 0x15b   : > { %v546_v34 = vmul.f32 %v3201_v7, %v544_v57  ;;  %v550_v63 = vmul.f32 %v3206_v33, %v544_v57  ;;  %v556_v18 = vmul.f32 %v3218_v55, %v544_v57  ;;  %v1067_v54 = vpop.xlane.xlu1 %1066  ;;  %v562_v26 = vmul.f32 %v3227_v46, %v544_v57 }
 0x15c   : > { %v644_v12 = vadd.f32 %v3319_v59, %v642_v58  ;;  %v1064_v9 = vpop.xlane.xlu0 %1063  ;;  %v3325_v8 = vpop.eup %2119  ;;  %v3360_v58 = vmul.f32 0.17677669, %v1067_v54 }
 0x15d   : > { %v548_v28 = vmul.f32 %v3224_v44, %v546_v34  ;;  %v552_v29 = vmul.f32 %v3230_v39, %v550_v63  ;;  %v3330_v11 = vpop.eup %2121  ;;  %v558_v55 = vmul.f32 %v3241_v43, %v556_v18  ;;  %v564_v46 = vmul.f32 %v3250_v53, %v562_v26 }
 0x15e   : > { %v646_v7 = vadd.f32 %v3325_v8, %v644_v12  ;;  %v2124_v27 = vpop.eup %2123  ;;  %v3362_v34 = vmul.f32 0.17677669, %v1064_v9  ;;  %v865_v12 = vmax.f32 %v833_v3, %v3348_v25 }
 0x15f   : > { %v554_v33 = vadd.f32 %v552_v29, %v548_v28  ;;  %v852_v36 = vpop.xlane.xlu1 %851  ;;  %v3336_v35 = vpop.eup %2125  ;;  %v543_v52 = vmul.f32 %v2124_v27, %v3204_v60  ;;  %v3366_v28 = vmul.f32 0.17677669, %v1057_v41  ;;  %v3368_v29 = vmul.f32 0.17677669, %v1054_v50 }
 0x160   : > { %2131 = vrcp.f32 %v646_v7  ;;  %v849_v32 = vpop.xlane.xlu0 %848  ;;  %v641_v48 = vadd.f32 %v3336_v35, %v3330_v11  ;;  %v3343_v38 = vpop.eup %2127  ;;  %v854_v57 = vmul.f32 0.17677669, %v852_v36  ;;  %v930_v42 = vld [vmem:[%s3296_s29] ss:$8 sm:$0x3] }
 0x161   : > { %v560_v45 = vadd.f32 %v558_v55, %v554_v33  ;;  %v545_v24 = vmul.f32 %v3235_v2, %v543_v52  ;;  %v549_v40 = vmul.f32 %v3247_v62, %v543_v52  ;;  %v555_v1 = vmul.f32 %v3268_v47, %v543_v52 }
 0x162   : > { %v643_v22 = vadd.f32 %v3343_v38, %v641_v48  ;;  %v3353_v16 = vpop.eup %2129  ;;  %v561_v62 = vmul.f32 %v3276_v13, %v543_v52  ;;  %v853_v17 = vmul.f32 0.17677669, %v849_v32  ;;  %v868_v27 = vmax.f32 %v866_v21, %v854_v57 }
 0x163   : > { %v566_v31 = vadd.f32 %v564_v46, %v560_v45  ;;  %v1077_v14 = vpop.xlane.xlu1 %1076  ;;  %v547_v0 = vmul.f32 %v545_v24, %v3259_v10  ;;  %v551_v2 = vmul.f32 %v3262_v15, %v549_v40  ;;  %v557_v18 = vmul.f32 %v3279_v30, %v555_v1 }
 0x164   : > { %v1074_v47 = vpop.xlane.xlu0 %1073  ;;  %v645_v56 = vadd.f32 %v3353_v16, %v643_v22  ;;  %v3370_v13 = vmul.f32 0.17677669, %v1077_v14  ;;  %v563_v9 = vmul.f32 %v3288_v6, %v561_v62  ;;  %v1091_v36 = vmax.f32 %v3366_v28, %v3360_v58 }
 0x165   : > { %1942 = vst [vmem:[%s3296_s29 + $0x11] ss:$4 sm:$0xf] %v566_v31  ;;  %v553_v63 = vadd.f32 %v551_v2, %v547_v0  ;;  %v3372_v26 = vmul.f32 0.17677669, %v1074_v47  ;;  %v1090_v41 = vmax.f32 %v3368_v29, %v3362_v34  ;;  %v867_v50 = vmax.f32 %v865_v12, %v853_v17 }
 0x166   : > { %2133 = vrcp.f32 %v645_v56  ;;  %v1093_v24 = vmax.f32 %v1091_v36, %v3370_v13 }
 0x167   : > { %v862_v7 = vpop.xlane.xlu1 %861  ;;  %v559_v54 = vadd.f32 %v557_v18, %v553_v63  ;;  %v3382_v40 = vmax.f32 %v1090_v41, %v3372_v26 }
 0x168   : > { %v864_v33 = vmul.f32 0.17677669, %v862_v7  ;;  %v859_v55 = vpop.xlane.xlu0 %858 }
 0x169   : > { %v863_v52 = vmul.f32 0.17677669, %v859_v55  ;;  %v565_v45 = vadd.f32 %v563_v9, %v559_v54 }
 0x16a   : > { %v2132_v32 = vpop.eup %2131  ;;  %v870_v46 = vmax.f32 %v868_v27, %v864_v33 }
 0x16b   : > { %v652_v48 = vmul.f32 %v2132_v32, %v3204_v60  ;;  %v869_v1 = vmax.f32 %v867_v50, %v863_v52  ;;  %v1087_v31 = vpop.xlane.xlu1 %1086  ;;  %1941 = vst [vmem:[%s3296_s29 + $0x1] ss:$4 sm:$0xf] %v565_v45 }
 0x16c   : > { %v872_v22 = vsub.f32 %v834_v5, %v870_v46  ;;  %v878_v21 = vsub.f32 %v3334_v19, %v870_v46  ;;  %v884_v14 = vsub.f32 %v854_v57, %v870_v46  ;;  %v890_v0 = vsub.f32 %v864_v33, %v870_v46  ;;  %v1084_v2 = vpop.xlane.xlu0 %1083 }
 0x16d   : > { %v654_v62 = vmul.f32 %v3307_v23, %v652_v48  ;;  %v658_v47 = vmul.f32 %v3313_v51, %v652_v48  ;;  %v664_v56 = vmul.f32 %v3319_v59, %v652_v48  ;;  %v670_v63 = vmul.f32 %v3325_v8, %v652_v48 }
 0x16e   : > { %v875_v18 = vmul.f32 1.442695, %v872_v22  ;;  %v881_v12 = vmul.f32 1.442695, %v878_v21  ;;  %v887_v7 = vmul.f32 1.442695, %v884_v14  ;;  %v871_v54 = vsub.f32 %v833_v3, %v869_v1 }
 0x16f   : > { %v656_v9 = vmul.f32 %v3224_v44, %v654_v62  ;;  %v660_v5 = vmul.f32 %v3230_v39, %v658_v47  ;;  %v666_v19 = vmul.f32 %v3241_v43, %v664_v56  ;;  %v672_v57 = vmul.f32 %v3250_v53, %v670_v63  ;;  %v3394_v27 = vpop.xlane.xlu1 %944 }
 0x170   : > { %2135 = vpow2.f32 %v875_v18  ;;  %v893_v23 = vmul.f32 1.442695, %v890_v0  ;;  %v873_v51 = vmul.f32 1.442695, %v871_v54  ;;  %v877_v59 = vsub.f32 %v3348_v25, %v869_v1  ;;  %v3397_v8 = vpop.xlane.xlu0 %941  ;;  %v2134_v33 = vpop.eup %2133 }
 0x171   : > { %v662_v55 = vadd.f32 %v660_v5, %v656_v9  ;;  %2137 = vpow2.f32 %v881_v12  ;;  %v883_v3 = vsub.f32 %v853_v17, %v869_v1  ;;  %v889_v44 = vsub.f32 %v863_v52, %v869_v1 }
 0x172   : > { %v651_v39 = vmul.f32 %v2134_v33, %v3204_v60  ;;  %2139 = vpow2.f32 %v887_v7  ;;  %v879_v43 = vmul.f32 1.442695, %v877_v59  ;;  %v1089_v36 = vmul.f32 0.17677669, %v1087_v31 }
 0x173   : > { %v668_v53 = vadd.f32 %v666_v19, %v662_v55  ;;  %2141 = vpow2.f32 %v893_v23  ;;  %v885_v41 = vmul.f32 1.442695, %v883_v3  ;;  %v891_v50 = vmul.f32 1.442695, %v889_v44  ;;  %v955_v32 = vpop.xlane.xlu1 %954 }
 0x174   : > { %v653_v25 = vmul.f32 %v3330_v11, %v651_v39  ;;  %v657_v45 = vmul.f32 %v3336_v35, %v651_v39  ;;  %v663_v46 = vmul.f32 %v3343_v38, %v651_v39  ;;  %v669_v17 = vmul.f32 %v3353_v16, %v651_v39  ;;  %v952_v52 = vpop.xlane.xlu0 %951 }
 0x175   : > { %v674_v48 = vadd.f32 %v672_v57, %v668_v53  ;;  %2143 = vpow2.f32 %v873_v51  ;;  %v1095_v1 = vmax.f32 %v1093_v24, %v1089_v36  ;;  %v1088_v22 = vmul.f32 0.17677669, %v1084_v2 }
 0x176   : > { %v655_v31 = vmul.f32 %v653_v25, %v3259_v10  ;;  %v659_v21 = vmul.f32 %v3262_v15, %v657_v45  ;;  %v665_v14 = vmul.f32 %v3279_v30, %v663_v46  ;;  %v671_v0 = vmul.f32 %v3288_v6, %v669_v17 }
 0x177   : > { %1944 = vst [vmem:[%s3296_s29 + $0x12] ss:$4 sm:$0xf] %v674_v48  ;;  %2145 = vpow2.f32 %v879_v43  ;;  %v1097_v11 = vsub.f32 %v3366_v28, %v1095_v1  ;;  %v1103_v35 = vsub.f32 %v3360_v58, %v1095_v1  ;;  %v1109_v38 = vsub.f32 %v3370_v13, %v1095_v1  ;;  %v1171_v16 = vpop.xlane.xlu1 %1170 }
 0x178   : > { %v661_v62 = vadd.f32 %v659_v21, %v655_v31  ;;  %2147 = vpow2.f32 %v885_v41  ;;  %v1115_v24 = vsub.f32 %v1089_v36, %v1095_v1  ;;  %v1094_v10 = vmax.f32 %v3382_v40, %v1088_v22  ;;  %v1168_v2 = vpop.xlane.xlu0 %1167 }
 0x179   : > { %2149 = vpow2.f32 %v891_v50  ;;  %v1100_v15 = vmul.f32 1.442695, %v1097_v11  ;;  %v1106_v30 = vmul.f32 1.442695, %v1103_v35  ;;  %v1112_v47 = vmul.f32 1.442695, %v1109_v38 }
 0x17a   : > { %v3413_v6 = vpop.eup %2135  ;;  %v667_v56 = vadd.f32 %v665_v14, %v661_v62  ;;  %v1118_v63 = vmul.f32 1.442695, %v1115_v24  ;;  %v1096_v28 = vsub.f32 %v3368_v29, %v1094_v10  ;;  %v1102_v58 = vsub.f32 %v3362_v34, %v1094_v10 }
 0x17b   : > { %v3417_v13 = vpop.eup %2137  ;;  %2151 = vpow2.f32 %v1100_v15  ;;  %v1108_v18 = vsub.f32 %v3372_v26, %v1094_v10  ;;  %v1114_v40 = vsub.f32 %v1088_v22, %v1094_v10  ;;  %v1181_v12 = vpop.xlane.xlu1 %1180  ;;  %v3427_v23 = vmul.f32 0.17677669, %v3394_v27 }
 0x17c   : > { %v3420_v7 = vpop.eup %2139  ;;  %v673_v54 = vadd.f32 %v671_v0, %v667_v56  ;;  %v896_v9 = vadd.f32 %v3417_v13, %v3413_v6  ;;  %2153 = vpow2.f32 %v1106_v30  ;;  %v1098_v5 = vmul.f32 1.442695, %v1096_v28  ;;  %v1178_v19 = vpop.xlane.xlu0 %1177 }
 0x17d   : > { %v3424_v29 = vpop.eup %2141  ;;  %2155 = vpow2.f32 %v1112_v47  ;;  %v1104_v34 = vmul.f32 1.442695, %v1102_v58  ;;  %v1110_v57 = vmul.f32 1.442695, %v1108_v18  ;;  %v1116_v51 = vmul.f32 1.442695, %v1114_v40 }
 0x17e   : > { %1943 = vst [vmem:[%s3296_s29 + $0x2] ss:$4 sm:$0xf] %v673_v54  ;;  %v898_v26 = vadd.f32 %v3420_v7, %v896_v9  ;;  %2157 = vpow2.f32 %v1118_v63  ;;  %v3431_v59 = vmul.f32 0.17677669, %v955_v32  ;;  %v3494_v28 = vstv %s1947_s6 }
 0x17f   : > { %v3433_v33 = vpop.eup %2143  ;;  %2159 = vpow2.f32 %v1098_v5  ;;  %v3436_v55 = vmul.f32 0.17677669, %v3397_v8  ;;  %v3438_v3 = vmul.f32 0.17677669, %v952_v52  ;;  %v3440_v44 = vmul.f32 0.17677669, %v1171_v16  ;;  %v1311_v39 = vpop.xlane.xlu1 %1310 }
 0x180   : > { %v900_v27 = vadd.f32 %v3424_v29, %v898_v26  ;;  %2161 = vpow2.f32 %v1104_v34  ;;  %v3445_v36 = vmul.f32 0.17677669, %v1181_v12  ;;  %v1308_v53 = vpop.xlane.xlu0 %1307  ;;  %v3451_v50 = vmul.f32 0.17677669, %v1168_v2 }
 0x181   : > { %v3447_v41 = vpop.eup %2145  ;;  %2163 = vpow2.f32 %v1110_v57  ;;  %v3453_v32 = vmul.f32 0.17677669, %v1178_v19  ;;  %v3466_v22 = vmul.f32 0.17677669, %v1311_v39  ;;  %v3472_v0 = vmul.f32 0.17677669, %v1308_v53 }
 0x182   : > { %v3455_v25 = vpop.eup %2147  ;;  %2165 = vrcp.f32 %v900_v27  ;;  %v895_v45 = vadd.f32 %v3447_v41, %v3433_v33  ;;  %v3506_v34 = vld [vmem:[%s3221_s10 + $0x10] ss:$8 sm:$0x3]  ;;  %v3513_v39 = vld [vmem:[%s3221_s10 + $0x12] ss:$8 sm:$0x3]  ;;  %v4286_v60 = vmax.f32 %v3436_v55, %v3438_v3 }
 0x183   : > { %v3461_v17 = vpop.eup %2149  ;;  %v1321_v48 = vpop.xlane.xlu1 %1320  ;;  %2167 = vpow2.f32 %v1116_v51 }
 0x184   : > { %v897_v1 = vadd.f32 %v3455_v25, %v895_v45  ;;  %v3468_v31 = vmul.f32 0.17677669, %v1321_v48  ;;  %v1318_v21 = vpop.xlane.xlu0 %1317 }
 0x185   : > { %v3470_v14 = vpop.eup %2151  ;;  %v3474_v11 = vmul.f32 0.17677669, %v1318_v21 }
 0x186   : > { %v3476_v35 = vpop.eup %2153  ;;  %v899_v38 = vadd.f32 %v3461_v17, %v897_v1 }
 0x187   : > { %v3481_v62 = vpop.eup %2155  ;;  %v1121_v24 = vadd.f32 %v3476_v35, %v3470_v14  ;;  %v1422_v2 = vpop.xlane.xlu1 %1421 }
 0x188   : > { %v3487_v15 = vpop.eup %2157  ;;  %2169 = vrcp.f32 %v899_v38  ;;  %v1419_v30 = vpop.xlane.xlu0 %1418  ;;  %v3501_v9 = vmul.f32 0.17677669, %v1422_v2 }
 0x189   : > { %v3489_v47 = vpop.eup %2159  ;;  %v1123_v56 = vadd.f32 %v3481_v62, %v1121_v24  ;;  %v3515_v27 = vmul.f32 0.17677669, %v1419_v30  ;;  %v3525_v24 = vld [vmem:[%s3221_s10 + $0x14] ss:$8 sm:$0x3] }
 0x18a   : > { %v3492_v63 = vpop.eup %2161 }
 0x18b   : > { %v3496_v58 = vpop.eup %2163  ;;  %v1125_v18 = vadd.f32 %v3487_v15, %v1123_v56  ;;  %v1120_v40 = vadd.f32 %v3492_v63, %v3489_v47  ;;  %v1432_v12 = vpop.xlane.xlu1 %1431 }
 0x18c   : > { %v2166_v54 = vpop.eup %2165  ;;  %v3503_v5 = vmul.f32 0.17677669, %v1432_v12  ;;  %v1429_v19 = vpop.xlane.xlu0 %1428 }
 0x18d   : > { %v907_v57 = vmul.f32 %v2166_v54, %v3494_v28  ;;  %2171 = vrcp.f32 %v1125_v18  ;;  %v1122_v26 = vadd.f32 %v3496_v58, %v1120_v40  ;;  %v3510_v51 = vmul.f32 0.17677669, %v1429_v19  ;;  %v3519_v45 = vpop.eup %2167  ;;  %v3532_v40 = vld [vmem:[%s3221_s10 + $0x16] ss:$8 sm:$0x3] }
 0x18e   : > { %v3538_v19 = vld [vmem:[%s3221_s10] ss:$8 sm:$0x3] }
 0x18f   : > { %v909_v48 = vmul.f32 %v3413_v6, %v907_v57  ;;  %v913_v1 = vmul.f32 %v3417_v13, %v907_v57  ;;  %v919_v21 = vmul.f32 %v3420_v7, %v907_v57  ;;  %v1532_v38 = vpop.xlane.xlu1 %1531  ;;  %v925_v2 = vmul.f32 %v3424_v29, %v907_v57  ;;  %v3541_v29 = vld [vmem:[%s3221_s10 + $0x2] ss:$8 sm:$0x3] }
 0x190   : > { %v1124_v30 = vadd.f32 %v3519_v45, %v1122_v26  ;;  %v1529_v18 = vpop.xlane.xlu0 %1528  ;;  %v3545_v53 = vmul.f32 0.17677669, %v1532_v38 }
 0x191   : > { %v911_v6 = vmul.f32 %v3506_v34, %v909_v48  ;;  %v915_v13 = vmul.f32 %v3513_v39, %v913_v1  ;;  %v921_v54 = vmul.f32 %v3525_v24, %v919_v21  ;;  %v927_v56 = vmul.f32 %v3532_v40, %v925_v2 }
 0x192   : > { %v2170_v12 = vpop.eup %2169  ;;  %2173 = vrcp.f32 %v1124_v30  ;;  %v3550_v30 = vld [vmem:[%s3221_s10 + $0x4] ss:$8 sm:$0x3] }
 0x193   : > { %v917_v7 = vadd.f32 %v915_v13, %v911_v6  ;;  %v906_v57 = vmul.f32 %v2170_v12, %v3494_v28  ;;  %v1542_v26 = vpop.xlane.xlu1 %1541  ;;  %4269 = vst [vmem:[#allocation23_spill] sm:$0xff] %v3550_v30  ;;  %v3555_v12 = vmul.f32 0.17677669, %v1529_v18 }
 0x194   : > { %v3547_v10 = vmul.f32 0.17677669, %v1542_v26  ;;  %v1539_v48 = vpop.xlane.xlu0 %1538 }
 0x195   : > { %v923_v1 = vadd.f32 %v921_v54, %v917_v7  ;;  %v908_v21 = vmul.f32 %v3433_v33, %v906_v57  ;;  %v912_v6 = vmul.f32 %v3447_v41, %v906_v57  ;;  %v918_v13 = vmul.f32 %v3455_v25, %v906_v57  ;;  %v1969_v41 = vld [vmem:[%s3296_s29 + $0x10] ss:$8 sm:$0x3]  ;;  %v3566_v25 = vld [vmem:[%s3221_s10 + $0x6] ss:$8 sm:$0x3] }
 0x196   : > { %v3559_v2 = vmul.f32 0.17677669, %v1539_v48  ;;  %v924_v33 = vmul.f32 %v3461_v17, %v906_v57  ;;  %4270 = vst [vmem:[#allocation24_spill] sm:$0xff] %v3566_v25 }
 0x197   : > { %v2172_v26 = vpop.eup %2171  ;;  %v929_v16 = vadd.f32 %v927_v56, %v923_v1  ;;  %v910_v7 = vmul.f32 %v908_v21, %v3538_v19  ;;  %v914_v54 = vmul.f32 %v3541_v29, %v912_v6  ;;  %v1642_v52 = vpop.xlane.xlu1 %1641  ;;  %v920_v1 = vmul.f32 %v3550_v30, %v918_v13 }
 0x198   : > { %v1131_v18 = vmul.f32 %v2172_v26, %v3494_v28  ;;  %v1639_v38 = vpop.xlane.xlu0 %1638  ;;  %v926_v8 = vmul.f32 %v3566_v25, %v924_v33 }
 0x199   : > { %v933_v46 = vadd.f32 %v1969_v41, %v929_v16  ;;  %v916_v56 = vadd.f32 %v914_v54, %v910_v7  ;;  %v3587_v41 = vmul.f32 0.17677669, %v1642_v52 }
 0x19a   : > { %v1133_v21 = vmul.f32 %v3470_v14, %v1131_v18  ;;  %v1137_v6 = vmul.f32 %v3476_v35, %v1131_v18  ;;  %v1143_v17 = vmul.f32 %v3481_v62, %v1131_v18  ;;  %v1149_v7 = vmul.f32 %v3487_v15, %v1131_v18 }
 0x19b   : > { %1970 = vst [vmem:[%s3296_s29 + $0x10] ss:$8 sm:$0x3] %v933_v46  ;;  %v922_v57 = vadd.f32 %v920_v1, %v916_v56  ;;  %v1652_v43 = vpop.xlane.xlu1 %1651  ;;  %4273 = vst [vmem:[#allocation27_spill] sm:$0xff] %v3587_v41  ;;  %v3589_v56 = vmul.f32 0.17677669, %v1639_v38 }
 0x19c   : > { %v2174_v26 = vpop.eup %2173  ;;  %v1135_v48 = vmul.f32 %v3506_v34, %v1133_v21  ;;  %v1139_v16 = vmul.f32 %v3513_v39, %v1137_v6  ;;  %v1649_v13 = vpop.xlane.xlu0 %1648  ;;  %v3582_v35 = vmul.f32 0.17677669, %v1652_v43  ;;  %v1145_v33 = vmul.f32 %v3525_v24, %v1143_v17  ;;  %v1976_v17 = vld [vmem:[%s3296_s29 + $0x14] ss:$8 sm:$0x3] }
 0x19d   : > { %v928_v54 = vadd.f32 %v926_v8, %v922_v57  ;;  %v1130_v14 = vmul.f32 %v2174_v26, %v3494_v28  ;;  %v3584_v46 = vmul.f32 0.17677669, %v1649_v13  ;;  %4274 = vst [vmem:[#allocation28_spill] sm:$0xff] %v3589_v56  ;;  %v1151_v6 = vmul.f32 %v3532_v40, %v1149_v7 }
 0x19e   : > { %4271 = vst [vmem:[#allocation25_spill] sm:$0xff] %v3582_v35  ;;  %v1141_v62 = vadd.f32 %v1139_v16, %v1135_v48  ;;  %v1676_v48 = vmax.f32 %v3587_v41, %v3582_v35 }
 0x19f   : > { %4272 = vst [vmem:[#allocation26_spill] sm:$0xff] %v3584_v46  ;;  %v932_v1 = vadd.f32 %v930_v42, %v928_v54  ;;  %v1132_v15 = vmul.f32 %v3489_v47, %v1130_v14  ;;  %v1136_v8 = vmul.f32 %v3492_v63, %v1130_v14  ;;  %v1142_v18 = vmul.f32 %v3496_v58, %v1130_v14  ;;  %v965_v43 = vpop.xlane.xlu1 %964 }
 0x1a0   : > { %v1147_v21 = vadd.f32 %v1145_v33, %v1141_v62  ;;  %v1675_v52 = vmax.f32 %v3589_v56, %v3584_v46  ;;  %v962_v38 = vpop.xlane.xlu0 %961  ;;  %v1148_v63 = vmul.f32 %v3519_v45, %v1130_v14 }
 0x1a1   : > { %934 = vst [vmem:[%s3296_s29] ss:$8 sm:$0x3] %v932_v1  ;;  %v1134_v42 = vmul.f32 %v1132_v15, %v3538_v19  ;;  %v1138_v47 = vmul.f32 %v3541_v29, %v1136_v8  ;;  %v1144_v26 = vmul.f32 %v3550_v30, %v1142_v18  ;;  %v1975_v15 = vld [vmem:[%s3296_s29 + $0x4] ss:$8 sm:$0x3] }
 0x1a2   : > { %v1153_v58 = vadd.f32 %v1151_v6, %v1147_v21  ;;  %v1150_v62 = vmul.f32 %v3566_v25, %v1148_v63 }
 0x1a3   : > { %v1140_v57 = vadd.f32 %v1138_v47, %v1134_v42  ;;  %v1191_v16 = vpop.xlane.xlu1 %1190 }
 0x1a4   : > { %v1159_v7 = vadd.f32 %v1976_v17, %v1153_v58  ;;  %v1188_v13 = vpop.xlane.xlu0 %1187 }
 0x1a5   : > { %v1146_v54 = vadd.f32 %v1144_v26, %v1140_v57  ;;  %v967_v26 = vmul.f32 0.17677669, %v965_v43  ;;  %v4282_v43 = vmax.f32 %v3300_v61, %v3304_v20  ;;  %v4289_v61 = vmax.f32 %v3466_v22, %v3468_v31 }
 0x1a6   : > { %1978 = vst [vmem:[%s3296_s29 + $0x14] ss:$8 sm:$0x3] %v1159_v7 }
 0x1a7   : > { %v1152_v33 = vadd.f32 %v1150_v62, %v1146_v54  ;;  %v1331_v1 = vpop.xlane.xlu1 %1330  ;;  %v966_v62 = vmul.f32 0.17677669, %v962_v38 }
 0x1a8   : > { %v1328_v4 = vpop.xlane.xlu0 %1327 }
 0x1a9   : > { %v1158_v8 = vadd.f32 %v1975_v15, %v1152_v33  ;;  %v3621_v33 = vmul.f32 0.17677669, %v1191_v16 }
 0x1ab   : > { %1977 = vst [vmem:[%s3296_s29 + $0x4] ss:$8 sm:$0x3] %v1158_v8  ;;  %v1442_v45 = vpop.xlane.xlu1 %1441  ;;  %v3625_v8 = vmul.f32 0.17677669, %v1188_v13  ;;  %v4284_v13 = vmax.f32 %v3427_v23, %v3431_v59 }
 0x1ac   : > { %v1439_v14 = vpop.xlane.xlu0 %1438 }
 0x1af   : > { %v1552_v21 = vpop.xlane.xlu1 %1551 }
 0x1b0   : > { %v1549_v6 = vpop.xlane.xlu0 %1548 }
 0x1b3   : > { %v1662_v42 = vpop.xlane.xlu1 %1661 }
 0x1b4   : > { %v3609_v47 = vmul.f32 0.17677669, %v1662_v42  ;;  %v1659_v18 = vpop.xlane.xlu0 %1658  ;;  %v3627_v42 = vmul.f32 0.17677669, %v1331_v1  ;;  %v981_v1 = vmax.f32 %v4284_v13, %v967_v26  ;;  %v4288_v13 = vmax.f32 %v3451_v50, %v3453_v32 }
 0x1b5   : > { %v3611_v58 = vmul.f32 0.17677669, %v1659_v18  ;;  %v3629_v18 = vmul.f32 0.17677669, %v1328_v4 }
 0x1b6   : > { %4275 = vst [vmem:[#allocation29_spill] sm:$0xff] %v3609_v47  ;;  %v3614_v63 = vmax.f32 %v1676_v48, %v3609_v47  ;;  %v4280_v48 = vmax.f32 %v3293_v49, %v3302_v37 }
 0x1b7   : > { %4276 = vst [vmem:[#allocation30_spill] sm:$0xff] %v3611_v58  ;;  %v3617_v17 = vmax.f32 %v1675_v52, %v3611_v58  ;;  %v706_v57 = vpop.xlane.xlu1 %705 }
 0x1b8   : > { %v3619_v7 = vmul.f32 0.17677669, %v706_v57  ;;  %v703_v54 = vpop.xlane.xlu0 %702 }
 0x1b9   : > { %4277 = vst [vmem:[#allocation31_spill] sm:$0xff] %v3617_v17  ;;  %v3623_v15 = vmul.f32 0.17677669, %v703_v54  ;;  %v3646_v54 = vstv %s1983_s18 }
 0x1ba   : > { %4278 = vst [vmem:[#allocation32_spill] sm:$0xff] %v3619_v7  ;;  %v3635_v52 = vmax.f32 %v4280_v48, %v3619_v7  ;;  %4285 = vst [vmem:[#allocation36_spill] sm:$0xff] %v3646_v54  ;;  %v980_v48 = vmax.f32 %v4286_v60, %v966_v62  ;;  %v4287_v7 = vmax.f32 %v3440_v44, %v3445_v36 }
 0x1bb   : > { %4279 = vst [vmem:[#allocation33_spill] sm:$0xff] %v3623_v15  ;;  %v3641_v38 = vmax.f32 %v4282_v43, %v3623_v15  ;;  %v975_v16 = vpop.xlane.xlu1 %974  ;;  %v3655_v43 = vmul.f32 0.17677669, %v1442_v45  ;;  %v4290_v60 = vmax.f32 %v3472_v0, %v3474_v11  ;;  %v3671_v45 = vmul.f32 0.17677669, %v1552_v21 }
 0x1bc   : > { %4281 = vst [vmem:[#allocation34_spill] sm:$0xff] %v3635_v52  ;;  %v977_v57 = vmul.f32 0.17677669, %v975_v16  ;;  %v972_v4 = vpop.xlane.xlu0 %971  ;;  %v1207_v20 = vmax.f32 %v4287_v7, %v3621_v33  ;;  %v1206_v16 = vmax.f32 %v4288_v13, %v3625_v8  ;;  %v3669_v7 = vmul.f32 0.17677669, %v1439_v14 }
 0x1bd   : > { %4283 = vst [vmem:[#allocation35_spill] sm:$0xff] %v3641_v38  ;;  %v976_v15 = vmul.f32 0.17677669, %v972_v4  ;;  %v1347_v38 = vmax.f32 %v4289_v61, %v3627_v42  ;;  %v1346_v37 = vmax.f32 %v4290_v60, %v3629_v18  ;;  %v3673_v4 = vmul.f32 0.17677669, %v1549_v6 }
 0x1be   : > { %v983_v49 = vmax.f32 %v981_v1, %v977_v57  ;;  %v4291_v60 = vmax.f32 %v3501_v9, %v3503_v5 }
 0x1bf   : > { %v982_v52 = vmax.f32 %v980_v48, %v976_v15  ;;  %v1201_v58 = vpop.xlane.xlu1 %1200 }
 0x1c0   : > { %v985_v13 = vsub.f32 %v3427_v23, %v983_v49  ;;  %v991_v46 = vsub.f32 %v3431_v59, %v983_v49  ;;  %v997_v56 = vsub.f32 %v967_v26, %v983_v49  ;;  %v1003_v61 = vsub.f32 %v977_v57, %v983_v49  ;;  %v1198_v17 = vpop.xlane.xlu0 %1197 }
 0x1c1   : > { %v3681_v1 = vmax.f32 %v4291_v60, %v3655_v43  ;;  %v984_v14 = vsub.f32 %v3436_v55, %v982_v52  ;;  %v990_v21 = vsub.f32 %v3438_v3, %v982_v52  ;;  %v996_v6 = vsub.f32 %v966_v62, %v982_v52 }
 0x1c2   : > { %v988_v48 = vmul.f32 1.442695, %v985_v13  ;;  %v994_v47 = vmul.f32 1.442695, %v991_v46  ;;  %v1000_v35 = vmul.f32 1.442695, %v997_v56  ;;  %v1002_v23 = vsub.f32 %v976_v15, %v982_v52 }
 0x1c3   : > { %v4292_v49 = vmax.f32 %v3515_v27, %v3510_v51  ;;  %v4293_v26 = vmax.f32 %v3545_v53, %v3547_v10  ;;  %v4294_v55 = vmax.f32 %v3555_v12, %v3559_v2  ;;  %v1006_v46 = vmul.f32 1.442695, %v1003_v61  ;;  %v1341_v56 = vpop.xlane.xlu1 %1340 }
 0x1c4   : > { %2175 = vpow2.f32 %v988_v48  ;;  %v986_v62 = vmul.f32 1.442695, %v984_v14  ;;  %v992_v15 = vmul.f32 1.442695, %v990_v21  ;;  %v1203_v52 = vmul.f32 0.17677669, %v1201_v58  ;;  %v1338_v13 = vpop.xlane.xlu0 %1337 }
 0x1c5   : > { %v3689_v59 = vmax.f32 %v4292_v49, %v3669_v7  ;;  %v3695_v57 = vmax.f32 %v4293_v26, %v3671_v45  ;;  %v3701_v3 = vmax.f32 %v4294_v55, %v3673_v4  ;;  %2177 = vpow2.f32 %v994_v47 }
 0x1c6   : > { %v1202_v60 = vmul.f32 0.17677669, %v1198_v17  ;;  %v1343_v49 = vmul.f32 0.17677669, %v1341_v56  ;;  %v3703_v41 = vmul.f32 0.17677669, %v1338_v13  ;;  %2179 = vpow2.f32 %v1000_v35 }
 0x1c7   : > { %v998_v26 = vmul.f32 1.442695, %v996_v6  ;;  %v1004_v54 = vmul.f32 1.442695, %v1002_v23  ;;  %v1209_v25 = vmax.f32 %v1207_v20, %v1203_v52  ;;  %2181 = vpow2.f32 %v1006_v46  ;;  %v1452_v6 = vpop.xlane.xlu1 %1451 }
 0x1c8   : > { %v1208_v30 = vmax.f32 %v1206_v16, %v1202_v60  ;;  %v1349_v55 = vmax.f32 %v1347_v38, %v1343_v49  ;;  %v1348_v61 = vmax.f32 %v1346_v37, %v3703_v41  ;;  %2183 = vpow2.f32 %v986_v62  ;;  %v1449_v13 = vpop.xlane.xlu0 %1448 }
 0x1c9   : > { %v1211_v14 = vsub.f32 %v3440_v44, %v1209_v25  ;;  %v1217_v58 = vsub.f32 %v3445_v36, %v1209_v25  ;;  %v1223_v47 = vsub.f32 %v3621_v33, %v1209_v25  ;;  %2185 = vpow2.f32 %v992_v15 }
 0x1ca   : > { %v1229_v17 = vsub.f32 %v1203_v52, %v1209_v25  ;;  %v1210_v21 = vsub.f32 %v3451_v50, %v1208_v30  ;;  %v1216_v35 = vsub.f32 %v3453_v32, %v1208_v30  ;;  %2187 = vpow2.f32 %v998_v26 }
 0x1cb   : > { %v1214_v20 = vmul.f32 1.442695, %v1211_v14  ;;  %v1220_v16 = vmul.f32 1.442695, %v1217_v58  ;;  %v1226_v38 = vmul.f32 1.442695, %v1223_v47  ;;  %2189 = vpow2.f32 %v1004_v54 }
 0x1cc   : > { %v1232_v37 = vmul.f32 1.442695, %v1229_v17  ;;  %v1212_v48 = vmul.f32 1.442695, %v1210_v21  ;;  %v1218_v23 = vmul.f32 1.442695, %v1216_v35  ;;  %v1222_v44 = vsub.f32 %v3625_v8, %v1208_v30 }
 0x1cd   : > { %2191 = vpow2.f32 %v1214_v20  ;;  %v1228_v36 = vsub.f32 %v1202_v60, %v1208_v30  ;;  %v1351_v33 = vsub.f32 %v3466_v22, %v1349_v55  ;;  %v1357_v50 = vsub.f32 %v3468_v31, %v1349_v55  ;;  %v1562_v22 = vpop.xlane.xlu1 %1561 }
 0x1ce   : > { %2193 = vpow2.f32 %v1220_v16  ;;  %v1363_v32 = vsub.f32 %v3627_v42, %v1349_v55  ;;  %v1369_v25 = vsub.f32 %v1343_v49, %v1349_v55  ;;  %v3715_v46 = vpop.eup %2175  ;;  %v1224_v56 = vmul.f32 1.442695, %v1222_v44  ;;  %v1559_v44 = vpop.xlane.xlu0 %1558 }
 0x1cf   : > { %2195 = vpow2.f32 %v1226_v38  ;;  %v1230_v54 = vmul.f32 1.442695, %v1228_v36  ;;  %v1354_v62 = vmul.f32 1.442695, %v1351_v33  ;;  %v3717_v15 = vpop.eup %2177  ;;  %v1360_v52 = vmul.f32 1.442695, %v1357_v50 }
 0x1d0   : > { %2197 = vpow2.f32 %v1232_v37  ;;  %v1366_v8 = vmul.f32 1.442695, %v1363_v32  ;;  %v1372_v30 = vmul.f32 1.442695, %v1369_v25  ;;  %v3719_v60 = vpop.eup %2179  ;;  %v1009_v31 = vadd.f32 %v3717_v15, %v3715_v46 }
 0x1d1   : > { %2199 = vpow2.f32 %v1212_v48  ;;  %v1350_v42 = vsub.f32 %v3472_v0, %v1348_v61  ;;  %v1356_v49 = vsub.f32 %v3474_v11, %v1348_v61  ;;  %v3725_v26 = vpop.eup %2181  ;;  %v1362_v55 = vsub.f32 %v3629_v18, %v1348_v61 }
 0x1d2   : > { %2201 = vpow2.f32 %v1218_v23  ;;  %v1368_v14 = vsub.f32 %v3703_v41, %v1348_v61  ;;  %v1454_v58 = vmul.f32 0.17677669, %v1452_v6  ;;  %v3729_v47 = vpop.eup %2183  ;;  %v1011_v17 = vadd.f32 %v3719_v60, %v1009_v31 }
 0x1d3   : > { %2203 = vpow2.f32 %v1224_v56  ;;  %v1352_v21 = vmul.f32 1.442695, %v1350_v42  ;;  %v1358_v35 = vmul.f32 1.442695, %v1356_v49  ;;  %v3732_v20 = vpop.eup %2185  ;;  %v1364_v0 = vmul.f32 1.442695, %v1362_v55 }
 0x1d4   : > { %2205 = vpow2.f32 %v1230_v54  ;;  %v1370_v11 = vmul.f32 1.442695, %v1368_v14  ;;  %v1460_v16 = vmax.f32 %v3681_v1, %v1454_v58  ;;  %v3735_v38 = vpop.eup %2187  ;;  %v1013_v18 = vadd.f32 %v3725_v26, %v1011_v17  ;;  %v1672_v1 = vpop.xlane.xlu1 %1671 }
 0x1d5   : > { %v1008_v41 = vadd.f32 %v3732_v20, %v3729_v47  ;;  %2207 = vpow2.f32 %v1354_v62  ;;  %v1453_v61 = vmul.f32 0.17677669, %v1449_v13  ;;  %v3740_v6 = vpop.eup %2189  ;;  %v1564_v14 = vmul.f32 0.17677669, %v1562_v22 }
 0x1d6   : > { %2209 = vpow2.f32 %v1360_v52  ;;  %v1462_v37 = vsub.f32 %v3501_v9, %v1460_v16  ;;  %v1468_v48 = vsub.f32 %v3503_v5, %v1460_v16  ;;  %v1474_v23 = vsub.f32 %v3655_v43, %v1460_v16 }
 0x1d7   : > { %v3745_v36 = vpop.eup %2191  ;;  %2211 = vrcp.f32 %v1013_v18  ;;  %v1010_v33 = vadd.f32 %v3735_v38, %v1008_v41  ;;  %v1480_v50 = vsub.f32 %v1454_v58, %v1460_v16  ;;  %v1459_v32 = vmax.f32 %v3689_v59, %v1453_v61 }
 0x1d8   : > { %v3749_v25 = vpop.eup %2193  ;;  %2213 = vpow2.f32 %v1366_v8  ;;  %v1465_v56 = vmul.f32 1.442695, %v1462_v37  ;;  %v1471_v54 = vmul.f32 1.442695, %v1468_v48  ;;  %v1477_v9 = vmul.f32 1.442695, %v1474_v23  ;;  %v716_v16 = vpop.xlane.xlu1 %715 }
 0x1d9   : > { %v3751_v62 = vpop.eup %2195  ;;  %v1012_v5 = vadd.f32 %v3740_v6, %v1010_v33  ;;  %v1235_v43 = vadd.f32 %v3749_v25, %v3745_v36  ;;  %2215 = vpow2.f32 %v1372_v30  ;;  %v1483_v52 = vmul.f32 1.442695, %v1480_v50 }
 0x1da   : > { %v3756_v13 = vpop.eup %2197  ;;  %2217 = vpow2.f32 %v1352_v21  ;;  %v1461_v59 = vsub.f32 %v3515_v27, %v1459_v32  ;;  %v1467_v31 = vsub.f32 %v3510_v51, %v1459_v32  ;;  %v1473_v8 = vsub.f32 %v3669_v7, %v1459_v32  ;;  %v1669_v27 = vpop.xlane.xlu0 %1668 }
 0x1db   : > { %v3761_v42 = vpop.eup %2199  ;;  %2219 = vrcp.f32 %v1012_v5  ;;  %v1237_v49 = vadd.f32 %v3751_v62, %v1235_v43  ;;  %v1479_v55 = vsub.f32 %v1453_v61, %v1459_v32  ;;  %v3780_v61 = vmul.f32 0.17677669, %v1559_v44 }
 0x1dc   : > { %v3764_v58 = vpop.eup %2201  ;;  %2221 = vpow2.f32 %v1358_v35  ;;  %v1463_v30 = vmul.f32 1.442695, %v1461_v59  ;;  %v3766_v17 = vmul.f32 1.442695, %v1467_v31  ;;  %v3768_v21 = vmul.f32 1.442695, %v1473_v8 }
 0x1dd   : > { %v3770_v51 = vpop.eup %2203  ;;  %v1239_v7 = vadd.f32 %v3756_v13, %v1237_v49  ;;  %v1234_v18 = vadd.f32 %v3764_v58, %v3761_v42  ;;  %2223 = vpow2.f32 %v1364_v0  ;;  %v3775_v41 = vmul.f32 1.442695, %v1479_v55 }
 0x1de   : > { %v3777_v22 = vpop.eup %2205  ;;  %2225 = vpow2.f32 %v1370_v11  ;;  %v1570_v35 = vmax.f32 %v3695_v57, %v1564_v14  ;;  %v3782_v37 = vmul.f32 0.17677669, %v1672_v1  ;;  %v3787_v33 = vmul.f32 0.17677669, %v1669_v27 }
 0x1df   : > { %v3784_v48 = vpop.eup %2207  ;;  %2227 = vrcp.f32 %v1239_v7  ;;  %v1236_v23 = vadd.f32 %v3770_v51, %v1234_v18  ;;  %v3789_v50 = vmul.f32 0.17677669, %v716_v16  ;;  %v3822_v18 = vmax.f32 %v3701_v3, %v3780_v61 }
 0x1e0   : > { %v3791_v0 = vpop.eup %2209  ;;  %2229 = vpow2.f32 %v1465_v56  ;;  %v1572_v11 = vsub.f32 %v3545_v53, %v1570_v35  ;;  %v1578_v57 = vsub.f32 %v3547_v10, %v1570_v35  ;;  %v1584_v44 = vsub.f32 %v3671_v45, %v1570_v35 }
 0x1e1   : > { %v2212_v1 = vpop.eup %2211  ;;  %v1238_v32 = vadd.f32 %v3777_v22, %v1236_v23  ;;  %v1375_v5 = vadd.f32 %v3791_v0, %v3784_v48  ;;  %2231 = vpow2.f32 %v1471_v54  ;;  %v1590_v43 = vsub.f32 %v1564_v14, %v1570_v35 }
 0x1e2   : > { %v3799_v59 = vpop.eup %2213  ;;  %v1019_v31 = vmul.f32 %v2212_v1, %v3494_v28  ;;  %2233 = vpow2.f32 %v1477_v9  ;;  %v3802_v56 = vmul.f32 1.442695, %v1572_v11  ;;  %v3804_v53 = vmul.f32 1.442695, %v1578_v57 }
 0x1e3   : > { %v3806_v10 = vpop.eup %2215  ;;  %2235 = vrcp.f32 %v1238_v32  ;;  %v1377_v45 = vadd.f32 %v3799_v59, %v1375_v5  ;;  %v3809_v8 = vmul.f32 1.442695, %v1584_v44  ;;  %v3811_v49 = vmul.f32 1.442695, %v1590_v43 }
 0x1e4   : > { %v3813_v54 = vpop.eup %2217  ;;  %v1021_v55 = vmul.f32 %v3715_v46, %v1019_v31  ;;  %v1025_v14 = vmul.f32 %v3717_v15, %v1019_v31  ;;  %v1031_v9 = vmul.f32 %v3719_v60, %v1019_v31  ;;  %v1037_v27 = vmul.f32 %v3725_v26, %v1019_v31 }
 0x1e5   : > { %v2220_v16 = vpop.eup %2219  ;;  %v1379_v7 = vadd.f32 %v3806_v10, %v1377_v45  ;;  %2237 = vpow2.f32 %v1483_v52  ;;  %v3826_v35 = vmax.f32 %v3614_v63, %v3782_v37  ;;  %v1571_v63 = vsub.f32 %v3555_v12, %v3822_v18 }
 0x1e6   : > { %v3828_v23 = vpop.eup %2221  ;;  %v1023_v46 = vmul.f32 %v3506_v34, %v1021_v55  ;;  %v1027_v15 = vmul.f32 %v3513_v39, %v1025_v14  ;;  %v1033_v60 = vmul.f32 %v3525_v24, %v1031_v9  ;;  %v1039_v26 = vmul.f32 %v3532_v40, %v1037_v27 }
 0x1e7   : > { %v3834_v11 = vpop.eup %2223  ;;  %v1018_v52 = vmul.f32 %v2220_v16, %v3494_v28  ;;  %2239 = vrcp.f32 %v1379_v7  ;;  %v1374_v3 = vadd.f32 %v3828_v23, %v3813_v54  ;;  %v1577_v1 = vsub.f32 %v3559_v2, %v3822_v18  ;;  %v4295_v16 = vld [vmem:[#allocation23_spill] sm:$0xff]  ;;  %v4296_v7 = vld [vmem:[#allocation24_spill] sm:$0xff] }
 0x1e8   : > { %v3841_v57 = vpop.eup %2225  ;;  %v1029_v44 = vadd.f32 %v1027_v15, %v1023_v46  ;;  %2241 = vpow2.f32 %v1463_v30  ;;  %v1583_v32 = vsub.f32 %v3673_v4, %v3822_v18  ;;  %v1979_v2 = vld [vmem:[%s3296_s29 + $0x6] ss:$8 sm:$0x3] }
 0x1e9   : > { %v2228_v5 = vpop.eup %2227  ;;  %v1020_v43 = vmul.f32 %v3729_v47, %v1018_v52  ;;  %v1024_v31 = vmul.f32 %v3732_v20, %v1018_v52  ;;  %v1030_v45 = vmul.f32 %v3735_v38, %v1018_v52  ;;  %v1036_v55 = vmul.f32 %v3740_v6, %v1018_v52 }
 0x1ea   : > { %v3851_v12 = vpop.eup %2229  ;;  %v1035_v14 = vadd.f32 %v1033_v60, %v1029_v44  ;;  %v1245_v30 = vmul.f32 %v2228_v5, %v3494_v28  ;;  %v1376_v9 = vadd.f32 %v3834_v11, %v1374_v3  ;;  %2243 = vpow2.f32 %v3766_v17  ;;  %v1972_v44 = vld [vmem:[%s3296_s29 + $0x12] ss:$8 sm:$0x3] }
 0x1eb   : > { %v3856_v27 = vpop.eup %2231  ;;  %v1022_v47 = vmul.f32 %v1020_v43, %v3538_v19  ;;  %v1026_v20 = vmul.f32 %v3541_v29, %v1024_v31  ;;  %v1032_v38 = vmul.f32 %v4295_v16, %v1030_v45  ;;  %v1038_v6 = vmul.f32 %v4296_v7, %v1036_v55 }
 0x1ec   : > { %v3862_v46 = vpop.eup %2233  ;;  %v1041_v15 = vadd.f32 %v1039_v26, %v1035_v14  ;;  %v1247_v60 = vmul.f32 %v3745_v36, %v1245_v30  ;;  %v1251_v52 = vmul.f32 %v3749_v25, %v1245_v30  ;;  %v1257_v3 = vmul.f32 %v3751_v62, %v1245_v30 }
 0x1ed   : > { %v2236_v17 = vpop.eup %2235  ;;  %v1028_v5 = vadd.f32 %v1026_v20, %v1022_v47  ;;  %v1263_v43 = vmul.f32 %v3756_v13, %v1245_v30  ;;  %v1378_v31 = vadd.f32 %v3841_v57, %v1376_v9  ;;  %v1486_v45 = vadd.f32 %v3856_v27, %v3851_v12 }
 0x1ee   : > { %v1045_v55 = vadd.f32 %v1972_v44, %v1041_v15  ;;  %v1249_v26 = vmul.f32 %v3506_v34, %v1247_v60  ;;  %v1253_v36 = vmul.f32 %v3513_v39, %v1251_v52  ;;  %v1259_v25 = vmul.f32 %v3525_v24, %v1257_v3  ;;  %v1971_v15 = vld [vmem:[%s3296_s29 + $0x2] ss:$8 sm:$0x3]  ;;  %v3900_v44 = vld [vmem:[%s3221_s10 + $0x14] sm:$0x1] }
 0x1ef   : > { %v3875_v14 = vpop.eup %2237  ;;  %v1034_v62 = vadd.f32 %v1032_v38, %v1028_v5  ;;  %v1265_v47 = vmul.f32 %v3532_v40, %v1263_v43  ;;  %v1244_v13 = vmul.f32 %v2236_v17, %v3494_v28  ;;  %2245 = vrcp.f32 %v1378_v31  ;;  %v3897_v17 = vld [vmem:[%s3221_s10 + $0x10] sm:$0x1]  ;;  %v3906_v31 = vld [vmem:[%s3221_s10 + $0x18] sm:$0x1] }
 0x1f0   : > { %1974 = vst [vmem:[%s3296_s29 + $0x12] ss:$8 sm:$0x3] %v1045_v55  ;;  %v1255_v30 = vadd.f32 %v1253_v36, %v1249_v26  ;;  %v1488_v9 = vadd.f32 %v3862_v46, %v1486_v45  ;;  %2247 = vpow2.f32 %v3768_v21  ;;  %v3882_v34 = vmul.f32 1.442695, %v1571_v63  ;;  %v4297_v63 = vld [vmem:[#allocation36_spill] sm:$0xff] }
 0x1f1   : > { %v2240_v39 = vpop.eup %2239  ;;  %v1040_v24 = vadd.f32 %v1038_v6, %v1034_v62  ;;  %v1246_v20 = vmul.f32 %v3761_v42, %v1244_v13  ;;  %v1250_v38 = vmul.f32 %v3764_v58, %v1244_v13  ;;  %v1256_v40 = vmul.f32 %v3770_v51, %v1244_v13  ;;  %v3909_v45 = vld [vmem:[%s3221_s10 + $0x1c] sm:$0x1] }
 0x1f2   : > { %v3887_v28 = vpop.eup %2241  ;;  %v1261_v60 = vadd.f32 %v1259_v25, %v1255_v30  ;;  %v1262_v21 = vmul.f32 %v3777_v22, %v1244_v13  ;;  %v1386_v52 = vmul.f32 %v2240_v39, %v4297_v63  ;;  %v1490_v6 = vadd.f32 %v3875_v14, %v1488_v9 }
 0x1f3   : > { %v1044_v3 = vadd.f32 %v1971_v15, %v1040_v24  ;;  %v1248_v42 = vmul.f32 %v1246_v20, %v3538_v19  ;;  %v1252_v58 = vmul.f32 %v3541_v29, %v1250_v38  ;;  %v1258_v51 = vmul.f32 %v4295_v16, %v1256_v40  ;;  %v1980_v29 = vld [vmem:[%s3296_s29 + $0x16] ss:$8 sm:$0x3]  ;;  %v4298_v24 = vld [vmem:[#allocation27_spill] sm:$0xff]  ;;  %v3941_v38 = vld [vmem:[%s3221_s10] sm:$0x1] }
 0x1f4   : > { %v3902_v5 = vpop.eup %2243  ;;  %v1267_v22 = vadd.f32 %v1265_v47, %v1261_v60  ;;  %v1264_v43 = vmul.f32 %v4296_v7, %v1262_v21  ;;  %v1388_v55 = vmul.f32 %v3784_v48, %v1386_v52  ;;  %v1392_v19 = vmul.f32 %v3791_v0, %v1386_v52  ;;  %v3951_v40 = vld [vmem:[%s3221_s10 + $0x8] sm:$0x1] }
 0x1f5   : > { %1973 = vst [vmem:[%s3296_s29 + $0x2] ss:$8 sm:$0x3] %v1044_v3  ;;  %v1254_v16 = vadd.f32 %v1252_v58, %v1248_v42  ;;  %v1398_v26 = vmul.f32 %v3799_v59, %v1386_v52  ;;  %v1404_v36 = vmul.f32 %v3806_v10, %v1386_v52  ;;  %2249 = vrcp.f32 %v1490_v6  ;;  %v3956_v52 = vld [vmem:[%s3221_s10 + $0xc] sm:$0x1] }
 0x1f6   : > { %v1273_v25 = vadd.f32 %v1980_v29, %v1267_v22  ;;  %v1390_v7 = vmul.f32 %v1388_v55, %v3897_v17  ;;  %v1394_v62 = vmul.f32 %v1392_v19, %v3900_v44  ;;  %2251 = vpow2.f32 %v3775_v41  ;;  %v1410_v42 = vld [vmem:[%s3296_s29 + $0x10] sm:$0x1] }
 0x1f7   : > { %v1260_v48 = vadd.f32 %v1258_v51, %v1254_v16  ;;  %v1400_v47 = vmul.f32 %v1398_v26, %v3906_v31  ;;  %v1406_v0 = vmul.f32 %v1404_v36, %v3909_v45  ;;  %v1485_v59 = vadd.f32 %v3902_v5, %v3887_v28  ;;  %v4301_v36 = vld [vmem:[#allocation31_spill] sm:$0xff] }
 0x1f8   : > { %1982 = vst [vmem:[%s3296_s29 + $0x16] ss:$8 sm:$0x3] %v1273_v25  ;;  %v1396_v10 = vadd.f32 %v1394_v62, %v1390_v7  ;;  %2253 = vpow2.f32 %v3802_v56  ;;  %v1579_v13 = vmul.f32 1.442695, %v1577_v1  ;;  %v1589_v39 = vsub.f32 %v3780_v61, %v3822_v18 }
 0x1f9   : > { %v1585_v41 = vmul.f32 1.442695, %v1583_v32  ;;  %v2246_v30 = vpop.eup %2245  ;;  %v1266_v9 = vadd.f32 %v1264_v43, %v1260_v48  ;;  %2255 = vpow2.f32 %v3804_v53  ;;  %v1682_v56 = vsub.f32 %v4298_v24, %v3826_v35  ;;  %v4299_v53 = vld [vmem:[#allocation25_spill] sm:$0xff]  ;;  %v3948_v18 = vld [vmem:[%s3221_s10 + $0x4] sm:$0x1] }
 0x1fa   : > { %v3937_v20 = vpop.eup %2247  ;;  %v1402_v1 = vadd.f32 %v1400_v47, %v1396_v10  ;;  %v1385_v4 = vmul.f32 %v2246_v30, %v4297_v63  ;;  %2257 = vpow2.f32 %v3809_v8  ;;  %v1688_v32 = vsub.f32 %v4299_v53, %v3826_v35 }
 0x1fb   : > { %v1272_v61 = vadd.f32 %v1979_v2, %v1266_v9  ;;  %v1487_v15 = vadd.f32 %v3937_v20, %v1485_v59  ;;  %2259 = vpow2.f32 %v3811_v49  ;;  %v1591_v60 = vmul.f32 1.442695, %v1589_v39  ;;  %v4303_v9 = vld [vmem:[#allocation26_spill] sm:$0xff] }
 0x1fc   : > { %v1408_v21 = vadd.f32 %v1406_v0, %v1402_v1  ;;  %v1387_v6 = vmul.f32 %v3813_v54, %v1385_v4  ;;  %v1391_v8 = vmul.f32 %v3828_v23, %v1385_v4  ;;  %v1397_v3 = vmul.f32 %v3834_v11, %v1385_v4  ;;  %v4300_v11 = vld [vmem:[#allocation29_spill] sm:$0xff] }
 0x1fd   : > { %1981 = vst [vmem:[%s3296_s29 + $0x6] ss:$8 sm:$0x3] %v1272_v61  ;;  %v1403_v58 = vmul.f32 %v3841_v57, %v1385_v4  ;;  %2261 = vpow2.f32 %v3882_v34  ;;  %v1685_v51 = vmul.f32 1.442695, %v1682_v56  ;;  %v1694_v29 = vsub.f32 %v4300_v11, %v3826_v35 }
 0x1fe   : > { %v1691_v22 = vmul.f32 1.442695, %v1688_v32  ;;  %v1412_v49 = vadd.f32 %v1410_v42, %v1408_v21  ;;  %v1389_v43 = vmul.f32 %v1387_v6, %v3941_v38  ;;  %v1393_v55 = vmul.f32 %v1391_v8, %v3948_v18  ;;  %v713_v32 = vpop.xlane.xlu0 %712  ;;  %v4304_v8 = vld [vmem:[#allocation30_spill] sm:$0xff] }
 0x1ff   : > { %v1399_v54 = vmul.f32 %v1397_v3, %v3951_v40  ;;  %v2250_v19 = vpop.eup %2249  ;;  %v1405_v23 = vmul.f32 %v1403_v58, %v3956_v52  ;;  %2263 = vpow2.f32 %v1579_v13  ;;  %v1700_v57 = vsub.f32 %v3782_v37, %v3826_v35 }
 0x200   : > { %v3973_v34 = vpop.eup %2251  ;;  %1414 = vst.msk [vmem:[%s3296_s29 + $0x10] sm:$0x1] %vm1305_vm2, %v1412_v49  ;;  %v1395_v16 = vadd.f32 %v1393_v55, %v1389_v43  ;;  %v1496_v26 = vmul.f32 %v2250_v19, %v4297_v63  ;;  %2265 = vpow2.f32 %v1585_v41  ;;  %v1679_v25 = vmax.f32 %v4301_v36, %v3787_v33  ;;  %v4302_v41 = vld [vmem:[#allocation28_spill] sm:$0xff]  ;;  %v4307_v36 = vld [vmem:[#allocation21_spill] sm:$0xff] }
 0x201   : > { %v1489_v7 = vadd.f32 %v3973_v34, %v1487_v15  ;;  %2267 = vpow2.f32 %v1591_v60  ;;  %v1697_v62 = vmul.f32 1.442695, %v1694_v29  ;;  %v1703_v48 = vmul.f32 1.442695, %v1700_v57  ;;  %v4306_v29 = vld [vmem:[#allocation19_spill] sm:$0xff] }
 0x202   : > { %v3981_v47 = vpop.eup %2253  ;;  %v1401_v37 = vadd.f32 %v1399_v54, %v1395_v16  ;;  %v1498_v35 = vmul.f32 %v3851_v12, %v1496_v26  ;;  %v1502_v0 = vmul.f32 %v3856_v27, %v1496_v26  ;;  %v1508_v59 = vmul.f32 %v3862_v46, %v1496_v26  ;;  %v1409_v46 = vld [vmem:[%s3296_s29] sm:$0x1] }
 0x203   : > { %v3986_v10 = vpop.eup %2255  ;;  %v1514_v13 = vmul.f32 %v3875_v14, %v1496_v26  ;;  %2269 = vrcp.f32 %v1489_v7  ;;  %v1681_v30 = vsub.f32 %v4302_v41, %v1679_v25  ;;  %v1687_v39 = vsub.f32 %v4303_v9, %v1679_v25  ;;  %v1520_v26 = vld [vmem:[%s3296_s29 + $0x14] sm:$0x1]  ;;  %v4309_v9 = vld [vmem:[#allocation35_spill] sm:$0xff] }
 0x204   : > { %v3991_v24 = vpop.eup %2257  ;;  %v1407_v56 = vadd.f32 %v1405_v23, %v1401_v37  ;;  %v1500_v2 = vmul.f32 %v1498_v35, %v3897_v17  ;;  %v1504_v12 = vmul.f32 %v1502_v0, %v3900_v44  ;;  %v1510_v27 = vmul.f32 %v1508_v59, %v3906_v31  ;;  %v4308_v7 = vld [vmem:[#allocation32_spill] sm:$0xff] }
 0x205   : > { %v3996_v1 = vpop.eup %2259  ;;  %v1516_v14 = vmul.f32 %v1514_v13, %v3909_v45  ;;  %v1596_v4 = vadd.f32 %v3986_v10, %v3981_v47  ;;  %2271 = vpow2.f32 %v1685_v51  ;;  %v1683_v53 = vmul.f32 1.442695, %v1681_v30  ;;  %v4305_v51 = vld [vmem:[#allocation34_spill] sm:$0xff] }
 0x206   : > { %v1411_v61 = vadd.f32 %v1409_v46, %v1407_v56  ;;  %v1506_v15 = vadd.f32 %v1504_v12, %v1500_v2  ;;  %2273 = vpow2.f32 %v1691_v22  ;;  %v1689_v60 = vmul.f32 1.442695, %v1687_v39 }
 0x207   : > { %v4002_v21 = vpop.eup %2261  ;;  %v1598_v6 = vadd.f32 %v3991_v24, %v1596_v4  ;;  %2275 = vpow2.f32 %v1697_v62  ;;  %v1693_v3 = vsub.f32 %v4304_v8, %v1679_v25  ;;  %v1699_v42 = vsub.f32 %v3787_v33, %v1679_v25 }
 0x208   : > { %1413 = vst.msk [vmem:[%s3296_s29] sm:$0x1] %vm1305_vm2, %v1411_v61  ;;  %v1512_v58 = vadd.f32 %v1510_v27, %v1506_v15  ;;  %2277 = vpow2.f32 %v1703_v48  ;;  %v724_v49 = vmax.f32 %v4305_v51, %v3789_v50  ;;  %v4011_v43 = vmul.f32 0.17677669, %v713_v32  ;;  %v4310_v61 = vld [vmem:[#allocation20_spill] sm:$0xff] }
 0x209   : > { %v4013_v22 = vpop.eup %2263  ;;  %v1600_v55 = vadd.f32 %v3996_v1, %v1598_v6  ;;  %2279 = vpow2.f32 %v1683_v53  ;;  %v1695_v54 = vmul.f32 1.442695, %v1693_v3  ;;  %v1701_v19 = vmul.f32 1.442695, %v1699_v42 }
 0x20a   : > { %v4016_v23 = vpop.eup %2265  ;;  %v1518_v33 = vadd.f32 %v1516_v14, %v1512_v58  ;;  %v1595_v11 = vadd.f32 %v4013_v22, %v4002_v21  ;;  %2281 = vpow2.f32 %v1689_v60  ;;  %v726_v57 = vsub.f32 %v4306_v29, %v724_v49  ;;  %v4311_v60 = vld [vmem:[#allocation22_spill] sm:$0xff] }
 0x20b   : > { %v4021_v16 = vpop.eup %2267  ;;  %2283 = vrcp.f32 %v1600_v55  ;;  %v732_v25 = vsub.f32 %v4307_v36, %v724_v49  ;;  %v738_v62 = vsub.f32 %v4308_v7, %v724_v49  ;;  %v744_v48 = vsub.f32 %v3789_v50, %v724_v49  ;;  %v4312_v55 = vld [vmem:[#allocation33_spill] sm:$0xff] }
 0x20c   : > { %v1522_v37 = vadd.f32 %v1520_v26, %v1518_v33  ;;  %v1597_v35 = vadd.f32 %v4016_v23, %v1595_v11  ;;  %2285 = vpow2.f32 %v1695_v54  ;;  %v729_v0 = vmul.f32 1.442695, %v726_v57 }
 0x20d   : > { %v2270_v59 = vpop.eup %2269  ;;  %2287 = vpow2.f32 %v1701_v19  ;;  %v735_v13 = vmul.f32 1.442695, %v732_v25  ;;  %v723_v39 = vmax.f32 %v4309_v9, %v4011_v43  ;;  %v741_v50 = vmul.f32 1.442695, %v738_v62 }
 0x20e   : > { %1524 = vst.msk [vmem:[%s3296_s29 + $0x14] sm:$0x1] %vm1305_vm2, %v1522_v37  ;;  %v1495_v41 = vmul.f32 %v2270_v59, %v4297_v63  ;;  %v1599_v30 = vadd.f32 %v4021_v16, %v1597_v35  ;;  %2289 = vpow2.f32 %v729_v0  ;;  %v747_v2 = vmul.f32 1.442695, %v744_v48 }
 0x20f   : > { %v4034_v56 = vpop.eup %2271  ;;  %2291 = vpow2.f32 %v735_v13  ;;  %v725_v15 = vsub.f32 %v4310_v61, %v723_v39  ;;  %v731_v6 = vsub.f32 %v4311_v60, %v723_v39  ;;  %v737_v54 = vsub.f32 %v4312_v55, %v723_v39 }
 0x210   : > { %v4036_v12 = vpop.eup %2273  ;;  %v1497_v27 = vmul.f32 %v3887_v28, %v1495_v41  ;;  %v1501_v46 = vmul.f32 %v3902_v5, %v1495_v41  ;;  %v1507_v14 = vmul.f32 %v3937_v20, %v1495_v41  ;;  %v1513_v4 = vmul.f32 %v3973_v34, %v1495_v41 }
 0x211   : > { %v4042_v53 = vpop.eup %2275  ;;  %2293 = vrcp.f32 %v1599_v30  ;;  %v1706_v32 = vadd.f32 %v4036_v12, %v4034_v56  ;;  %v727_v42 = vmul.f32 1.442695, %v725_v15  ;;  %v733_v58 = vmul.f32 1.442695, %v731_v6  ;;  %v1519_v30 = vld [vmem:[%s3296_s29 + $0x4] sm:$0x1] }
 0x212   : > { %v4048_v8 = vpop.eup %2277  ;;  %v1499_v28 = vmul.f32 %v1497_v27, %v3941_v38  ;;  %v1503_v5 = vmul.f32 %v1501_v46, %v3948_v18  ;;  %v1509_v20 = vmul.f32 %v1507_v14, %v3951_v40  ;;  %2295 = vpow2.f32 %v741_v50 }
 0x213   : > { %v4053_v3 = vpop.eup %2279  ;;  %v1708_v34 = vadd.f32 %v4042_v53, %v1706_v32  ;;  %2297 = vpow2.f32 %v747_v2  ;;  %v743_v19 = vsub.f32 %v4011_v43, %v723_v39  ;;  %v1515_v11 = vmul.f32 %v1513_v4, %v3956_v52 }
 0x214   : > { %v4056_v51 = vpop.eup %2281  ;;  %v1505_v49 = vadd.f32 %v1503_v5, %v1499_v28  ;;  %2299 = vpow2.f32 %v727_v42  ;;  %v739_v7 = vmul.f32 1.442695, %v737_v54 }
 0x215   : > { %v2284_v33 = vpop.eup %2283  ;;  %v1710_v29 = vadd.f32 %v4048_v8, %v1708_v34  ;;  %v1705_v57 = vadd.f32 %v4056_v51, %v4053_v3  ;;  %2301 = vpow2.f32 %v733_v58  ;;  %v745_v48 = vmul.f32 1.442695, %v743_v19 }
 0x216   : > { %v4064_v26 = vpop.eup %2285  ;;  %v1511_v36 = vadd.f32 %v1509_v20, %v1505_v49  ;;  %v1606_v25 = vmul.f32 %v2284_v33, %v4297_v63 }
 0x217   : > { %v4067_v62 = vpop.eup %2287  ;;  %2303 = vrcp.f32 %v1710_v29  ;;  %v1707_v43 = vadd.f32 %v4064_v26, %v1705_v57 }
 0x218   : > { %v4070_v37 = vpop.eup %2289  ;;  %v1517_v35 = vadd.f32 %v1515_v11, %v1511_v36  ;;  %v1608_v0 = vmul.f32 %v3981_v47, %v1606_v25  ;;  %v1612_v59 = vmul.f32 %v3986_v10, %v1606_v25  ;;  %v1618_v13 = vmul.f32 %v3991_v24, %v1606_v25 }
 0x219   : > { %v4075_v41 = vpop.eup %2291  ;;  %v1624_v9 = vmul.f32 %v3996_v1, %v1606_v25  ;;  %v1709_v39 = vadd.f32 %v4067_v62, %v1707_v43  ;;  %2305 = vpow2.f32 %v739_v7 }
 0x21a   : > { %v1521_v50 = vadd.f32 %v1519_v30, %v1517_v35  ;;  %v1610_v2 = vmul.f32 %v1608_v0, %v3897_v17  ;;  %v1614_v27 = vmul.f32 %v1612_v59, %v3900_v44  ;;  %v750_v47 = vadd.f32 %v4075_v41, %v4070_v37 }
 0x21b   : > { %v2294_v46 = vpop.eup %2293  ;;  %2307 = vrcp.f32 %v1709_v39  ;;  %v1620_v24 = vmul.f32 %v1618_v13, %v3906_v31  ;;  %v1626_v4 = vmul.f32 %v1624_v9, %v3909_v45  ;;  %v1629_v9 = vld [vmem:[%s3296_s29 + $0x8] sm:$0x1] }
 0x21c   : > { %1523 = vst.msk [vmem:[%s3296_s29 + $0x4] sm:$0x1] %vm1305_vm2, %v1521_v50  ;;  %v1616_v10 = vadd.f32 %v1614_v27, %v1610_v2  ;;  %v1605_v1 = vmul.f32 %v2294_v46, %v4297_v63  ;;  %2309 = vpow2.f32 %v745_v48  ;;  %v4088_v14 = vpop.eup %2295 }
 0x21d   : > { %v4091_v32 = vpop.eup %2297  ;;  %v752_v20 = vadd.f32 %v4088_v14, %v750_v47 }
 0x21e   : > { %v1622_v61 = vadd.f32 %v1620_v24, %v1616_v10  ;;  %v1607_v15 = vmul.f32 %v4002_v21, %v1605_v1  ;;  %v1611_v60 = vmul.f32 %v4013_v22, %v1605_v1  ;;  %v1617_v6 = vmul.f32 %v4016_v23, %v1605_v1  ;;  %v4096_v28 = vpop.eup %2299  ;;  %v1630_v21 = vld [vmem:[%s3296_s29 + $0x18] sm:$0x1]  ;;  %v4313_v24 = vld [vmem:[#allocation18_spill] sm:$0xff] }
 0x21f   : > { %v1623_v5 = vmul.f32 %v4021_v16, %v1605_v1  ;;  %v4100_v34 = vpop.eup %2301  ;;  %v754_v22 = vadd.f32 %v4091_v32, %v752_v20  ;;  %v2316_v20 = vld [vmem:[%s3221_s10 + $0x11] ss:$4 sm:$0xf] }
 0x220   : > { %v1628_v42 = vadd.f32 %v1626_v4, %v1622_v61  ;;  %v1609_v58 = vmul.f32 %v1607_v15, %v3941_v38  ;;  %v1613_v49 = vmul.f32 %v1611_v60, %v3948_v18  ;;  %v749_v23 = vadd.f32 %v4100_v34, %v4096_v28  ;;  %v1739_v60 = vld [vmem:[%s3296_s29 + $0xc] sm:$0x1] }
 0x221   : > { %v2304_v55 = vpop.eup %2303  ;;  %v1619_v16 = vmul.f32 %v1617_v6, %v3951_v40  ;;  %v1625_v11 = vmul.f32 %v1623_v5, %v3956_v52  ;;  %2311 = vrcp.f32 %v754_v22  ;;  %v2315_v6 = vld [vmem:[%s3221_s10 + $0x10] ss:$4 sm:$0xf] }
 0x222   : > { %v1632_v54 = vadd.f32 %v1630_v21, %v1628_v42  ;;  %v1615_v19 = vadd.f32 %v1613_v49, %v1609_v58  ;;  %v1716_v33 = vmul.f32 %v2304_v55, %v4297_v63  ;;  %v2317_v55 = vld [vmem:[%s3221_s10 + $0x12] ss:$4 sm:$0xf] }
 0x223   : > { %v2306_v29 = vpop.eup %2305 }
 0x224   : > { %1634 = vst.msk [vmem:[%s3296_s29 + $0x18] sm:$0x1] %vm1305_vm2, %v1632_v54  ;;  %v1621_v57 = vadd.f32 %v1619_v16, %v1615_v19  ;;  %v1718_v36 = vmul.f32 %v4034_v56, %v1716_v33  ;;  %v1722_v25 = vmul.f32 %v4036_v12, %v1716_v33  ;;  %v1728_v7 = vmul.f32 %v4042_v53, %v1716_v33 }
 0x225   : > { %v2308_v43 = vpop.eup %2307  ;;  %v1734_v48 = vmul.f32 %v4048_v8, %v1716_v33  ;;  %v751_v35 = vadd.f32 %v2306_v29, %v749_v23  ;;  %v2319_v33 = vld [vmem:[%s3221_s10] ss:$4 sm:$0xf] }
 0x226   : > { %v2310_v0 = vpop.eup %2309  ;;  %v1627_v59 = vadd.f32 %v1625_v11, %v1621_v57  ;;  %v1720_v13 = vmul.f32 %v1718_v36, %v3897_v17  ;;  %v1724_v30 = vmul.f32 %v1722_v25, %v3900_v44  ;;  %v1715_v39 = vmul.f32 %v2308_v43, %v4297_v63  ;;  %v2320_v57 = vld [vmem:[%s3221_s10 + $0x1] ss:$4 sm:$0xf] }
 0x227   : > { %v753_v50 = vadd.f32 %v2310_v0, %v751_v35  ;;  %v1730_v53 = vmul.f32 %v1728_v7, %v3906_v31  ;;  %v1736_v63 = vmul.f32 %v1734_v48, %v3909_v45  ;;  %v2321_v7 = vld [vmem:[%s3221_s10 + $0x2] ss:$4 sm:$0xf]  ;;  %v2322_v48 = vld [vmem:[%s3221_s10 + $0x3] ss:$4 sm:$0xf] }
 0x228   : > { %v1631_v56 = vadd.f32 %v1629_v9, %v1627_v59  ;;  %v1726_v12 = vadd.f32 %v1724_v30, %v1720_v13  ;;  %v1717_v2 = vmul.f32 %v4053_v3, %v1715_v39  ;;  %v1721_v8 = vmul.f32 %v4056_v51, %v1715_v39  ;;  %v1740_v51 = vld [vmem:[%s3296_s29 + $0x1c] sm:$0x1] }
 0x229   : > { %v1727_v27 = vmul.f32 %v4064_v26, %v1715_v39  ;;  %v1733_v46 = vmul.f32 %v4067_v62, %v1715_v39  ;;  %2313 = vrcp.f32 %v753_v50 }
 0x22a   : > { %1633 = vst.msk [vmem:[%s3296_s29 + $0x8] sm:$0x1] %vm1305_vm2, %v1631_v56  ;;  %v1732_v17 = vadd.f32 %v1730_v53, %v1726_v12  ;;  %v1719_v44 = vmul.f32 %v1717_v2, %v3941_v38  ;;  %v1723_v47 = vmul.f32 %v1721_v8, %v3948_v18 }
 0x22b   : > { %v2312_v3 = vpop.eup %2311  ;;  %v1729_v62 = vmul.f32 %v1727_v27, %v3951_v40  ;;  %v1735_v45 = vmul.f32 %v1733_v46, %v3956_v52 }
 0x22c   : > { %v1738_v31 = vadd.f32 %v1736_v63, %v1732_v17  ;;  %v1725_v26 = vadd.f32 %v1723_v47, %v1719_v44  ;;  %v760_v1 = vmul.f32 %v2312_v3, %v4313_v24 }
 0x22e   : > { %v1742_v10 = vadd.f32 %v1740_v51, %v1738_v31  ;;  %v1731_v4 = vadd.f32 %v1729_v62, %v1725_v26  ;;  %v762_v38 = vmul.f32 %v4070_v37, %v760_v1  ;;  %v766_v18 = vmul.f32 %v4075_v41, %v760_v1 }
 0x22f   : > { %v772_v61 = vmul.f32 %v4088_v14, %v760_v1  ;;  %v778_v15 = vmul.f32 %v4091_v32, %v760_v1  ;;  %v2318_v32 = vld [vmem:[%s3221_s10 + $0x13] ss:$4 sm:$0xf] }
 0x230   : > { %1744 = vst.msk [vmem:[%s3296_s29 + $0x1c] sm:$0x1] %vm1305_vm2, %v1742_v10  ;;  %v1737_v40 = vadd.f32 %v1735_v45, %v1731_v4  ;;  %v764_v5 = vmul.f32 %v2315_v6, %v762_v38  ;;  %v768_v42 = vmul.f32 %v2316_v20, %v766_v18 }
 0x231   : > { %v774_v37 = vmul.f32 %v2317_v55, %v772_v61  ;;  %v780_v21 = vmul.f32 %v2318_v32, %v778_v15 }
 0x232   : > { %v1741_v52 = vadd.f32 %v1739_v60, %v1737_v40  ;;  %v770_v49 = vadd.f32 %v768_v42, %v764_v5 }
 0x233   : > { %v2314_v58 = vpop.eup %2313 }
 0x234   : > { %1743 = vst.msk [vmem:[%s3296_s29 + $0xc] sm:$0x1] %vm1305_vm2, %v1741_v52  ;;  %v759_v41 = vmul.f32 %v2314_v58, %v4313_v24  ;;  %v776_v14 = vadd.f32 %v774_v37, %v770_v49 }
 0x236   : > { %v761_v22 = vmul.f32 %v4096_v28, %v759_v41  ;;  %v765_v23 = vmul.f32 %v4100_v34, %v759_v41  ;;  %v771_v54 = vmul.f32 %v2306_v29, %v759_v41  ;;  %v777_v19 = vmul.f32 %v2310_v0, %v759_v41 }
 0x237   : > { %v782_v16 = vadd.f32 %v780_v21, %v776_v14 }
 0x238   : > { %v763_v11 = vmul.f32 %v2319_v33, %v761_v22  ;;  %v767_v36 = vmul.f32 %v2320_v57, %v765_v23  ;;  %v773_v43 = vmul.f32 %v2321_v7, %v771_v54  ;;  %v779_v35 = vmul.f32 %v2322_v48, %v777_v19 }
 0x239   : > { %1946 = vst [vmem:[%s3296_s29 + $0x13] ss:$4 sm:$0xf] %v782_v16 }
 0x23a   : > { %v769_v25 = vadd.f32 %v767_v36, %v763_v11 }
 0x23c   : > { %v775_v28 = vadd.f32 %v773_v43, %v769_v25 }
 0x23e   : > { %v781_v34 = vadd.f32 %v779_v35, %v775_v28 }
 0x240   : > { %1945 = vst [vmem:[%s3296_s29 + $0x3] ss:$4 sm:$0xf] %v781_v34 }
 0x241   : > { %2436 = shalt.err (!%p2433_p1)
}
 0x242   : > { %s2437_s23 = scalar_lea.hbm %s4161_s12, 512  ;;  %s2441_s24 = scalar_lea.hbm %s4216_s4, 2048 }
 0x243   : > { %p2438_p0 = scmp.ne.s32.totalorder %s4161_s12, %s2437_s23  ;;  %p2442_p9 = scmp.lt.u32.totalorder %s4161_s12, %s4216_s4 }
 0x244   : > { %p2443_p6 = scmp.lt.u32.totalorder %s2441_s24, %s2437_s23  ;;  %p2445_p2 = scmp.lt.u32.totalorder %s2437_s23, %s4161_s12 }
 0x245   : > { %p2439_p8 = pnand %p2438_p0, %p4314_p10 }
 0x246   : > { %p2444_p5 = por %p2443_p6, %p2442_p9 }
 0x247   : > { %p2440_p7 = pneg %p2439_p8 }
 0x248   : > { %p2446_p11 = por %p2445_p2, %p2444_p5 }
 0x24a   : > { %p2447_p12 = pnand %p2446_p11, %p2440_p7 }
 0x24c   : > { %2450 = shalt.err (!%p2447_p12)
}
 0x24d   : > { %s2520_s30 = smov 128   ;;  %s2521_s10 = smov 8  }
 0x24e   : > { %2004 = dma.vmem_to_hbm [thread:$0]  (%p4314_p10), %s4163_s16, 512, %s4161_s12, %s1746_s2, %s2520_s30, %s2520_s30, %s2521_s10  }
 0x24f PF: > { %p2021_p3 = scmp.ge.s32.totalorder %s2511_s0, 2  ;;  %s1777_s29 = sand.u32 1, %s2491_s25  }
 0x250   : > { %p4315_p4 = scmp.ne.s32.totalorder %s4252_s13, 0  ;;  %s1778_s6 = scalar_lea.sflag [#allocation6], %s1777_s29 }
 0x252   : > { %p2017_p13 = pnand %p2021_p3, %p4315_p4 }
 0x254   : > { %2486 = dma.done.wait (!%p2017_p13), %s1778_s6, 512  }
 0x255   : > { %2488 = vsyncadd (!%p2017_p13), %s1778_s6, 4294966784  ;;  %s27_s0 = sadd.s32 1, %s2511_s0   ;;  %s4316_s18 = sld [smem:[#allocation17_spill]] }
 0x256   : > { %p24_p1 = scmp.ge.s32.totalorder %s27_s0, 6   ;;  %s4317_s28 = sld [smem:[#allocation15_spill]] }
 0x257   : > { %s4318_s29 = sld [smem:[#allocation16_spill]]  ;;  %s4319_s25 = smov %s2495_s26 }
 0x258   : > { %s4320_s26 = smov %s2499_s27  ;;  %26 = sbr.rel (!%p24_p1) target bundleno = 20 (0x14), region = 145 }
 0x25b   : > { %s4321_s27 = smov %s4316_s18 }
 0x25f   :  { %1783 = vsyncpa [#allocation5], 1 }
 0x260   :  { %1785 = vsyncpa [#allocation5 + $0x1], 1 }
 0x261   :  { %1786 = vsyncpa [#allocation8], 1 }
 0x262   :  { %1788 = vsyncpa [#allocation8 + $0x1], 1 }
 0x263   :  { %1789 = vsyncpa [#allocation6], 1 }
 0x264   :  { %1791 = vsyncpa [#allocation6 + $0x1], 1 }

// kernel: tpu_custom_call.1
= control target key start
LH: loop header
LB: loop body
LE: loop exit
PB: predicated region body
PF: predicated region fallthrough
CT: control target
= control target key end

     0   :  { %s7864_s0 = inlined_call_operand.hbm [shape: f32[3], index: 0, kind: input, shape index: {}]   ;;  %s7865_s1 = inlined_call_operand.hbm [shape: f32[8,16,32], index: 1, kind: input, shape index: {}]   ;;  %s7866_s2 = inlined_call_operand.hbm [shape: f32[8,16,32], index: 2, kind: input, shape index: {}]   ;;  %s7867_s3 = inlined_call_operand.hbm [shape: f32[8,16,32], index: 3, kind: input, shape index: {}]   ;;  %s7868_s4 = inlined_call_operand.hbm [shape: f32[8,16,32], index: 4, kind: output, shape index: {}]  }
   0x1   :  { %7973 = sst [smem:[#allocation68_spill]] %s7866_s2  ;;  %s4263_s17 = scalar_lea.hbm %s7864_s0, 16 }
   0x2   :  { %p4264_p0 = scmp.ne.s32.totalorder %s7864_s0, %s4263_s17  ;;  %p4267_p1 = scmp.lt.u32.totalorder %s4263_s17, %s7864_s0 }
   0x4   :  { %p4269_p2 = pnand %p4267_p1, %p4264_p0 }
   0x6   :  { %4272 = shalt.err (!%p4269_p2)  }
   0x7   :  { %s4453_s22 = smov [#allocation3]  }
   0x8   :  { %10 = dma.hbm_to_smem %s7864_s0, 16, %s4453_s22, [#allocation2] }
   0x9   :  { %4415 = dma.done.wait [#allocation2], 16 }
   0xa   :  { %4416 = vsyncadd [#allocation2], 4294967280 }
   0xb   :  { %12 = sfence }
   0xc   :  { %13 = vsyncpa [#allocation5], 0 }
   0xd   :  { %15 = vsyncpa [#allocation5 + $0x1], 0 }
   0xe   :  { %16 = vsyncpa [#allocation8], 0 }
   0xf   :  { %18 = vsyncpa [#allocation8 + $0x1], 0 }
  0x10   :  { %19 = vsyncpa [#allocation6], 0 }
  0x11   :  { %21 = vsyncpa [#allocation6 + $0x1], 0  ;;  %s4500_s25 = smov 0   ;;  %s4502_s26 = smov 0  }
  0x12   :  { %s4504_s27 = smov 0   ;;  %s4506_s28 = smov 0  }
  0x13   :  { %s4508_s29 = smov 0   ;;  %s4510_s0 = smov 0  }
  0x14 LB: > { %7974 = sst [smem:[#allocation15_spill]] %s4447_s29  ;;  %s4531_s30 = sadd.s32 4294967295, %s4451_s0   ;;  %s4451_s0 = sphi %s4510_s0, %s27_s0   ;;  %s4447_s29 = sphi %s4508_s29, %s8259_s29   ;;  %s4443_s28 = sphi %s4506_s28, %s8258_s28   ;;  %s4439_s27 = sphi %s4504_s27, %s8262_s27   ;;  %s4435_s26 = sphi %s4502_s26, %s8261_s26   ;;  %s4431_s25 = sphi %s4500_s25, %s8260_s25  }
  0x15   : > { %s3891_s5 = sadd.s32 4294967294, %s4451_s0   ;;  %s39_s6 = sadd.s32 1, %s4447_s29 }
  0x16   : > { %s48_s7 = sadd.s32 1, %s4439_s27  ;;  %p41_p3 = scmp.ge.s32.totalorder %s39_s6, 4 }
  0x17   : > { %p55_p4 = scmp.ne.s32.totalorder %s4439_s27, %s4435_s26  ;;  %p56_p5 = scmp.eq.s32.totalorder %s4451_s0, 0 }
  0x18   : > { %p61_p6 = scmp.ne.s32.totalorder %s4435_s26, %s4431_s25  ;;  %s8264_s6 = smov (%p41_p3, %s39_s6), 0 }
  0x19   : > { %7975 = sst [smem:[#allocation16_spill]] %s8264_s6  ;;  %p4543_p7 = por %p56_p5, %p55_p4 }
  0x1a   : > { %p62_p8 = scmp.eq.s32.totalorder %s4531_s30, 0  ;;  %s43_s9 = ssub.s32 %s4447_s29, %s8264_s6 }
  0x1b   : > { %p143_p9 = scmp.eq.s32.totalorder %s4531_s30, 3  ;;  %p46_p10 = scmp.eq.s32.totalorder %s43_s9, 0 }
  0x1c   : > { %p4551_p11 = por %p62_p8, %p61_p6  ;;  %p149_p13 = scmp.eq.s32.totalorder %s3891_s5, 3 }
  0x1d   : > { %p4555_p12 = por %p143_p9, %p55_p4  ;;  %p3949_p1 = scmp.lt.s32.totalorder %s4451_s0, 4 }
  0x1e   : > { %s7977_s10 = scalar_select %p4551_p11, 1, 0 }
  0x1f   : > { %s7978_s11 = scalar_select %p4555_p12, 1, 0 }
  0x20   : > { %s4560_s12 = scalar_select %p46_p10, %s4439_s27, %s48_s7  }
  0x21   : > { %p4562_p0 = por %p149_p13, %p61_p6  ;;  %s7871_s14 = sand.u32 1, %s4439_s27  }
  0x22   : > { %7979 = sst [smem:[#allocation17_spill]] %s4560_s12  ;;  %s4570_s15 = sshll.u32 %s7871_s14, 5 }
  0x23   : > { %s7980_s13 = scalar_select %p4562_p0, 1, 0 }
  0x24   : > { %s4573_s16 = sshll.u32 %s4447_s29, 9  ;;  %p4577_p2 = pnand %p3949_p1, %p4543_p7 }
  0x25   : > { %s193_s18 = sand.u32 1, %s4451_s0   ;;  %s7982_s2 = sld [smem:[#allocation68_spill]] }
  0x26   : > { %s197_s22 = scalar_lea.vmem [#allocation7], %s4570_s15  ;;  %s4593_s24 = scalar_lea.sflag [#allocation8], %s193_s18 }
  0x27   : > { %s207_s23 = sshll.u32 %s197_s22, 4  ;;  %p4599_p6 = pneg %p4577_p2  ;;  %s4590_s23 = int_to_ptr.vmem [resolvable:$true] %s207_s23 }
  0x2b   : > { %s4586_s21 = scalar_lea.hbm %s7982_s2, %s4573_s16  ;;  %s4278_s19 = scalar_lea.hbm %s7982_s2, 2048 }
  0x2c   : > { %s4273_s5 = scalar_lea.hbm %s4586_s21, 512  ;;  %p4279_p9 = scmp.lt.u32.totalorder %s4586_s21, %s7982_s2 }
  0x2d   : > { %p4274_p5 = scmp.ne.s32.totalorder %s4586_s21, %s4273_s5  ;;  %p4280_p10 = scmp.lt.u32.totalorder %s4278_s19, %s4273_s5 }
  0x2e   : > { %p4282_p1 = scmp.lt.u32.totalorder %s4273_s5, %s4586_s21 }
  0x2f   : > { %p4276_p7 = pnand %p4599_p6, %p4274_p5  ;;  %p4281_p13 = por %p4280_p10, %p4279_p9 }
  0x31   : > { %p4277_p8 = pneg %p4276_p7  ;;  %p4283_p3 = por %p4282_p1, %p4281_p13 }
  0x33   : > { %p4284_p4 = pnand %p4283_p3, %p4277_p8 }
  0x35   : > { %4287 = shalt.err (!%p4284_p4)
}
  0x36   : > { %s4288_s18 = scalar_lea.vmem %s4590_s23, 512  ;;  %s4454_s8 = smov [#allocation7]  }
  0x37   : > { %p4289_p5 = scmp.ne.s32.totalorder %s4590_s23, %s4288_s18  ;;  %s4293_s9 = sshll.u32 %s4454_s8, 4  ;;  %s4294_s9 = int_to_ptr.vmem [resolvable:$false] %s4293_s9 }
  0x38   : > { %s4295_s20 = scalar_lea.vmem %s4294_s9, 1024  ;;  %p4296_p12 = scmp.lt.s32.totalorder %s4590_s23, %s4294_s9 }
  0x39   : > { %p4291_p7 = pnand %p4289_p5, %p4599_p6  ;;  %p4297_p11 = scmp.lt.s32.totalorder %s4295_s20, %s4288_s18 }
  0x3b   : > { %p4292_p0 = pneg %p4291_p7  ;;  %p4298_p9 = por %p4297_p11, %p4296_p12 }
  0x3d   : > { %p4299_p10 = pnand %p4298_p9, %p4292_p0 }
  0x3f   : > { %4302 = shalt.err (!%p4299_p10)
}
  0x40   : > { %s7872_s5 = smov 128   ;;  %s7874_s19 = smov 8  }
  0x41   : > { %3941 = dma.hbm_to_vmem [thread:$0]  (!%p4577_p2), %s4586_s21, 512, %s4590_s23, %s4593_s24, %s7872_s5, %s7872_s5, %s7874_s19  }
  0x42   : > { %p7984_p11 = scmp.lt.s32.totalorder %s4451_s0, 5  ;;  %p7985_p12 = scmp.ge.s32.totalorder %s4451_s0, 1 }
  0x43   : > { %s4638_s9 = scalar_lea.hbm %s7865_s1, %s4573_s16  ;;  %s173_s20 = scalar_lea.vmem [#allocation4], %s4570_s15 }
  0x44   : > { %p4630_p0 = pnand %p7985_p12, %p7984_p11  ;;  %s183_s14 = sshll.u32 %s173_s20, 4  ;;  %s4641_s14 = int_to_ptr.vmem [resolvable:$true] %s183_s14 }
  0x45   : > { %s4647_s5 = scalar_lea.hbm %s7867_s3, %s4573_s16  ;;  %s7987_s19 = sand.u32 1, %s4439_s27  }
  0x46   : > { %s7986_s22 = scalar_select %p4630_p0, 1, 0 }
  0x47   : > { %s4651_s2 = scalar_lea.sflag [#allocation5], %s7987_s19  ;;  %s4303_s6 = scalar_lea.hbm %s4638_s9, 512 }
  0x48   : > { %p4304_p3 = scmp.ne.s32.totalorder %s4638_s9, %s4303_s6  ;;  %s4308_s29 = scalar_lea.hbm %s7865_s1, 2048 }
  0x49   : > { %p4309_p13 = scmp.lt.u32.totalorder %s4638_s9, %s7865_s1  ;;  %p4310_p1 = scmp.lt.u32.totalorder %s4308_s29, %s4303_s6 }
  0x4a   : > { %p4306_p4 = pnand %p4304_p3, %p4599_p6  ;;  %p4312_p7 = scmp.lt.u32.totalorder %s4303_s6, %s4638_s9 }
  0x4b   : > { %p4311_p5 = por %p4310_p1, %p4309_p13 }
  0x4c   : > { %p4307_p8 = pneg %p4306_p4 }
  0x4d   : > { %p4313_p9 = por %p4312_p7, %p4311_p5 }
  0x4f   : > { %p4314_p10 = pnand %p4313_p9, %p4307_p8 }
  0x51   : > { %4317 = shalt.err (!%p4314_p10)
}
  0x52   : > { %s4318_s16 = scalar_lea.vmem %s4641_s14, 512  ;;  %s4457_s19 = smov [#allocation4]  }
  0x53   : > { %p4319_p11 = scmp.ne.s32.totalorder %s4641_s14, %s4318_s16  ;;  %s4323_s21 = sshll.u32 %s4457_s19, 4  ;;  %s4324_s21 = int_to_ptr.vmem [resolvable:$false] %s4323_s21 }
  0x54   : > { %s4325_s12 = scalar_lea.vmem %s4324_s21, 1024  ;;  %p4326_p4 = scmp.lt.s32.totalorder %s4641_s14, %s4324_s21 }
  0x55   : > { %p4321_p12 = pnand %p4319_p11, %p4599_p6  ;;  %p4327_p0 = scmp.lt.s32.totalorder %s4325_s12, %s4318_s16 }
  0x57   : > { %p4322_p3 = pneg %p4321_p12  ;;  %p4328_p13 = por %p4327_p0, %p4326_p4 }
  0x59   : > { %p4329_p1 = pnand %p4328_p13, %p4322_p3 }
  0x5b   : > { %4332 = shalt.err (!%p4329_p1)
}
  0x5c   : > { %s7988_s29 = smov 8   ;;  %s7989_s6 = smov 128  }
  0x5d   : > { %3938 = dma.hbm_to_vmem [thread:$0]  (!%p4577_p2), %s4638_s9, 512, %s4641_s14, %s4651_s2, %s7989_s6, %s7989_s6, %s7988_s29  }
  0x5e   : > { %s221_s23 = scalar_lea.vmem [#allocation9], %s4570_s15  ;;  %s4333_s8 = scalar_lea.hbm %s4647_s5, 512 }
  0x5f   : > { %s231_s18 = sshll.u32 %s221_s23, 4  ;;  %p4334_p0 = scmp.ne.s32.totalorder %s4647_s5, %s4333_s8  ;;  %s4679_s18 = int_to_ptr.vmem [resolvable:$true] %s231_s18 }
  0x60   : > { %s4338_s19 = scalar_lea.hbm %s7867_s3, 2048  ;;  %p4339_p7 = scmp.lt.u32.totalorder %s4647_s5, %s7867_s3 }
  0x61   : > { %p4336_p8 = pnand %p4334_p0, %p4599_p6  ;;  %p4340_p9 = scmp.lt.u32.totalorder %s4338_s19, %s4333_s8 }
  0x62   : > { %p4342_p11 = scmp.lt.u32.totalorder %s4333_s8, %s4647_s5 }
  0x63   : > { %p4337_p5 = pneg %p4336_p8  ;;  %p4341_p10 = por %p4340_p9, %p4339_p7 }
  0x65   : > { %p4343_p12 = por %p4342_p11, %p4341_p10 }
  0x67   : > { %p4344_p3 = pnand %p4343_p12, %p4337_p5 }
  0x69   : > { %4347 = shalt.err (!%p4344_p3)
}
  0x6a   : > { %s4348_s2 = scalar_lea.vmem %s4679_s18, 512  ;;  %s4458_s14 = smov [#allocation9]  }
  0x6b   : > { %p4349_p4 = scmp.ne.s32.totalorder %s4679_s18, %s4348_s2  ;;  %s4353_s15 = sshll.u32 %s4458_s14, 4  ;;  %s4354_s15 = int_to_ptr.vmem [resolvable:$false] %s4353_s15 }
  0x6c   : > { %s4355_s9 = scalar_lea.vmem %s4354_s15, 1024  ;;  %p4356_p0 = scmp.lt.s32.totalorder %s4679_s18, %s4354_s15 }
  0x6d   : > { %p4351_p13 = pnand %p4349_p4, %p4599_p6  ;;  %p4357_p8 = scmp.lt.s32.totalorder %s4355_s9, %s4348_s2 }
  0x6f   : > { %p4352_p1 = pneg %p4351_p13  ;;  %p4358_p7 = por %p4357_p8, %p4356_p0 }
  0x71   : > { %p4359_p9 = pnand %p4358_p7, %p4352_p1 }
  0x73   : > { %4362 = shalt.err (!%p4359_p9)
}
  0x74   : > { %3944 = dma.hbm_to_vmem [thread:$0]  (!%p4577_p2), %s4647_s5, 512, %s4679_s18, %s4593_s24, %s7989_s6, %s7989_s6, %s7988_s29  }
  0x75   : > { %p7990_p6 = scmp.ne.s32.totalorder %s7986_s22, 0 }
  0x77   : > { %243 = sbr.rel (%p7990_p6) target bundleno = 659 (0x293), region = 32 }
  0x7e   : > { %s4709_s7 = sand.u32 1, %s4435_s26   ;;  %p7991_p5 = scmp.ne.s32.totalorder %s7977_s10, 0 }
  0x7f   : > { %s4712_s23 = sshll.u32 %s4709_s7, 5  ;;  %s246_s17 = scalar_lea.sflag [#allocation5], %s4709_s7 }
  0x80   : > { %s4716_s8 = scalar_lea.vmem [#allocation4], %s4712_s23 }
  0x81   : > { %4418 = dma.done.wait (%p7991_p5), %s246_s17, 512  }
  0x82   : > { %4420 = vsyncadd (%p7991_p5), %s246_s17, 4294966784  ;;  %s254_s24 = sand.u32 1, %s4531_s30   ;;  %s4724_s22 = scalar_lea.vmem [#allocation7], %s4712_s23 }
  0x83   : > { %s255_s5 = scalar_lea.sflag [#allocation8], %s254_s24 }
  0x84   : > { %4422 = dma.done.wait (%p7991_p5), %s255_s5, 1024  }
  0x85   : > { %4424 = vsyncadd (%p7991_p5), %s255_s5, 4294966272  ;;  %v369_v0 = vlaneseq  ;;  %vm403_vm0 = vcmask 1042434   ;;  %vm405_vm1 = vcmask 1043459   ;;  %vm968_vm2 = vcmask 1044484   ;;  %v4736_v3 = vld [vmem:[%s4716_s8 + $0x10] sm:$0xff]  ;;  %v4739_v4 = vld [vmem:[%s4716_s8 + $0x18] sm:$0xff] }
  0x86   : > { %vm975_vm3 = vcmask 258049   ;;  %v4742_v5 = vld [vmem:[%s4724_s22 + $0x10] sm:$0xff]  ;;  %vm401_vm4 = vcmask 1041409   ;;  %v4752_v8 = vcombine.high %v4736_v3, %v4736_v3  ;;  %v4756_v9 = vcombine.high %v4739_v4, %v4739_v4  ;;  %v4759_v10 = vld [vmem:[%s4724_s22 + $0x18] sm:$0xff]  ;;  %v4770_v13 = vld [vmem:[%s4716_s8] sm:$0xff]  ;;  %s5626_s30 = scalar_lea.vmem [#allocation9], %s4712_s23 }
  0x87   : > { %v4730_v1 = vshrl.u32 %v369_v0, 7  ;;  %v4763_v11 = vcombine.high %v4742_v5, %v4742_v5  ;;  %v4767_v12 = vmul.f32 %v4742_v5, %v4736_v3  ;;  %v4773_v14 = vld [vmem:[%s4716_s8 + $0x8] sm:$0xff]  ;;  %vm412_vm5 = vcmask 257024   ;;  %v4792_v19 = vld [vmem:[%s4724_s22] sm:$0xff]  ;;  %s5774_s10 = sld [smem:[#allocation3]]  ;;  %s6208_s29 = sld [smem:[#allocation3 + $0x1]] }
  0x88   : > { %v4777_v15 = vcombine.high %v4759_v10, %v4759_v10  ;;  %v4781_v16 = vmul.f32 %v4759_v10, %v4739_v4  ;;  %v4785_v17 = vcombine.high %v4770_v13, %v4770_v13  ;;  %v4789_v18 = vcombine.high %v4773_v14, %v4773_v14  ;;  %v4795_v20 = vld [vmem:[%s4724_s22 + $0x8] sm:$0xff]  ;;  %s6914_s6 = scalar_lea.vmem [#allocation10], %s4712_s23  ;;  %s7553_s18 = sld [smem:[#allocation3 + $0x2]] }
  0x89   : > { %v4733_v2 = vsub.s32 1, %v4730_v1  ;;  %v4745_v6 = vsub.s32 0, %v4730_v1  ;;  %v4748_v7 = vsub.s32 2, %v4730_v1  ;;  %7993 = vst [vmem:[#allocation19_spill] sm:$0xff] %v4767_v12  ;;  %v4799_v21 = vmul.f32 %v4763_v11, %v4752_v8  ;;  %s3926_s20 = sshll.u32 %s4443_s28, 9  ;;  %s3754_s16 = sshll.u32 %s6914_s6, 4  ;;  %s7814_s16 = int_to_ptr.vmem [resolvable:$true] %s3754_s16 }
  0x8a   : > { %7994 = vst [vmem:[#allocation20_spill] sm:$0xff] %v4781_v16  ;;  %v4805_v23 = vcombine.high %v4792_v19, %v4792_v19  ;;  %v4809_v24 = vcombine.high %v4795_v20, %v4795_v20  ;;  %v4813_v25 = vmul.f32 %v4777_v15, %v4756_v9  ;;  %v4819_v27 = vmul.f32 %v4792_v19, %v4770_v13  ;;  %s7812_s12 = scalar_lea.hbm %s7868_s4, %s3926_s20  ;;  %s3738_s28 = scalar_lea.sflag [#allocation6], %s4709_s7 }
  0x8b   : > { %7992 = vst [vmem:[#allocation18_spill] sm:$0xff] %v4745_v6  ;;  %7995 = vst [vmem:[#allocation21_spill] sm:$0xff] %v4799_v21  ;;  %v1003_v22 = vrot.slane %v4767_v12, %v4733_v2  ;;  %v1011_v26 = vrot.slane %v4781_v16, %v4733_v2  ;;  %v4823_v28 = vmul.f32 %v4795_v20, %v4773_v14  ;;  %v605_v32 = vrot.slane %v4742_v5, 7  ;;  %s4363_s2 = scalar_lea.vmem %s7814_s16, 512  ;;  %p8255_p10 = scmp.ne.s32.totalorder %s7978_s11, 0 }
  0x8c   : > { %7996 = vst [vmem:[#allocation22_spill] sm:$0xff] %v4813_v25  ;;  %7997 = vst [vmem:[#allocation23_spill] sm:$0xff] %v4819_v27  ;;  %v1007_v29 = vrot.slane %v4799_v21, %v4733_v2  ;;  %v4829_v30 = vmul.f32 %v4805_v23, %v4785_v17  ;;  %v4833_v31 = vmul.f32 %v4809_v24, %v4789_v18  ;;  %v7898_v36 = vrot.slane %v4763_v11, 7  ;;  %p4364_p2 = scmp.ne.s32.totalorder %s7814_s16, %s4363_s2  ;;  %s4460_s14 = smov [#allocation10]  }
  0x8d   : > { %7998 = vst [vmem:[#allocation24_spill] sm:$0xff] %v4823_v28  ;;  %v1015_v33 = vrot.slane %v4813_v25, %v4733_v2  ;;  %v372_v34 = vrot.slane %v4819_v27, %v4745_v6  ;;  %v380_v35 = vrot.slane %v4823_v28, %v4745_v6  ;;  %v7897_v40 = vrot.slane %v4759_v10, 7  ;;  %s4367_s15 = sshll.u32 %s4460_s14, 4  ;;  %s4368_s15 = int_to_ptr.vmem [resolvable:$false] %s4367_s15 }
  0x8e   : > { %7999 = vst [vmem:[#allocation25_spill] sm:$0xff] %v4829_v30  ;;  %8000 = vst [vmem:[#allocation26_spill] sm:$0xff] %v4833_v31  ;;  %v1019_v37 = vsel %vm403_vm0, %v1007_v29, %v1003_v22  ;;  %v376_v38 = vrot.slane %v4829_v30, %v4745_v6  ;;  %v384_v39 = vrot.slane %v4833_v31, %v4745_v6  ;;  %v7891_v42 = vrot.slane %v4777_v15, 7  ;;  %p4365_p11 = pnand %p4364_p2, %p8255_p10  ;;  %s4369_s9 = scalar_lea.vmem %s4368_s15, 1024 }
  0x8f   : > { %v1020_v41 = vsel %vm405_vm1, %v1011_v26, %v1019_v37  ;;  %v4854_v43 = vmul.f32 %v605_v32, %v4736_v3  ;;  %v4859_v44 = vmul.f32 %v7898_v36, %v4752_v8  ;;  %v4866_v47 = vmul.f32 %v7897_v40, %v4739_v4  ;;  %p4370_p3 = scmp.lt.s32.totalorder %s7814_s16, %s4368_s15  ;;  %p4371_p4 = scmp.lt.s32.totalorder %s4369_s9, %s4363_s2 }
  0x90   : > { %v1021_v45 = vsel %vm968_vm2, %v1015_v33, %v1020_v41  ;;  %v402_v46 = vsel %vm401_vm4, %v376_v38, %v372_v34  ;;  %v388_v48 = vrot.slane %v4767_v12, %v4745_v6  ;;  %v4875_v51 = vmul.f32 %v7891_v42, %v4756_v9  ;;  %p4366_p12 = pneg %p4365_p11 }
  0x91   : > { %v1027_v49 = vsel %vm975_vm3, %v1021_v45, 0.0  ;;  %v404_v50 = vsel %vm403_vm0, %v380_v35, %v402_v46  ;;  %v953_v52 = vrot.slane %v4854_v43, %v4733_v2  ;;  %v957_v54 = vrot.slane %v4859_v44, %v4733_v2  ;;  %p4372_p13 = por %p4371_p4, %p4370_p3 }
  0x92   : > { %1028 = vadd.xlane.f32.xlu1 %v1027_v49  ;;  %v406_v53 = vsel %vm405_vm1, %v384_v39, %v404_v50  ;;  %v961_v55 = vrot.slane %v4866_v47, %v4733_v2  ;;  %v392_v56 = vrot.slane %v4799_v21, %v4745_v6  ;;  %v965_v58 = vrot.slane %v4875_v51, %v4733_v2 }
  0x93   : > { %v413_v57 = vsel %vm412_vm5, %v406_v53, 0.0  ;;  %v396_v59 = vrot.slane %v4781_v16, %v4745_v6  ;;  %v400_v60 = vrot.slane %v4813_v25, %v4745_v6  ;;  %v970_v61 = vsel %vm403_vm0, %v957_v54, %v953_v52  ;;  %p4373_p1 = pnand %p4372_p13, %p4366_p12 }
  0x94   : > { %414 = vadd.xlane.f32.xlu0 %v413_v57  ;;  %v407_v62 = vsel %vm401_vm4, %v392_v56, %v388_v48  ;;  %v7881_v63 = vrot.slane %v4792_v19, 5  ;;  %v7880_v0 = vrot.slane %v4805_v23, 5  ;;  %v971_v22 = vsel %vm405_vm1, %v961_v55, %v970_v61 }
  0x95   : > { %v408_v26 = vsel %vm403_vm0, %v396_v59, %v407_v62  ;;  %v7879_v29 = vrot.slane %v4795_v20, 5  ;;  %v7878_v33 = vrot.slane %v4809_v24, 5  ;;  %v972_v34 = vsel %vm968_vm2, %v965_v58, %v971_v22 }
  0x96   : > { %v409_v35 = vsel %vm405_vm1, %v400_v60, %v408_v26  ;;  %v422_v37 = vrot.slane %v7881_v63, 4  ;;  %v424_v38 = vrot.slane %v7880_v0, 4  ;;  %v979_v39 = vsel %vm975_vm3, %v972_v34, 0.0 }
  0x97   : > { %v416_v41 = vsel %vm412_vm5, %v409_v35, 0.0  ;;  %v426_v45 = vrot.slane %v7879_v29, 4  ;;  %v428_v46 = vrot.slane %v7878_v33, 4  ;;  %980 = vadd.xlane.f32.xlu1 %v979_v39  ;;  %v987_v50 = vrot.slane %v4819_v27, %v4733_v2 }
  0x98   : > { %417 = vadd.xlane.f32.xlu0 %v416_v41  ;;  %v4914_v48 = vmul.f32 %v422_v37, %v4770_v13  ;;  %v4917_v49 = vmul.f32 %v424_v38, %v4785_v17  ;;  %v7885_v52 = vrot.slane %v4742_v5, 5  ;;  %v991_v55 = vrot.slane %v4829_v30, %v4733_v2 }
  0x99   : > { %v4923_v53 = vmul.f32 %v426_v45, %v4773_v14  ;;  %v4926_v54 = vmul.f32 %v428_v46, %v4789_v18  ;;  %v995_v56 = vrot.slane %v4823_v28, %v4733_v2  ;;  %v999_v59 = vrot.slane %v4833_v31, %v4733_v2 }
  0x9a   : > { %v464_v57 = vrot.slane %v4914_v48, %v4745_v6  ;;  %v468_v58 = vrot.slane %v4917_v49, %v4745_v6  ;;  %v430_v60 = vrot.slane %v7885_v52, 4  ;;  %v1016_v22 = vsel %vm403_vm0, %v991_v55, %v987_v50 }
  0x9b   : > { %v472_v61 = vrot.slane %v4923_v53, %v4745_v6  ;;  %v476_v62 = vrot.slane %v4926_v54, %v4745_v6  ;;  %v7884_v26 = vrot.slane %v4763_v11, 5  ;;  %v1017_v35 = vsel %vm405_vm1, %v995_v56, %v1016_v22 }
  0x9c   : > { %v493_v34 = vsel %vm401_vm4, %v468_v58, %v464_v57  ;;  %v7883_v37 = vrot.slane %v4759_v10, 5  ;;  %v7882_v38 = vrot.slane %v4777_v15, 5  ;;  %v1018_v41 = vsel %vm968_vm2, %v999_v59, %v1017_v35 }
  0x9d   : > { %v494_v39 = vsel %vm403_vm0, %v472_v61, %v493_v34  ;;  %v432_v45 = vrot.slane %v7884_v26, 4  ;;  %v4955_v46 = vmul.f32 %v430_v60, %v4736_v3  ;;  %v1024_v55 = vsel %vm975_vm3, %v1018_v41, 0.0 }
  0x9e   : > { %v495_v50 = vsel %vm405_vm1, %v476_v62, %v494_v39  ;;  %v434_v56 = vrot.slane %v7883_v37, 4  ;;  %v436_v57 = vrot.slane %v7882_v38, 4  ;;  %1025 = vadd.xlane.f32.xlu0 %v1024_v55  ;;  %v7890_v61 = vrot.slane %v4792_v19, 7 }
  0x9f   : > { %v501_v58 = vsel %vm412_vm5, %v495_v50, 0.0  ;;  %v4965_v59 = vmul.f32 %v432_v45, %v4752_v8  ;;  %v480_v60 = vrot.slane %v4955_v46, %v4745_v6  ;;  %v7889_v34 = vrot.slane %v4805_v23, 7 }
  0xa0   : > { %502 = vadd.xlane.f32.xlu1 %v501_v58  ;;  %v4971_v62 = vmul.f32 %v434_v56, %v4739_v4  ;;  %v4974_v22 = vmul.f32 %v436_v57, %v4756_v9  ;;  %v7887_v35 = vrot.slane %v4795_v20, 7  ;;  %v7886_v41 = vrot.slane %v4809_v24, 7 }
  0xa1   : > { %v484_v39 = vrot.slane %v4965_v59, %v4745_v6  ;;  %v4984_v45 = vmul.f32 %v7890_v61, %v4770_v13  ;;  %v7888_v50 = vrot.slane %v4742_v5, 6  ;;  %v4994_v57 = vmul.f32 %v7889_v34, %v4785_v17 }
  0xa2   : > { %v488_v55 = vrot.slane %v4971_v62, %v4745_v6  ;;  %v492_v56 = vrot.slane %v4974_v22, %v4745_v6  ;;  %v4999_v58 = vmul.f32 %v7887_v35, %v4773_v14  ;;  %v5005_v29 = vmul.f32 %v7886_v41, %v4789_v18 }
  0xa3   : > { %v496_v33 = vsel %vm401_vm4, %v484_v39, %v480_v60  ;;  %v937_v0 = vrot.slane %v4984_v45, %v4733_v2  ;;  %v518_v63 = vrot.slane %v7888_v50, 4  ;;  %v941_v37 = vrot.slane %v4994_v57, %v4733_v2 }
  0xa4   : > { %v497_v38 = vsel %vm403_vm0, %v488_v55, %v496_v33  ;;  %v945_v26 = vrot.slane %v4999_v58, %v4733_v2  ;;  %v7896_v60 = vrot.slane %v4763_v11, 6  ;;  %v949_v52 = vrot.slane %v5005_v29, %v4733_v2 }
  0xa5   : > { %v498_v39 = vsel %vm405_vm1, %v492_v56, %v497_v38  ;;  %v7893_v41 = vrot.slane %v4759_v10, 6  ;;  %v7892_v35 = vrot.slane %v4777_v15, 6  ;;  %v966_v33 = vsel %vm403_vm0, %v941_v37, %v937_v0 }
  0xa6   : > { %v504_v50 = vsel %vm412_vm5, %v498_v39, 0.0  ;;  %v520_v55 = vrot.slane %v7896_v60, 4  ;;  %v5027_v34 = vmul.f32 %v518_v63, %v4736_v3  ;;  %v967_v38 = vsel %vm405_vm1, %v945_v26, %v966_v33 }
  0xa7   : > { %505 = vadd.xlane.f32.xlu1 %v504_v50  ;;  %v522_v56 = vrot.slane %v7893_v41, 4  ;;  %v524_v61 = vrot.slane %v7892_v35, 4  ;;  %v7894_v42 = vrot.slane %v4792_v19, 6  ;;  %v969_v39 = vsel %vm968_vm2, %v949_v52, %v967_v38 }
  0xa8   : > { %v5037_v0 = vmul.f32 %v520_v55, %v4752_v8  ;;  %v568_v63 = vrot.slane %v5027_v34, %v4745_v6  ;;  %v7895_v37 = vrot.slane %v4805_v23, 6  ;;  %v976_v26 = vsel %vm975_vm3, %v969_v39, 0.0 }
  0xa9   : > { %v5044_v50 = vmul.f32 %v522_v56, %v4739_v4  ;;  %v5047_v33 = vmul.f32 %v524_v61, %v4756_v9  ;;  %v510_v35 = vrot.slane %v7894_v42, 4  ;;  %977 = vadd.xlane.f32.xlu0 %v976_v26  ;;  %v7903_v38 = vrot.slane %v4795_v20, 6 }
  0xaa   : > { %v572_v52 = vrot.slane %v5037_v0, %v4745_v6  ;;  %v512_v55 = vrot.slane %v7895_v37, 4  ;;  %v7904_v39 = vrot.slane %v4809_v24, 6  ;;  %v606_v26 = vrot.slane %v605_v32, 4 }
  0xab   : > { %v576_v56 = vrot.slane %v5044_v50, %v4745_v6  ;;  %v580_v61 = vrot.slane %v5047_v33, %v4745_v6  ;;  %v5062_v41 = vmul.f32 %v510_v35, %v4770_v13  ;;  %v514_v37 = vrot.slane %v7903_v38, 4 }
  0xac   : > { %v584_v42 = vsel %vm401_vm4, %v572_v52, %v568_v63  ;;  %v516_v60 = vrot.slane %v7904_v39, 4  ;;  %v5072_v40 = vmul.f32 %v512_v55, %v4785_v17  ;;  %v8001_v31 = vrot.slane %v4763_v11, 7 }
  0xad   : > { %v585_v36 = vsel %vm403_vm0, %v576_v56, %v584_v42  ;;  %v552_v35 = vrot.slane %v5062_v41, %v4745_v6  ;;  %v8002_v32 = vrot.slane %v4759_v10, 7  ;;  %v5083_v38 = vmul.f32 %v514_v37, %v4773_v14 }
  0xae   : > { %v608_v28 = vrot.slane %v8001_v31, 4  ;;  %v586_v52 = vsel %vm405_vm1, %v580_v61, %v585_v36  ;;  %v5086_v39 = vmul.f32 %v516_v60, %v4789_v18  ;;  %v556_v42 = vrot.slane %v5072_v40, %v4745_v6 }
  0xaf   : > { %v610_v63 = vrot.slane %v8002_v32, 4  ;;  %v592_v55 = vsel %vm412_vm5, %v586_v52, 0.0  ;;  %v8003_v56 = vrot.slane %v4777_v15, 7  ;;  %v625_v31 = vmul.f32 %v606_v26, %v4736_v3 }
  0xb0   : > { %v626_v32 = vmul.f32 %v608_v28, %v4752_v8  ;;  %593 = vadd.xlane.f32.xlu1 %v592_v55  ;;  %v560_v36 = vrot.slane %v5083_v38, %v4745_v6  ;;  %v564_v60 = vrot.slane %v5086_v39, %v4745_v6  ;;  %v581_v37 = vsel %vm401_vm4, %v556_v42, %v552_v35 }
  0xb1   : > { %v612_v30 = vrot.slane %v8003_v56, 4  ;;  %v627_v61 = vmul.f32 %v610_v63, %v4739_v4  ;;  %v656_v27 = vrot.slane %v625_v31, %v4745_v6  ;;  %v8004_v26 = vrot.slane %v4792_v19, 7 }
  0xb2   : > { %v660_v56 = vrot.slane %v626_v32, %v4745_v6  ;;  %v582_v55 = vsel %vm403_vm0, %v560_v36, %v581_v37  ;;  %v8005_v16 = vrot.slane %v4805_v23, 7  ;;  %v8006_v35 = vrot.slane %v4795_v20, 7 }
  0xb3   : > { %v628_v52 = vmul.f32 %v612_v30, %v4756_v9  ;;  %v598_v28 = vrot.slane %v8004_v26, 4  ;;  %v664_v25 = vrot.slane %v627_v61, %v4745_v6  ;;  %v583_v63 = vsel %vm405_vm1, %v564_v60, %v582_v55 }
  0xb4   : > { %v600_v21 = vrot.slane %v8005_v16, 4  ;;  %v602_v42 = vrot.slane %v8006_v35, 4  ;;  %v672_v31 = vsel %vm401_vm4, %v660_v56, %v656_v27  ;;  %v8007_v32 = vrot.slane %v4809_v24, 7 }
  0xb5   : > { %v668_v30 = vrot.slane %v628_v52, %v4745_v6  ;;  %v589_v26 = vsel %vm412_vm5, %v583_v63, 0.0  ;;  %v673_v36 = vsel %vm403_vm0, %v664_v25, %v672_v31  ;;  %v621_v37 = vmul.f32 %v598_v28, %v4770_v13 }
  0xb6   : > { %v604_v12 = vrot.slane %v8007_v32, 4  ;;  %v622_v16 = vmul.f32 %v600_v21, %v4785_v17  ;;  %590 = vadd.xlane.f32.xlu0 %v589_v26  ;;  %v623_v60 = vmul.f32 %v602_v42, %v4773_v14  ;;  %v1051_v27 = vrot.slane %v4955_v46, %v4733_v2 }
  0xb7   : > { %v674_v61 = vsel %vm405_vm1, %v668_v30, %v673_v36  ;;  %v640_v55 = vrot.slane %v621_v37, %v4745_v6  ;;  %v1055_v28 = vrot.slane %v4965_v59, %v4733_v2  ;;  %v1063_v42 = vrot.slane %v4974_v22, %v4733_v2 }
  0xb8   : > { %v624_v52 = vmul.f32 %v604_v12, %v4789_v18  ;;  %v680_v56 = vsel %vm412_vm5, %v674_v61, 0.0  ;;  %v644_v25 = vrot.slane %v622_v16, %v4745_v6  ;;  %v648_v21 = vrot.slane %v623_v60, %v4745_v6 }
  0xb9   : > { %681 = vadd.xlane.f32.xlu1 %v680_v56  ;;  %v1059_v12 = vrot.slane %v4971_v62, %v4733_v2  ;;  %v1067_v30 = vsel %vm403_vm0, %v1055_v28, %v1051_v27  ;;  %v1035_v31 = vrot.slane %v4914_v48, %v4733_v2  ;;  %v1039_v32 = vrot.slane %v4917_v49, %v4733_v2 }
  0xba   : > { %v652_v35 = vrot.slane %v624_v52, %v4745_v6  ;;  %v669_v63 = vsel %vm401_vm4, %v644_v25, %v640_v55  ;;  %v1043_v37 = vrot.slane %v4923_v53, %v4733_v2  ;;  %v1047_v16 = vrot.slane %v4926_v54, %v4733_v2 }
  0xbb   : > { %v670_v26 = vsel %vm403_vm0, %v648_v21, %v669_v63  ;;  %v1068_v36 = vsel %vm405_vm1, %v1059_v12, %v1067_v30  ;;  %v1064_v52 = vsel %vm403_vm0, %v1039_v32, %v1035_v31  ;;  %v1099_v27 = vrot.slane %v5027_v34, %v4733_v2 }
  0xbc   : > { %v671_v61 = vsel %vm405_vm1, %v652_v35, %v670_v26  ;;  %v1069_v60 = vsel %vm968_vm2, %v1063_v42, %v1068_v36  ;;  %vm1282_vm6 = vcmask 1045509   ;;  %v1065_v25 = vsel %vm405_vm1, %v1043_v37, %v1064_v52 }
  0xbd   : > { %v677_v56 = vsel %vm412_vm5, %v671_v61, 0.0  ;;  %v1075_v55 = vsel %vm975_vm3, %v1069_v60, 0.0  ;;  %v1103_v28 = vrot.slane %v5037_v0, %v4733_v2  ;;  %vm1289_vm7 = vcmask 259074  }
  0xbe   : > { %678 = vadd.xlane.f32.xlu0 %v677_v56  ;;  %1076 = vadd.xlane.f32.xlu1 %v1075_v55  ;;  %v1066_v21 = vsel %vm968_vm2, %v1047_v16, %v1065_v25  ;;  %v1107_v35 = vrot.slane %v5044_v50, %v4733_v2  ;;  %v1111_v34 = vrot.slane %v5047_v33, %v4733_v2  ;;  %v5165_v12 = vsub.s32 3, %v4730_v1 }
  0xbf   : > { %v1072_v42 = vsel %vm975_vm3, %v1066_v21, 0.0  ;;  %v1115_v63 = vsel %vm403_vm0, %v1103_v28, %v1099_v27  ;;  %v1083_v0 = vrot.slane %v5062_v41, %v4733_v2  ;;  %v1087_v30 = vrot.slane %v5072_v40, %v4733_v2 }
  0xc0   : > { %v1116_v31 = vsel %vm405_vm1, %v1107_v35, %v1115_v63  ;;  %v1091_v50 = vrot.slane %v5083_v38, %v4733_v2  ;;  %v1095_v33 = vrot.slane %v5086_v39, %v4733_v2  ;;  %v8008_v32 = vrot.slane %v4742_v5, 6 }
  0xc1   : > { %v1117_v36 = vsel %vm968_vm2, %v1111_v34, %v1116_v31  ;;  %v1112_v41 = vsel %vm403_vm0, %v1087_v30, %v1083_v0  ;;  %v8009_v40 = vrot.slane %v4763_v11, 6  ;;  %v8010_v38 = vrot.slane %v4759_v10, 6 }
  0xc2   : > { %v5181_v26 = vmul.f32 %v8008_v32, %v4736_v3  ;;  %1073 = vadd.xlane.f32.xlu0 %v1072_v42  ;;  %v1123_v39 = vsel %vm975_vm3, %v1117_v36, 0.0  ;;  %v1113_v61 = vsel %vm405_vm1, %v1091_v50, %v1112_v41  ;;  %v8011_v60 = vrot.slane %v4777_v15, 6 }
  0xc3   : > { %v5188_v37 = vmul.f32 %v8009_v40, %v4752_v8  ;;  %v5193_v16 = vmul.f32 %v8010_v38, %v4739_v4  ;;  %1124 = vadd.xlane.f32.xlu1 %v1123_v39  ;;  %v1114_v56 = vsel %vm968_vm2, %v1095_v33, %v1113_v61  ;;  %v8012_v28 = vrot.slane %v4792_v19, 6 }
  0xc4   : > { %v5200_v52 = vmul.f32 %v8011_v60, %v4756_v9  ;;  %v1267_v27 = vrot.slane %v5181_v26, %v4748_v7  ;;  %v1120_v35 = vsel %vm975_vm3, %v1114_v56, 0.0  ;;  %v8013_v42 = vrot.slane %v4805_v23, 6 }
  0xc5   : > { %v1271_v55 = vrot.slane %v5188_v37, %v4748_v7  ;;  %v1275_v25 = vrot.slane %v5193_v16, %v4748_v7  ;;  %v5212_v21 = vmul.f32 %v8012_v28, %v4770_v13  ;;  %v8014_v0 = vrot.slane %v4795_v20, 6 }
  0xc6   : > { %v1279_v34 = vrot.slane %v5200_v52, %v4748_v7  ;;  %v5220_v63 = vmul.f32 %v8013_v42, %v4785_v17  ;;  %v8015_v50 = vrot.slane %v4809_v24, 6  ;;  %v1317_v36 = vrot.slane %v4854_v43, %v4748_v7  ;;  %1121 = vadd.xlane.f32.xlu0 %v1120_v35 }
  0xc7   : > { %v5225_v30 = vmul.f32 %v8014_v0, %v4773_v14  ;;  %v1284_v31 = vsel %vm405_vm1, %v1271_v55, %v1267_v27  ;;  %v1251_v32 = vrot.slane %v5212_v21, %v4748_v7  ;;  %v1321_v39 = vrot.slane %v4859_v44, %v4748_v7 }
  0xc8   : > { %v5231_v33 = vmul.f32 %v8015_v50, %v4789_v18  ;;  %v1285_v41 = vsel %vm968_vm2, %v1275_v25, %v1284_v31  ;;  %v1255_v40 = vrot.slane %v5220_v63, %v4748_v7  ;;  %vm1596_vm8 = vcmask 1046534  }
  0xc9   : > { %v1259_v38 = vrot.slane %v5225_v30, %v4748_v7  ;;  %v1286_v61 = vsel %vm1282_vm6, %v1279_v34, %v1285_v41  ;;  %v1325_v27 = vrot.slane %v4866_v47, %v4748_v7  ;;  %v1329_v56 = vrot.slane %v4875_v51, %v4748_v7 }
  0xca   : > { %v1263_v60 = vrot.slane %v5231_v33, %v4748_v7  ;;  %vm1603_vm9 = vcmask 260099   ;;  %v1293_v55 = vsel %vm1289_vm7, %v1286_v61, 0.0  ;;  %v1280_v25 = vsel %vm405_vm1, %v1255_v40, %v1251_v32 }
  0xcb   : > { %v1333_v28 = vsel %vm405_vm1, %v1321_v39, %v1317_v36  ;;  %v1301_v35 = vrot.slane %v4984_v45, %v4748_v7  ;;  %1294 = vadd.xlane.f32.xlu1 %v1293_v55  ;;  %v1281_v34 = vsel %vm968_vm2, %v1259_v38, %v1280_v25  ;;  %v1305_v0 = vrot.slane %v4994_v57, %v4748_v7 }
  0xcc   : > { %v1334_v42 = vsel %vm968_vm2, %v1325_v27, %v1333_v28  ;;  %v1309_v31 = vrot.slane %v4999_v58, %v4748_v7  ;;  %v1283_v50 = vsel %vm1282_vm6, %v1263_v60, %v1281_v34  ;;  %v1313_v36 = vrot.slane %v5005_v29, %v4748_v7 }
  0xcd   : > { %v1335_v32 = vsel %vm1282_vm6, %v1329_v56, %v1334_v42  ;;  %v8016_v41 = vrot.slane %v4742_v5, 5  ;;  %v1290_v38 = vsel %vm1289_vm7, %v1283_v50, 0.0  ;;  %v1330_v61 = vsel %vm405_vm1, %v1305_v0, %v1301_v35 }
  0xce   : > { %v1341_v39 = vsel %vm1289_vm7, %v1335_v32, 0.0  ;;  %v8017_v27 = vrot.slane %v4763_v11, 5  ;;  %1291 = vadd.xlane.f32.xlu0 %v1290_v38  ;;  %v1331_v60 = vsel %vm968_vm2, %v1309_v31, %v1330_v61  ;;  %v8018_v56 = vrot.slane %v4759_v10, 5 }
  0xcf   : > { %v1550_v40 = vmul.f32 %v8016_v41, %v4736_v3  ;;  %v8019_v28 = vrot.slane %v4777_v15, 5  ;;  %1342 = vadd.xlane.f32.xlu1 %v1341_v39  ;;  %v1332_v35 = vsel %vm1282_vm6, %v1313_v36, %v1331_v60  ;;  %v8021_v31 = vrot.slane %v4805_v23, 5 }
  0xd0   : > { %v1551_v55 = vmul.f32 %v8017_v27, %v4752_v8  ;;  %v1552_v25 = vmul.f32 %v8018_v56, %v4739_v4  ;;  %v8020_v8 = vrot.slane %v4792_v19, 5  ;;  %v1338_v32 = vsel %vm1289_vm7, %v1332_v35, 0.0 }
  0xd1   : > { %v1553_v34 = vmul.f32 %v8019_v28, %v4756_v9  ;;  %v1581_v42 = vrot.slane %v1550_v40, %v5165_v12  ;;  %v1547_v50 = vmul.f32 %v8021_v31, %v4785_v17  ;;  %v8022_v41 = vrot.slane %v4795_v20, 5 }
  0xd2   : > { %v1585_v0 = vrot.slane %v1551_v55, %v5165_v12  ;;  %v1546_v11 = vmul.f32 %v8020_v8, %v4770_v13  ;;  %v1589_v15 = vrot.slane %v1552_v25, %v5165_v12  ;;  %v8023_v38 = vrot.slane %v4809_v24, 5  ;;  %1339 = vadd.xlane.f32.xlu0 %v1338_v32 }
  0xd3   : > { %v1593_v9 = vrot.slane %v1553_v34, %v5165_v12  ;;  %v1548_v36 = vmul.f32 %v8022_v41, %v4773_v14  ;;  %v1569_v17 = vrot.slane %v1547_v50, %v5165_v12  ;;  %v1631_v55 = vrot.slane %v5181_v26, %v5165_v12  ;;  %v8024_v41 = vld [vmem:[#allocation19_spill] sm:$0xff] }
  0xd4   : > { %v1598_v40 = vsel %vm968_vm2, %v1585_v0, %v1581_v42  ;;  %v1549_v39 = vmul.f32 %v8023_v38, %v4789_v18  ;;  %v1565_v61 = vrot.slane %v1546_v11, %v5165_v12  ;;  %v1635_v60 = vrot.slane %v5188_v37, %v5165_v12 }
  0xd5   : > { %v1599_v23 = vsel %vm1282_vm6, %v1589_v15, %v1598_v40  ;;  %v1573_v27 = vrot.slane %v1548_v36, %v5165_v12  ;;  %v1639_v25 = vrot.slane %v5193_v16, %v5165_v12  ;;  %v1643_v42 = vrot.slane %v5200_v52, %v5165_v12 }
  0xd6   : > { %v1600_v56 = vsel %vm1596_vm8, %v1593_v9, %v1599_v23  ;;  %v1577_v24 = vrot.slane %v1549_v39, %v5165_v12  ;;  %v1594_v18 = vsel %vm968_vm2, %v1569_v17, %v1565_v61  ;;  %v1647_v35 = vsel %vm968_vm2, %v1635_v60, %v1631_v55  ;;  %v8026_v39 = vld [vmem:[#allocation20_spill] sm:$0xff]  ;;  %v8027_v17 = vld [vmem:[#allocation22_spill] sm:$0xff] }
  0xd7   : > { %v1607_v28 = vsel %vm1603_vm9, %v1600_v56, 0.0  ;;  %v1595_v34 = vsel %vm1282_vm6, %v1573_v27, %v1594_v18  ;;  %v1648_v0 = vsel %vm1282_vm6, %v1639_v25, %v1647_v35  ;;  %v1615_v8 = vrot.slane %v5212_v21, %v5165_v12  ;;  %v8029_v56 = vld [vmem:[#allocation25_spill] sm:$0xff]  ;;  %v8030_v18 = vld [vmem:[#allocation24_spill] sm:$0xff] }
  0xd8   : > { %1608 = vadd.xlane.f32.xlu1 %v1607_v28  ;;  %v1597_v37 = vsel %vm1596_vm8, %v1577_v24, %v1595_v34  ;;  %v1619_v11 = vrot.slane %v5220_v63, %v5165_v12  ;;  %v1649_v50 = vsel %vm1596_vm8, %v1643_v42, %v1648_v0  ;;  %v1623_v52 = vrot.slane %v5225_v30, %v5165_v12  ;;  %v8025_v63 = vld [vmem:[#allocation21_spill] sm:$0xff]  ;;  %v8031_v42 = vld [vmem:[#allocation26_spill] sm:$0xff] }
  0xd9   : > { %v1604_v31 = vsel %vm1603_vm9, %v1597_v37, 0.0  ;;  %v1627_v32 = vrot.slane %v5231_v33, %v5165_v12  ;;  %v1655_v15 = vsel %vm1603_vm9, %v1649_v50, 0.0  ;;  %v1365_v36 = vrot.slane %v8024_v41, %v4748_v7  ;;  %v8028_v33 = vld [vmem:[#allocation23_spill] sm:$0xff] }
  0xda   : > { %1605 = vadd.xlane.f32.xlu0 %v1604_v31  ;;  %v1644_v9 = vsel %vm968_vm2, %v1619_v11, %v1615_v8  ;;  %v1369_v40 = vrot.slane %v8025_v63, %v4748_v7  ;;  %v1373_v61 = vrot.slane %v8026_v39, %v4748_v7  ;;  %v1377_v23 = vrot.slane %v8027_v17, %v4748_v7 }
  0xdb   : > { %v1645_v38 = vsel %vm1282_vm6, %v1623_v52, %v1644_v9  ;;  %v1349_v27 = vrot.slane %v8028_v33, %v4748_v7  ;;  %v1353_v24 = vrot.slane %v8029_v56, %v4748_v7  ;;  %v1357_v25 = vrot.slane %v8030_v18, %v4748_v7 }
  0xdc   : > { %1656 = vadd.xlane.f32.xlu1 %v1655_v15  ;;  %v1646_v55 = vsel %vm1596_vm8, %v1627_v32, %v1645_v38  ;;  %v1381_v60 = vsel %vm405_vm1, %v1369_v40, %v1365_v36  ;;  %v1361_v35 = vrot.slane %v8031_v42, %v4748_v7  ;;  %v1679_v37 = vrot.slane %v4854_v43, %v5165_v12 }
  0xdd   : > { %v1652_v28 = vsel %vm1603_vm9, %v1646_v55, 0.0  ;;  %v1382_v34 = vsel %vm968_vm2, %v1373_v61, %v1381_v60  ;;  %v1378_v8 = vsel %vm405_vm1, %v1353_v24, %v1349_v27  ;;  %v1683_v11 = vrot.slane %v4859_v44, %v5165_v12 }
  0xde   : > { %1653 = vadd.xlane.f32.xlu0 %v1652_v28  ;;  %v1383_v0 = vsel %vm1282_vm6, %v1377_v23, %v1382_v34  ;;  %v1687_v31 = vrot.slane %v4866_v47, %v5165_v12  ;;  %v1379_v52 = vsel %vm968_vm2, %v1357_v25, %v1378_v8  ;;  %v1691_v32 = vrot.slane %v4875_v51, %v5165_v12 }
  0xdf   : > { %v1389_v50 = vsel %vm1289_vm7, %v1383_v0, 0.0  ;;  %v1663_v43 = vrot.slane %v4984_v45, %v5165_v12  ;;  %v1380_v15 = vsel %vm1282_vm6, %v1361_v35, %v1379_v52  ;;  %v1695_v9 = vsel %vm968_vm2, %v1683_v11, %v1679_v37 }
  0xe0   : > { %1390 = vadd.xlane.f32.xlu1 %v1389_v50  ;;  %v1667_v44 = vrot.slane %v4994_v57, %v5165_v12  ;;  %v1671_v47 = vrot.slane %v4999_v58, %v5165_v12  ;;  %v1386_v36 = vsel %vm1289_vm7, %v1380_v15, 0.0  ;;  %v1696_v40 = vsel %vm1282_vm6, %v1687_v31, %v1695_v9 }
  0xe1   : > { %v1675_v51 = vrot.slane %v5005_v29, %v5165_v12  ;;  %v1413_v45 = vrot.slane %v4955_v46, %v4748_v7  ;;  %v1697_v38 = vsel %vm1596_vm8, %v1691_v32, %v1696_v40  ;;  %v1417_v57 = vrot.slane %v4965_v59, %v4748_v7 }
  0xe2   : > { %1387 = vadd.xlane.f32.xlu0 %v1386_v36  ;;  %v1692_v61 = vsel %vm968_vm2, %v1667_v44, %v1663_v43  ;;  %v1421_v58 = vrot.slane %v4971_v62, %v4748_v7  ;;  %vm2569_vm10 = vcmask 257026   ;;  %v1703_v23 = vsel %vm1603_vm9, %v1697_v38, 0.0 }
  0xe3   : > { %v1693_v27 = vsel %vm1282_vm6, %v1671_v47, %v1692_v61  ;;  %v1425_v29 = vrot.slane %v4974_v22, %v4748_v7  ;;  %v1397_v46 = vrot.slane %v4914_v48, %v4748_v7  ;;  %v1429_v60 = vsel %vm405_vm1, %v1417_v57, %v1413_v45 }
  0xe4   : > { %1704 = vadd.xlane.f32.xlu1 %v1703_v23  ;;  %v1694_v55 = vsel %vm1596_vm8, %v1675_v51, %v1693_v27  ;;  %v1401_v59 = vrot.slane %v4917_v49, %v4748_v7  ;;  %v1405_v62 = vrot.slane %v4923_v53, %v4748_v7  ;;  %v1430_v25 = vsel %vm968_vm2, %v1421_v58, %v1429_v60 }
  0xe5   : > { %v1700_v24 = vsel %vm1603_vm9, %v1694_v55, 0.0  ;;  %v1409_v22 = vrot.slane %v4926_v54, %v4748_v7  ;;  %v1727_v48 = vrot.slane %v8024_v41, %v5165_v12  ;;  %v1431_v28 = vsel %vm1282_vm6, %v1425_v29, %v1430_v25 }
  0xe6   : > { %1701 = vadd.xlane.f32.xlu0 %v1700_v24  ;;  %v1426_v34 = vsel %vm405_vm1, %v1401_v59, %v1397_v46  ;;  %v1731_v49 = vrot.slane %v8025_v63, %v5165_v12  ;;  %v1735_v53 = vrot.slane %v8026_v39, %v5165_v12  ;;  %v1437_v35 = vsel %vm1289_vm7, %v1431_v28, 0.0 }
  0xe7   : > { %v1427_v37 = vsel %vm968_vm2, %v1405_v62, %v1426_v34  ;;  %v1739_v54 = vrot.slane %v8027_v17, %v5165_v12  ;;  %v1711_v0 = vrot.slane %v8028_v33, %v5165_v12  ;;  %v1715_v63 = vrot.slane %v8029_v56, %v5165_v12 }
  0xe8   : > { %1438 = vadd.xlane.f32.xlu1 %v1437_v35  ;;  %v1428_v8 = vsel %vm1282_vm6, %v1409_v22, %v1427_v37  ;;  %v1743_v11 = vsel %vm968_vm2, %v1731_v49, %v1727_v48  ;;  %v1719_v31 = vrot.slane %v8030_v18, %v5165_v12  ;;  %v1723_v17 = vrot.slane %v8031_v42, %v5165_v12 }
  0xe9   : > { %v1434_v50 = vsel %vm1289_vm7, %v1428_v8, 0.0  ;;  %v1744_v52 = vsel %vm1282_vm6, %v1735_v53, %v1743_v11  ;;  %v5427_v32 = vrot.slane %v5193_v16, 7  ;;  %v1740_v15 = vsel %vm968_vm2, %v1715_v63, %v1711_v0 }
  0xea   : > { %1435 = vadd.xlane.f32.xlu0 %v1434_v50  ;;  %v1745_v43 = vsel %vm1596_vm8, %v1739_v54, %v1744_v52  ;;  %v5432_v56 = vrot.slane %v5225_v30, 7  ;;  %v5435_v9 = vrot.slane %v8026_v39, 7  ;;  %v1741_v47 = vsel %vm1282_vm6, %v1719_v31, %v1740_v15 }
  0xeb   : > { %v1751_v44 = vsel %vm1603_vm9, %v1745_v43, 0.0  ;;  %v2566_v16 = vsel %vm405_vm1, %v5427_v32, %v5181_v26  ;;  %v1742_v42 = vsel %vm1596_vm8, %v1723_v17, %v1741_v47  ;;  %v5447_v30 = vrot.slane %v8030_v18, 7 }
  0xec   : > { %1752 = vadd.xlane.f32.xlu1 %v1751_v44  ;;  %v2565_v36 = vsel %vm405_vm1, %v5432_v56, %v5212_v21  ;;  %v1748_v39 = vsel %vm1603_vm9, %v1742_v42, 0.0  ;;  %v2573_v40 = vsel %vm2569_vm10, %v2566_v16, 0.0  ;;  %v2378_v51 = vrot.slane %v4742_v5, 2 }
  0xed   : > { %v2379_v45 = vrot.slane %v4759_v10, 2  ;;  %v2579_v38 = vsel %vm405_vm1, %v5435_v9, %v8024_v41  ;;  %v2376_v61 = vrot.slane %v4792_v19, 2  ;;  %v2377_v57 = vrot.slane %v4795_v20, 2 }
  0xee   : > { %1749 = vadd.xlane.f32.xlu0 %v1748_v39  ;;  %v2408_v18 = vrot.slane %v4742_v5, 4  ;;  %v2570_v58 = vsel %vm2569_vm10, %v2565_v36, 0.0  ;;  %v5461_v23 = vmul.f32 %v2378_v51, %v4736_v3  ;;  %v2409_v29 = vrot.slane %v4759_v10, 4 }
  0xef   : > { %v2387_v27 = vmul.f32 %v2379_v45, %v4739_v4  ;;  %v2578_v46 = vsel %vm405_vm1, %v5447_v30, %v8028_v33  ;;  %v5469_v55 = vmul.f32 %v2376_v61, %v4770_v13  ;;  %v2385_v60 = vmul.f32 %v2377_v57, %v4773_v14 }
  0xf0   : > { %2574 = vadd.xlane.f32.xlu1 %v2573_v40  ;;  %v2406_v5 = vrot.slane %v4792_v19, 4  ;;  %v2585_v59 = vsel %vm2569_vm10, %v2579_v38, 0.0  ;;  %v2417_v24 = vmul.f32 %v2409_v29, %v4739_v4  ;;  %v2407_v10 = vrot.slane %v4795_v20, 4 }
  0xf1   : > { %v5474_v62 = vrot.slane %v2387_v27, 7  ;;  %v5478_v25 = vrot.slane %v2385_v60, 7  ;;  %v5481_v22 = vmul.f32 %v2408_v18, %v4736_v3  ;;  %v2582_v48 = vsel %vm2569_vm10, %v2578_v46, 0.0 }
  0xf2   : > { %2571 = vadd.xlane.f32.xlu0 %v2570_v58  ;;  %v5487_v28 = vrot.slane %v2417_v24, 7  ;;  %v2415_v34 = vmul.f32 %v2407_v10, %v4773_v14  ;;  %v5494_v20 = vmul.f32 %v2406_v5, %v4770_v13  ;;  %vm2698_vm11 = vcmask 259076  }
  0xf3   : > { %v2591_v19 = vsel %vm405_vm1, %v5474_v62, %v5461_v23  ;;  %v2590_v4 = vsel %vm405_vm1, %v5478_v25, %v5469_v55  ;;  %v2708_v37 = vsel %vm1282_vm6, %v5427_v32, %v5181_v26  ;;  %vm2823_vm12 = vcmask 1047559  }
  0xf4   : > { %2586 = vadd.xlane.f32.xlu1 %v2585_v59  ;;  %v2597_v3 = vsel %vm2569_vm10, %v2591_v19, 0.0  ;;  %v5497_v49 = vrot.slane %v2415_v34, 7  ;;  %v2695_v53 = vsel %vm1282_vm6, %v5487_v28, %v5481_v22  ;;  %v2594_v14 = vsel %vm2569_vm10, %v2590_v4, 0.0 }
  0xf5   : > { %v2702_v13 = vsel %vm2698_vm11, %v2695_v53, 0.0  ;;  %v2707_v0 = vsel %vm1282_vm6, %v5432_v56, %v5212_v21  ;;  %v2714_v8 = vsel %vm2698_vm11, %v2708_v37, 0.0  ;;  %v2825_v11 = vsel %vm2823_vm12, %v5474_v62, %v5461_v23  ;;  %v5607_v37 = vld [vmem:[%s4716_s8 + $0x18] sm:$0xff] }
  0xf6   : > { %2583 = vadd.xlane.f32.xlu0 %v2582_v48  ;;  %v2694_v35 = vsel %vm1282_vm6, %v5497_v49, %v5494_v20  ;;  %vm2828_vm13 = vcmask 261126   ;;  %v2711_v63 = vsel %vm2698_vm11, %v2707_v0, 0.0  ;;  %v2824_v31 = vsel %vm2823_vm12, %v5478_v25, %v5469_v55 }
  0xf7   : > { %v2699_v54 = vsel %vm2698_vm11, %v2694_v35, 0.0  ;;  %v2832_v50 = vsel %vm2828_vm13, %v2825_v11, 0.0  ;;  %v2838_v52 = vsel %vm2823_vm12, %v5487_v28, %v5481_v22  ;;  %v2829_v17 = vsel %vm2828_vm13, %v2824_v31, 0.0  ;;  %v343_v31 = vld [vmem:[%s5626_s30 + $0x10] sm:$0xff] }
  0xf8   : > { %2598 = vadd.xlane.f32.xlu1 %v2597_v3  ;;  %v2837_v43 = vsel %vm2823_vm12, %v5497_v49, %v5494_v20  ;;  %v2844_v15 = vsel %vm2828_vm13, %v2838_v52, 0.0  ;;  %v2360_v44 = vsel %vm401_vm4, %v5435_v9, %v8024_v41  ;;  %vm2363_vm14 = vcmask 254976  }
  0xf9   : > { %v2841_v47 = vsel %vm2828_vm13, %v2837_v43, 0.0  ;;  %v2358_v16 = vsel %vm401_vm4, %v5447_v30, %v8028_v33  ;;  %v2367_v42 = vsel %vm2363_vm14, %v2360_v44, 0.0  ;;  %v2395_v36 = vsel %vm401_vm4, %v5474_v62, %v5461_v23 }
  0xfa   : > { %2595 = vadd.xlane.f32.xlu0 %v2594_v14  ;;  %v2364_v39 = vsel %vm2363_vm14, %v2358_v16, 0.0  ;;  %v2393_v40 = vsel %vm401_vm4, %v5478_v25, %v5469_v55  ;;  %v2401_v51 = vsel %vm2363_vm14, %v2395_v36, 0.0  ;;  %v2603_v45 = vsel %vm405_vm1, %v5487_v28, %v5481_v22  ;;  %v5600_v14 = vld [vmem:[%s4716_s8 + $0x10] sm:$0xff] }
  0xfb   : > { %v2398_v38 = vsel %vm2363_vm14, %v2393_v40, 0.0  ;;  %v2602_v61 = vsel %vm405_vm1, %v5497_v49, %v5494_v20  ;;  %v2609_v57 = vsel %vm2569_vm10, %v2603_v45, 0.0  ;;  %v2720_v18 = vsel %vm1282_vm6, %v5435_v9, %v8024_v41 }
  0xfc   : > { %2703 = vadd.xlane.f32.xlu1 %v2702_v13  ;;  %v2606_v58 = vsel %vm2569_vm10, %v2602_v61, 0.0  ;;  %v2719_v27 = vsel %vm1282_vm6, %v5447_v30, %v8028_v33  ;;  %v2726_v29 = vsel %vm2698_vm11, %v2720_v18, 0.0  ;;  %v2850_v46 = vsel %vm2823_vm12, %v5427_v32, %v5181_v26 }
  0xfd   : > { %v2723_v60 = vsel %vm2698_vm11, %v2719_v27, 0.0  ;;  %v2849_v5 = vsel %vm2823_vm12, %v5432_v56, %v5212_v21  ;;  %v2856_v59 = vsel %vm2828_vm13, %v2850_v46, 0.0  ;;  %v2425_v24 = vsel %vm401_vm4, %v5487_v28, %v5481_v22  ;;  %v341_v46 = vld [vmem:[%s5626_s30] sm:$0xff] }
  0xfe   : > { %2700 = vadd.xlane.f32.xlu0 %v2699_v54  ;;  %v2853_v10 = vsel %vm2828_vm13, %v2849_v5, 0.0  ;;  %v2423_v48 = vsel %vm401_vm4, %v5497_v49, %v5494_v20  ;;  %v2431_v19 = vsel %vm2363_vm14, %v2425_v24, 0.0  ;;  %v2732_v34 = vsel %vm1282_vm6, %v5474_v62, %v5461_v23  ;;  %v5615_v54 = vld [vmem:[%s4724_s22 + $0x18] sm:$0xff] }
  0xff   : > { %v2428_v4 = vsel %vm2363_vm14, %v2423_v48, 0.0  ;;  %v2731_v22 = vsel %vm1282_vm6, %v5478_v25, %v5469_v55  ;;  %v2738_v28 = vsel %vm2698_vm11, %v2732_v34, 0.0  ;;  %v2862_v20 = vsel %vm2823_vm12, %v5435_v9, %v8024_v41  ;;  %v3264_v25 = vld [vmem:[%s4724_s22 + $0x10] sm:$0xff]  ;;  %v5603_v41 = vld [vmem:[%s4716_s8] sm:$0xff] }
 0x100   : > { %2715 = vadd.xlane.f32.xlu1 %v2714_v8  ;;  %v4459_v3 = vmov 1966171168   ;;  %v2735_v62 = vsel %vm2698_vm11, %v2731_v22, 0.0  ;;  %v2861_v49 = vsel %vm2823_vm12, %v5447_v30, %v8028_v33  ;;  %v2455_v55 = vsel %vm401_vm4, %v5427_v32, %v5181_v26  ;;  %v3262_v9 = vld [vmem:[%s4724_s22] sm:$0xff]  ;;  %v5610_v33 = vld [vmem:[%s4716_s8 + $0x8] sm:$0xff] }
 0x101   : > { %v1855_v23 = vunpack.c.l.s4 %v4459_v3  ;;  %v2868_v53 = vsel %vm2828_vm13, %v2862_v20, 0.0  ;;  %v3284_v35 = vrot.slane %v3264_v25, 4  ;;  %v3283_v13 = vrot.slane %v3262_v9, 4 }
 0x102   : > { %2712 = vadd.xlane.f32.xlu0 %v2711_v63  ;;  %v2865_v26 = vsel %vm2828_vm13, %v2861_v49, 0.0  ;;  %v2461_v32 = vsel %vm2363_vm14, %v2455_v55, 0.0  ;;  %v2453_v0 = vsel %vm401_vm4, %v5432_v56, %v5212_v21  ;;  %v3271_v8 = vmul.f32 %v3264_v25, %v5600_v14  ;;  %v5623_v63 = vld [vmem:[%s4724_s22 + $0x8] sm:$0xff] }
 0x103   : > { %v1856_v30 = vunpack.c.0.s8 %v1855_v23  ;;  %vm3272_vm15 = vcmask 253952   ;;  %v3270_v11 = vmul.f32 %v3262_v9, %v5603_v41  ;;  %v5631_v52 = vmul.f32 %v3264_v25, %v5607_v37 }
 0x104   : > { %2833 = vadd.xlane.f32.xlu1 %v2832_v50  ;;  %v3288_v50 = vmul.f32 %v3284_v35, %v5600_v14  ;;  %v3508_v21 = vmul.f32 %v3284_v35, %v5607_v37  ;;  %v3287_v56 = vmul.f32 %v3283_v13, %v5603_v41  ;;  %v3507_v43 = vmul.f32 %v3283_v13, %v5610_v33 }
 0x105   : > { %v5644_v44 = vsub.s32 %v1856_v30, %v4730_v1  ;;  %v5649_v16 = vmul.f32 %v5623_v63, %v5603_v41  ;;  %v3276_v36 = vsel %vm3272_vm15, %v3271_v8, 0.0  ;;  %v5655_v40 = vmul.f32 %v5615_v54, %v5607_v37 }
 0x106   : > { %2830 = vadd.xlane.f32.xlu0 %v2829_v17  ;;  %v5634_v17 = vmul.f32 %v3262_v9, %v5610_v33  ;;  %v5659_v1 = vmul.f32 %v5623_v63, %v5610_v33  ;;  %v3292_v45 = vsel %vm3272_vm15, %v3288_v50, 0.0  ;;  %v5676_v27 = vsel %vm3272_vm15, %v3507_v43, 0.0 }
 0x107   : > { %8032 = vst [vmem:[#allocation19_spill] sm:$0xff] %v5644_v44  ;;  %8033 = vst [vmem:[#allocation21_spill] sm:$0xff] %v5655_v40  ;;  %vm3400_vm3 = vcmask 258052   ;;  %v349_v20 = vcombine.high %v341_v46, %v341_v46  ;;  %v5739_v35 = vrot.slane %v343_v31, %v4748_v7  ;;  %vm2331_vm5 = vcmask 261120  }
 0x108   : > { %2845 = vadd.xlane.f32.xlu1 %v2844_v15  ;;  %v5641_v15 = vmul.f32 %v5615_v54, %v5600_v14  ;;  %8034 = vst [vmem:[#allocation20_spill] sm:$0xff] %v5659_v1  ;;  %v5667_v61 = vsel %vm3272_vm15, %v5634_v17, 0.0  ;;  %v5699_v48 = vsel %vm3272_vm15, %v5659_v1, 0.0  ;;  %v5711_v22 = vsel %vm3400_vm3, %v3287_v56, 0.0 }
 0x109   : > { %v5719_v23 = vsel %vm3400_vm3, %v3270_v11, 0.0  ;;  %v5725_v49 = vsel %vm3400_vm3, %v3507_v43, 0.0  ;;  %vm3235_vm7 = vcmask 1045504  }
 0x10a   : > { %2842 = vadd.xlane.f32.xlu0 %v2841_v47  ;;  %v2458_v47 = vsel %vm2363_vm14, %v2453_v0, 0.0  ;;  %8038 = vst [vmem:[#allocation24_spill] sm:$0xff] %v5719_v23  ;;  %8040 = vst [vmem:[#allocation27_spill] sm:$0xff] %v5725_v49  ;;  %v5816_v23 = vrot.slane %v349_v20, %v5165_v12 }
 0x10c   : > { %2368 = vadd.xlane.f32.xlu1 %v2367_v42  ;;  %v351_v42 = vcombine.high %v343_v31, %v343_v31  ;;  %8044 = vst [vmem:[#allocation31_spill] sm:$0xff] %v5816_v23 }
 0x10e   : > { %2365 = vadd.xlane.f32.xlu0 %v2364_v39  ;;  %v3273_v39 = vsel %vm3272_vm15, %v3270_v11, 0.0  ;;  %v5691_v24 = vrot.slane %v351_v42, %v4745_v6  ;;  %v5705_v34 = vrot.slane %v351_v42, %v4733_v2  ;;  %v5742_v13 = vrot.slane %v351_v42, %v4748_v7 }
 0x10f   : > { %v5754_v0 = vrot.slane %v351_v42, %v5165_v12  ;;  %v5780_v42 = vrot.slane %v349_v20, %v4733_v2 }
 0x110   : > { %2402 = vadd.xlane.f32.xlu1 %v2401_v51  ;;  %v344_v51 = vld [vmem:[%s5626_s30 + $0x18] sm:$0xff] }
 0x111   : > { %v352_v5 = vcombine.high %v344_v51, %v344_v51  ;;  %v5728_v55 = vrot.slane %v344_v51, %v4745_v6  ;;  %v5736_v9 = vrot.slane %v344_v51, %v4733_v2 }
 0x112   : > { %2399 = vadd.xlane.f32.xlu0 %v2398_v38  ;;  %v3502_v38 = vsel %vm3272_vm15, %v5631_v52, 0.0 }
 0x113   : > { %8041 = vst [vmem:[#allocation28_spill] sm:$0xff] %v5728_v55  ;;  %v5745_v30 = vrot.slane %v352_v5, %v4745_v6  ;;  %v5758_v11 = vrot.slane %v352_v5, %v4733_v2  ;;  %v5772_v43 = vrot.slane %v352_v5, %v4748_v7 }
 0x114   : > { %2610 = vadd.xlane.f32.xlu1 %v2609_v57  ;;  %v5670_v57 = vsel %vm3272_vm15, %v3508_v21, 0.0 }
 0x116   : > { %2607 = vadd.xlane.f32.xlu0 %v2606_v58  ;;  %v3289_v58 = vsel %vm3272_vm15, %v3287_v56, 0.0  ;;  %v5767_v56 = vrot.slane %v349_v20, %v4745_v6 }
 0x118   : > { %2727 = vadd.xlane.f32.xlu1 %v2726_v29  ;;  %v5680_v29 = vsel %vm3272_vm15, %v5641_v15, 0.0 }
 0x11a   : > { %2724 = vadd.xlane.f32.xlu0 %v2723_v60  ;;  %v5685_v60 = vsel %vm3272_vm15, %v5649_v16, 0.0 }
 0x11c   : > { %2857 = vadd.xlane.f32.xlu1 %v2856_v59  ;;  %v5688_v59 = vrot.slane %v343_v31, %v4745_v6 }
 0x11e   : > { %2854 = vadd.xlane.f32.xlu0 %v2853_v10  ;;  %v5695_v10 = vsel %vm3272_vm15, %v5655_v40, 0.0 }
 0x11f   : > { %v5672_v18 = vpop.xlane.xlu1 %1028 }
 0x120   : > { %2432 = vadd.xlane.f32.xlu1 %v2431_v19  ;;  %8035 = vst [vmem:[#allocation22_spill] sm:$0xff] %v5672_v18  ;;  %v5702_v19 = vrot.slane %v343_v31, %v4733_v2  ;;  %v5802_v18 = vrot.slane %v349_v20, %v4748_v7 }
 0x121   : > { %v5716_v3 = vpop.xlane.xlu0 %414 }
 0x122   : > { %2429 = vadd.xlane.f32.xlu0 %v2428_v4  ;;  %v5708_v4 = vsel %vm3400_vm3, %v3288_v50, 0.0  ;;  %8037 = vst [vmem:[#allocation25_spill] sm:$0xff] %v5716_v3  ;;  %v5761_v50 = vrot.slane %v344_v51, %v4748_v7  ;;  %8043 = vst [vmem:[#allocation30_spill] sm:$0xff] %v5802_v18  ;;  %v5826_v3 = vrot.slane %v352_v5, %v5165_v12 }
 0x124   : > { %2739 = vadd.xlane.f32.xlu1 %v2738_v28  ;;  %v5714_v28 = vsel %vm3400_vm3, %v3271_v8, 0.0  ;;  %v5730_v25 = vpop.xlane.xlu1 %980  ;;  %v342_v8 = vld [vmem:[%s5626_s30 + $0x8] sm:$0xff] }
 0x125   : > { %8036 = vst [vmem:[#allocation23_spill] sm:$0xff] %v5714_v28  ;;  %8042 = vst [vmem:[#allocation29_spill] sm:$0xff] %v5730_v25  ;;  %v5796_v49 = vrot.slane %v342_v8, %v4745_v6  ;;  %v5813_v25 = vrot.slane %v341_v46, %v5165_v12  ;;  %v5873_v28 = vstv %s5774_s10 }
 0x126   : > { %2736 = vadd.xlane.f32.xlu0 %v2735_v62  ;;  %v5722_v62 = vsel %vm3400_vm3, %v3508_v21, 0.0  ;;  %v5764_v21 = vrot.slane %v341_v46, %v4745_v6  ;;  %8052 = vst [vmem:[#allocation39_spill] sm:$0xff] %v5873_v28 }
 0x127   : > { %8039 = vst [vmem:[#allocation26_spill] sm:$0xff] %v5722_v62 }
 0x128   : > { %2869 = vadd.xlane.f32.xlu1 %v2868_v53  ;;  %v765_v53 = vsel %vm401_vm4, %v5691_v24, %v5688_v59 }
 0x12a   : > { %2866 = vadd.xlane.f32.xlu0 %v2865_v26  ;;  %v809_v26 = vsel %vm401_vm4, %v5705_v34, %v5702_v19 }
 0x12c   : > { %2462 = vadd.xlane.f32.xlu1 %v2461_v32  ;;  %v5751_v32 = vrot.slane %v343_v31, %v5165_v12  ;;  %v766_v31 = vsel %vm403_vm0, %v5728_v55, %v765_v53  ;;  %v5790_v53 = vpop.xlane.xlu0 %417 }
 0x12d   : > { %v5804_v62 = vpop.xlane.xlu1 %502  ;;  %v5821_v1 = vsel %vm405_vm1, %v5745_v30, %v766_v31 }
 0x12e   : > { %2459 = vadd.xlane.f32.xlu0 %v2458_v47  ;;  %v5777_v47 = vrot.slane %v341_v46, %v4733_v2  ;;  %v901_v44 = vsel %vm401_vm4, %v5754_v0, %v5751_v32  ;;  %8045 = vst [vmem:[#allocation32_spill] sm:$0xff] %v5821_v1 }
 0x130   : > { %3277 = vadd.xlane.f32.xlu1 %v3276_v36  ;;  %v810_v36 = vsel %vm403_vm0, %v5736_v9, %v809_v26  ;;  %v5799_v26 = vrot.slane %v341_v46, %v4748_v7  ;;  %v806_v46 = vsel %vm401_vm4, %v5780_v42, %v5777_v47 }
 0x131   : > { %v5833_v20 = vsel %vm405_vm1, %v5758_v11, %v810_v36 }
 0x132   : > { %3274 = vadd.xlane.f32.xlu0 %v3273_v39  ;;  %v855_v39 = vsel %vm401_vm4, %v5742_v13, %v5739_v35  ;;  %8046 = vst [vmem:[#allocation33_spill] sm:$0xff] %v5833_v20  ;;  %v852_v36 = vsel %vm401_vm4, %v5802_v18, %v5799_v26  ;;  %v5866_v20 = vpop.xlane.xlu0 %1025 }
 0x133   : > { %v856_v40 = vsel %vm403_vm0, %v5761_v50, %v855_v39  ;;  %v5841_v39 = vrot.slane %v342_v8, %v4748_v7 }
 0x134   : > { %3293 = vadd.xlane.f32.xlu1 %v3292_v45  ;;  %v5788_v45 = vrot.slane %v344_v51, %v5165_v12  ;;  %v762_v51 = vsel %vm401_vm4, %v5767_v56, %v5764_v21 }
 0x135   : > { %8047 = vst [vmem:[#allocation34_spill] sm:$0xff] %v5841_v39  ;;  %v763_v5 = vsel %vm403_vm0, %v5796_v49, %v762_v51  ;;  %v898_v51 = vsel %vm401_vm4, %v5816_v23, %v5813_v25 }
 0x136   : > { %3290 = vadd.xlane.f32.xlu0 %v3289_v58  ;;  %v350_v58 = vcombine.high %v342_v8, %v342_v8 }
 0x138   : > { %3503 = vadd.xlane.f32.xlu1 %v3502_v38  ;;  %v5810_v38 = vrot.slane %v342_v8, %v4733_v2  ;;  %v5838_v31 = vrot.slane %v350_v58, %v4745_v6  ;;  %v5847_v1 = vrot.slane %v350_v58, %v4733_v2  ;;  %v5857_v6 = vsel %vm405_vm1, %v5772_v43, %v856_v40 }
 0x139   : > { %8050 = vst [vmem:[#allocation37_spill] sm:$0xff] %v5857_v6  ;;  %v3310_v2 = vrot.slane %v5615_v54, 4  ;;  %v5876_v40 = vrot.slane %v350_v58, %v4748_v7  ;;  %v506_v6 = vpop.xlane.xlu1 %505  ;;  %v5897_v28 = vrot.slane %v350_v58, %v5165_v12 }
 0x13a   : > { %3500 = vadd.xlane.f32.xlu0 %v5667_v61  ;;  %v902_v61 = vsel %vm403_vm0, %v5788_v45, %v901_v44  ;;  %8048 = vst [vmem:[#allocation35_spill] sm:$0xff] %v5847_v1  ;;  %v5853_v44 = vrot.slane %v342_v8, %v5165_v12  ;;  %v5883_v54 = vsel %vm405_vm1, %v5838_v31, %v763_v5 }
 0x13b   : > { %v5870_v8 = vsel %vm405_vm1, %v5826_v3, %v902_v61  ;;  %8053 = vst [vmem:[#allocation40_spill] sm:$0xff] %v5876_v40  ;;  %8054 = vst [vmem:[#allocation41_spill] sm:$0xff] %v5883_v54  ;;  %v3309_v61 = vrot.slane %v5623_v63, 4  ;;  %v3314_v63 = vmul.f32 %v3310_v2, %v5600_v14  ;;  %v1215_v12 = vsel %vm403_vm0, %v5754_v0, %v5751_v32 }
 0x13c   : > { %3513 = vadd.xlane.f32.xlu1 %v5670_v57  ;;  %8049 = vst [vmem:[#allocation36_spill] sm:$0xff] %v5853_v44  ;;  %v807_v57 = vsel %vm403_vm0, %v5810_v38, %v806_v46  ;;  %8051 = vst [vmem:[#allocation38_spill] sm:$0xff] %v5870_v8  ;;  %v1175_v46 = vsel %vm403_vm0, %v5691_v24, %v5688_v59  ;;  %v1187_v8 = vsel %vm403_vm0, %v5705_v34, %v5702_v19 }
 0x13d   : > { %v5894_v7 = vsel %vm405_vm1, %v5847_v1, %v807_v57  ;;  %8056 = vst [vmem:[#allocation43_spill] sm:$0xff] %v5897_v28  ;;  %v899_v5 = vsel %vm403_vm0, %v5853_v44, %v898_v51  ;;  %v1176_v54 = vsel %vm405_vm1, %v5728_v55, %v1175_v46  ;;  %v1188_v14 = vsel %vm405_vm1, %v5736_v9, %v1187_v8 }
 0x13e   : > { %3510 = vadd.xlane.f32.xlu0 %v5676_v27  ;;  %v853_v27 = vsel %vm403_vm0, %v5841_v39, %v852_v36  ;;  %8055 = vst [vmem:[#allocation42_spill] sm:$0xff] %v5894_v7  ;;  %v5903_v36 = vsel %vm3400_vm3, %v5631_v52, 0.0  ;;  %v1172_v52 = vsel %vm403_vm0, %v5767_v56, %v5764_v21  ;;  %v1184_v57 = vsel %vm403_vm0, %v5780_v42, %v5777_v47 }
 0x13f   : > { %v5917_v58 = vsel %vm405_vm1, %v5876_v40, %v853_v27  ;;  %v5929_v51 = vsel %vm3400_vm3, %v5634_v17, 0.0  ;;  %v1198_v46 = vsel %vm403_vm0, %v5802_v18, %v5799_v26  ;;  %v1212_v8 = vsel %vm403_vm0, %v5816_v23, %v5813_v25  ;;  %v978_v27 = vpop.xlane.xlu0 %977  ;;  %v594_v18 = vpop.xlane.xlu1 %593 }
 0x140   : > { %3303 = vadd.xlane.f32.xlu1 %v5680_v29  ;;  %v1201_v29 = vsel %vm403_vm0, %v5742_v13, %v5739_v35  ;;  %8057 = vst [vmem:[#allocation44_spill] sm:$0xff] %v5917_v58  ;;  %v5941_v58 = vsel %vm405_vm1, %v5897_v28, %v899_v5  ;;  %v5945_v17 = vsel %vm968_vm2, %v5745_v30, %v1176_v54  ;;  %v5952_v23 = vsel %vm3272_vm15, %v3314_v63, 0.0 }
 0x141   : > { %8058 = vst [vmem:[#allocation45_spill] sm:$0xff] %v5941_v58  ;;  %8059 = vst [vmem:[#allocation46_spill] sm:$0xff] %v5945_v17  ;;  %v1216_v7 = vsel %vm405_vm1, %v5788_v45, %v1215_v12  ;;  %v1173_v5 = vsel %vm405_vm1, %v5796_v49, %v1172_v52  ;;  %v1185_v54 = vsel %vm405_vm1, %v5810_v38, %v1184_v57  ;;  %vm2288_vm0 = vcmask 1040384  }
 0x142   : > { %3300 = vadd.xlane.f32.xlu0 %v5685_v60  ;;  %v3313_v60 = vmul.f32 %v3309_v61, %v5603_v41  ;;  %v1202_v41 = vsel %vm405_vm1, %v5761_v50, %v1201_v29  ;;  %v508_v29 = vmul.f32 0.17677669, %v506_v6  ;;  %v1199_v12 = vsel %vm405_vm1, %v5841_v39, %v1198_v46 }
 0x143   : > { %v1213_v17 = vsel %vm405_vm1, %v5853_v44, %v1212_v8  ;;  %v3528_v58 = vmul.f32 %v3310_v2, %v5607_v37  ;;  %v5973_v52 = vsel %vm968_vm2, %v5772_v43, %v1202_v41  ;;  %v5977_v57 = vsel %vm968_vm2, %v5826_v3, %v1216_v7 }
 0x144   : > { %3523 = vadd.xlane.f32.xlu1 %v5695_v10  ;;  %v5956_v10 = vsel %vm968_vm2, %v5758_v11, %v1188_v14  ;;  %v5969_v14 = vsel %vm3272_vm15, %v3313_v60, 0.0  ;;  %8061 = vst [vmem:[#allocation48_spill] sm:$0xff] %v5973_v52  ;;  %8062 = vst [vmem:[#allocation49_spill] sm:$0xff] %v5977_v57  ;;  %v3527_v6 = vmul.f32 %v3309_v61, %v5610_v33  ;;  %v596_v46 = vmul.f32 0.17677669, %v594_v18  ;;  %v591_v61 = vpop.xlane.xlu0 %590  ;;  %v8075_v52 = vld [vmem:[#allocation20_spill] sm:$0xff] }
 0x145   : > { %8060 = vst [vmem:[#allocation47_spill] sm:$0xff] %v5956_v10  ;;  %v5984_v37 = vsel %vm968_vm2, %v5838_v31, %v1173_v5  ;;  %v5988_v2 = vsel %vm968_vm2, %v5847_v1, %v1185_v54  ;;  %v5992_v8 = vsel %vm968_vm2, %v5876_v40, %v1199_v12  ;;  %v5996_v33 = vsel %vm968_vm2, %v5897_v28, %v1213_v17 }
 0x146   : > { %3520 = vadd.xlane.f32.xlu0 %v5699_v48  ;;  %v420_v48 = vmul.f32 0.17677669, %v5790_v53  ;;  %8063 = vst [vmem:[#allocation50_spill] sm:$0xff] %v5984_v37  ;;  %8064 = vst [vmem:[#allocation51_spill] sm:$0xff] %v5988_v2  ;;  %v5999_v53 = vsel %vm3400_vm3, %v3314_v63, 0.0  ;;  %v6002_v18 = vsel %vm3400_vm3, %v3313_v60, 0.0  ;;  %v682_v5 = vpop.xlane.xlu1 %681  ;;  %v1489_v54 = vsel %vm405_vm1, %v5691_v24, %v5688_v59 }
 0x147   : > { %8065 = vst [vmem:[#allocation52_spill] sm:$0xff] %v5992_v8  ;;  %8066 = vst [vmem:[#allocation53_spill] sm:$0xff] %v5996_v33  ;;  %v6006_v7 = vsel %vm3272_vm15, %v3528_v58, 0.0  ;;  %v6009_v41 = vsel %vm3400_vm3, %v3528_v58, 0.0  ;;  %v6013_v17 = vsel %vm3400_vm3, %v5641_v15, 0.0  ;;  %v6017_v60 = vsel %vm3272_vm15, %v3527_v6, 0.0 }
 0x148   : > { %3405 = vadd.xlane.f32.xlu1 %v5708_v4  ;;  %v686_v4 = vmax.f32 %v420_v48, %v508_v29  ;;  %8067 = vst [vmem:[#allocation54_spill] sm:$0xff] %v6009_v41  ;;  %8068 = vst [vmem:[#allocation55_spill] sm:$0xff] %v6013_v17  ;;  %v507_v63 = vmul.f32 0.17677669, %v5804_v62  ;;  %v8070_v58 = vld [vmem:[#allocation23_spill] sm:$0xff]  ;;  %v6028_v15 = vsel %vm3400_vm3, %v3527_v6, 0.0  ;;  %v1501_v62 = vsel %vm405_vm1, %v5705_v34, %v5702_v19 }
 0x149   : > { %v684_v33 = vmul.f32 0.17677669, %v682_v5  ;;  %8071 = vst [vmem:[#allocation23_spill] sm:$0xff] %v6028_v15  ;;  %v8072_v8 = vld [vmem:[#allocation25_spill] sm:$0xff]  ;;  %v595_v37 = vmul.f32 0.17677669, %v591_v61  ;;  %v1490_v6 = vsel %vm968_vm2, %v5728_v55, %v1489_v54 }
 0x14a   : > { %3402 = vadd.xlane.f32.xlu0 %v5711_v22  ;;  %v6021_v22 = vsel %vm3400_vm3, %v5649_v16, 0.0  ;;  %v688_v12 = vmax.f32 %v686_v4, %v596_v46  ;;  %v419_v2 = vmul.f32 0.17677669, %v8072_v8  ;;  %v8073_v16 = vld [vmem:[#allocation21_spill] sm:$0xff]  ;;  %v6040_v10 = vsel %vm3400_vm3, %v8075_v52, 0.0  ;;  %v8077_v4 = vld [vmem:[#allocation24_spill] sm:$0xff] }
 0x14b   : > { %8069 = vst [vmem:[#allocation56_spill] sm:$0xff] %v6021_v22  ;;  %v6036_v57 = vsel %vm3400_vm3, %v8073_v16, 0.0  ;;  %8076 = vst [vmem:[#allocation21_spill] sm:$0xff] %v6040_v10  ;;  %v1529_v8 = vsel %vm405_vm1, %v5754_v0, %v5751_v32  ;;  %v8078_v61 = vld [vmem:[#allocation29_spill] sm:$0xff]  ;;  %v6054_v52 = vmul.f32 0.17677669, %v978_v27  ;;  %v679_v40 = vpop.xlane.xlu0 %678  ;;  %v1077_v17 = vpop.xlane.xlu1 %1076 }
 0x14c   : > { %3413 = vadd.xlane.f32.xlu1 %v8070_v58  ;;  %8074 = vst [vmem:[#allocation25_spill] sm:$0xff] %v6036_v57  ;;  %v690_v5 = vmax.f32 %v688_v12, %v684_v33  ;;  %v1515_v58 = vsel %vm405_vm1, %v5742_v13, %v5739_v35  ;;  %v6052_v16 = vmul.f32 0.17677669, %v8078_v61  ;;  %v685_v57 = vmax.f32 %v419_v2, %v507_v63  ;;  %v8080_v15 = vld [vmem:[#allocation22_spill] sm:$0xff]  ;;  %v8081_v27 = vld [vmem:[#allocation27_spill] sm:$0xff] }
 0x14d   : > { %v1502_v12 = vsel %vm968_vm2, %v5736_v9, %v1501_v62  ;;  %v1031_v55 = vmul.f32 0.17677669, %v8080_v15  ;;  %v6061_v44 = vmul.f32 0.17677669, %v5866_v20  ;;  %v683_v39 = vmul.f32 0.17677669, %v679_v40 }
 0x14e   : > { %3410 = vadd.xlane.f32.xlu0 %v8077_v4  ;;  %v8079_v4 = vld [vmem:[#allocation26_spill] sm:$0xff]  ;;  %v692_v54 = vsub.f32 %v420_v48, %v690_v5  ;;  %v698_v10 = vsub.f32 %v508_v29, %v690_v5  ;;  %v704_v22 = vsub.f32 %v596_v46, %v690_v5  ;;  %v710_v28 = vsub.f32 %v684_v33, %v690_v5 }
 0x14f   : > { %v687_v61 = vmax.f32 %v685_v57, %v595_v37  ;;  %v1079_v62 = vmul.f32 0.17677669, %v1077_v17  ;;  %v1516_v48 = vsel %vm968_vm2, %v5761_v50, %v1515_v58  ;;  %v6068_v33 = vsel %vm1282_vm6, %v5745_v30, %v1490_v6  ;;  %v1074_v17 = vpop.xlane.xlu0 %1073 }
 0x150   : > { %3605 = vadd.xlane.f32.xlu1 %v8079_v4  ;;  %v695_v1 = vmul.f32 1.442695, %v692_v54  ;;  %v701_v41 = vmul.f32 1.442695, %v698_v10  ;;  %v707_v29 = vmul.f32 1.442695, %v704_v22  ;;  %v1530_v20 = vsel %vm968_vm2, %v5788_v45, %v1529_v8  ;;  %v1125_v58 = vpop.xlane.xlu1 %1124 }
 0x151   : > { %v689_v46 = vmax.f32 %v687_v61, %v683_v39  ;;  %8082 = vst [vmem:[#allocation20_spill] sm:$0xff] %v6068_v33  ;;  %v1129_v57 = vmax.f32 %v6052_v16, %v1031_v55  ;;  %v1128_v40 = vmax.f32 %v6054_v52, %v6061_v44  ;;  %v713_v10 = vmul.f32 1.442695, %v710_v28 }
 0x152   : > { %3602 = vadd.xlane.f32.xlu0 %v8081_v27  ;;  %4017 = vpow2.f32 %v695_v1  ;;  %v1078_v8 = vmul.f32 0.17677669, %v1074_v17  ;;  %v1127_v54 = vmul.f32 0.17677669, %v1125_v58 }
 0x153   : > { %4019 = vpow2.f32 %v701_v41  ;;  %v691_v22 = vsub.f32 %v419_v2, %v689_v46  ;;  %v697_v15 = vsub.f32 %v507_v63, %v689_v46  ;;  %v703_v5 = vsub.f32 %v595_v37, %v689_v46 }
 0x154   : > { %3613 = vadd.xlane.f32.xlu1 %v5903_v36  ;;  %v709_v6 = vsub.f32 %v683_v39, %v689_v46  ;;  %v1131_v4 = vmax.f32 %v1129_v57, %v1079_v62  ;;  %4021 = vpow2.f32 %v707_v29  ;;  %v1122_v36 = vpop.xlane.xlu0 %1121  ;;  %v6080_v37 = vsel %vm1282_vm6, %v5758_v11, %v1502_v12 }
 0x155   : > { %v693_v61 = vmul.f32 1.442695, %v691_v22  ;;  %v699_v27 = vmul.f32 1.442695, %v697_v15  ;;  %v705_v33 = vmul.f32 1.442695, %v703_v5  ;;  %4023 = vpow2.f32 %v713_v10 }
 0x156   : > { %3610 = vadd.xlane.f32.xlu0 %v5929_v51  ;;  %v711_v1 = vmul.f32 1.442695, %v709_v6  ;;  %v1133_v28 = vmax.f32 %v1131_v4, %v1127_v54  ;;  %v1130_v39 = vmax.f32 %v1128_v40, %v1078_v8  ;;  %v1126_v51 = vmul.f32 0.17677669, %v1122_v36 }
 0x157   : > { %4025 = vpow2.f32 %v693_v61  ;;  %v1486_v2 = vsel %vm405_vm1, %v5767_v56, %v5764_v21  ;;  %v1498_v12 = vsel %vm405_vm1, %v5780_v42, %v5777_v47  ;;  %v6102_v15 = vsel %vm1282_vm6, %v5772_v43, %v1516_v48 }
 0x158   : > { %3319 = vadd.xlane.f32.xlu1 %v5952_v23  ;;  %4027 = vpow2.f32 %v699_v27  ;;  %v1135_v41 = vsub.f32 %v6052_v16, %v1133_v28  ;;  %v1141_v63 = vsub.f32 %v1031_v55, %v1133_v28  ;;  %v1147_v23 = vsub.f32 %v1079_v62, %v1133_v28  ;;  %v6087_v57 = vpop.xlane.xlu1 %1294 }
 0x159   : > { %4029 = vpow2.f32 %v705_v33  ;;  %v1153_v29 = vsub.f32 %v1127_v54, %v1133_v28  ;;  %v1132_v46 = vmax.f32 %v1130_v39, %v1126_v51  ;;  %v1499_v48 = vsel %vm968_vm2, %v5810_v38, %v1498_v12 }
 0x15a   : > { %3316 = vadd.xlane.f32.xlu0 %v5969_v14  ;;  %4031 = vpow2.f32 %v711_v1  ;;  %v1138_v40 = vmul.f32 1.442695, %v1135_v41  ;;  %v1144_v10 = vmul.f32 1.442695, %v1141_v63  ;;  %v1150_v17 = vmul.f32 1.442695, %v1147_v23 }
 0x15b   : > { %v1156_v14 = vmul.f32 1.442695, %v1153_v29  ;;  %v1134_v16 = vsub.f32 %v6054_v52, %v1132_v46  ;;  %v1140_v55 = vsub.f32 %v6061_v44, %v1132_v46  ;;  %v1146_v62 = vsub.f32 %v1078_v8, %v1132_v46  ;;  %v6098_v22 = vpop.xlane.xlu0 %1291  ;;  %v8085_v1 = vld [vmem:[#allocation31_spill] sm:$0xff] }
 0x15c   : > { %3533 = vadd.xlane.f32.xlu1 %v6006_v7  ;;  %v6095_v33 = vpop.eup %4017  ;;  %4033 = vpow2.f32 %v1138_v40  ;;  %v6106_v7 = vsel %vm1282_vm6, %v5826_v3, %v1530_v20  ;;  %v1487_v52 = vsel %vm968_vm2, %v5796_v49, %v1486_v2  ;;  %v1152_v6 = vsub.f32 %v1126_v51, %v1132_v46  ;;  %v8083_v20 = vld [vmem:[#allocation30_spill] sm:$0xff]  ;;  %v8087_v46 = vld [vmem:[#allocation35_spill] sm:$0xff]  ;;  %v8090_v40 = vld [vmem:[#allocation36_spill] sm:$0xff] }
 0x15d   : > { %v6110_v44 = vpop.eup %4019  ;;  %4035 = vpow2.f32 %v1144_v10  ;;  %v1136_v5 = vmul.f32 1.442695, %v1134_v16  ;;  %v1142_v58 = vmul.f32 1.442695, %v1140_v55  ;;  %v1512_v8 = vsel %vm405_vm1, %v8083_v20, %v5799_v26  ;;  %v8091_v10 = vld [vmem:[#allocation28_spill] sm:$0xff]  ;;  %v8092_v55 = vld [vmem:[#allocation23_spill] sm:$0xff] }
 0x15e   : > { %3530 = vadd.xlane.f32.xlu0 %v6017_v60  ;;  %v6112_v60 = vpop.xlane.xlu1 %1342  ;;  %v716_v4 = vadd.f32 %v6110_v44, %v6095_v33  ;;  %4037 = vpow2.f32 %v1150_v17  ;;  %v6122_v54 = vpop.eup %4021  ;;  %v1148_v61 = vmul.f32 1.442695, %v1146_v62  ;;  %v6126_v27 = vsel %vm1282_vm6, %v5838_v31, %v1487_v52 }
 0x15f   : > { %4039 = vpow2.f32 %v1156_v14  ;;  %8084 = vst [vmem:[#allocation24_spill] sm:$0xff] %v6126_v27  ;;  %v1526_v28 = vsel %vm405_vm1, %v8085_v1, %v5813_v25  ;;  %v6135_v39 = vpop.xlane.xlu0 %1339  ;;  %v1803_v51 = vsel %vm968_vm2, %v5691_v24, %v5688_v59  ;;  %v1815_v2 = vsel %vm968_vm2, %v5705_v34, %v5702_v19  ;;  %v8086_v24 = vld [vmem:[#allocation54_spill] sm:$0xff] }
 0x160   : > { %3421 = vadd.xlane.f32.xlu1 %v5999_v53  ;;  %v6131_v53 = vpop.eup %4023  ;;  %v718_v36 = vadd.f32 %v6122_v54, %v716_v4  ;;  %4041 = vpow2.f32 %v1136_v5  ;;  %v1154_v63 = vmul.f32 1.442695, %v1152_v6  ;;  %v1829_v23 = vsel %vm968_vm2, %v5742_v13, %v5739_v35  ;;  %v8089_v34 = vld [vmem:[#allocation34_spill] sm:$0xff]  ;;  %v8094_v4 = vld [vmem:[#allocation40_spill] sm:$0xff] }
 0x161   : > { %v6143_v41 = vpop.eup %4025  ;;  %4043 = vpow2.f32 %v1142_v58  ;;  %v6157_v19 = vsel %vm1282_vm6, %v8087_v46, %v1499_v48  ;;  %v1513_v12 = vsel %vm968_vm2, %v8089_v34, %v1512_v8  ;;  %v1527_v35 = vsel %vm968_vm2, %v8090_v40, %v1526_v28  ;;  %v8096_v48 = vld [vmem:[#allocation43_spill] sm:$0xff] }
 0x162   : > { %3418 = vadd.xlane.f32.xlu0 %v6002_v18  ;;  %v1843_v18 = vsel %vm968_vm2, %v5754_v0, %v5751_v32  ;;  %v6151_v29 = vpop.eup %4027  ;;  %v720_v59 = vadd.f32 %v6131_v53, %v718_v36  ;;  %8088 = vst [vmem:[#allocation29_spill] sm:$0xff] %v6157_v19  ;;  %4045 = vpow2.f32 %v1148_v61  ;;  %v1804_v17 = vsel %vm1282_vm6, %v8091_v10, %v1803_v51 }
 0x163   : > { %v6163_v13 = vpop.eup %4029  ;;  %v715_v32 = vadd.f32 %v6151_v29, %v6143_v41  ;;  %v1800_v14 = vsel %vm968_vm2, %v5767_v56, %v5764_v21  ;;  %v1816_v62 = vsel %vm1282_vm6, %v5736_v9, %v1815_v2  ;;  %v1830_v52 = vsel %vm1282_vm6, %v5761_v50, %v1829_v23  ;;  %v8093_v50 = vld [vmem:[#allocation55_spill] sm:$0xff] }
 0x164   : > { %3621 = vadd.xlane.f32.xlu1 %v8086_v24  ;;  %v6174_v16 = vpop.eup %4031  ;;  %4047 = vrcp.f32 %v720_v59  ;;  %v1844_v5 = vsel %vm1282_vm6, %v5788_v45, %v1843_v18  ;;  %v1812_v21 = vsel %vm968_vm2, %v5780_v42, %v5777_v47  ;;  %v1826_v9 = vsel %vm968_vm2, %v8083_v20, %v5799_v26  ;;  %v2348_v26 = vld [vmem:[%s5626_s30 + $0x18] sm:$0xff] }
 0x165   : > { %v6167_v0 = vpop.xlane.xlu1 %1608  ;;  %v717_v58 = vadd.f32 %v6163_v13, %v715_v32  ;;  %4049 = vpow2.f32 %v1154_v63  ;;  %v6197_v45 = vsel %vm1282_vm6, %v8094_v4, %v1513_v12  ;;  %v6201_v8 = vsel %vm1282_vm6, %v8096_v48, %v1527_v35  ;;  %v8101_v63 = vld [vmem:[#allocation56_spill] sm:$0xff]  ;;  %v8105_v32 = vld [vmem:[#allocation25_spill] sm:$0xff] }
 0x166   : > { %3618 = vadd.xlane.f32.xlu0 %v8092_v55  ;;  %v6192_v56 = vpop.eup %4033  ;;  %8095 = vst [vmem:[#allocation26_spill] sm:$0xff] %v6197_v45  ;;  %8097 = vst [vmem:[#allocation22_spill] sm:$0xff] %v6201_v8  ;;  %v1801_v47 = vsel %vm1282_vm6, %v5796_v49, %v1800_v14  ;;  %v1840_v42 = vsel %vm968_vm2, %v8085_v1, %v5813_v25  ;;  %v6218_v36 = vsel %vm1596_vm8, %v5745_v30, %v1804_v17  ;;  %v6229_v1 = vld [vmem:[%s5626_s30 + $0x10] sm:$0xff]  ;;  %vm2306_vm2 = vcmask 1042432  }
 0x167   : > { %v6184_v6 = vpop.xlane.xlu0 %1605  ;;  %v6211_v20 = vpop.eup %4035  ;;  %v719_v61 = vadd.f32 %v6174_v16, %v717_v58  ;;  %8098 = vst [vmem:[#allocation27_spill] sm:$0xff] %v6218_v36  ;;  %v6222_v49 = vsel %vm1596_vm8, %v5758_v11, %v1816_v62  ;;  %v6226_v25 = vsel %vm1596_vm8, %v5772_v43, %v1830_v52  ;;  %v6238_v30 = vsel %vm1596_vm8, %v5826_v3, %v1844_v5  ;;  %v8110_v52 = vld [vmem:[#allocation21_spill] sm:$0xff] }
 0x168   : > { %3429 = vadd.xlane.f32.xlu1 %v8093_v50  ;;  %8099 = vst [vmem:[#allocation30_spill] sm:$0xff] %v6222_v49  ;;  %8100 = vst [vmem:[#allocation31_spill] sm:$0xff] %v6226_v25  ;;  %v6231_v51 = vpop.eup %4037  ;;  %v1159_v2 = vadd.f32 %v6211_v20, %v6192_v56  ;;  %v1813_v11 = vsel %vm1282_vm6, %v5810_v38, %v1812_v21  ;;  %v1827_v43 = vsel %vm1282_vm6, %v8089_v34, %v1826_v9 }
 0x169   : > { %v6214_v28 = vpop.xlane.xlu1 %1656  ;;  %8102 = vst [vmem:[#allocation54_spill] sm:$0xff] %v6238_v30  ;;  %v6244_v23 = vpop.eup %4039  ;;  %4051 = vrcp.f32 %v719_v61  ;;  %v6250_v59 = vsel %vm1596_vm8, %v5838_v31, %v1801_v47  ;;  %v1841_v24 = vsel %vm1282_vm6, %v8090_v40, %v1840_v42  ;;  %v6254_v3 = vrot.slane %v2348_v26, 7 }
 0x16a   : > { %3426 = vadd.xlane.f32.xlu0 %v8101_v63  ;;  %8103 = vst [vmem:[#allocation35_spill] sm:$0xff] %v6250_v59  ;;  %v6256_v12 = vpop.eup %4041  ;;  %v1161_v38 = vadd.f32 %v6231_v51, %v1159_v2  ;;  %v6260_v34 = vmul.f32 0.17677669, %v6087_v57  ;;  %v6263_v35 = vmul.f32 0.17677669, %v6112_v60  ;;  %v6267_v31 = vrot.slane %v6229_v1, 2 }
 0x16b   : > { %v6246_v18 = vpop.xlane.xlu0 %1653  ;;  %8104 = vst [vmem:[#allocation34_spill] sm:$0xff] %v6254_v3  ;;  %v6269_v10 = vpop.eup %4043  ;;  %v6272_v40 = vmul.f32 0.17677669, %v6135_v39  ;;  %v6274_v14 = vrot.slane %v2348_v26, 1  ;;  %v6277_v55 = vrot.slane %v6229_v1, 4  ;;  %v6279_v57 = vrot.slane %v2348_v26, 3 }
 0x16c   : > { %3629 = vadd.xlane.f32.xlu1 %v8105_v32  ;;  %8106 = vst [vmem:[#allocation36_spill] sm:$0xff] %v6267_v31  ;;  %v1163_v60 = vadd.f32 %v6244_v23, %v1161_v38  ;;  %v1158_v62 = vadd.f32 %v6269_v10, %v6256_v12  ;;  %v6286_v39 = vrot.slane %v6229_v1, 6  ;;  %v6288_v5 = vrot.slane %v2348_v26, 5  ;;  %v6290_v58 = vpop.eup %4045  ;;  %v2346_v63 = vld [vmem:[%s5626_s30 + $0x8] sm:$0xff]  ;;  %v2345_v32 = vld [vmem:[%s5626_s30] sm:$0xff] }
 0x16d   : > { %v1391_v17 = vpop.xlane.xlu1 %1390  ;;  %8107 = vst [vmem:[#allocation28_spill] sm:$0xff] %v6274_v14  ;;  %8108 = vst [vmem:[#allocation23_spill] sm:$0xff] %v6277_v55  ;;  %v6293_v21 = vmul.f32 0.17677669, %v6098_v22  ;;  %v6297_v50 = vsel %vm1596_vm8, %v8087_v46, %v1813_v11  ;;  %v6301_v47 = vsel %vm1596_vm8, %v8094_v4, %v1827_v43  ;;  %v6305_v42 = vsel %vm1596_vm8, %v8096_v48, %v1841_v24  ;;  %v8117_v11 = vld [vmem:[#allocation39_spill] sm:$0xff] }
 0x16e   : > { %8109 = vst [vmem:[#allocation55_spill] sm:$0xff] %v6279_v57  ;;  %3626 = vadd.xlane.f32.xlu0 %v8110_v52  ;;  %8111 = vst [vmem:[#allocation40_spill] sm:$0xff] %v6286_v39  ;;  %v4048_v26 = vpop.eup %4047  ;;  %4053 = vrcp.f32 %v1163_v60  ;;  %v1160_v61 = vadd.f32 %v6290_v58, %v1158_v62  ;;  %v1443_v22 = vmax.f32 %v6260_v34, %v6263_v35  ;;  %v6311_v2 = vstv %s6208_s29 }
 0x16f   : > { %8112 = vst [vmem:[#allocation43_spill] sm:$0xff] %v6288_v5  ;;  %v1388_v9 = vpop.xlane.xlu0 %1387  ;;  %8113 = vst [vmem:[#allocation56_spill] sm:$0xff] %v6297_v50  ;;  %v6314_v46 = vpop.eup %4049  ;;  %v727_v38 = vmul.f32 %v4048_v26, %v8117_v11  ;;  %v1442_v4 = vmax.f32 %v6293_v21, %v6272_v40  ;;  %v6324_v48 = vsel %vm405_vm1, %v6254_v3, %v6229_v1  ;;  %v6334_v62 = vmul.f32 0.17677669, %v6167_v0 }
 0x170   : > { %8114 = vst [vmem:[#allocation25_spill] sm:$0xff] %v6301_v47  ;;  %8115 = vst [vmem:[#allocation21_spill] sm:$0xff] %v6305_v42  ;;  %v6329_v24 = vsel %vm405_vm1, %v6274_v14, %v6267_v31  ;;  %v1162_v60 = vadd.f32 %v6314_v46, %v1160_v61  ;;  %v6339_v52 = vsel %vm405_vm1, %v6288_v5, %v6286_v39  ;;  %v6352_v0 = vrot.slane %v2346_v63, 7 }
 0x171   : > { %8116 = vst [vmem:[#allocation57_spill] sm:$0xff] %v6311_v2  ;;  %v6319_v43 = vpop.xlane.xlu1 %1704  ;;  %8118 = vst [vmem:[#allocation39_spill] sm:$0xff] %v6324_v48  ;;  %v6344_v26 = vsel %vm405_vm1, %v6279_v57, %v6277_v55  ;;  %v729_v48 = vmul.f32 %v6095_v33, %v727_v38  ;;  %v6348_v2 = vmul.f32 0.17677669, %v1391_v17  ;;  %v6355_v42 = vmul.f32 0.17677669, %v6184_v6 }
 0x172   : > { %8119 = vst [vmem:[#allocation58_spill] sm:$0xff] %v6329_v24  ;;  %8120 = vst [vmem:[#allocation59_spill] sm:$0xff] %v6339_v52  ;;  %v773_v24 = vmul.f32 %v6110_v44, %v727_v38  ;;  %4055 = vrcp.f32 %v1162_v60  ;;  %v6357_v52 = vrot.slane %v2345_v32, 2  ;;  %v6359_v47 = vrot.slane %v2346_v63, 1  ;;  %v8126_v33 = vld [vmem:[#allocation33_spill] sm:$0xff] }
 0x173   : > { %8121 = vst [vmem:[#allocation60_spill] sm:$0xff] %v6344_v26  ;;  %v6350_v61 = vpop.xlane.xlu0 %1701  ;;  %8122 = vst [vmem:[#allocation61_spill] sm:$0xff] %v6352_v0  ;;  %v4052_v50 = vpop.eup %4051  ;;  %v8125_v26 = vld [vmem:[#allocation32_spill] sm:$0xff]  ;;  %v6363_v17 = vrot.slane %v2345_v32, 4  ;;  %v6365_v25 = vrot.slane %v2346_v63, 3  ;;  %v819_v49 = vmul.f32 %v6122_v54, %v727_v38  ;;  %v6371_v36 = vrot.slane %v2345_v32, 6 }
 0x174   : > { %8123 = vst [vmem:[#allocation62_spill] sm:$0xff] %v6357_v52  ;;  %8124 = vst [vmem:[#allocation63_spill] sm:$0xff] %v6359_v47  ;;  %v771_v59 = vmul.f32 %v8125_v26, %v729_v48  ;;  %v815_v30 = vmul.f32 %v8126_v33, %v773_v24  ;;  %v726_v60 = vmul.f32 %v4052_v50, %v8117_v11  ;;  %v6374_v45 = vmul.f32 0.17677669, %v1388_v9 }
 0x175   : > { %v1439_v44 = vpop.xlane.xlu1 %1438  ;;  %8127 = vst [vmem:[#allocation32_spill] sm:$0xff] %v6363_v17  ;;  %8128 = vst [vmem:[#allocation33_spill] sm:$0xff] %v6365_v25  ;;  %v1445_v8 = vmax.f32 %v1443_v22, %v6348_v2  ;;  %v6376_v26 = vrot.slane %v2346_v63, 5  ;;  %v6380_v24 = vsel %vm405_vm1, %v6352_v0, %v2345_v32  ;;  %v865_v19 = vmul.f32 %v6131_v53, %v727_v38 }
 0x176   : > { %v6369_v6 = vmul.f32 0.17677669, %v1439_v44  ;;  %8129 = vst [vmem:[#allocation64_spill] sm:$0xff] %v6371_v36  ;;  %8131 = vst [vmem:[#allocation66_spill] sm:$0xff] %v6380_v24  ;;  %v817_v33 = vadd.f32 %v815_v30, %v771_v59  ;;  %v728_v54 = vmul.f32 %v6143_v41, %v726_v60  ;;  %v772_v50 = vmul.f32 %v6151_v29, %v726_v60  ;;  %v8133_v41 = vld [vmem:[#allocation37_spill] sm:$0xff] }
 0x177   : > { %v1436_v48 = vpop.xlane.xlu0 %1435  ;;  %8130 = vst [vmem:[#allocation65_spill] sm:$0xff] %v6376_v26  ;;  %v818_v44 = vmul.f32 %v6163_v13, %v726_v60  ;;  %v6387_v22 = vmul.f32 0.17677669, %v6214_v28  ;;  %v6395_v32 = vsel %vm405_vm1, %v6359_v47, %v6357_v52  ;;  %v861_v59 = vmul.f32 %v8133_v41, %v819_v49  ;;  %v8134_v29 = vld [vmem:[#allocation41_spill] sm:$0xff]  ;;  %v8135_v13 = vld [vmem:[#allocation42_spill] sm:$0xff] }
 0x178   : > { %v1447_v9 = vmax.f32 %v1445_v8, %v6369_v6  ;;  %8132 = vst [vmem:[#allocation67_spill] sm:$0xff] %v6395_v32  ;;  %v4054_v30 = vpop.eup %4053  ;;  %v770_v0 = vmul.f32 %v8134_v29, %v728_v54  ;;  %v814_v24 = vmul.f32 %v8135_v13, %v772_v50  ;;  %v864_v53 = vmul.f32 %v6174_v16, %v726_v60  ;;  %v8137_v54 = vld [vmem:[#allocation44_spill] sm:$0xff]  ;;  %v8138_v52 = vld [vmem:[#allocation38_spill] sm:$0xff] }
 0x179   : > { %v6390_v63 = vpop.xlane.xlu1 %1752  ;;  %v1169_v28 = vmul.f32 %v4054_v30, %v8117_v11  ;;  %v6409_v47 = vsel %vm405_vm1, %v6365_v25, %v6363_v17  ;;  %v863_v49 = vadd.f32 %v861_v59, %v817_v33  ;;  %v860_v29 = vmul.f32 %v8137_v54, %v818_v44  ;;  %v8139_v33 = vld [vmem:[#allocation45_spill] sm:$0xff]  ;;  %v8140_v44 = vld [vmem:[#allocation46_spill] sm:$0xff] }
 0x17a   : > { %v1449_v8 = vsub.f32 %v6260_v34, %v1447_v9  ;;  %v1455_v38 = vsub.f32 %v6263_v35, %v1447_v9  ;;  %8136 = vst [vmem:[#allocation37_spill] sm:$0xff] %v6409_v47  ;;  %v816_v41 = vadd.f32 %v814_v24, %v770_v0  ;;  %v1444_v50 = vmax.f32 %v1442_v4, %v6374_v45  ;;  %v8141_v4 = vld [vmem:[#allocation47_spill] sm:$0xff] }
 0x17b   : > { %v6404_v27 = vpop.xlane.xlu0 %1749  ;;  %v1171_v16 = vmul.f32 %v6192_v56, %v1169_v28  ;;  %v1183_v60 = vmul.f32 %v6211_v20, %v1169_v28  ;;  %v1197_v34 = vmul.f32 %v6231_v51, %v1169_v28  ;;  %v6416_v35 = vmul.f32 0.17677669, %v1436_v48 }
 0x17c   : > { %v4056_v13 = vpop.eup %4055  ;;  %v907_v32 = vmul.f32 %v8138_v52, %v865_v19  ;;  %v862_v47 = vadd.f32 %v860_v29, %v816_v41  ;;  %v906_v0 = vmul.f32 %v8139_v33, %v864_v53  ;;  %v1452_v24 = vmul.f32 1.442695, %v1449_v8  ;;  %v8142_v53 = vld [vmem:[#allocation48_spill] sm:$0xff] }
 0x17d   : > { %v6418_v30 = vpop.xlane.xlu1 %2574  ;;  %v1181_v59 = vmul.f32 %v8140_v44, %v1171_v16  ;;  %v1193_v54 = vmul.f32 %v8141_v4, %v1183_v60  ;;  %v1211_v56 = vmul.f32 %v6244_v23, %v1169_v28  ;;  %v1458_v20 = vmul.f32 1.442695, %v1455_v38  ;;  %v8145_v60 = vld [vmem:[#allocation51_spill] sm:$0xff] }
 0x17e   : > { %v909_v51 = vadd.f32 %v907_v32, %v863_v49  ;;  %v1168_v48 = vmul.f32 %v4056_v13, %v8117_v11  ;;  %v1461_v17 = vsub.f32 %v6348_v2, %v1447_v9  ;;  %v1467_v19 = vsub.f32 %v6369_v6, %v1447_v9  ;;  %v8143_v2 = vld [vmem:[#allocation49_spill] sm:$0xff]  ;;  %v8144_v9 = vld [vmem:[#allocation50_spill] sm:$0xff] }
 0x17f   : > { %v6425_v25 = vpop.xlane.xlu0 %2571  ;;  %v908_v52 = vadd.f32 %v906_v0, %v862_v47  ;;  %v1195_v41 = vadd.f32 %v1193_v54, %v1181_v59  ;;  %v1207_v8 = vmul.f32 %v8142_v53, %v1197_v34  ;;  %v6432_v29 = vmax.f32 %v1444_v50, %v6416_v35  ;;  %v8148_v59 = vld [vmem:[#allocation52_spill] sm:$0xff] }
 0x180   : > { %v1170_v23 = vmul.f32 %v6256_v12, %v1168_v48  ;;  %v1182_v28 = vmul.f32 %v6269_v10, %v1168_v48  ;;  %v1196_v32 = vmul.f32 %v6290_v58, %v1168_v48  ;;  %4057 = vpow2.f32 %v1452_v24  ;;  %v8147_v58 = vld [vmem:[#allocation19_spill] sm:$0xff] }
 0x181   : > { %v6434_v16 = vpop.xlane.xlu1 %2586  ;;  %v1209_v38 = vadd.f32 %v1207_v8, %v1195_v41  ;;  %v1221_v49 = vmul.f32 %v8143_v2, %v1211_v56  ;;  %v1210_v47 = vmul.f32 %v6314_v46, %v1168_v48  ;;  %4059 = vpow2.f32 %v1458_v20  ;;  %v8150_v20 = vld [vmem:[#allocation53_spill] sm:$0xff] }
 0x182   : > { %v1180_v50 = vmul.f32 %v8144_v9, %v1170_v23  ;;  %v1192_v34 = vmul.f32 %v8145_v60, %v1182_v28  ;;  %v6448_v12 = vsel %vm405_vm1, %v6376_v26, %v6371_v36  ;;  %v6453_v10 = vsel %vm1282_vm6, %v6279_v57, %v6277_v55 }
 0x183   : > { %v6441_v6 = vpop.xlane.xlu0 %2583  ;;  %8146 = vst [vmem:[#allocation41_spill] sm:$0xff] %v6453_v10  ;;  %v1884_v13 = vrot.slane %v909_v51, %v8147_v58  ;;  %v1860_v46 = vrot.slane %v908_v52, %v8147_v58  ;;  %v1223_v33 = vadd.f32 %v1221_v49, %v1209_v38  ;;  %v1464_v0 = vmul.f32 1.442695, %v1461_v17 }
 0x184   : > { %v1194_v44 = vadd.f32 %v1192_v34, %v1180_v50  ;;  %v1206_v4 = vmul.f32 %v8148_v59, %v1196_v32  ;;  %v1470_v54 = vmul.f32 1.442695, %v1467_v19  ;;  %v6463_v56 = vsel %vm1282_vm6, %v6288_v5, %v6286_v39 }
 0x185   : > { %v6457_v24 = vpop.xlane.xlu1 %2598  ;;  %8149 = vst [vmem:[#allocation42_spill] sm:$0xff] %v6463_v56  ;;  %v1220_v48 = vmul.f32 %v8150_v20, %v1210_v47  ;;  %v6467_v41 = vmul.f32 0.17677669, %v6246_v18  ;;  %v1448_v51 = vsub.f32 %v6293_v21, %v6432_v29  ;;  %v6476_v52 = vsel %vm1282_vm6, %v6254_v3, %v6229_v1 }
 0x186   : > { %8151 = vst [vmem:[#allocation44_spill] sm:$0xff] %v6476_v52  ;;  %v1958_v19 = vrot.slane %v1223_v33, %v8147_v58  ;;  %v1208_v53 = vadd.f32 %v1206_v4, %v1194_v44  ;;  %4061 = vpow2.f32 %v1464_v0  ;;  %v1454_v8 = vsub.f32 %v6272_v40, %v6432_v29 }
 0x187   : > { %v6471_v17 = vpop.xlane.xlu0 %2595  ;;  %v1885_v23 = vcombine.high %v1884_v13, %v1884_v13  ;;  %v1861_v18 = vcombine.high %v1860_v46, %v1860_v46  ;;  %v1951_v28 = vcombine.high %v1223_v33, %v1223_v33  ;;  %v1450_v32 = vmul.f32 1.442695, %v1448_v51 }
 0x188   : > { %v1222_v21 = vadd.f32 %v1220_v48, %v1208_v53  ;;  %4063 = vpow2.f32 %v1470_v54  ;;  %v1456_v2 = vmul.f32 1.442695, %v1454_v8  ;;  %v1460_v1 = vsub.f32 %v6374_v45, %v6432_v29 }
 0x189   : > { %v6481_v38 = vpop.xlane.xlu1 %2703  ;;  %v6486_v49 = vrot.slane %v1884_v13, %v8147_v58  ;;  %v6489_v47 = vmul.f32 0.17677669, %v6319_v43  ;;  %v6492_v40 = vmul.f32 0.17677669, %v6350_v61  ;;  %4065 = vpow2.f32 %v1450_v32 }
 0x18a   : > { %v6496_v50 = vpop.eup %4057  ;;  %v1966_v60 = vcombine.high %v1958_v19, %v1958_v19  ;;  %v1757_v34 = vmax.f32 %v6334_v62, %v6387_v22  ;;  %4067 = vpow2.f32 %v1456_v2  ;;  %v1462_v45 = vmul.f32 1.442695, %v1460_v1 }
 0x18b   : > { %v6494_v9 = vpop.xlane.xlu0 %2700  ;;  %v6500_v33 = vpop.eup %4059  ;;  %v6503_v13 = vrot.slane %v1885_v23, %v8147_v58  ;;  %v1756_v43 = vmax.f32 %v6355_v42, %v6467_v41  ;;  %v1466_v61 = vsub.f32 %v6416_v35, %v6432_v29  ;;  %v6514_v44 = vsel %vm1282_vm6, %v6274_v14, %v6267_v31 }
 0x18c   : > { %8152 = vst [vmem:[#allocation38_spill] sm:$0xff] %v6514_v44  ;;  %v6517_v59 = vrot.slane %v1860_v46, %v8147_v58  ;;  %v6520_v4 = vrot.slane %v1861_v18, %v8147_v58  ;;  %v6523_v54 = vrot.slane %v1951_v28, %v8147_v58  ;;  %v1919_v20 = vrot.slane %v1222_v21, %v8147_v58 }
 0x18d   : > { %v6509_v0 = vpop.xlane.xlu1 %2715  ;;  %v1759_v29 = vmax.f32 %v1757_v34, %v6489_v47  ;;  %v1758_v48 = vmax.f32 %v1756_v43, %v6492_v40  ;;  %v1473_v51 = vadd.f32 %v6500_v33, %v6496_v50  ;;  %v1973_v53 = vrot.slane %v1958_v19, %v8147_v58 }
 0x18e   : > { %v6536_v8 = vrot.slane %v1966_v60, %v8147_v58  ;;  %v1912_v23 = vcombine.high %v1222_v21, %v1222_v21  ;;  %4069 = vpow2.f32 %v1462_v45  ;;  %v1468_v28 = vmul.f32 1.442695, %v1466_v61 }
 0x18f   : > { %v6532_v46 = vpop.xlane.xlu0 %2712  ;;  %v1755_v32 = vmul.f32 0.17677669, %v6390_v63  ;;  %v6542_v2 = vmul.f32 0.17677669, %v6404_v27  ;;  %v1980_v60 = vrot.slane %v6523_v54, %v8147_v58  ;;  %v1927_v45 = vcombine.high %v1919_v20, %v1919_v20 }
 0x190   : > { %v6546_v34 = vpop.eup %4061  ;;  %4071 = vpow2.f32 %v1468_v28  ;;  %v1988_v18 = vcombine.high %v1973_v53, %v1973_v53  ;;  %v1989_v19 = vcombine.high %v6536_v8, %v6536_v8  ;;  %v1926_v21 = vrot.slane %v1912_v23, %v8147_v58 }
 0x191   : > { %v6544_v1 = vpop.xlane.xlu1 %2833  ;;  %v1475_v43 = vadd.f32 %v6546_v34, %v1473_v51  ;;  %v1761_v63 = vmax.f32 %v1759_v29, %v1755_v32  ;;  %v1760_v27 = vmax.f32 %v1758_v48, %v6542_v2  ;;  %v1934_v44 = vrot.slane %v1919_v20, %v8147_v58 }
 0x192   : > { %v6558_v35 = vpop.eup %4063  ;;  %v1948_v56 = vrot.slane %v1927_v45, %v8147_v58  ;;  %vm2297_vm1 = vcmask 1041408   ;;  %vm3240_vm8 = vcmask 1046528  }
 0x193   : > { %v6556_v61 = vpop.xlane.xlu0 %2830  ;;  %v6564_v54 = vpop.eup %4065  ;;  %v1477_v51 = vadd.f32 %v6558_v35, %v1475_v43  ;;  %v1763_v29 = vsub.f32 %v6334_v62, %v1761_v63  ;;  %v1769_v48 = vsub.f32 %v6387_v22, %v1761_v63  ;;  %v1775_v28 = vsub.f32 %v6489_v47, %v1761_v63  ;;  %v8153_v47 = vld [vmem:[#allocation18_spill] sm:$0xff] }
 0x194   : > { %v6572_v53 = vpop.eup %4067  ;;  %v1781_v10 = vsub.f32 %v1755_v32, %v1761_v63  ;;  %v1762_v23 = vsub.f32 %v6355_v42, %v1760_v27  ;;  %v1768_v20 = vsub.f32 %v6467_v41, %v1760_v27  ;;  %v2187_v5 = vrot.slane %v6536_v8, %v8153_v47 }
 0x195   : > { %v6570_v52 = vpop.xlane.xlu1 %2845  ;;  %4073 = vrcp.f32 %v1477_v51  ;;  %v1472_v43 = vadd.f32 %v6572_v53, %v6564_v54  ;;  %v1766_v62 = vmul.f32 1.442695, %v1763_v29  ;;  %v1772_v3 = vmul.f32 1.442695, %v1769_v48 }
 0x196   : > { %v1778_v39 = vmul.f32 1.442695, %v1775_v28  ;;  %v1784_v57 = vmul.f32 1.442695, %v1781_v10  ;;  %v1774_v45 = vsub.f32 %v6492_v40, %v1760_v27  ;;  %v2191_v32 = vrot.slane %v1988_v18, %v8153_v47 }
 0x197   : > { %v6579_v22 = vpop.xlane.xlu0 %2842  ;;  %v1949_v42 = vcombine.high %v1934_v44, %v1934_v44  ;;  %4075 = vpow2.f32 %v1766_v62  ;;  %v1764_v41 = vmul.f32 1.442695, %v1762_v23  ;;  %v1941_v29 = vrot.slane %v1926_v21, %v8147_v58 }
 0x198   : > { %v6587_v51 = vpop.eup %4069  ;;  %v1950_v48 = vcombine.high %v1948_v56, %v1948_v56  ;;  %4077 = vpow2.f32 %v1772_v3  ;;  %v1770_v55 = vmul.f32 1.442695, %v1768_v20  ;;  %v1776_v10 = vmul.f32 1.442695, %v1774_v45 }
 0x199   : > { %v6585_v63 = vpop.xlane.xlu1 %2368  ;;  %v1474_v8 = vadd.f32 %v6587_v51, %v1472_v43  ;;  %4079 = vpow2.f32 %v1778_v39  ;;  %v1780_v40 = vsub.f32 %v6542_v2, %v1760_v27  ;;  %v2195_v44 = vrot.slane %v1989_v19, %v8153_v47 }
 0x19a   : > { %v2199_v18 = vrot.slane %v1980_v60, %v8153_v47  ;;  %v6598_v23 = vsel %vm2288_vm0, %v6486_v49, %v2187_v5  ;;  %4081 = vpow2.f32 %v1784_v57  ;;  %v6600_v21 = vpop.eup %4071  ;;  %v2171_v3 = vrot.slane %v1948_v56, %v8153_v47 }
 0x19b   : > { %v6592_v28 = vpop.xlane.xlu0 %2365  ;;  %v2175_v39 = vrot.slane %v1949_v42, %v8153_v47  ;;  %4083 = vpow2.f32 %v1764_v41  ;;  %v6605_v2 = vmul.f32 0.17677669, %v6434_v16  ;;  %v2179_v19 = vrot.slane %v1950_v48, %v8153_v47 }
 0x19c   : > { %v2183_v60 = vrot.slane %v1941_v29, %v8153_v47  ;;  %v1476_v5 = vadd.f32 %v6600_v21, %v1474_v8  ;;  %4085 = vpow2.f32 %v1770_v55  ;;  %v1782_v57 = vmul.f32 1.442695, %v1780_v40 }
 0x19d   : > { %v6607_v27 = vpop.xlane.xlu1 %2402  ;;  %4087 = vpow2.f32 %v1776_v10  ;;  %v2577_v20 = vmul.f32 0.17677669, %v6418_v30  ;;  %v6614_v56 = vmul.f32 0.17677669, %v6457_v24  ;;  %v6620_v16 = vsel %vm2288_vm0, %v6503_v13, %v2191_v32 }
 0x19e   : > { %v8154_v62 = vcombine.high %v6503_v13, %v6503_v13  ;;  %4089 = vrcp.f32 %v1476_v5  ;;  %v6629_v55 = vmul.f32 0.17677669, %v6441_v6  ;;  %v8155_v24 = vcombine.high %v6486_v49, %v6486_v49 }
 0x19f   : > { %v6616_v43 = vpop.xlane.xlu0 %2399  ;;  %v4074_v30 = vpop.eup %4073  ;;  %v6639_v32 = vsel %vm2288_vm0, %v6517_v59, %v2171_v3  ;;  %v6643_v13 = vsel %vm2288_vm0, %v6520_v4, %v2175_v39  ;;  %v2615_v41 = vmax.f32 %v2577_v20, %v6605_v2  ;;  %v8156_v6 = vcombine.high %v6517_v59, %v6517_v59 }
 0x1a0   : > { %v6626_v45 = vsel %vm2288_vm0, %v8154_v62, %v2199_v18  ;;  %v6635_v42 = vsel %vm2288_vm0, %v8155_v24, %v2195_v44  ;;  %v8157_v49 = vcombine.high %v6520_v4, %v6520_v4  ;;  %v1483_v10 = vmul.f32 %v4074_v30, %v8117_v11 }
 0x1a1   : > { %v2611_v29 = vpop.xlane.xlu1 %2610  ;;  %v6650_v48 = vsel %vm2288_vm0, %v8156_v6, %v2179_v19  ;;  %v6660_v40 = vmul.f32 0.17677669, %v6425_v25  ;;  %v6662_v44 = vpop.eup %4075  ;;  %4091 = vpow2.f32 %v1782_v57  ;;  %v2617_v18 = vmax.f32 %v2615_v41, %v6614_v56 }
 0x1a2   : > { %v6656_v8 = vsel %vm2288_vm0, %v8157_v49, %v2183_v60  ;;  %v6666_v59 = vmul.f32 0.17677669, %v6471_v17  ;;  %v6668_v3 = vmul.f32 0.17677669, %v2611_v29  ;;  %v6670_v39 = vpop.eup %4077  ;;  %v1485_v4 = vmul.f32 %v6496_v50, %v1483_v10 }
 0x1a3   : > { %v1497_v19 = vmul.f32 %v6500_v33, %v1483_v10  ;;  %v1511_v60 = vmul.f32 %v6546_v34, %v1483_v10  ;;  %v2614_v25 = vmax.f32 %v6660_v40, %v6629_v55  ;;  %v6677_v5 = vpop.eup %4079  ;;  %v1787_v57 = vadd.f32 %v6670_v39, %v6662_v44  ;;  %v2608_v30 = vpop.xlane.xlu0 %2607  ;;  %v8158_v34 = vld [vmem:[#allocation20_spill] sm:$0xff] }
 0x1a4   : > { %v6682_v17 = vmul.f32 0.17677669, %v6481_v38  ;;  %v6685_v62 = vmul.f32 0.17677669, %v6494_v9  ;;  %v2619_v50 = vmax.f32 %v2617_v18, %v6668_v3  ;;  %v6688_v33 = vpop.eup %4081  ;;  %v1495_v24 = vmul.f32 %v8158_v34, %v1485_v4 }
 0x1a5   : > { %v1507_v41 = vmul.f32 %v6080_v37, %v1497_v19  ;;  %v1525_v29 = vmul.f32 %v6558_v35, %v1483_v10  ;;  %v6694_v6 = vmul.f32 0.17677669, %v6509_v0  ;;  %v6696_v49 = vpop.eup %4083  ;;  %v1789_v38 = vadd.f32 %v6677_v5, %v1787_v57 }
 0x1a6   : > { %v2616_v9 = vmax.f32 %v2614_v25, %v6666_v59  ;;  %v2621_v14 = vsub.f32 %v2577_v20, %v2619_v50  ;;  %v2627_v18 = vsub.f32 %v6605_v2, %v2619_v50  ;;  %v6701_v31 = vpop.eup %4085  ;;  %v1521_v4 = vmul.f32 %v6102_v15, %v1511_v60 }
 0x1a7   : > { %v1509_v26 = vadd.f32 %v1507_v41, %v1495_v24  ;;  %v6705_v37 = vmul.f32 0.17677669, %v6532_v46  ;;  %v6707_v35 = vmul.f32 0.17677669, %v2608_v30  ;;  %v6709_v0 = vpop.eup %4087  ;;  %v1791_v10 = vadd.f32 %v6688_v33, %v1789_v38 }
 0x1a8   : > { %v1786_v19 = vadd.f32 %v6701_v31, %v6696_v49  ;;  %v6715_v20 = vmul.f32 0.17677669, %v6544_v1  ;;  %v2624_v2 = vmul.f32 1.442695, %v2621_v14  ;;  %v4090_v25 = vpop.eup %4089  ;;  %v1535_v15 = vmul.f32 %v6106_v7, %v1525_v29 }
 0x1a9   : > { %v1523_v57 = vadd.f32 %v1521_v4, %v1509_v26  ;;  %v2630_v60 = vmul.f32 1.442695, %v2627_v18  ;;  %v6719_v46 = vmax.f32 %v2616_v9, %v6707_v35  ;;  %v1482_v30 = vmul.f32 %v4090_v25, %v8117_v11  ;;  %v2728_v18 = vpop.xlane.xlu1 %2727  ;;  %v6733_v4 = vpop.xlane.xlu0 %2724 }
 0x1aa   : > { %4093 = vrcp.f32 %v1791_v10  ;;  %v1788_v34 = vadd.f32 %v6709_v0, %v1786_v19  ;;  %v2633_v24 = vsub.f32 %v6614_v56, %v2619_v50  ;;  %v2639_v1 = vsub.f32 %v6668_v3, %v2619_v50  ;;  %v8160_v19 = vld [vmem:[#allocation29_spill] sm:$0xff] }
 0x1ab   : > { %v1537_v41 = vadd.f32 %v1535_v15, %v1523_v57  ;;  %4095 = vpow2.f32 %v2624_v2  ;;  %v2620_v14 = vsub.f32 %v6660_v40, %v6719_v46  ;;  %v6727_v26 = vpop.eup %4091  ;;  %v1484_v7 = vmul.f32 %v6564_v54, %v1482_v30  ;;  %v8159_v40 = vld [vmem:[#allocation24_spill] sm:$0xff] }
 0x1ac   : > { %v1496_v29 = vmul.f32 %v6572_v53, %v1482_v30  ;;  %v1510_v38 = vmul.f32 %v6587_v51, %v1482_v30  ;;  %v1524_v9 = vmul.f32 %v6600_v21, %v1482_v30  ;;  %v1790_v3 = vadd.f32 %v6727_v26, %v1788_v34  ;;  %v8161_v34 = vld [vmem:[#allocation26_spill] sm:$0xff] }
 0x1ad   : > { %v2039_v56 = vcombine.high %v1537_v41, %v1537_v41  ;;  %v2046_v10 = vrot.slane %v1537_v41, %v8147_v58  ;;  %4097 = vpow2.f32 %v2630_v60  ;;  %v1494_v50 = vmul.f32 %v8159_v40, %v1484_v7  ;;  %v8162_v41 = vld [vmem:[#allocation22_spill] sm:$0xff] }
 0x1ae   : > { %v1506_v2 = vmul.f32 %v8160_v19, %v1496_v29  ;;  %v2636_v54 = vmul.f32 1.442695, %v2633_v24  ;;  %v2626_v53 = vsub.f32 %v6629_v55, %v6719_v46  ;;  %v2744_v25 = vmax.f32 %v6682_v17, %v6694_v6 }
 0x1af   : > { %v2053_v51 = vrot.slane %v2039_v56, %v8147_v58  ;;  %v2054_v21 = vcombine.high %v2046_v10, %v2046_v10  ;;  %v2642_v57 = vmul.f32 1.442695, %v2639_v1  ;;  %v2062_v15 = vrot.slane %v2046_v10, %v8147_v58  ;;  %v6755_v10 = vpop.xlane.xlu1 %2857 }
 0x1b0   : > { %v1508_v30 = vadd.f32 %v1506_v2, %v1494_v50  ;;  %v1520_v60 = vmul.f32 %v8161_v34, %v1510_v38  ;;  %4099 = vrcp.f32 %v1790_v3  ;;  %v1534_v7 = vmul.f32 %v8162_v41, %v1524_v9  ;;  %v6757_v38 = vpop.xlane.xlu0 %2854 }
 0x1b1   : > { %v6748_v24 = vmul.f32 0.17677669, %v6556_v61  ;;  %v6751_v55 = vmul.f32 0.17677669, %v6570_v52  ;;  %v2622_v29 = vmul.f32 1.442695, %v2620_v14  ;;  %4101 = vpow2.f32 %v2636_v54 }
 0x1b2   : > { %v1522_v56 = vadd.f32 %v1520_v60, %v1508_v30  ;;  %v2628_v40 = vmul.f32 1.442695, %v2626_v53  ;;  %v2632_v1 = vsub.f32 %v6666_v59, %v6719_v46  ;;  %v2055_v3 = vcombine.high %v2053_v51, %v2053_v51 }
 0x1b3   : > { %v2076_v9 = vrot.slane %v2054_v21, %v8147_v58  ;;  %v6763_v52 = vmul.f32 0.17677669, %v6579_v22  ;;  %v2084_v50 = vcombine.high %v2062_v15, %v2062_v15  ;;  %4103 = vpow2.f32 %v2642_v57 }
 0x1b4   : > { %v4094_v14 = vpop.eup %4093  ;;  %v1536_v19 = vadd.f32 %v1534_v7, %v1522_v56  ;;  %v2638_v59 = vsub.f32 %v6707_v35, %v6719_v46  ;;  %v2069_v54 = vrot.slane %v2053_v51, %v8147_v58  ;;  %v6771_v53 = vmul.f32 0.17677669, %v6585_v63  ;;  %v6788_v56 = vpop.xlane.xlu0 %2429 }
 0x1b5   : > { %v6767_v2 = vpop.eup %4095  ;;  %4105 = vpow2.f32 %v2622_v29  ;;  %v2634_v21 = vmul.f32 1.442695, %v2632_v1  ;;  %v1797_v34 = vmul.f32 %v4094_v14, %v8117_v11  ;;  %v6778_v57 = vrot.slane %v2055_v3, %v8147_v58  ;;  %v6786_v29 = vpop.xlane.xlu1 %2432 }
 0x1b6   : > { %v1992_v30 = vcombine.high %v1536_v19, %v1536_v19  ;;  %v1999_v22 = vrot.slane %v1536_v19, %v8147_v58  ;;  %4107 = vpow2.f32 %v2628_v40  ;;  %v2085_v35 = vcombine.high %v2076_v9, %v2076_v9 }
 0x1b7   : > { %v6775_v15 = vpop.eup %4097  ;;  %v6782_v51 = vmul.f32 0.17677669, %v2728_v18  ;;  %v2227_v63 = vrot.slane %v2084_v50, %v8153_v47  ;;  %v1799_v41 = vmul.f32 %v6662_v44, %v1797_v34  ;;  %v2640_v7 = vmul.f32 1.442695, %v2638_v59  ;;  %v8163_v59 = vld [vmem:[#allocation27_spill] sm:$0xff] }
 0x1b8   : > { %v2007_v60 = vcombine.high %v1999_v22, %v1999_v22  ;;  %v1811_v40 = vmul.f32 %v6670_v39, %v1797_v34  ;;  %v1825_v1 = vmul.f32 %v6677_v5, %v1797_v34  ;;  %v2645_v3 = vadd.f32 %v6775_v15, %v6767_v2  ;;  %v8164_v39 = vld [vmem:[#allocation30_spill] sm:$0xff] }
 0x1b9   : > { %4109 = vpow2.f32 %v2634_v21  ;;  %v2235_v9 = vrot.slane %v2069_v54, %v8153_v47  ;;  %v2006_v14 = vrot.slane %v1992_v30, %v8147_v58  ;;  %v2015_v44 = vrot.slane %v1999_v22, %v8147_v58  ;;  %v8165_v30 = vld [vmem:[#allocation31_spill] sm:$0xff] }
 0x1ba   : > { %v4100_v18 = vpop.eup %4099  ;;  %v1839_v50 = vmul.f32 %v6688_v33, %v1797_v34  ;;  %v2231_v19 = vrot.slane %v2085_v35, %v8153_v47  ;;  %v1809_v46 = vmul.f32 %v8163_v59, %v1799_v41  ;;  %v1821_v61 = vmul.f32 %v8164_v39, %v1811_v40  ;;  %v2740_v39 = vpop.xlane.xlu1 %2739 }
 0x1bb   : > { %v6802_v5 = vmax.f32 %v2744_v25, %v6782_v51  ;;  %v6804_v36 = vpop.eup %4101  ;;  %v2239_v54 = vrot.slane %v6778_v57, %v8153_v47  ;;  %v6810_v21 = vsel %vm2297_vm1, %v6598_v23, %v2227_v63  ;;  %v2029_v33 = vrot.slane %v2007_v60, %v8147_v58  ;;  %v8166_v23 = vld [vmem:[#allocation54_spill] sm:$0xff]  ;;  %v6823_v60 = vpop.xlane.xlu0 %2736 }
 0x1bc   : > { %v1835_v22 = vmul.f32 %v8165_v30, %v1825_v1  ;;  %v1823_v34 = vadd.f32 %v1821_v61, %v1809_v46  ;;  %v1796_v35 = vmul.f32 %v4100_v18, %v8117_v11  ;;  %v2647_v41 = vadd.f32 %v6804_v36, %v2645_v3  ;;  %v8167_v30 = vld [vmem:[#allocation35_spill] sm:$0xff] }
 0x1bd   : > { %4111 = vpow2.f32 %v2640_v7  ;;  %v6816_v25 = vpop.eup %4103  ;;  %v6820_v40 = vsel %vm2297_vm1, %v6635_v42, %v2235_v9  ;;  %v2008_v57 = vcombine.high %v2006_v14, %v2006_v14  ;;  %v2037_v59 = vcombine.high %v2015_v44, %v2015_v44 }
 0x1be   : > { %v1849_v63 = vmul.f32 %v8166_v23, %v1839_v50  ;;  %v1837_v61 = vadd.f32 %v1835_v22, %v1823_v34  ;;  %v1798_v11 = vmul.f32 %v6696_v49, %v1796_v35  ;;  %v1810_v46 = vmul.f32 %v6701_v31, %v1796_v35  ;;  %v8168_v34 = vld [vmem:[#allocation56_spill] sm:$0xff] }
 0x1bf   : > { %v6825_v1 = vpop.eup %4105  ;;  %v1824_v7 = vmul.f32 %v6709_v0, %v1796_v35  ;;  %v2303_v42 = vsel %vm2297_vm1, %v6620_v16, %v2231_v19  ;;  %v2022_v18 = vrot.slane %v2006_v14, %v8147_v58  ;;  %v2038_v9 = vcombine.high %v2029_v33, %v2029_v33 }
 0x1c0   : > { %v6830_v3 = vpop.eup %4107  ;;  %v2649_v44 = vadd.f32 %v6816_v25, %v2647_v41  ;;  %v1851_v50 = vadd.f32 %v1849_v63, %v1837_v61  ;;  %v1808_v22 = vmul.f32 %v8167_v30, %v1798_v11  ;;  %v1820_v49 = vmul.f32 %v8168_v34, %v1810_v46  ;;  %v8169_v63 = vld [vmem:[#allocation25_spill] sm:$0xff]  ;;  %v6854_v11 = vpop.xlane.xlu1 %2869 }
 0x1c1   : > { %v1838_v31 = vmul.f32 %v6727_v26, %v1796_v35  ;;  %v6840_v0 = vrot.slane %v2008_v57, %v8147_v58  ;;  %v2211_v23 = vrot.slane %v2037_v59, %v8153_v47  ;;  %v2644_v16 = vadd.f32 %v6830_v3, %v6825_v1  ;;  %v6856_v46 = vpop.xlane.xlu0 %2866 }
 0x1c2   : > { %4113 = vrcp.f32 %v2649_v44  ;;  %v2128_v19 = vcombine.high %v1851_v50, %v1851_v50  ;;  %v2135_v33 = vrot.slane %v1851_v50, %v8147_v58  ;;  %v1822_v41 = vadd.f32 %v1820_v49, %v1808_v22  ;;  %v8170_v22 = vld [vmem:[#allocation21_spill] sm:$0xff] }
 0x1c3   : > { %v6845_v14 = vpop.eup %4109  ;;  %v1834_v61 = vmul.f32 %v8169_v63, %v1824_v7  ;;  %v2305_v26 = vsel %vm2297_vm1, %v6626_v45, %v2239_v54  ;;  %v2215_v35 = vrot.slane %v2038_v9, %v8153_v47  ;;  %v2219_v57 = vrot.slane %v2022_v18, %v8153_v47 }
 0x1c4   : > { %v2646_v59 = vadd.f32 %v6845_v14, %v2644_v16  ;;  %v2142_v44 = vrot.slane %v2128_v19, %v8147_v58  ;;  %v2143_v50 = vcombine.high %v2135_v33, %v2135_v33  ;;  %v1848_v7 = vmul.f32 %v8170_v22, %v1838_v31 }
 0x1c5   : > { %v1836_v30 = vadd.f32 %v1834_v61, %v1822_v41  ;;  %v2223_v45 = vrot.slane %v6840_v0, %v8153_v47  ;;  %v6864_v54 = vsel %vm2297_vm1, %v6639_v32, %v2211_v23  ;;  %v6867_v18 = vmul.f32 0.17677669, %v6733_v4 }
 0x1c6   : > { %v6869_v9 = vmul.f32 0.17677669, %v2740_v39  ;;  %v2144_v49 = vcombine.high %v2142_v44, %v2142_v44  ;;  %v2151_v16 = vrot.slane %v2142_v44, %v8147_v58  ;;  %v2158_v19 = vrot.slane %v2143_v50, %v8147_v58 }
 0x1c7   : > { %v6871_v34 = vpop.eup %4111  ;;  %v1850_v31 = vadd.f32 %v1848_v7, %v1836_v30  ;;  %v2299_v0 = vsel %vm2297_vm1, %v6643_v13, %v2215_v35  ;;  %v2300_v32 = vsel %vm2297_vm1, %v6650_v48, %v2219_v57  ;;  %v6889_v48 = vpop.xlane.xlu1 %2462 }
 0x1c8   : > { %v2648_v23 = vadd.f32 %v6871_v34, %v2646_v59  ;;  %v6882_v4 = vmax.f32 %v6802_v5, %v6869_v9  ;;  %v2165_v39 = vrot.slane %v2144_v49, %v8147_v58  ;;  %v2166_v33 = vcombine.high %v2151_v16, %v2151_v16  ;;  %v6891_v35 = vpop.xlane.xlu0 %2459 }
 0x1c9   : > { %v2167_v41 = vcombine.high %v2158_v19, %v2158_v19  ;;  %v2271_v63 = vrot.slane %v2151_v16, %v8153_v47  ;;  %v2088_v61 = vcombine.high %v1850_v31, %v1850_v31  ;;  %v2095_v44 = vrot.slane %v1850_v31, %v8147_v58 }
 0x1ca   : > { %4115 = vrcp.f32 %v2648_v23  ;;  %v2750_v13 = vsub.f32 %v6682_v17, %v6882_v4  ;;  %v2275_v57 = vrot.slane %v2165_v39, %v8153_v47  ;;  %v2279_v59 = vrot.slane %v2166_v33, %v8153_v47  ;;  %v8171_v23 = vld [vmem:[#allocation57_spill] sm:$0xff] }
 0x1cb   : > { %v2267_v5 = vrot.slane %v2167_v41, %v8153_v47  ;;  %v2312_v50 = vsel %vm2306_vm2, %v2303_v42, %v2271_v63  ;;  %v2102_v22 = vrot.slane %v2088_v61, %v8147_v58  ;;  %v2103_v7 = vcombine.high %v2095_v44, %v2095_v44 }
 0x1cc   : > { %v4114_v30 = vpop.eup %4113  ;;  %v2753_v49 = vmul.f32 1.442695, %v2750_v13  ;;  %v2756_v17 = vsub.f32 %v6694_v6, %v6882_v4  ;;  %v2313_v19 = vsel %vm2306_vm2, %v6820_v40, %v2275_v57  ;;  %v2314_v31 = vsel %vm2306_vm2, %v2305_v26, %v2279_v59  ;;  %v8172_v57 = vld [vmem:[#allocation59_spill] sm:$0xff] }
 0x1cd   : > { %v2311_v16 = vsel %vm2306_vm2, %v6810_v21, %v2267_v5  ;;  %v2655_v39 = vmul.f32 %v4114_v30, %v8171_v23  ;;  %v2326_v33 = vcombine.low %v2313_v19, %v2314_v31  ;;  %v2104_v41 = vcombine.high %v2102_v22, %v2102_v22  ;;  %v6922_v5 = vpop.xlane.xlu1 %3277 }
 0x1ce   : > { %v2325_v42 = vcombine.low %v2311_v16, %v2312_v50  ;;  %v2111_v63 = vrot.slane %v2102_v22, %v8147_v58  ;;  %v2118_v61 = vrot.slane %v2103_v7, %v8147_v58  ;;  %v2301_v40 = vsel %vm2297_vm1, %v6656_v8, %v2223_v45  ;;  %v8173_v45 = vld [vmem:[#allocation39_spill] sm:$0xff]  ;;  %v8174_v16 = vld [vmem:[#allocation58_spill] sm:$0xff] }
 0x1cf   : > { %v2657_v44 = vmul.f32 %v6767_v2, %v2655_v39  ;;  %v2665_v6 = vmul.f32 %v6775_v15, %v2655_v39  ;;  %v2675_v21 = vmul.f32 %v6804_v36, %v2655_v39  ;;  %2335 = vst.msk [vmem:[%s6914_s6 + $0x18] sm:$0xff] %vm2331_vm5, %v2326_v33  ;;  %v2125_v26 = vrot.slane %v2104_v41, %v8147_v58  ;;  %v6924_v15 = vpop.xlane.xlu0 %3274 }
 0x1d0   : > { %2334 = vst.msk [vmem:[%s6914_s6 + $0x10] sm:$0xff] %vm2331_vm5, %v2325_v42  ;;  %v2126_v13 = vcombine.high %v2111_v63, %v2111_v63  ;;  %v2255_v2 = vrot.slane %v2111_v63, %v8153_v47  ;;  %v2127_v36 = vcombine.high %v2118_v61, %v2118_v61  ;;  %v2685_v50 = vmul.f32 %v6816_v25, %v2655_v39 }
 0x1d1   : > { %v2663_v8 = vmul.f32 %v8172_v57, %v2657_v44  ;;  %v2671_v59 = vmul.f32 %v8173_v45, %v2665_v6  ;;  %v2259_v30 = vrot.slane %v2125_v26, %v8153_v47  ;;  %v2681_v19 = vmul.f32 %v8174_v16, %v2675_v21  ;;  %v6943_v26 = vpop.xlane.xlu1 %3293  ;;  %v8178_v16 = vld [vmem:[#allocation32_spill] sm:$0xff] }
 0x1d2   : > { %v2263_v22 = vrot.slane %v2126_v13, %v8153_v47  ;;  %v2308_v7 = vsel %vm2306_vm2, %v2299_v0, %v2255_v2  ;;  %v2251_v31 = vrot.slane %v2127_v36, %v8153_v47  ;;  %4117 = vpow2.f32 %v2753_v49  ;;  %v8175_v13 = vld [vmem:[#allocation60_spill] sm:$0xff] }
 0x1d3   : > { %v2673_v42 = vadd.f32 %v2671_v59, %v2663_v8  ;;  %v2759_v33 = vmul.f32 1.442695, %v2756_v17  ;;  %v2309_v63 = vsel %vm2306_vm2, %v2300_v32, %v2259_v30  ;;  %v2762_v25 = vsub.f32 %v6782_v51, %v6882_v4 }
 0x1d4   : > { %v4116_v41 = vpop.eup %4115  ;;  %v2310_v61 = vsel %vm2306_vm2, %v2301_v40, %v2263_v22  ;;  %v2768_v39 = vsub.f32 %v6869_v9, %v6882_v4  ;;  %v2307_v0 = vsel %vm2306_vm2, %v6864_v54, %v2251_v31  ;;  %v6945_v40 = vpop.xlane.xlu0 %3290  ;;  %v6950_v51 = vmul.f32 0.17677669, %v6592_v28 }
 0x1d5   : > { %v2324_v44 = vcombine.low %v2309_v63, %v2310_v61  ;;  %v2683_v6 = vadd.f32 %v2681_v19, %v2673_v42  ;;  %v2654_v49 = vmul.f32 %v4116_v41, %v8171_v23  ;;  %v2323_v17 = vcombine.low %v2307_v0, %v2308_v7  ;;  %v8179_v19 = vld [vmem:[#allocation33_spill] sm:$0xff]  ;;  %v8181_v63 = vld [vmem:[#allocation67_spill] sm:$0xff] }
 0x1d6   : > { %4119 = vpow2.f32 %v2759_v33  ;;  %v2765_v21 = vmul.f32 1.442695, %v2762_v25  ;;  %v2771_v32 = vmul.f32 1.442695, %v2768_v39  ;;  %v6953_v9 = vmul.f32 0.17677669, %v6607_v27  ;;  %v6988_v33 = vpop.xlane.xlu1 %3503 }
 0x1d7   : > { %2333 = vst.msk [vmem:[%s6914_s6 + $0x8] sm:$0xff] %vm2331_vm5, %v2324_v44  ;;  %v2656_v54 = vmul.f32 %v6825_v1, %v2654_v49  ;;  %v2664_v4 = vmul.f32 %v6830_v3, %v2654_v49  ;;  %2332 = vst.msk [vmem:[%s6914_s6] sm:$0xff] %vm2331_vm5, %v2323_v17  ;;  %v2691_v2 = vmul.f32 %v8175_v13, %v2685_v50  ;;  %v2741_v28 = vmul.f32 0.17677669, %v6823_v60  ;;  %v8177_v1 = vld [vmem:[#allocation66_spill] sm:$0xff] }
 0x1d8   : > { %v8176_v36 = vmax.f32 %v6685_v62, %v6705_v37  ;;  %4121 = vpow2.f32 %v2765_v21  ;;  %v2873_v27 = vmax.f32 %v6748_v24, %v6763_v52  ;;  %v2674_v3 = vmul.f32 %v6845_v14, %v2654_v49 }
 0x1d9   : > { %v2662_v8 = vmul.f32 %v6448_v12, %v2656_v54  ;;  %v2670_v45 = vmul.f32 %v8177_v1, %v2664_v4  ;;  %v6971_v59 = vmul.f32 0.17677669, %v6616_v43  ;;  %v2693_v50 = vadd.f32 %v2691_v2, %v2683_v6  ;;  %v8183_v54 = vld [vmem:[#allocation37_spill] sm:$0xff] }
 0x1da   : > { %v2745_v57 = vmax.f32 %v8176_v36, %v6867_v18  ;;  %4123 = vpow2.f32 %v2771_v32  ;;  %v2860_v7 = vmul.f32 0.17677669, %v6755_v10  ;;  %v6975_v60 = vmul.f32 0.17677669, %v6757_v38  ;;  %v6990_v10 = vpop.xlane.xlu0 %3500 }
 0x1db   : > { %v2672_v22 = vadd.f32 %v2670_v45, %v2662_v8  ;;  %v6980_v12 = vsel %vm1282_vm6, %v8179_v19, %v8178_v16  ;;  %v6983_v31 = vmul.f32 0.17677669, %v6786_v29  ;;  %8180 = vst [vmem:[#allocation45_spill] sm:$0xff] %v6990_v10  ;;  %v2467_v41 = vmax.f32 %v6771_v53, %v6953_v9  ;;  %v8185_v8 = vld [vmem:[#allocation65_spill] sm:$0xff]  ;;  %v7027_v45 = vpop.xlane.xlu1 %3513 }
 0x1dc   : > { %v2747_v30 = vmax.f32 %v2745_v57, %v2741_v28  ;;  %v6992_v38 = vpop.eup %4117  ;;  %v2680_v61 = vmul.f32 %v8181_v63, %v2674_v3  ;;  %v2684_v29 = vmul.f32 %v6871_v34, %v2654_v49  ;;  %v2466_v0 = vmax.f32 %v6950_v51, %v6971_v59 }
 0x1dd   : > { %v8182_v6 = vmax.f32 %v6715_v20, %v6751_v55  ;;  %v2875_v34 = vmax.f32 %v2873_v27, %v6975_v60  ;;  %v7011_v49 = vmax.f32 %v2467_v41, %v6983_v31  ;;  %v8184_v27 = vld [vmem:[#allocation64_spill] sm:$0xff] }
 0x1de   : > { %v2749_v43 = vsub.f32 %v6685_v62, %v2747_v30  ;;  %v2755_v14 = vsub.f32 %v6705_v37, %v2747_v30  ;;  %v2761_v42 = vsub.f32 %v6867_v18, %v2747_v30  ;;  %v2767_v25 = vsub.f32 %v2741_v28, %v2747_v30  ;;  %v7029_v3 = vpop.xlane.xlu0 %3510 }
 0x1df   : > { %v3035_v62 = vrot.slane %v2693_v50, %v8147_v58  ;;  %v7000_v37 = vmul.f32 0.17677669, %v6788_v56  ;;  %v2682_v44 = vadd.f32 %v2680_v61, %v2672_v22  ;;  %v2876_v17 = vmax.f32 %v8182_v6, %v2860_v7  ;;  %8186 = vst [vmem:[#allocation46_spill] sm:$0xff] %v7029_v3 }
 0x1e0   : > { %v2751_v18 = vmul.f32 1.442695, %v2749_v43  ;;  %v2757_v39 = vmul.f32 1.442695, %v2755_v14  ;;  %v2763_v21 = vmul.f32 1.442695, %v2761_v42  ;;  %v7007_v32 = vpop.eup %4119  ;;  %v2690_v4 = vmul.f32 %v8183_v54, %v2684_v29 }
 0x1e1   : > { %v2872_v56 = vmul.f32 0.17677669, %v6854_v11  ;;  %v2774_v13 = vadd.f32 %v7007_v32, %v6992_v38  ;;  %v2769_v2 = vmul.f32 1.442695, %v2767_v25  ;;  %v3036_v57 = vcombine.high %v3035_v62, %v3035_v62  ;;  %v7036_v14 = vld [vmem:[%s5626_s30] sm:$0xff]  ;;  %v8187_v42 = vld [vmem:[#allocation61_spill] sm:$0xff] }
 0x1e2   : > { %4125 = vpow2.f32 %v2751_v18  ;;  %v7017_v36 = vpop.eup %4121  ;;  %v7020_v28 = vmax.f32 %v2466_v0, %v7000_v37  ;;  %v7025_v1 = vsel %vm1282_vm6, %v8185_v8, %v8184_v27  ;;  %v3043_v50 = vrot.slane %v3035_v62, %v8147_v58  ;;  %v8188_v0 = vld [vmem:[#allocation62_spill] sm:$0xff]  ;;  %v8192_v54 = vld [vmem:[#allocation28_spill] sm:$0xff] }
 0x1e3   : > { %4127 = vpow2.f32 %v2757_v39  ;;  %v2878_v11 = vmax.f32 %v2876_v17, %v2872_v56  ;;  %v2692_v30 = vadd.f32 %v2690_v4, %v2682_v44  ;;  %v2776_v22 = vadd.f32 %v7017_v36, %v2774_v13  ;;  %v8189_v44 = vld [vmem:[#allocation63_spill] sm:$0xff] }
 0x1e4   : > { %4129 = vpow2.f32 %v2763_v21  ;;  %v7033_v43 = vpop.eup %4123  ;;  %v7041_v41 = vsel %vm1282_vm6, %v8187_v42, %v7036_v14  ;;  %v2871_v18 = vmul.f32 0.17677669, %v6856_v46  ;;  %v3050_v39 = vrot.slane %v3036_v57, %v8147_v58  ;;  %v8194_v46 = vld [vmem:[#allocation23_spill] sm:$0xff] }
 0x1e5   : > { %v2880_v63 = vsub.f32 %v6715_v20, %v2878_v11  ;;  %v2886_v61 = vsub.f32 %v6751_v55, %v2878_v11  ;;  %v2892_v29 = vsub.f32 %v2860_v7, %v2878_v11  ;;  %v2778_v25 = vadd.f32 %v7033_v43, %v2776_v22  ;;  %v8191_v7 = vld [vmem:[#allocation36_spill] sm:$0xff]  ;;  %v8195_v4 = vld [vmem:[#allocation55_spill] sm:$0xff]  ;;  %v7066_v22 = vpop.xlane.xlu0 %3300 }
 0x1e6   : > { %4131 = vpow2.f32 %v2769_v2  ;;  %v2898_v62 = vsub.f32 %v2872_v56, %v2878_v11  ;;  %v7051_v6 = vsel %vm1282_vm6, %v8189_v44, %v8188_v0  ;;  %v3051_v20 = vcombine.high %v3043_v50, %v3043_v50  ;;  %v7064_v11 = vpop.xlane.xlu1 %3303  ;;  %8198 = vst [vmem:[#allocation51_spill] sm:$0xff] %v7066_v22  ;;  %v8199_v50 = vld [vmem:[#allocation40_spill] sm:$0xff] }
 0x1e7   : > { %8190 = vst [vmem:[#allocation47_spill] sm:$0xff] %v7051_v6  ;;  %v2883_v17 = vmul.f32 1.442695, %v2880_v63  ;;  %v2889_v21 = vmul.f32 1.442695, %v2886_v61  ;;  %v3011_v55 = vrot.slane %v2692_v30, %v8147_v58  ;;  %4133 = vrcp.f32 %v2778_v25  ;;  %8197 = vst [vmem:[#allocation50_spill] sm:$0xff] %v7064_v11 }
 0x1e8   : > { %v7057_v56 = vsel %vm2823_vm12, %v8192_v54, %v8191_v7  ;;  %v7062_v13 = vsel %vm2823_vm12, %v8195_v4, %v8194_v46  ;;  %v2895_v2 = vmul.f32 1.442695, %v2892_v29  ;;  %v2877_v57 = vmax.f32 %v2875_v34, %v2871_v18  ;;  %v8200_v30 = vld [vmem:[#allocation43_spill] sm:$0xff]  ;;  %v7074_v61 = vld [vmem:[%s5626_s30 + $0x10] sm:$0xff]  ;;  %v8203_v25 = vld [vmem:[#allocation34_spill] sm:$0xff] }
 0x1e9   : > { %8193 = vst [vmem:[#allocation48_spill] sm:$0xff] %v7057_v56  ;;  %8196 = vst [vmem:[#allocation49_spill] sm:$0xff] %v7062_v13  ;;  %4135 = vpow2.f32 %v2883_v17  ;;  %v7071_v63 = vsel %vm2823_vm12, %v8200_v30, %v8199_v50  ;;  %v7079_v56 = vsel %vm2823_vm12, %v8203_v25, %v7074_v61  ;;  %v2901_v17 = vmul.f32 1.442695, %v2898_v62 }
 0x1ea   : > { %8201 = vst [vmem:[#allocation19_spill] sm:$0xff] %v7071_v63  ;;  %8202 = vst [vmem:[#allocation52_spill] sm:$0xff] %v7074_v61  ;;  %4137 = vpow2.f32 %v2889_v21  ;;  %v3052_v34 = vcombine.high %v3050_v39, %v3050_v39  ;;  %v2879_v13 = vsub.f32 %v6748_v24, %v2877_v57  ;;  %v2885_v22 = vsub.f32 %v6763_v52, %v2877_v57 }
 0x1eb   : > { %8204 = vst [vmem:[#allocation53_spill] sm:$0xff] %v7079_v56  ;;  %v2891_v11 = vsub.f32 %v6975_v60, %v2877_v57  ;;  %v7089_v63 = vrot.slane %v3051_v20, %v8153_v47  ;;  %v3012_v6 = vcombine.high %v3011_v55, %v3011_v55  ;;  %v7092_v3 = vrot.slane %v3011_v55, %v8147_v58 }
 0x1ec   : > { %v7081_v29 = vpop.eup %4125  ;;  %v2897_v21 = vsub.f32 %v2871_v18, %v2877_v57  ;;  %4139 = vpow2.f32 %v2895_v2  ;;  %v2881_v39 = vmul.f32 1.442695, %v2879_v13  ;;  %v2887_v24 = vmul.f32 1.442695, %v2885_v22  ;;  %v7113_v2 = vpop.xlane.xlu1 %3523 }
 0x1ed   : > { %v7086_v10 = vpop.eup %4127  ;;  %8205 = vst [vmem:[#allocation18_spill] sm:$0xff] %v7089_v63  ;;  %4141 = vpow2.f32 %v2901_v17  ;;  %v7101_v52 = vsel %vm2823_vm12, %v8189_v44, %v8188_v0  ;;  %v2893_v60 = vmul.f32 1.442695, %v2891_v11  ;;  %v2465_v20 = vmul.f32 0.17677669, %v6889_v48  ;;  %8209 = vst [vmem:[#allocation26_spill] sm:$0xff] %v7113_v2  ;;  %v7115_v57 = vpop.xlane.xlu0 %3520 }
 0x1ee   : > { %v2773_v62 = vadd.f32 %v7086_v10, %v7081_v29  ;;  %v7096_v56 = vpop.eup %4129  ;;  %8206 = vst [vmem:[#allocation20_spill] sm:$0xff] %v7101_v52  ;;  %v7105_v55 = vrot.slane %v3052_v34, %v8153_v47  ;;  %v7111_v13 = vsel %vm2823_vm12, %v8179_v19, %v8178_v16  ;;  %4143 = vpow2.f32 %v2881_v39  ;;  %8210 = vst [vmem:[#allocation22_spill] sm:$0xff] %v7115_v57 }
 0x1ef   : > { %8208 = vst [vmem:[#allocation29_spill] sm:$0xff] %v7111_v13  ;;  %4145 = vpow2.f32 %v2887_v24  ;;  %v2899_v11 = vmul.f32 1.442695, %v2897_v21  ;;  %v2471_v48 = vmax.f32 %v7011_v49, %v2465_v20  ;;  %v2464_v17 = vmul.f32 0.17677669, %v6891_v35 }
 0x1f0   : > { %8207 = vst [vmem:[#allocation24_spill] sm:$0xff] %v7105_v55  ;;  %v2775_v18 = vadd.f32 %v7096_v56, %v2773_v62  ;;  %v7117_v22 = vpop.eup %4131  ;;  %v7122_v34 = vrot.slane %v3012_v6, %v8147_v58  ;;  %v3027_v62 = vcombine.high %v7092_v3, %v7092_v3  ;;  %v7130_v55 = vsel %vm2823_vm12, %v8185_v8, %v8184_v27  ;;  %v7145_v2 = vpop.xlane.xlu1 %3405 }
 0x1f1   : > { %8211 = vst [vmem:[#allocation27_spill] sm:$0xff] %v7130_v55  ;;  %v4134_v63 = vpop.eup %4133  ;;  %4147 = vpow2.f32 %v2893_v60  ;;  %v2473_v21 = vsub.f32 %v6771_v53, %v2471_v48  ;;  %v2479_v49 = vsub.f32 %v6953_v9, %v2471_v48  ;;  %v2485_v35 = vsub.f32 %v6983_v31, %v2471_v48  ;;  %8212 = vst [vmem:[#allocation30_spill] sm:$0xff] %v7145_v2 }
 0x1f2   : > { %v2777_v39 = vadd.f32 %v7117_v22, %v2775_v18  ;;  %v2784_v24 = vmul.f32 %v4134_v63, %v8171_v23  ;;  %v2491_v3 = vsub.f32 %v2465_v20, %v2471_v48  ;;  %v2470_v18 = vmax.f32 %v7020_v28, %v2464_v17  ;;  %v7147_v63 = vpop.xlane.xlu0 %3402 }
 0x1f3   : > { %v7135_v6 = vpop.eup %4135  ;;  %v2476_v55 = vmul.f32 1.442695, %v2473_v21  ;;  %v2482_v52 = vmul.f32 1.442695, %v2479_v49  ;;  %v2488_v60 = vmul.f32 1.442695, %v2485_v35 }
 0x1f4   : > { %4149 = vrcp.f32 %v2777_v39  ;;  %v7139_v13 = vpop.eup %4137  ;;  %v2786_v53 = vmul.f32 %v6992_v38, %v2784_v24  ;;  %v2794_v9 = vmul.f32 %v7007_v32, %v2784_v24  ;;  %v2804_v31 = vmul.f32 %v7017_v36, %v2784_v24  ;;  %8213 = vst [vmem:[#allocation31_spill] sm:$0xff] %v7147_v63  ;;  %v8214_v32 = vld [vmem:[#allocation41_spill] sm:$0xff]  ;;  %v8215_v39 = vld [vmem:[#allocation42_spill] sm:$0xff]  ;;  %v8216_v21 = vld [vmem:[#allocation44_spill] sm:$0xff] }
 0x1f5   : > { %4151 = vpow2.f32 %v2899_v11  ;;  %v2814_v57 = vmul.f32 %v7033_v43, %v2784_v24  ;;  %v2904_v28 = vadd.f32 %v7139_v13, %v7135_v6  ;;  %v2494_v20 = vmul.f32 1.442695, %v2491_v3 }
 0x1f6   : > { %4153 = vpow2.f32 %v2476_v55  ;;  %v2472_v11 = vsub.f32 %v6950_v51, %v2470_v18  ;;  %v7152_v48 = vpop.eup %4139  ;;  %v3028_v38 = vcombine.high %v7122_v34, %v7122_v34  ;;  %v2792_v36 = vmul.f32 %v8214_v32, %v2786_v53 }
 0x1f7   : > { %v2800_v43 = vmul.f32 %v8215_v39, %v2794_v9  ;;  %v2810_v49 = vmul.f32 %v8216_v21, %v2804_v31  ;;  %v7159_v35 = vpop.eup %4141  ;;  %v2906_v24 = vadd.f32 %v7152_v48, %v2904_v28  ;;  %4155 = vpow2.f32 %v2482_v52  ;;  %v8217_v9 = vld [vmem:[#allocation38_spill] sm:$0xff] }
 0x1f8   : > { %v2474_v55 = vmul.f32 1.442695, %v2472_v11  ;;  %v2478_v3 = vsub.f32 %v6971_v59, %v2470_v18  ;;  %v7163_v51 = vpop.eup %4143  ;;  %4157 = vpow2.f32 %v2488_v60  ;;  %v2484_v34 = vsub.f32 %v7000_v37, %v2470_v18  ;;  %v7172_v11 = vpop.xlane.xlu1 %3413 }
 0x1f9   : > { %v2802_v63 = vadd.f32 %v2800_v43, %v2792_v36  ;;  %v2490_v2 = vsub.f32 %v2464_v17, %v2470_v18  ;;  %v7166_v53 = vpop.eup %4145  ;;  %v2820_v32 = vmul.f32 %v8217_v9, %v2814_v57  ;;  %v2908_v31 = vadd.f32 %v7159_v35, %v2906_v24  ;;  %v7174_v60 = vpop.xlane.xlu0 %3410 }
 0x1fa   : > { %4159 = vpow2.f32 %v2494_v20  ;;  %v2480_v39 = vmul.f32 1.442695, %v2478_v3  ;;  %v2903_v52 = vadd.f32 %v7166_v53, %v7163_v51  ;;  %v2486_v59 = vmul.f32 1.442695, %v2484_v34  ;;  %8218 = vst [vmem:[#allocation54_spill] sm:$0xff] %v7174_v60 }
 0x1fb   : > { %v2812_v28 = vadd.f32 %v2810_v49, %v2802_v63  ;;  %4161 = vpow2.f32 %v2474_v55  ;;  %v7176_v37 = vpop.eup %4147  ;;  %v7181_v57 = vsel %vm2823_vm12, %v8187_v42, %v7036_v14  ;;  %v7186_v17 = vsel %vm401_vm4, %v8203_v25, %v7074_v61 }
 0x1fc   : > { %4163 = vrcp.f32 %v2908_v31  ;;  %v2492_v18 = vmul.f32 1.442695, %v2490_v2  ;;  %v7189_v20 = vrot.slane %v3027_v62, %v8153_v47  ;;  %v2905_v43 = vadd.f32 %v7176_v37, %v2903_v52 }
 0x1fd   : > { %v2822_v36 = vadd.f32 %v2820_v32, %v2812_v28  ;;  %4165 = vpow2.f32 %v2480_v39  ;;  %v7195_v49 = vrot.slane %v3028_v38, %v8153_v47  ;;  %v7201_v25 = vsel %vm401_vm4, %v8192_v54, %v8191_v7 }
 0x1fe   : > { %v4150_v63 = vpop.eup %4149  ;;  %v7206_v2 = vsel %vm401_vm4, %v8195_v4, %v8194_v46  ;;  %v7212_v38 = vsel %vm401_vm4, %v8200_v30, %v8199_v50  ;;  %4167 = vpow2.f32 %v2486_v59  ;;  %v7222_v4 = vsel %vm401_vm4, %v8187_v42, %v7036_v14  ;;  %v8222_v59 = vld [vmem:[#allocation46_spill] sm:$0xff]  ;;  %v8230_v46 = vld [vmem:[#allocation48_spill] sm:$0xff] }
 0x1ff   : > { %v7192_v21 = vpop.eup %4151  ;;  %v2783_v24 = vmul.f32 %v4150_v63, %v8171_v23  ;;  %v3078_v62 = vcombine.high %v2822_v36, %v2822_v36  ;;  %4169 = vpow2.f32 %v2492_v18  ;;  %v7227_v50 = vsel %vm401_vm4, %v8189_v44, %v8188_v0  ;;  %v8224_v36 = vld [vmem:[#allocation47_spill] sm:$0xff] }
 0x200   : > { %v2907_v55 = vadd.f32 %v7192_v21, %v2905_v43  ;;  %v7214_v3 = vpop.eup %4153  ;;  %v7230_v30 = vmul.f32 0.17677669, %v6943_v26  ;;  %v7242_v42 = vmul.f32 0.17677669, %v6945_v40  ;;  %v7251_v44 = vsel %vm401_vm4, %v8179_v19, %v8178_v16 }
 0x201   : > { %v2785_v34 = vmul.f32 %v7081_v29, %v2783_v24  ;;  %v2793_v7 = vmul.f32 %v7086_v10, %v2783_v24  ;;  %v2803_v54 = vmul.f32 %v7096_v56, %v2783_v24  ;;  %v7232_v29 = vpop.xlane.xlu1 %3605  ;;  %v7234_v10 = vpop.xlane.xlu0 %3602  ;;  %v2813_v14 = vmul.f32 %v7117_v22, %v2783_v24 }
 0x202   : > { %4171 = vrcp.f32 %v2907_v55  ;;  %8219 = vst [vmem:[#allocation35_spill] sm:$0xff] %v7232_v29  ;;  %8220 = vst [vmem:[#allocation56_spill] sm:$0xff] %v7234_v10  ;;  %v7236_v56 = vpop.eup %4155  ;;  %v7254_v31 = vmul.f32 0.17677669, %v6922_v5  ;;  %v3085_v40 = vrot.slane %v3078_v62, %v8147_v58  ;;  %v7264_v28 = vmul.f32 0.17677669, %v6924_v15 }
 0x203   : > { %v2791_v9 = vmul.f32 %v6980_v12, %v2785_v34  ;;  %v2799_v32 = vmul.f32 %v7025_v1, %v2793_v7  ;;  %v7244_v0 = vpop.eup %4157  ;;  %v2497_v26 = vadd.f32 %v7236_v56, %v7214_v3  ;;  %v7257_v12 = vmul.f32 0.17677669, %v7027_v45 }
 0x204   : > { %v7259_v1 = vpop.eup %4159  ;;  %v2809_v39 = vmul.f32 %v7041_v41, %v2803_v54  ;;  %v7272_v5 = vsel %vm401_vm4, %v8185_v8, %v8184_v27  ;;  %v7275_v45 = vmul.f32 0.17677669, %v6988_v33  ;;  %v7278_v18 = vmul.f32 0.17677669, %v8222_v59  ;;  %v8225_v8 = vld [vmem:[#allocation45_spill] sm:$0xff] }
 0x205   : > { %8221 = vst [vmem:[#allocation25_spill] sm:$0xff] %v7257_v12  ;;  %v2801_v22 = vadd.f32 %v2799_v32, %v2791_v9  ;;  %v7266_v52 = vpop.eup %4161  ;;  %v2499_v19 = vadd.f32 %v7244_v0, %v2497_v26  ;;  %v2819_v15 = vmul.f32 %v8224_v36, %v2813_v14  ;;  %v3324_v43 = vmax.f32 %v7254_v31, %v7230_v30  ;;  %v7294_v7 = vpop.xlane.xlu1 %3613 }
 0x206   : > { %8223 = vst [vmem:[#allocation21_spill] sm:$0xff] %v7278_v18  ;;  %v4164_v63 = vpop.eup %4163  ;;  %v3323_v24 = vmax.f32 %v7264_v28, %v7242_v42  ;;  %v7290_v55 = vmul.f32 0.17677669, %v8225_v8  ;;  %v3538_v34 = vmax.f32 %v7275_v45, %v7257_v12  ;;  %8227 = vst [vmem:[#allocation59_spill] sm:$0xff] %v7294_v7  ;;  %v7296_v54 = vpop.xlane.xlu0 %3610  ;;  %v3086_v9 = vcombine.high %v3085_v40, %v3085_v40 }
 0x207   : > { %v2811_v41 = vadd.f32 %v2809_v39, %v2801_v22  ;;  %v7285_v62 = vpop.eup %4165  ;;  %v2914_v27 = vmul.f32 %v4164_v63, %v8171_v23  ;;  %v2501_v33 = vadd.f32 %v7259_v1, %v2499_v19  ;;  %8228 = vst [vmem:[#allocation39_spill] sm:$0xff] %v7296_v54  ;;  %v3093_v32 = vrot.slane %v3085_v40, %v8147_v58 }
 0x208   : > { %8226 = vst [vmem:[#allocation57_spill] sm:$0xff] %v7290_v55  ;;  %v2496_v26 = vadd.f32 %v7285_v62, %v7266_v52  ;;  %v7301_v22 = vpop.eup %4167  ;;  %v3537_v63 = vmax.f32 %v7290_v55, %v7278_v18  ;;  %v8236_v55 = vld [vmem:[#allocation53_spill] sm:$0xff]  ;;  %vm3225_vm4 = vcmask 1043456   ;;  %vm3230_vm6 = vcmask 1044480  }
 0x209   : > { %v2821_v14 = vadd.f32 %v2819_v15, %v2811_v41  ;;  %v2916_v39 = vmul.f32 %v7135_v6, %v2914_v27  ;;  %v2924_v19 = vmul.f32 %v7139_v13, %v2914_v27  ;;  %v2934_v59 = vmul.f32 %v7152_v48, %v2914_v27  ;;  %v7308_v36 = vpop.eup %4169  ;;  %v8229_v41 = vld [vmem:[#allocation50_spill] sm:$0xff]  ;;  %v8231_v6 = vld [vmem:[#allocation49_spill] sm:$0xff]  ;;  %v8232_v48 = vld [vmem:[#allocation51_spill] sm:$0xff] }
 0x20a   : > { %4173 = vrcp.f32 %v2501_v33  ;;  %v2498_v40 = vadd.f32 %v7301_v22, %v2496_v26  ;;  %v7312_v15 = vmul.f32 0.17677669, %v8229_v41  ;;  %v2944_v13 = vmul.f32 %v7159_v35, %v2914_v27  ;;  %v8233_v26 = vld [vmem:[#allocation26_spill] sm:$0xff]  ;;  %v8234_v35 = vld [vmem:[#allocation19_spill] sm:$0xff] }
 0x20b   : > { %v3055_v8 = vcombine.high %v2821_v14, %v2821_v14  ;;  %v2922_v61 = vmul.f32 %v8230_v46, %v2916_v39  ;;  %v2930_v10 = vmul.f32 %v8231_v6, %v2924_v19  ;;  %v7318_v54 = vmul.f32 0.17677669, %v8232_v48  ;;  %v3320_v19 = vpop.xlane.xlu1 %3319  ;;  %v3317_v6 = vpop.xlane.xlu0 %3316 }
 0x20c   : > { %v4172_v16 = vpop.eup %4171  ;;  %v2500_v33 = vadd.f32 %v7308_v36, %v2498_v40  ;;  %v7324_v7 = vmul.f32 0.17677669, %v8233_v26  ;;  %v7327_v41 = vrot.slane %v3086_v9, %v8147_v58  ;;  %v7330_v46 = vrot.slane %v3093_v32, %v8153_v47  ;;  %v8235_v40 = vld [vmem:[#allocation22_spill] sm:$0xff] }
 0x20d   : > { %v3062_v29 = vrot.slane %v3055_v8, %v8147_v58  ;;  %v2913_v14 = vmul.f32 %v4172_v16, %v8171_v23  ;;  %v2932_v39 = vadd.f32 %v2930_v10, %v2922_v61  ;;  %v2940_v27 = vmul.f32 %v8234_v35, %v2934_v59  ;;  %v8237_v10 = vld [vmem:[#allocation20_spill] sm:$0xff]  ;;  %v8238_v59 = vld [vmem:[#allocation29_spill] sm:$0xff] }
 0x20e   : > { %v7336_v18 = vmul.f32 0.17677669, %v8235_v40  ;;  %v2950_v9 = vmul.f32 %v8236_v55, %v2944_v13  ;;  %4175 = vrcp.f32 %v2500_v33  ;;  %v3326_v40 = vmax.f32 %v3324_v43, %v7312_v15  ;;  %v8239_v13 = vld [vmem:[#allocation27_spill] sm:$0xff] }
 0x20f   : > { %v3063_v48 = vcombine.high %v3062_v29, %v3062_v29  ;;  %v2915_v8 = vmul.f32 %v7163_v51, %v2913_v14  ;;  %v2923_v16 = vmul.f32 %v7166_v53, %v2913_v14  ;;  %v2942_v26 = vadd.f32 %v2940_v27, %v2932_v39  ;;  %v3534_v43 = vpop.xlane.xlu1 %3533 }
 0x210   : > { %v2933_v60 = vmul.f32 %v7176_v37, %v2913_v14  ;;  %v3070_v61 = vrot.slane %v3062_v29, %v8147_v58  ;;  %v2943_v12 = vmul.f32 %v7192_v21, %v2913_v14  ;;  %v3325_v39 = vmax.f32 %v3323_v24, %v7318_v54  ;;  %v3531_v24 = vpop.xlane.xlu0 %3530 }
 0x211   : > { %v2921_v32 = vmul.f32 %v8237_v10, %v2915_v8  ;;  %v2929_v35 = vmul.f32 %v8238_v59, %v2923_v16  ;;  %v7345_v51 = vrot.slane %v3063_v48, %v8147_v58  ;;  %v2952_v53 = vadd.f32 %v2950_v9, %v2942_v26 }
 0x212   : > { %v3188_v37 = vrot.slane %v7327_v41, %v8153_v47  ;;  %v2939_v29 = vmul.f32 %v8239_v13, %v2933_v60  ;;  %v7353_v33 = vmax.f32 %v3538_v34, %v7324_v7  ;;  %v7356_v21 = vmax.f32 %v3537_v63, %v7336_v18 }
 0x213   : > { %v2931_v55 = vadd.f32 %v2929_v35, %v2921_v32  ;;  %v3128_v27 = vcombine.high %v2952_v53, %v2952_v53  ;;  %v7359_v14 = vmul.f32 0.17677669, %v7172_v11  ;;  %v7361_v48 = vmul.f32 0.17677669, %v3320_v19 }
 0x214   : > { %v4174_v8 = vpop.eup %4173  ;;  %v7364_v16 = vrot.slane %v3070_v61, %v8153_v47  ;;  %v2949_v60 = vmul.f32 %v7181_v57, %v2943_v12  ;;  %v7367_v34 = vmul.f32 0.17677669, %v3317_v6  ;;  %v3180_v63 = vrot.slane %v7345_v51, %v8153_v47  ;;  %v7460_v41 = vpop.xlane.xlu0 %3418 }
 0x215   : > { %v2941_v26 = vadd.f32 %v2939_v29, %v2931_v55  ;;  %v3135_v9 = vrot.slane %v3128_v27, %v8147_v58  ;;  %v2508_v11 = vmul.f32 %v4174_v8, %v8171_v23  ;;  %v3328_v19 = vmax.f32 %v3326_v40, %v7361_v48 }
 0x216   : > { %v7375_v32 = vmax.f32 %v3325_v39, %v7367_v34  ;;  %v7377_v61 = vmul.f32 0.17677669, %v3534_v43  ;;  %v7379_v59 = vmul.f32 0.17677669, %v3531_v24 }
 0x217   : > { %v2951_v10 = vadd.f32 %v2949_v60, %v2941_v26  ;;  %v3136_v57 = vcombine.high %v3135_v9, %v3135_v9  ;;  %v3143_v12 = vrot.slane %v3135_v9, %v8147_v58  ;;  %v2510_v6 = vmul.f32 %v7214_v3, %v2508_v11 }
 0x218   : > { %v2524_v35 = vmul.f32 %v7236_v56, %v2508_v11  ;;  %v2538_v55 = vmul.f32 %v7244_v0, %v2508_v11  ;;  %v2552_v40 = vmul.f32 %v7259_v1, %v2508_v11  ;;  %v3330_v13 = vsub.f32 %v7254_v31, %v3328_v19  ;;  %v4176_v39 = vpop.eup %4175 }
 0x219   : > { %v3103_v53 = vcombine.high %v2951_v10, %v2951_v10  ;;  %v3150_v29 = vrot.slane %v3136_v57, %v8147_v58  ;;  %v3151_v27 = vcombine.high %v3143_v12, %v3143_v12  ;;  %v2522_v43 = vmul.f32 %v7186_v17, %v2510_v6 }
 0x21a   : > { %v2534_v24 = vmul.f32 %v7201_v25, %v2524_v35  ;;  %v2548_v3 = vmul.f32 %v7206_v2, %v2538_v55  ;;  %v2562_v56 = vmul.f32 %v7212_v38, %v2552_v40  ;;  %v2507_v0 = vmul.f32 %v4176_v39, %v8171_v23 }
 0x21b   : > { %v3110_v8 = vrot.slane %v3103_v53, %v8147_v58  ;;  %v3152_v26 = vcombine.high %v3150_v29, %v3150_v29  ;;  %v7395_v1 = vrot.slane %v3151_v27, %v8153_v47  ;;  %v3333_v60 = vmul.f32 1.442695, %v3330_v13 }
 0x21c   : > { %v2536_v31 = vadd.f32 %v2534_v24, %v2522_v43  ;;  %v2509_v17 = vmul.f32 %v7266_v52, %v2507_v0  ;;  %v2523_v25 = vmul.f32 %v7285_v62, %v2507_v0  ;;  %v2537_v23 = vmul.f32 %v7301_v22, %v2507_v0 }
 0x21d   : > { %v3111_v9 = vcombine.high %v3110_v8, %v3110_v8  ;;  %v3118_v11 = vrot.slane %v3110_v8, %v8147_v58  ;;  %v7401_v10 = vrot.slane %v3152_v26, %v8153_v47  ;;  %v2551_v38 = vmul.f32 %v7308_v36, %v2507_v0  ;;  %v8240_v0 = vld [vmem:[#allocation18_spill] sm:$0xff] }
 0x21e   : > { %v2550_v2 = vadd.f32 %v2548_v3, %v2536_v31  ;;  %v2521_v6 = vmul.f32 %v7222_v4, %v2509_v17  ;;  %v2533_v35 = vmul.f32 %v7227_v50, %v2523_v25  ;;  %v2547_v62 = vmul.f32 %v7251_v44, %v2537_v23  ;;  %v8241_v17 = vld [vmem:[#allocation24_spill] sm:$0xff] }
 0x21f   : > { %v3125_v57 = vrot.slane %v3111_v9, %v8147_v58  ;;  %v3126_v12 = vcombine.high %v3118_v11, %v3118_v11  ;;  %v2561_v53 = vmul.f32 %v7272_v5, %v2551_v38  ;;  %4177 = vpow2.f32 %v3333_v60 }
 0x220   : > { %v2564_v52 = vadd.f32 %v2562_v56, %v2550_v2  ;;  %v2535_v36 = vadd.f32 %v2533_v35, %v2521_v6  ;;  %v3336_v40 = vsub.f32 %v7230_v30, %v3328_v19  ;;  %v3342_v4 = vsub.f32 %v7312_v15, %v3328_v19 }
 0x221   : > { %v3127_v55 = vcombine.high %v3125_v57, %v3125_v57  ;;  %v7411_v22 = vrot.slane %v3126_v12, %v8153_v47  ;;  %v3348_v50 = vsub.f32 %v7361_v48, %v3328_v19  ;;  %v3329_v44 = vsub.f32 %v7264_v28, %v7375_v32  ;;  %v7445_v12 = vpop.xlane.xlu1 %3421 }
 0x222   : > { %v2983_v13 = vrot.slane %v2564_v52, %v8147_v58  ;;  %v2549_v39 = vadd.f32 %v2547_v62, %v2535_v36  ;;  %v3339_v29 = vmul.f32 1.442695, %v3336_v40  ;;  %v3335_v27 = vsub.f32 %v7242_v42, %v7375_v32 }
 0x223   : > { %v7420_v5 = vrot.slane %v3127_v55, %v8153_v47  ;;  %v3345_v24 = vmul.f32 1.442695, %v3342_v4  ;;  %v3351_v8 = vmul.f32 1.442695, %v3348_v50  ;;  %v3331_v15 = vmul.f32 1.442695, %v3329_v44 }
 0x224   : > { %v2984_v43 = vcombine.high %v2983_v13, %v2983_v13  ;;  %v2991_v30 = vrot.slane %v2983_v13, %v8147_v58  ;;  %v2563_v3 = vadd.f32 %v2561_v53, %v2549_v39  ;;  %4179 = vpow2.f32 %v3339_v29  ;;  %v3247_v55 = vld [vmem:[%s6914_s6 + $0x10] sm:$0xff]  ;;  %v3248_v4 = vld [vmem:[%s6914_s6 + $0x18] sm:$0xff] }
 0x225   : > { %v3337_v48 = vmul.f32 1.442695, %v3335_v27  ;;  %4181 = vpow2.f32 %v3345_v24  ;;  %v3341_v56 = vsub.f32 %v7318_v54, %v7375_v32  ;;  %v3347_v31 = vsub.f32 %v7367_v34, %v7375_v32 }
 0x226   : > { %v2998_v19 = vrot.slane %v2984_v43, %v8147_v58  ;;  %v3215_v28 = vsel %vm2288_vm0, %v2991_v30, 0.0  ;;  %v2961_v26 = vrot.slane %v2563_v3, %v8147_v58  ;;  %4183 = vpow2.f32 %v3351_v8  ;;  %v7494_v8 = vpop.xlane.xlu1 %3621  ;;  %v8242_v3 = vld [vmem:[#allocation25_spill] sm:$0xff] }
 0x227   : > { %v3219_v42 = vsel %vm2297_vm1, %v3215_v28, %v8240_v0  ;;  %4185 = vpow2.f32 %v3331_v15  ;;  %v3343_v11 = vmul.f32 1.442695, %v3341_v56  ;;  %v3349_v57 = vmul.f32 1.442695, %v3347_v31  ;;  %v7511_v0 = vpop.xlane.xlu0 %3618 }
 0x228   : > { %v3216_v60 = vsel %vm2288_vm0, %v2998_v19, 0.0  ;;  %v3223_v9 = vsel %vm2306_vm2, %v3219_v42, 0.0  ;;  %v2962_v2 = vcombine.high %v2961_v26, %v2961_v26  ;;  %v2969_v23 = vrot.slane %v2961_v26, %v8147_v58  ;;  %v3246_v26 = vld [vmem:[%s6914_s6 + $0x8] sm:$0xff] }
 0x229   : > { %v3220_v25 = vsel %vm2297_vm1, %v3216_v60, %v8241_v17  ;;  %v3228_v54 = vsel %vm3225_vm4, %v3223_v9, %v7330_v46  ;;  %v7441_v38 = vpop.eup %4177  ;;  %4187 = vpow2.f32 %v3337_v48  ;;  %v3542_v27 = vmax.f32 %v7353_v33, %v7377_v61 }
 0x22a   : > { %v3224_v34 = vsel %vm2306_vm2, %v3220_v25, 0.0  ;;  %v3233_v32 = vsel %vm3230_vm6, %v3228_v54, 0.0  ;;  %v2976_v35 = vrot.slane %v2962_v2, %v8147_v58  ;;  %v3213_v52 = vsel %vm2288_vm0, %v2969_v23, 0.0  ;;  %v8244_v25 = vld [vmem:[#allocation57_spill] sm:$0xff] }
 0x22b   : > { %v3229_v6 = vsel %vm3225_vm4, %v3224_v34, %v3188_v37  ;;  %v3238_v46 = vsel %vm3235_vm7, %v3233_v32, %v7395_v1  ;;  %v3217_v36 = vsel %vm2297_vm1, %v3213_v52, %v7189_v20  ;;  %4189 = vpow2.f32 %v3343_v11  ;;  %v3430_v52 = vpop.xlane.xlu1 %3429 }
 0x22c   : > { %v3234_v62 = vsel %vm3230_vm6, %v3229_v6, 0.0  ;;  %v3243_v53 = vsel %vm3240_vm8, %v3238_v46, 0.0  ;;  %v3214_v58 = vsel %vm2288_vm0, %v2976_v35, 0.0  ;;  %v3221_v40 = vsel %vm2306_vm2, %v3217_v36, 0.0 }
 0x22d   : > { %v3239_v37 = vsel %vm3235_vm7, %v3234_v62, %v7401_v10  ;;  %v3251_v1 = vadd.f32 %v3247_v55, %v3243_v53  ;;  %v3218_v50 = vsel %vm2297_vm1, %v3214_v58, %v7195_v49  ;;  %v3226_v20 = vsel %vm3225_vm4, %v3221_v40, %v7364_v16  ;;  %v8247_v62 = vld [vmem:[#allocation31_spill] sm:$0xff]  ;;  %v3427_v40 = vpop.xlane.xlu0 %3426 }
 0x22e   : > { %v3244_v13 = vsel %vm3240_vm8, %v3239_v37, 0.0  ;;  %4191 = vpow2.f32 %v3349_v57  ;;  %v7472_v44 = vpop.eup %4179  ;;  %v3222_v39 = vsel %vm2306_vm2, %v3218_v50, 0.0  ;;  %v3231_v29 = vsel %vm3230_vm6, %v3226_v20, 0.0  ;;  %v8246_v57 = vld [vmem:[#allocation30_spill] sm:$0xff]  ;;  %v8248_v50 = vld [vmem:[#allocation59_spill] sm:$0xff] }
 0x22f   : > { %v3252_v10 = vadd.f32 %v3248_v4, %v3244_v13  ;;  %3255 = vst.msk [vmem:[%s6914_s6 + $0x10] sm:$0xff] %vm2331_vm5, %v3251_v1  ;;  %v7480_v43 = vpop.eup %4181  ;;  %v3227_v49 = vsel %vm3225_vm4, %v3222_v39, %v3180_v63  ;;  %v3236_v16 = vsel %vm3235_vm7, %v3231_v29, %v7411_v22  ;;  %v3354_v30 = vadd.f32 %v7472_v44, %v7441_v38  ;;  %v3245_v63 = vld [vmem:[%s6914_s6] sm:$0xff] }
 0x230   : > { %v7492_v24 = vmax.f32 %v7356_v21, %v7379_v59  ;;  %v7496_v33 = vpop.eup %4183  ;;  %v3232_v47 = vsel %vm3230_vm6, %v3227_v49, 0.0  ;;  %v3241_v51 = vsel %vm3240_vm8, %v3236_v16, 0.0  ;;  %v3544_v22 = vsub.f32 %v7275_v45, %v3542_v27  ;;  %v8249_v49 = vld [vmem:[#allocation35_spill] sm:$0xff] }
 0x231   : > { %3256 = vst.msk [vmem:[%s6914_s6 + $0x18] sm:$0xff] %vm2331_vm5, %v3252_v10  ;;  %v3550_v15 = vsub.f32 %v8242_v3, %v3542_v27  ;;  %v7505_v48 = vpop.eup %4185  ;;  %v3237_v21 = vsel %vm3235_vm7, %v3232_v47, %v7420_v5  ;;  %v3249_v19 = vadd.f32 %v3245_v63, %v3241_v51  ;;  %v3356_v28 = vadd.f32 %v7480_v43, %v3354_v30  ;;  %v8243_v5 = vld [vmem:[#allocation54_spill] sm:$0xff]  ;;  %v3630_v30 = vpop.xlane.xlu1 %3629 }
 0x232   : > { %v3556_v56 = vsub.f32 %v7324_v7, %v3542_v27  ;;  %v3242_v42 = vsel %vm3240_vm8, %v3237_v21, 0.0  ;;  %v3547_v31 = vmul.f32 1.442695, %v3544_v22  ;;  %v3562_v60 = vsub.f32 %v7377_v61, %v3542_v27  ;;  %v8245_v61 = vld [vmem:[#allocation21_spill] sm:$0xff] }
 0x233   : > { %v3553_v45 = vmul.f32 1.442695, %v3550_v15  ;;  %v7516_v9 = vpop.eup %4187  ;;  %v3250_v11 = vadd.f32 %v3246_v26, %v3242_v42  ;;  %3253 = vst.msk [vmem:[%s6914_s6] sm:$0xff] %vm2331_vm5, %v3249_v19  ;;  %v7521_v17 = vmul.f32 0.17677669, %v8243_v5  ;;  %v3358_v7 = vadd.f32 %v7496_v33, %v3356_v28 }
 0x234   : > { %v3543_v54 = vsub.f32 %v8244_v25, %v7492_v24  ;;  %v3353_v2 = vadd.f32 %v7516_v9, %v7505_v48  ;;  %4193 = vpow2.f32 %v3547_v31  ;;  %v3559_v23 = vmul.f32 1.442695, %v3556_v56 }
 0x235   : > { %v3549_v34 = vsub.f32 %v8245_v61, %v7492_v24  ;;  %v7530_v32 = vpop.eup %4189  ;;  %3254 = vst.msk [vmem:[%s6914_s6 + $0x8] sm:$0xff] %vm2331_vm5, %v3250_v11  ;;  %v3408_v6 = vmul.f32 0.17677669, %v8246_v57  ;;  %v3424_v35 = vmul.f32 0.17677669, %v7445_v12  ;;  %4195 = vpow2.f32 %v3553_v45 }
 0x236   : > { %v3545_v46 = vmul.f32 1.442695, %v3543_v54  ;;  %v7537_v53 = vmul.f32 0.17677669, %v8247_v62  ;;  %v3565_v55 = vmul.f32 1.442695, %v3562_v60  ;;  %v3555_v36 = vsub.f32 %v7336_v18, %v7492_v24  ;;  %v3627_v62 = vpop.xlane.xlu0 %3626 }
 0x237   : > { %v3434_v1 = vmax.f32 %v3408_v6, %v7359_v14  ;;  %4197 = vrcp.f32 %v3358_v7  ;;  %v3551_v58 = vmul.f32 1.442695, %v3549_v34  ;;  %v3355_v12 = vadd.f32 %v7530_v32, %v3353_v2  ;;  %v8250_v7 = vld [vmem:[#allocation39_spill] sm:$0xff] }
 0x238   : > { %v7541_v37 = vpop.eup %4191  ;;  %v3433_v13 = vmax.f32 %v7537_v53, %v7521_v17  ;;  %4199 = vpow2.f32 %v3559_v23  ;;  %v7548_v4 = vmul.f32 0.17677669, %v7460_v41  ;;  %v7551_v20 = vmul.f32 0.17677669, %v8248_v50 }
 0x239   : > { %4201 = vpow2.f32 %v3545_v46  ;;  %v3436_v18 = vmax.f32 %v3434_v1, %v3424_v35  ;;  %v3432_v10 = vmul.f32 0.17677669, %v3430_v52  ;;  %v3557_v39 = vmul.f32 1.442695, %v3555_v36  ;;  %v8251_v46 = vld [vmem:[#allocation56_spill] sm:$0xff] }
 0x23a   : > { %4203 = vpow2.f32 %v3565_v55  ;;  %v3561_v29 = vsub.f32 %v7379_v59, %v7492_v24  ;;  %v7557_v27 = vmul.f32 0.17677669, %v3427_v40  ;;  %v7560_v16 = vmul.f32 0.17677669, %v8249_v49 }
 0x23b   : > { %4205 = vpow2.f32 %v3551_v58  ;;  %v3438_v41 = vmax.f32 %v3436_v18, %v3432_v10  ;;  %v3357_v47 = vadd.f32 %v7541_v37, %v3355_v12  ;;  %v3435_v51 = vmax.f32 %v3433_v13, %v7548_v4 }
 0x23c   : > { %v7565_v63 = vmul.f32 0.17677669, %v7494_v8  ;;  %v3634_v22 = vmax.f32 %v7560_v16, %v7551_v20  ;;  %4207 = vpow2.f32 %v3557_v39  ;;  %v3563_v21 = vmul.f32 1.442695, %v3561_v29 }
 0x23d   : > { %v3440_v59 = vsub.f32 %v3408_v6, %v3438_v41  ;;  %v3446_v24 = vsub.f32 %v7359_v14, %v3438_v41  ;;  %v3452_v3 = vsub.f32 %v3424_v35, %v3438_v41  ;;  %v3437_v19 = vmax.f32 %v3435_v51, %v7557_v27 }
 0x23e   : > { %v7570_v15 = vpop.eup %4193  ;;  %v7573_v28 = vmul.f32 0.17677669, %v3630_v30  ;;  %v3458_v8 = vsub.f32 %v3432_v10, %v3438_v41  ;;  %4209 = vrcp.f32 %v3357_v47  ;;  %v3636_v31 = vmax.f32 %v3634_v22, %v7565_v63 }
 0x23f   : > { %v3443_v56 = vmul.f32 1.442695, %v3440_v59  ;;  %v3449_v42 = vmul.f32 1.442695, %v3446_v24  ;;  %v7575_v26 = vpop.eup %4195  ;;  %v7579_v60 = vstv %s7553_s18  ;;  %v3455_v11 = vmul.f32 1.442695, %v3452_v3 }
 0x240   : > { %v3568_v14 = vadd.f32 %v7575_v26, %v7570_v15  ;;  %v7586_v25 = vmul.f32 0.17677669, %v8250_v7  ;;  %v3439_v54 = vsub.f32 %v7537_v53, %v3437_v19  ;;  %v3638_v2 = vmax.f32 %v3636_v31, %v7573_v28  ;;  %v8252_v3 = vld [vmem:[#allocation52_spill] sm:$0xff] }
 0x241   : > { %v4198_v45 = vpop.eup %4197  ;;  %4211 = vpow2.f32 %v3443_v56  ;;  %v3461_v34 = vmul.f32 1.442695, %v3458_v8  ;;  %v3445_v57 = vsub.f32 %v7521_v17, %v3437_v19  ;;  %v3607_v35 = vmul.f32 0.17677669, %v8251_v46 }
 0x242   : > { %v7583_v5 = vpop.eup %4199  ;;  %4213 = vpow2.f32 %v3563_v21  ;;  %v7598_v52 = vmul.f32 0.17677669, %v7511_v0  ;;  %v7603_v53 = vmul.f32 %v4198_v45, %v7579_v60  ;;  %v3451_v1 = vsub.f32 %v7548_v4, %v3437_v19 }
 0x243   : > { %v7590_v23 = vpop.eup %4201  ;;  %v3570_v61 = vadd.f32 %v7583_v5, %v3568_v14  ;;  %4215 = vpow2.f32 %v3449_v42  ;;  %v3633_v17 = vmax.f32 %v3607_v35, %v7586_v25  ;;  %v3441_v40 = vmul.f32 1.442695, %v3439_v54 }
 0x244   : > { %v7594_v6 = vpop.eup %4203  ;;  %4217 = vpow2.f32 %v3455_v11  ;;  %v3457_v0 = vsub.f32 %v7557_v27, %v3437_v19  ;;  %v3447_v13 = vmul.f32 1.442695, %v3445_v57  ;;  %v3640_v12 = vsub.f32 %v7560_v16, %v3638_v2 }
 0x245   : > { %v7600_v55 = vpop.eup %4205  ;;  %v3572_v36 = vadd.f32 %v7594_v6, %v3570_v61  ;;  %4219 = vpow2.f32 %v3461_v34  ;;  %v7612_v50 = vmul.f32 0.17677669, %v3627_v62  ;;  %v3635_v10 = vmax.f32 %v3633_v17, %v7598_v52 }
 0x246   : > { %v3567_v58 = vadd.f32 %v7600_v55, %v7590_v23  ;;  %v7614_v18 = vpop.eup %4207  ;;  %v3646_v4 = vsub.f32 %v7551_v20, %v3638_v2  ;;  %v3367_v39 = vmul.f32 %v7441_v38, %v7603_v53  ;;  %v3453_v49 = vmul.f32 1.442695, %v3451_v1 }
 0x247   : > { %4221 = vrcp.f32 %v3572_v36  ;;  %v3371_v41 = vmul.f32 %v7472_v44, %v7603_v53  ;;  %v3459_v16 = vmul.f32 1.442695, %v3457_v0  ;;  %v3652_v30 = vsub.f32 %v7565_v63, %v3638_v2 }
 0x248   : > { %v3569_v29 = vadd.f32 %v7614_v18, %v3567_v58  ;;  %v4210_v27 = vpop.eup %4209  ;;  %4223 = vpow2.f32 %v3441_v40  ;;  %v3643_v51 = vmul.f32 1.442695, %v3640_v12  ;;  %v3658_v20 = vsub.f32 %v7573_v28, %v3638_v2  ;;  %v8253_v28 = vld [vmem:[#allocation23_spill] sm:$0xff] }
 0x249   : > { %4225 = vpow2.f32 %v3447_v13  ;;  %v3637_v38 = vmax.f32 %v3635_v10, %v7612_v50  ;;  %v3649_v59 = vmul.f32 1.442695, %v3646_v4  ;;  %v3369_v21 = vmul.f32 %v8252_v3, %v3367_v39  ;;  %v7671_v10 = vld [vmem:[%s5626_s30] sm:$0xff]  ;;  %v8254_v39 = vld [vmem:[#allocation32_spill] sm:$0xff] }
 0x24a   : > { %4227 = vpow2.f32 %v3453_v49  ;;  %v3655_v19 = vmul.f32 1.442695, %v3652_v30  ;;  %v3379_v8 = vmul.f32 %v3371_v41, %v8253_v28  ;;  %v3661_v31 = vmul.f32 1.442695, %v3658_v20 }
 0x24b   : > { %v7624_v47 = vpop.eup %4211  ;;  %4229 = vpow2.f32 %v3459_v16  ;;  %v3639_v56 = vsub.f32 %v3607_v35, %v3637_v38  ;;  %v3645_v45 = vsub.f32 %v7586_v25, %v3637_v38  ;;  %v3364_v14 = vmul.f32 %v4210_v27, %v7579_v60 }
 0x24c   : > { %v7628_v22 = vpop.eup %4213  ;;  %4231 = vpow2.f32 %v3643_v51  ;;  %v3383_v54 = vmul.f32 %v7480_v43, %v7603_v53  ;;  %v3651_v61 = vsub.f32 %v7598_v52, %v3637_v38  ;;  %v3381_v46 = vadd.f32 %v3379_v8, %v3369_v21  ;;  %v7656_v52 = vld [vmem:[%s5626_s30 + $0x18] sm:$0xff]  ;;  %v7684_v51 = vld [vmem:[%s5626_s30 + $0x8] sm:$0xff] }
 0x24d   : > { %v7630_v24 = vpop.eup %4215  ;;  %v3571_v44 = vadd.f32 %v7628_v22, %v3569_v29  ;;  %4233 = vpow2.f32 %v3649_v59  ;;  %v3641_v2 = vmul.f32 1.442695, %v3639_v56  ;;  %v3647_v57 = vmul.f32 1.442695, %v3645_v45 }
 0x24e   : > { %v3464_v63 = vadd.f32 %v7630_v24, %v7624_v47  ;;  %v7636_v42 = vpop.eup %4217  ;;  %v3657_v35 = vsub.f32 %v7612_v50, %v3637_v38  ;;  %v3366_v36 = vmul.f32 %v7505_v48, %v3364_v14  ;;  %v3370_v43 = vmul.f32 %v7516_v9, %v3364_v14 }
 0x24f   : > { %v7642_v7 = vpop.eup %4219  ;;  %4235 = vrcp.f32 %v3571_v44  ;;  %v3385_v17 = vmul.f32 %v7656_v52, %v3383_v54  ;;  %v3653_v58 = vmul.f32 1.442695, %v3651_v61  ;;  %v7660_v40 = vrot.slane %v7656_v52, 4 }
 0x250   : > { %v3466_v11 = vadd.f32 %v7636_v42, %v3464_v63  ;;  %4237 = vpow2.f32 %v3655_v19  ;;  %v3389_v0 = vmul.f32 %v7496_v33, %v7603_v53  ;;  %v3659_v12 = vmul.f32 1.442695, %v3657_v35 }
 0x251   : > { %v4222_v25 = vpop.eup %4221  ;;  %4239 = vpow2.f32 %v3661_v31  ;;  %v3387_v13 = vadd.f32 %v3385_v17, %v3381_v46  ;;  %v3368_v4 = vmul.f32 %v7671_v10, %v3366_v36  ;;  %v3378_v29 = vmul.f32 %v3370_v43, %v8254_v39 }
 0x252   : > { %v3468_v34 = vadd.f32 %v7642_v7, %v3466_v11  ;;  %v7649_v62 = vpop.eup %4223  ;;  %v3578_v49 = vmul.f32 %v4222_v25, %v7579_v60  ;;  %v3397_v41 = vmul.f32 %v7660_v40, %v3389_v0  ;;  %v3382_v16 = vmul.f32 %v7530_v32, %v3364_v14 }
 0x253   : > { %v7653_v1 = vpop.eup %4225  ;;  %v7687_v20 = vrot.slane %v7684_v51, 4  ;;  %v3380_v44 = vadd.f32 %v3378_v29, %v3368_v4  ;;  %v3388_v63 = vmul.f32 %v7541_v37, %v3364_v14 }
 0x254   : > { %4241 = vrcp.f32 %v3468_v34  ;;  %v3463_v48 = vadd.f32 %v7653_v1, %v7649_v62  ;;  %v7666_v9 = vpop.eup %4227  ;;  %v3399_v21 = vadd.f32 %v3397_v41, %v3387_v13  ;;  %v3580_v32 = vmul.f32 %v7570_v15, %v3578_v49  ;;  %v7711_v34 = vld [vmem:[%s5626_s30 + $0x10] sm:$0xff] }
 0x255   : > { %4243 = vpow2.f32 %v3641_v2  ;;  %v7668_v50 = vpop.eup %4229  ;;  %v3584_v56 = vmul.f32 %v7575_v26, %v3578_v49  ;;  %v3384_v45 = vmul.f32 %v7684_v51, %v3382_v16  ;;  %v3396_v26 = vmul.f32 %v7687_v20, %v3388_v63 }
 0x256   : > { %4245 = vpow2.f32 %v3647_v57  ;;  %v3465_v33 = vadd.f32 %v7666_v9, %v3463_v48  ;;  %v7677_v53 = vpop.eup %4231  ;;  %v3698_v15 = vsel %vm2288_vm0, %v3399_v21, 0.0  ;;  %v3582_v57 = vmul.f32 %v7711_v34, %v3580_v32 }
 0x257   : > { %4247 = vpow2.f32 %v3653_v58  ;;  %v7679_v27 = vpop.eup %4233  ;;  %v3386_v61 = vadd.f32 %v3384_v45, %v3380_v44  ;;  %v3586_v25 = vmul.f32 %v3584_v56, %v8253_v28  ;;  %v3590_v43 = vmul.f32 %v7583_v5, %v3578_v49 }
 0x258   : > { %v3467_v38 = vadd.f32 %v7668_v50, %v3465_v33  ;;  %v3664_v59 = vadd.f32 %v7679_v27, %v7677_v53  ;;  %4249 = vpow2.f32 %v3659_v12  ;;  %v3700_v33 = vsel %vm2297_vm1, %v3698_v15, 0.0 }
 0x259   : > { %v4236_v30 = vpop.eup %4235  ;;  %v3398_v12 = vadd.f32 %v3396_v26, %v3386_v61  ;;  %v3592_v41 = vmul.f32 %v7656_v52, %v3590_v43  ;;  %v3702_v32 = vsel %vm2306_vm2, %v3700_v33, 0.0 }
 0x25a   : > { %v7692_v3 = vpop.eup %4237  ;;  %4251 = vrcp.f32 %v3467_v38  ;;  %v3577_v11 = vmul.f32 %v4236_v30, %v7579_v60 }
 0x25b   : > { %v7696_v19 = vpop.eup %4239  ;;  %v3666_v8 = vadd.f32 %v7692_v3, %v3664_v59  ;;  %v3697_v44 = vsel %vm2288_vm0, %v3398_v12, 0.0 }
 0x25c   : > { %v3579_v17 = vmul.f32 %v7590_v23, %v3577_v11  ;;  %v3583_v48 = vmul.f32 %v7600_v55, %v3577_v11  ;;  %v3588_v23 = vadd.f32 %v3586_v25, %v3582_v57  ;;  %v3596_v55 = vmul.f32 %v7594_v6, %v3578_v49 }
 0x25d   : > { %v3668_v37 = vadd.f32 %v7696_v19, %v3666_v8  ;;  %v3589_v6 = vmul.f32 %v7614_v18, %v3577_v11 }
 0x25e   : > { %v4242_v31 = vpop.eup %4241  ;;  %v3585_v38 = vmul.f32 %v3583_v48, %v8254_v39  ;;  %v3594_v56 = vadd.f32 %v3592_v41, %v3588_v23 }
 0x25f   : > { %v7702_v54 = vpop.eup %4243  ;;  %v3474_v2 = vmul.f32 %v4242_v31, %v7579_v60  ;;  %4253 = vrcp.f32 %v3668_v37  ;;  %v3598_v37 = vmul.f32 %v3596_v55, %v7660_v40 }
 0x260   : > { %v7706_v14 = vpop.eup %4245 }
 0x261   : > { %v3476_v46 = vmul.f32 %v7624_v47, %v3474_v2  ;;  %v3480_v35 = vmul.f32 %v7630_v24, %v3474_v2  ;;  %v3486_v36 = vmul.f32 %v7636_v42, %v3474_v2  ;;  %v3663_v58 = vadd.f32 %v7706_v14, %v7702_v54  ;;  %v7722_v0 = vpop.eup %4247 }
 0x262   : > { %v3492_v24 = vmul.f32 %v7642_v7, %v3474_v2  ;;  %v7729_v5 = vpop.eup %4249  ;;  %v3581_v7 = vmul.f32 %v7671_v10, %v3579_v17  ;;  %v3699_v2 = vsel %vm2297_vm1, %v3697_v44, 0.0  ;;  %v3727_v17 = vld [vmem:[%s6914_s6 + $0x10] sm:$0xff] }
 0x263   : > { %v3478_v13 = vmul.f32 %v3476_v46, %v8253_v28  ;;  %v3482_v47 = vmul.f32 %v7711_v34, %v3480_v35  ;;  %v3665_v42 = vadd.f32 %v7722_v0, %v3663_v58  ;;  %v3488_v29 = vmul.f32 %v3486_v36, %v7660_v40 }
 0x264   : > { %v4252_v30 = vpop.eup %4251  ;;  %v3494_v21 = vmul.f32 %v7656_v52, %v3492_v24  ;;  %v3587_v15 = vadd.f32 %v3585_v38, %v3581_v7  ;;  %v3591_v36 = vmul.f32 %v7684_v51, %v3589_v6 }
 0x265   : > { %v3484_v4 = vadd.f32 %v3482_v47, %v3478_v13  ;;  %v3667_v16 = vadd.f32 %v7729_v5, %v3665_v42  ;;  %v3473_v63 = vmul.f32 %v4252_v30, %v7579_v60 }
 0x267   : > { %v3490_v59 = vadd.f32 %v3488_v29, %v3484_v4  ;;  %4255 = vrcp.f32 %v3667_v16  ;;  %v3475_v49 = vmul.f32 %v7649_v62, %v3473_v63  ;;  %v3479_v31 = vmul.f32 %v7653_v1, %v3473_v63 }
 0x268   : > { %v3485_v45 = vmul.f32 %v7666_v9, %v3473_v63  ;;  %v3491_v62 = vmul.f32 %v7668_v50, %v3473_v63  ;;  %v3600_v1 = vadd.f32 %v3598_v37, %v3594_v56  ;;  %v3595_v9 = vmul.f32 %v7628_v22, %v3577_v11 }
 0x269   : > { %v3496_v8 = vadd.f32 %v3494_v21, %v3490_v59  ;;  %v4254_v26 = vpop.eup %4253  ;;  %v3477_v25 = vmul.f32 %v3475_v49, %v8254_v39  ;;  %v3481_v18 = vmul.f32 %v7671_v10, %v3479_v31  ;;  %v3593_v11 = vadd.f32 %v3591_v36, %v3587_v15  ;;  %v3728_v15 = vld [vmem:[%s6914_s6 + $0x18] sm:$0xff] }
 0x26a   : > { %v3674_v35 = vmul.f32 %v4254_v26, %v7579_v60  ;;  %v3487_v48 = vmul.f32 %v3485_v45, %v7687_v20  ;;  %v3493_v12 = vmul.f32 %v7684_v51, %v3491_v62  ;;  %v3712_v23 = vsel %vm2288_vm0, %v3600_v1, 0.0  ;;  %v3726_v62 = vld [vmem:[%s6914_s6 + $0x8] sm:$0xff] }
 0x26b   : > { %v3704_v61 = vsel %vm3225_vm4, %v3702_v32, %v3496_v8  ;;  %v3483_v58 = vadd.f32 %v3481_v18, %v3477_v25  ;;  %v3714_v16 = vsel %vm2297_vm1, %v3712_v23, 0.0  ;;  %v3725_v32 = vld [vmem:[%s6914_s6] sm:$0xff] }
 0x26c   : > { %v3706_v57 = vsel %vm3230_vm6, %v3704_v61, 0.0  ;;  %v3676_v47 = vmul.f32 %v7677_v53, %v3674_v35  ;;  %v3680_v50 = vmul.f32 %v7679_v27, %v3674_v35  ;;  %v3686_v22 = vmul.f32 %v7692_v3, %v3674_v35 }
 0x26d   : > { %v3708_v46 = vsel %vm3235_vm7, %v3706_v57, 0.0  ;;  %v3489_v24 = vadd.f32 %v3487_v48, %v3483_v58  ;;  %v3692_v42 = vmul.f32 %v7696_v19, %v3674_v35  ;;  %v3597_v53 = vmul.f32 %v3595_v9, %v7687_v20 }
 0x26e   : > { %v3710_v43 = vsel %vm3240_vm8, %v3708_v46, 0.0  ;;  %v3678_v4 = vmul.f32 %v3676_v47, %v8253_v28  ;;  %v3682_v29 = vmul.f32 %v7711_v34, %v3680_v50  ;;  %v3701_v3 = vsel %vm2306_vm2, %v3699_v2, 0.0 }
 0x26f   : > { %v3731_v13 = vadd.f32 %v3727_v17, %v3710_v43  ;;  %v3495_v27 = vadd.f32 %v3493_v12, %v3489_v24  ;;  %v3688_v55 = vmul.f32 %v3686_v22, %v7660_v40  ;;  %v3599_v30 = vadd.f32 %v3597_v53, %v3593_v11 }
 0x270   : > { %v3684_v41 = vadd.f32 %v3682_v29, %v3678_v4  ;;  %v3694_v28 = vmul.f32 %v7656_v52, %v3692_v42 }
 0x271   : > { %3735 = vst.msk [vmem:[%s6914_s6 + $0x10] sm:$0xff] %vm2331_vm5, %v3731_v13  ;;  %v4256_v33 = vpop.eup %4255  ;;  %v3703_v7 = vsel %vm3225_vm4, %v3701_v3, %v3495_v27  ;;  %v3711_v6 = vsel %vm2288_vm0, %v3599_v30, 0.0 }
 0x272   : > { %v3673_v19 = vmul.f32 %v4256_v33, %v7579_v60  ;;  %v3705_v34 = vsel %vm3230_vm6, %v3703_v7, 0.0  ;;  %v3690_v38 = vadd.f32 %v3688_v55, %v3684_v41 }
 0x273   : > { %v3707_v44 = vsel %vm3235_vm7, %v3705_v34, 0.0 }
 0x274   : > { %v3675_v59 = vmul.f32 %v7702_v54, %v3673_v19  ;;  %v3679_v21 = vmul.f32 %v7706_v14, %v3673_v19  ;;  %v3685_v40 = vmul.f32 %v7722_v0, %v3673_v19  ;;  %v3691_v60 = vmul.f32 %v7729_v5, %v3673_v19 }
 0x275   : > { %v3709_v63 = vsel %vm3240_vm8, %v3707_v44, 0.0  ;;  %v3696_v56 = vadd.f32 %v3694_v28, %v3690_v38  ;;  %v3716_v54 = vsel %vm2306_vm2, %v3714_v16, 0.0 }
 0x276   : > { %v3677_v52 = vmul.f32 %v3675_v59, %v8254_v39  ;;  %v3681_v8 = vmul.f32 %v7671_v10, %v3679_v21  ;;  %v3729_v14 = vadd.f32 %v3725_v32, %v3709_v63  ;;  %v3687_v5 = vmul.f32 %v3685_v40, %v7687_v20 }
 0x277   : > { %v3718_v49 = vsel %vm3225_vm4, %v3716_v54, %v3696_v56  ;;  %v3713_v39 = vsel %vm2297_vm1, %v3711_v6, 0.0  ;;  %v3693_v2 = vmul.f32 %v7684_v51, %v3691_v60 }
 0x278   : > { %v3683_v0 = vadd.f32 %v3681_v8, %v3677_v52  ;;  %3733 = vst.msk [vmem:[%s6914_s6] sm:$0xff] %vm2331_vm5, %v3729_v14  ;;  %v3720_v31 = vsel %vm3230_vm6, %v3718_v49, 0.0  ;;  %v3715_v20 = vsel %vm2306_vm2, %v3713_v39, 0.0 }
 0x279   : > { %v3722_v10 = vsel %vm3235_vm7, %v3720_v31, 0.0 }
 0x27a   : > { %v3689_v45 = vadd.f32 %v3687_v5, %v3683_v0  ;;  %v3724_v37 = vsel %vm3240_vm8, %v3722_v10, 0.0 }
 0x27b   : > { %v3732_v61 = vadd.f32 %v3728_v15, %v3724_v37 }
 0x27c   : > { %v3695_v26 = vadd.f32 %v3693_v2, %v3689_v45 }
 0x27d   : > { %3736 = vst.msk [vmem:[%s6914_s6 + $0x18] sm:$0xff] %vm2331_vm5, %v3732_v61 }
 0x27e   : > { %v3717_v57 = vsel %vm3225_vm4, %v3715_v20, %v3695_v26 }
 0x27f   : > { %v3719_v25 = vsel %vm3230_vm6, %v3717_v57, 0.0 }
 0x280   : > { %v3721_v51 = vsel %vm3235_vm7, %v3719_v25, 0.0 }
 0x281   : > { %v3723_v18 = vsel %vm3240_vm8, %v3721_v51, 0.0 }
 0x282   : > { %v3730_v1 = vadd.f32 %v3726_v62, %v3723_v18 }
 0x284   : > { %3734 = vst.msk [vmem:[%s6914_s6 + $0x8] sm:$0xff] %vm2331_vm5, %v3730_v1 }
 0x285   : > { %4376 = shalt.err (!%p4373_p1)
}
 0x286   : > { %s4377_s23 = scalar_lea.hbm %s7812_s12, 512  ;;  %s4381_s24 = scalar_lea.hbm %s7868_s4, 2048 }
 0x287   : > { %p4378_p0 = scmp.ne.s32.totalorder %s7812_s12, %s4377_s23  ;;  %p4382_p9 = scmp.lt.u32.totalorder %s7812_s12, %s7868_s4 }
 0x288   : > { %p4383_p6 = scmp.lt.u32.totalorder %s4381_s24, %s4377_s23  ;;  %p4385_p2 = scmp.lt.u32.totalorder %s4377_s23, %s7812_s12 }
 0x289   : > { %p4379_p8 = pnand %p4378_p0, %p8255_p10 }
 0x28a   : > { %p4384_p5 = por %p4383_p6, %p4382_p9 }
 0x28b   : > { %p4380_p7 = pneg %p4379_p8 }
 0x28c   : > { %p4386_p11 = por %p4385_p2, %p4384_p5 }
 0x28e   : > { %p4387_p12 = pnand %p4386_p11, %p4380_p7 }
 0x290   : > { %4390 = shalt.err (!%p4387_p12)
}
 0x291   : > { %s4461_s30 = smov 128   ;;  %s4462_s10 = smov 8  }
 0x292   : > { %3933 = dma.vmem_to_hbm [thread:$0]  (%p8255_p10), %s7814_s16, 512, %s7812_s12, %s3738_s28, %s4461_s30, %s4461_s30, %s4462_s10  }
 0x293 PF: > { %p3950_p3 = scmp.ge.s32.totalorder %s4451_s0, 2  ;;  %s3769_s29 = sand.u32 1, %s4431_s25  }
 0x294   : > { %p8256_p4 = scmp.ne.s32.totalorder %s7980_s13, 0  ;;  %s3770_s6 = scalar_lea.sflag [#allocation6], %s3769_s29 }
 0x296   : > { %p3946_p13 = pnand %p3950_p3, %p8256_p4 }
 0x298   : > { %4426 = dma.done.wait (!%p3946_p13), %s3770_s6, 512  }
 0x299   : > { %4428 = vsyncadd (!%p3946_p13), %s3770_s6, 4294966784  ;;  %s27_s0 = sadd.s32 1, %s4451_s0   ;;  %s8257_s18 = sld [smem:[#allocation17_spill]] }
 0x29a   : > { %p24_p1 = scmp.ge.s32.totalorder %s27_s0, 6   ;;  %s8258_s28 = sld [smem:[#allocation15_spill]] }
 0x29b   : > { %s8259_s29 = sld [smem:[#allocation16_spill]]  ;;  %s8260_s25 = smov %s4435_s26 }
 0x29c   : > { %s8261_s26 = smov %s4439_s27  ;;  %26 = sbr.rel (!%p24_p1) target bundleno = 20 (0x14), region = 101 }
 0x29f   : > { %s8262_s27 = smov %s8257_s18 }
 0x2a3   :  { %3775 = vsyncpa [#allocation5], 1 }
 0x2a4   :  { %3777 = vsyncpa [#allocation5 + $0x1], 1 }
 0x2a5   :  { %3778 = vsyncpa [#allocation8], 1 }
 0x2a6   :  { %3780 = vsyncpa [#allocation8 + $0x1], 1 }
 0x2a7   :  { %3781 = vsyncpa [#allocation6], 1 }
 0x2a8   :  { %3783 = vsyncpa [#allocation6 + $0x1], 1 }

</bundles_post_ra>
